<compile_context>
chip_gen: v7x
topology: tpu7x:2x2x1
jax: 0.10.0
libtpu: 0.0.40
codegen_flags: <defaults>
</compile_context>

<pallas_src>
import functools

import numpy as np
import jax
import jax.numpy as jnp
from jax import lax
from jax.experimental import pallas as pl
from jax.experimental.pallas import tpu as pltpu


# ------------------------------ Pallas kernel -------------------------------

def digit_kernel(x_ref, w1_ref, b1_ref, w2_ref, b2_ref,
                 fc1w_ref, fc1b_ref, fc2w_ref, fc2b_ref,
                 o_ref, pooled_ref):
    """Whole Digit forward pass for one batch tile.

      x_ref     : (28, TB, 28)    input, (h, b, w) layout
      w1_ref    : (168, 480)      conv1 scattered weights, cols = (phase, j, c_out)
      b1_ref    : (1, 480)
      w2_ref    : (360, 200)      conv2 scattered weights, cols = (ow, c_out)
      b2_ref    : (1, 200)
      fc1w_ref  : (10, 200, 500)  fc1 weights with rows permuted to (oh, ow, c)
      fc1b_ref  : (1, 500)
      fc2w_ref  : (500, 10)
      fc2b_ref  : (1, 10)
      o_ref     : (TB, 10)        log-probs
      pooled_ref: (12, TB, 120)   VMEM scratch, pooled conv1 output, lane = (j, c)
    """
    tb = o_ref.shape[0]

    # ---- conv1 (1->10, 5x5) + bias + ReLU + maxpool(2,2) ----
    w1 = w1_ref[...]
    b1 = b1_ref[...]
    for i in range(12):  # pooled output row
        # input rows 2i .. 2i+5 placed side by side on lanes -> (TB, 168)
        lhs = jnp.concatenate([x_ref[2 * i + k] for k in range(6)], axis=-1)
        h = jnp.dot(lhs, w1, preferred_element_type=jnp.float32) + b1      # (TB, 480)
        h = jnp.maximum(h, 0.0)
        # max over the 4 pooling phases (ReLU is monotone, so this equals
        # PyTorch's relu-then-maxpool)
        m = jnp.maximum(jnp.maximum(h[:, 0:120], h[:, 120:240]),
                        jnp.maximum(h[:, 240:360], h[:, 360:480]))         # (TB, 120)
        pooled_ref[i] = m

    # ---- conv2 (10->20, 3x3) + bias + ReLU, accumulated straight into fc1 ----
    w2 = w2_ref[...]
    b2 = b2_ref[...]
    acc = jnp.zeros((tb, 500), jnp.float32)
    for oh in range(10):  # conv2 output row
        lhs2 = jnp.concatenate([pooled_ref[oh + k] for k in range(3)], axis=-1)  # (TB, 360)
        slab = jnp.dot(lhs2, w2, preferred_element_type=jnp.float32) + b2        # (TB, 200)
        slab = jnp.maximum(slab, 0.0)
        acc = acc + jnp.dot(slab, fc1w_ref[oh], preferred_element_type=jnp.float32)

    # ---- fc1 bias + ReLU, fc2, log_softmax ----
    h1 = jnp.maximum(acc + fc1b_ref[...], 0.0)                                    # (TB, 500)
    logits = jnp.dot(h1, fc2w_ref[...], preferred_element_type=jnp.float32) + fc2b_ref[...]
    zmax = jnp.max(logits, axis=-1, keepdims=True)
    z = logits - zmax
    lse = jnp.log(jnp.sum(jnp.exp(z), axis=-1, keepdims=True))
    o_ref[...] = z - lse


# -------------------------------- Wrapper ------------------------------------

def digit_forward(kp, x):
    """Pallas implementation of Digit.forward.  x: (N, 1, 28, 28) float32."""
    N = x.shape[0]
    xT = jnp.transpose(x[:, 0], (1, 0, 2)).astype(jnp.float32)   # (28, N, 28)

    if N <= 256:
        TB, Np = N, N
    else:
        TB = 128
        Np = ((N + TB - 1) // TB) * TB
        xT = jnp.pad(xT, ((0, 0), (0, Np - N), (0, 0)))

    out = pl.pallas_call(
        digit_kernel,
        grid=(Np // TB,),
        in_specs=[
            pl.BlockSpec((28, TB, 28), lambda i: (0, i, 0)),
            pl.BlockSpec((168, 480), lambda i: (0, 0)),
            pl.BlockSpec((1, 480), lambda i: (0, 0)),
            pl.BlockSpec((360, 200), lambda i: (0, 0)),
            pl.BlockSpec((1, 200), lambda i: (0, 0)),
            pl.BlockSpec((10, 200, 500), lambda i: (0, 0, 0)),
            pl.BlockSpec((1, 500), lambda i: (0, 0)),
            pl.BlockSpec((500, 10), lambda i: (0, 0)),
            pl.BlockSpec((1, 10), lambda i: (0, 0)),
        ],
        out_specs=pl.BlockSpec((TB, 10), lambda i: (i, 0)),
        out_shape=jax.ShapeDtypeStruct((Np, 10), jnp.float32),
        scratch_shapes=[pltpu.VMEM((12, TB, 120), jnp.float32)],
        compiler_params=pltpu.CompilerParams(
            dimension_semantics=("parallel",),
            vmem_limit_bytes=32 * 1024 * 1024,
        ),
    )(xT, kp["w1t"], kp["b1t"], kp["w2t"], kp["b2t"],
      kp["fc1w"], kp["fc1b"], kp["fc2w"], kp["fc2b"])
    return out if Np == N else out[:N]


# --------------------------- Params & host repacking -------------------------

def init_params(key):
    def uniform(k, shape, fan_in):
        bound = 1.0 / float(fan_in) ** 0.5
        return jax.random.uniform(k, shape, jnp.float32, -bound, bound)

    ks = jax.random.split(key, 8)
    return dict(
        w1=uniform(ks[0], (10, 1, 5, 5), 25),
        b1=uniform(ks[1], (10,), 25),
        w2=uniform(ks[2], (20, 10, 3, 3), 90),
        b2=uniform(ks[3], (20,), 90),
        fc1w=uniform(ks[4], (500, 2000), 2000),
        fc1b=uniform(ks[5], (500,), 2000),
        fc2w=uniform(ks[6], (10, 500), 500),
        fc2b=uniform(ks[7], (10,), 500),
    )


def build_kernel_params(raw):
    """One-time host-side repacking of PyTorch-layout weights into the
    scattered / permuted matrices consumed by the fused kernel."""
    w1 = np.asarray(raw["w1"], np.float32)       # (10, 1, 5, 5)
    b1 = np.asarray(raw["b1"], np.float32)
    w2 = np.asarray(raw["w2"], np.float32)       # (20, 10, 3, 3)
    b2 = np.asarray(raw["b2"], np.float32)
    fc1w = np.asarray(raw["fc1w"], np.float32)   # (500, 2000)
    fc1b = np.asarray(raw["fc1b"], np.float32)
    fc2w = np.asarray(raw["fc2w"], np.float32)   # (10, 500)
    fc2b = np.asarray(raw["fc2b"], np.float32)

    # conv1: all 4 pooling phases in one (168, 480) matrix.
    #   lhs lane = kh'*28 + w_in   (6 input rows starting at 2*i, 28 cols each)
    #   out lane = phase*120 + j*10 + c_out,   phase = 2*r + c
    w1t = np.zeros((6 * 28, 4 * 120), np.float32)
    for r in range(2):
        for c in range(2):
            p = 2 * r + c
            for j in range(12):
                for co in range(10):
                    col = p * 120 + j * 10 + co
                    for kh in range(5):
                        for kw in range(5):
                            w1t[(r + kh) * 28 + (c + 2 * j + kw), col] = w1[co, 0, kh, kw]
    b1t = np.tile(b1, 48)[None, :]               # (1, 480)

    # conv2: (360, 200); lhs lane = kh*120 + w*10 + c_in, out lane = ow*20 + c_out
    w2t = np.zeros((3 * 120, 10 * 20), np.float32)
    for ow in range(10):
        for co in range(20):
            col = ow * 20 + co
            for kh in range(3):
                for kw in range(3):
                    for cin in range(10):
                        w2t[kh * 120 + (ow + kw) * 10 + cin, col] = w2[co, cin, kh, kw]
    b2t = np.tile(b2, 10)[None, :]               # (1, 200)

    # fc1: permute input rows from torch flatten order (c, oh, ow) to the
    # kernel's (oh, ow, c) slab order -> (10, 200, 500)
    fc1wp = fc1w.reshape(500, 20, 10, 10).transpose(2, 3, 1, 0).reshape(10, 200, 500)

    return dict(
        w1t=jnp.asarray(w1t), b1t=jnp.asarray(b1t),
        w2t=jnp.asarray(w2t), b2t=jnp.asarray(b2t),
        fc1w=jnp.asarray(np.ascontiguousarray(fc1wp)),
        fc1b=jnp.asarray(fc1b[None, :]),
        fc2w=jnp.asarray(np.ascontiguousarray(fc2w.T)),
        fc2b=jnp.asarray(fc2b[None, :]),
    )


# ------------------------------ Pure-JAX reference ---------------------------

def reference_forward(raw, x):
    """Pure-JAX reference matching the PyTorch forward pass."""
    prec = lax.Precision.HIGHEST
    h = lax.conv_general_dilated(x, raw["w1"], (1, 1), "VALID",
                                 dimension_numbers=("NCHW", "OIHW", "NCHW"),
                                 precision=prec)
    h = h + raw["b1"][None, :, None, None]
    h = jnp.maximum(h, 0.0)
    h = lax.reduce_window(h, -jnp.inf, lax.max, (1, 1, 2, 2), (1, 1, 2, 2), "VALID")
    h = lax.conv_general_dilated(h, raw["w2"], (1, 1), "VALID",
                                 dimension_numbers=("NCHW", "OIHW", "NCHW"),
                                 precision=prec)
    h = h + raw["b2"][None, :, None, None]
    h = jnp.maximum(h, 0.0)
    h = h.reshape(x.shape[0], -1)
    h = jnp.maximum(jnp.dot(h, raw["fc1w"].T, precision=prec) + raw["fc1b"], 0.0)
    logits = jnp.dot(h, raw["fc2w"].T, precision=prec) + raw["fc2b"]
    return jax.nn.log_softmax(logits, axis=1)


# ---------------------------------- Main --------------------------------------

if __name__ == "__main__":
    key = jax.random.PRNGKey(0)
    pkey, xkey = jax.random.split(key)
    raw = init_params(pkey)
    kparams = build_kernel_params(raw)

    # 28x28 spatial size is forced by fc1 (20 * 10 * 10 features); batch = 2.
    x = jax.random.normal(xkey, (2, 1, 28, 28), jnp.float32)

    fwd = jax.jit(functools.partial(digit_forward, kparams))
    out = jax.block_until_ready(fwd(x))

    assert out.shape == (2, 10) and out.dtype == jnp.float32
    ref = reference_forward(raw, x)
    err = float(jnp.max(jnp.abs(out - ref)))
    if err > 2e-3:
        raise AssertionError(f"Pallas output mismatch vs reference, max abs err = {err}")

    print("KERNEL_OK")
</pallas_src>

<mosaic_0001>
module attributes {stable_mosaic.version = 11 : i64} {
  func.func @digit_kernel(%arg0: i32, %arg1: memref<28x2x28xf32, #tpu.memory_space<vmem>>, %arg2: memref<168x480xf32, #tpu.memory_space<vmem>>, %arg3: memref<1x480xf32, #tpu.memory_space<vmem>>, %arg4: memref<360x200xf32, #tpu.memory_space<vmem>>, %arg5: memref<1x200xf32, #tpu.memory_space<vmem>>, %arg6: memref<10x200x500xf32, #tpu.memory_space<vmem>>, %arg7: memref<1x500xf32, #tpu.memory_space<vmem>>, %arg8: memref<500x10xf32, #tpu.memory_space<vmem>>, %arg9: memref<1x10xf32, #tpu.memory_space<vmem>>, %arg10: memref<2x10xf32, #tpu.memory_space<vmem>>, %arg11: memref<12x2x120xf32, #tpu.memory_space<vmem>>) attributes {dimension_semantics = [#tpu.dimension_semantics<parallel>], iteration_bounds = array<i64: 1>, scalar_prefetch = 0 : i64, scratch_operands = 1 : i64, tpu.core_type = #tpu.core_type<tc>, window_params = [{transform_indices = @transform_0, window_bounds = array<i64: 28, 2, 28>}, {pipeline_mode = #tpu.pipeline_mode<synchronous>, transform_indices = @transform_1, window_bounds = array<i64: 168, 480>}, {pipeline_mode = #tpu.pipeline_mode<synchronous>, transform_indices = @transform_2, window_bounds = array<i64: 1, 480>}, {pipeline_mode = #tpu.pipeline_mode<synchronous>, transform_indices = @transform_3, window_bounds = array<i64: 360, 200>}, {pipeline_mode = #tpu.pipeline_mode<synchronous>, transform_indices = @transform_4, window_bounds = array<i64: 1, 200>}, {pipeline_mode = #tpu.pipeline_mode<synchronous>, transform_indices = @transform_5, window_bounds = array<i64: 10, 200, 500>}, {pipeline_mode = #tpu.pipeline_mode<synchronous>, transform_indices = @transform_6, window_bounds = array<i64: 1, 500>}, {pipeline_mode = #tpu.pipeline_mode<synchronous>, transform_indices = @transform_7, window_bounds = array<i64: 500, 10>}, {pipeline_mode = #tpu.pipeline_mode<synchronous>, transform_indices = @transform_8, window_bounds = array<i64: 1, 10>}, {transform_indices = @transform_9, window_bounds = array<i64: 2, 10>}]} {
    %c0 = arith.constant 0 : index
    %c0_0 = arith.constant 0 : index
    %0 = vector.load %arg2[%c0, %c0_0] : memref<168x480xf32, #tpu.memory_space<vmem>>, vector<168x480xf32>
    %c0_1 = arith.constant 0 : index
    %c0_2 = arith.constant 0 : index
    %1 = vector.load %arg3[%c0_1, %c0_2] : memref<1x480xf32, #tpu.memory_space<vmem>>, vector<1x480xf32>
    %c0_3 = arith.constant 0 : index
    %c0_4 = arith.constant 0 : index
    %c0_5 = arith.constant 0 : index
    %2 = vector.load %arg1[%c0_3, %c0_4, %c0_5] : memref<28x2x28xf32, #tpu.memory_space<vmem>>, vector<1x2x28xf32>
    %3 = vector.shape_cast %2 : vector<1x2x28xf32> to vector<2x28xf32>
    %c1 = arith.constant 1 : index
    %c0_6 = arith.constant 0 : index
    %c0_7 = arith.constant 0 : index
    %4 = vector.load %arg1[%c1, %c0_6, %c0_7] : memref<28x2x28xf32, #tpu.memory_space<vmem>>, vector<1x2x28xf32>
    %5 = vector.shape_cast %4 : vector<1x2x28xf32> to vector<2x28xf32>
    %c2 = arith.constant 2 : index
    %c0_8 = arith.constant 0 : index
    %c0_9 = arith.constant 0 : index
    %6 = vector.load %arg1[%c2, %c0_8, %c0_9] : memref<28x2x28xf32, #tpu.memory_space<vmem>>, vector<1x2x28xf32>
    %7 = vector.shape_cast %6 : vector<1x2x28xf32> to vector<2x28xf32>
    %c3 = arith.constant 3 : index
    %c0_10 = arith.constant 0 : index
    %c0_11 = arith.constant 0 : index
    %8 = vector.load %arg1[%c3, %c0_10, %c0_11] : memref<28x2x28xf32, #tpu.memory_space<vmem>>, vector<1x2x28xf32>
    %9 = vector.shape_cast %8 : vector<1x2x28xf32> to vector<2x28xf32>
    %c4 = arith.constant 4 : index
    %c0_12 = arith.constant 0 : index
    %c0_13 = arith.constant 0 : index
    %10 = vector.load %arg1[%c4, %c0_12, %c0_13] : memref<28x2x28xf32, #tpu.memory_space<vmem>>, vector<1x2x28xf32>
    %11 = vector.shape_cast %10 : vector<1x2x28xf32> to vector<2x28xf32>
    %c5 = arith.constant 5 : index
    %c0_14 = arith.constant 0 : index
    %c0_15 = arith.constant 0 : index
    %12 = vector.load %arg1[%c5, %c0_14, %c0_15] : memref<28x2x28xf32, #tpu.memory_space<vmem>>, vector<1x2x28xf32>
    %13 = vector.shape_cast %12 : vector<1x2x28xf32> to vector<2x28xf32>
    %14 = tpu.concatenate %3, %5, %7, %9, %11, %13 in 1 : vector<2x28xf32>, vector<2x28xf32>, vector<2x28xf32>, vector<2x28xf32>, vector<2x28xf32>, vector<2x28xf32> -> vector<2x168xf32>
    %cst = arith.constant dense<0.000000e+00> : vector<2x480xf32>
    %15 = tpu.matmul %14, %0, %cst {dimension_numbers = #tpu.dot_dimension_numbers<[1], [0], [0], [1], [0, 0, 1, 1], [], []>} : vector<2x168xf32>, vector<168x480xf32>, vector<2x480xf32> -> vector<2x480xf32>
    %16 = vector.broadcast %1 : vector<1x480xf32> to vector<2x480xf32>
    %17 = arith.addf %15, %16 : vector<2x480xf32>
    %cst_16 = arith.constant 0.000000e+00 : f32
    %18 = vector.broadcast %cst_16 : f32 to vector<2x480xf32>
    %19 = arith.maximumf %17, %18 : vector<2x480xf32>
    %20 = vector.extract_strided_slice %19 {offsets = [0, 0], sizes = [2, 120], strides = [1, 1]} : vector<2x480xf32> to vector<2x120xf32>
    %21 = vector.extract_strided_slice %19 {offsets = [0, 120], sizes = [2, 120], strides = [1, 1]} : vector<2x480xf32> to vector<2x120xf32>
    %22 = arith.maximumf %20, %21 : vector<2x120xf32>
    %23 = vector.extract_strided_slice %19 {offsets = [0, 240], sizes = [2, 120], strides = [1, 1]} : vector<2x480xf32> to vector<2x120xf32>
    %24 = vector.extract_strided_slice %19 {offsets = [0, 360], sizes = [2, 120], strides = [1, 1]} : vector<2x480xf32> to vector<2x120xf32>
    %25 = arith.maximumf %23, %24 : vector<2x120xf32>
    %26 = arith.maximumf %22, %25 : vector<2x120xf32>
    %c0_17 = arith.constant 0 : index
    %c0_18 = arith.constant 0 : index
    %c0_19 = arith.constant 0 : index
    %27 = vector.load %arg11[%c0_17, %c0_18, %c0_19] : memref<12x2x120xf32, #tpu.memory_space<vmem>>, vector<1x2x120xf32>
    %28 = vector.shape_cast %27 : vector<1x2x120xf32> to vector<2x120xf32>
    %29 = vector.shape_cast %26 : vector<2x120xf32> to vector<1x2x120xf32>
    tpu.vector_store %arg11[%c0_17, %c0_18, %c0_19], %29 {strides = array<i32>} : memref<12x2x120xf32, #tpu.memory_space<vmem>>, vector<1x2x120xf32>,
    %c2_20 = arith.constant 2 : index
    %c0_21 = arith.constant 0 : index
    %c0_22 = arith.constant 0 : index
    %30 = vector.load %arg1[%c2_20, %c0_21, %c0_22] : memref<28x2x28xf32, #tpu.memory_space<vmem>>, vector<1x2x28xf32>
    %31 = vector.shape_cast %30 : vector<1x2x28xf32> to vector<2x28xf32>
    %c3_23 = arith.constant 3 : index
    %c0_24 = arith.constant 0 : index
    %c0_25 = arith.constant 0 : index
    %32 = vector.load %arg1[%c3_23, %c0_24, %c0_25] : memref<28x2x28xf32, #tpu.memory_space<vmem>>, vector<1x2x28xf32>
    %33 = vector.shape_cast %32 : vector<1x2x28xf32> to vector<2x28xf32>
    %c4_26 = arith.constant 4 : index
    %c0_27 = arith.constant 0 : index
    %c0_28 = arith.constant 0 : index
    %34 = vector.load %arg1[%c4_26, %c0_27, %c0_28] : memref<28x2x28xf32, #tpu.memory_space<vmem>>, vector<1x2x28xf32>
    %35 = vector.shape_cast %34 : vector<1x2x28xf32> to vector<2x28xf32>
    %c5_29 = arith.constant 5 : index
    %c0_30 = arith.constant 0 : index
    %c0_31 = arith.constant 0 : index
    %36 = vector.load %arg1[%c5_29, %c0_30, %c0_31] : memref<28x2x28xf32, #tpu.memory_space<vmem>>, vector<1x2x28xf32>
    %37 = vector.shape_cast %36 : vector<1x2x28xf32> to vector<2x28xf32>
    %c6 = arith.constant 6 : index
    %c0_32 = arith.constant 0 : index
    %c0_33 = arith.constant 0 : index
    %38 = vector.load %arg1[%c6, %c0_32, %c0_33] : memref<28x2x28xf32, #tpu.memory_space<vmem>>, vector<1x2x28xf32>
    %39 = vector.shape_cast %38 : vector<1x2x28xf32> to vector<2x28xf32>
    %c7 = arith.constant 7 : index
    %c0_34 = arith.constant 0 : index
    %c0_35 = arith.constant 0 : index
    %40 = vector.load %arg1[%c7, %c0_34, %c0_35] : memref<28x2x28xf32, #tpu.memory_space<vmem>>, vector<1x2x28xf32>
    %41 = vector.shape_cast %40 : vector<1x2x28xf32> to vector<2x28xf32>
    %42 = tpu.concatenate %31, %33, %35, %37, %39, %41 in 1 : vector<2x28xf32>, vector<2x28xf32>, vector<2x28xf32>, vector<2x28xf32>, vector<2x28xf32>, vector<2x28xf32> -> vector<2x168xf32>
    %cst_36 = arith.constant dense<0.000000e+00> : vector<2x480xf32>
    %43 = tpu.matmul %42, %0, %cst_36 {dimension_numbers = #tpu.dot_dimension_numbers<[1], [0], [0], [1], [0, 0, 1, 1], [], []>} : vector<2x168xf32>, vector<168x480xf32>, vector<2x480xf32> -> vector<2x480xf32>
    %44 = vector.broadcast %1 : vector<1x480xf32> to vector<2x480xf32>
    %45 = arith.addf %43, %44 : vector<2x480xf32>
    %cst_37 = arith.constant 0.000000e+00 : f32
    %46 = vector.broadcast %cst_37 : f32 to vector<2x480xf32>
    %47 = arith.maximumf %45, %46 : vector<2x480xf32>
    %48 = vector.extract_strided_slice %47 {offsets = [0, 0], sizes = [2, 120], strides = [1, 1]} : vector<2x480xf32> to vector<2x120xf32>
    %49 = vector.extract_strided_slice %47 {offsets = [0, 120], sizes = [2, 120], strides = [1, 1]} : vector<2x480xf32> to vector<2x120xf32>
    %50 = arith.maximumf %48, %49 : vector<2x120xf32>
    %51 = vector.extract_strided_slice %47 {offsets = [0, 240], sizes = [2, 120], strides = [1, 1]} : vector<2x480xf32> to vector<2x120xf32>
    %52 = vector.extract_strided_slice %47 {offsets = [0, 360], sizes = [2, 120], strides = [1, 1]} : vector<2x480xf32> to vector<2x120xf32>
    %53 = arith.maximumf %51, %52 : vector<2x120xf32>
    %54 = arith.maximumf %50, %53 : vector<2x120xf32>
    %c1_38 = arith.constant 1 : index
    %c0_39 = arith.constant 0 : index
    %c0_40 = arith.constant 0 : index
    %55 = vector.load %arg11[%c1_38, %c0_39, %c0_40] : memref<12x2x120xf32, #tpu.memory_space<vmem>>, vector<1x2x120xf32>
    %56 = vector.shape_cast %55 : vector<1x2x120xf32> to vector<2x120xf32>
    %57 = vector.shape_cast %54 : vector<2x120xf32> to vector<1x2x120xf32>
    tpu.vector_store %arg11[%c1_38, %c0_39, %c0_40], %57 {strides = array<i32>} : memref<12x2x120xf32, #tpu.memory_space<vmem>>, vector<1x2x120xf32>,
    %c4_41 = arith.constant 4 : index
    %c0_42 = arith.constant 0 : index
    %c0_43 = arith.constant 0 : index
    %58 = vector.load %arg1[%c4_41, %c0_42, %c0_43] : memref<28x2x28xf32, #tpu.memory_space<vmem>>, vector<1x2x28xf32>
    %59 = vector.shape_cast %58 : vector<1x2x28xf32> to vector<2x28xf32>
    %c5_44 = arith.constant 5 : index
    %c0_45 = arith.constant 0 : index
    %c0_46 = arith.constant 0 : index
    %60 = vector.load %arg1[%c5_44, %c0_45, %c0_46] : memref<28x2x28xf32, #tpu.memory_space<vmem>>, vector<1x2x28xf32>
    %61 = vector.shape_cast %60 : vector<1x2x28xf32> to vector<2x28xf32>
    %c6_47 = arith.constant 6 : index
    %c0_48 = arith.constant 0 : index
    %c0_49 = arith.constant 0 : index
    %62 = vector.load %arg1[%c6_47, %c0_48, %c0_49] : memref<28x2x28xf32, #tpu.memory_space<vmem>>, vector<1x2x28xf32>
    %63 = vector.shape_cast %62 : vector<1x2x28xf32> to vector<2x28xf32>
    %c7_50 = arith.constant 7 : index
    %c0_51 = arith.constant 0 : index
    %c0_52 = arith.constant 0 : index
    %64 = vector.load %arg1[%c7_50, %c0_51, %c0_52] : memref<28x2x28xf32, #tpu.memory_space<vmem>>, vector<1x2x28xf32>
    %65 = vector.shape_cast %64 : vector<1x2x28xf32> to vector<2x28xf32>
    %c8 = arith.constant 8 : index
    %c0_53 = arith.constant 0 : index
    %c0_54 = arith.constant 0 : index
    %66 = vector.load %arg1[%c8, %c0_53, %c0_54] : memref<28x2x28xf32, #tpu.memory_space<vmem>>, vector<1x2x28xf32>
    %67 = vector.shape_cast %66 : vector<1x2x28xf32> to vector<2x28xf32>
    %c9 = arith.constant 9 : index
    %c0_55 = arith.constant 0 : index
    %c0_56 = arith.constant 0 : index
    %68 = vector.load %arg1[%c9, %c0_55, %c0_56] : memref<28x2x28xf32, #tpu.memory_space<vmem>>, vector<1x2x28xf32>
    %69 = vector.shape_cast %68 : vector<1x2x28xf32> to vector<2x28xf32>
    %70 = tpu.concatenate %59, %61, %63, %65, %67, %69 in 1 : vector<2x28xf32>, vector<2x28xf32>, vector<2x28xf32>, vector<2x28xf32>, vector<2x28xf32>, vector<2x28xf32> -> vector<2x168xf32>
    %cst_57 = arith.constant dense<0.000000e+00> : vector<2x480xf32>
    %71 = tpu.matmul %70, %0, %cst_57 {dimension_numbers = #tpu.dot_dimension_numbers<[1], [0], [0], [1], [0, 0, 1, 1], [], []>} : vector<2x168xf32>, vector<168x480xf32>, vector<2x480xf32> -> vector<2x480xf32>
    %72 = vector.broadcast %1 : vector<1x480xf32> to vector<2x480xf32>
    %73 = arith.addf %71, %72 : vector<2x480xf32>
    %cst_58 = arith.constant 0.000000e+00 : f32
    %74 = vector.broadcast %cst_58 : f32 to vector<2x480xf32>
    %75 = arith.maximumf %73, %74 : vector<2x480xf32>
    %76 = vector.extract_strided_slice %75 {offsets = [0, 0], sizes = [2, 120], strides = [1, 1]} : vector<2x480xf32> to vector<2x120xf32>
    %77 = vector.extract_strided_slice %75 {offsets = [0, 120], sizes = [2, 120], strides = [1, 1]} : vector<2x480xf32> to vector<2x120xf32>
    %78 = arith.maximumf %76, %77 : vector<2x120xf32>
    %79 = vector.extract_strided_slice %75 {offsets = [0, 240], sizes = [2, 120], strides = [1, 1]} : vector<2x480xf32> to vector<2x120xf32>
    %80 = vector.extract_strided_slice %75 {offsets = [0, 360], sizes = [2, 120], strides = [1, 1]} : vector<2x480xf32> to vector<2x120xf32>
    %81 = arith.maximumf %79, %80 : vector<2x120xf32>
    %82 = arith.maximumf %78, %81 : vector<2x120xf32>
    %c2_59 = arith.constant 2 : index
    %c0_60 = arith.constant 0 : index
    %c0_61 = arith.constant 0 : index
    %83 = vector.load %arg11[%c2_59, %c0_60, %c0_61] : memref<12x2x120xf32, #tpu.memory_space<vmem>>, vector<1x2x120xf32>
    %84 = vector.shape_cast %83 : vector<1x2x120xf32> to vector<2x120xf32>
    %85 = vector.shape_cast %82 : vector<2x120xf32> to vector<1x2x120xf32>
    tpu.vector_store %arg11[%c2_59, %c0_60, %c0_61], %85 {strides = array<i32>} : memref<12x2x120xf32, #tpu.memory_space<vmem>>, vector<1x2x120xf32>,
    %c6_62 = arith.constant 6 : index
    %c0_63 = arith.constant 0 : index
    %c0_64 = arith.constant 0 : index
    %86 = vector.load %arg1[%c6_62, %c0_63, %c0_64] : memref<28x2x28xf32, #tpu.memory_space<vmem>>, vector<1x2x28xf32>
    %87 = vector.shape_cast %86 : vector<1x2x28xf32> to vector<2x28xf32>
    %c7_65 = arith.constant 7 : index
    %c0_66 = arith.constant 0 : index
    %c0_67 = arith.constant 0 : index
    %88 = vector.load %arg1[%c7_65, %c0_66, %c0_67] : memref<28x2x28xf32, #tpu.memory_space<vmem>>, vector<1x2x28xf32>
    %89 = vector.shape_cast %88 : vector<1x2x28xf32> to vector<2x28xf32>
    %c8_68 = arith.constant 8 : index
    %c0_69 = arith.constant 0 : index
    %c0_70 = arith.constant 0 : index
    %90 = vector.load %arg1[%c8_68, %c0_69, %c0_70] : memref<28x2x28xf32, #tpu.memory_space<vmem>>, vector<1x2x28xf32>
    %91 = vector.shape_cast %90 : vector<1x2x28xf32> to vector<2x28xf32>
    %c9_71 = arith.constant 9 : index
    %c0_72 = arith.constant 0 : index
    %c0_73 = arith.constant 0 : index
    %92 = vector.load %arg1[%c9_71, %c0_72, %c0_73] : memref<28x2x28xf32, #tpu.memory_space<vmem>>, vector<1x2x28xf32>
    %93 = vector.shape_cast %92 : vector<1x2x28xf32> to vector<2x28xf32>
    %c10 = arith.constant 10 : index
    %c0_74 = arith.constant 0 : index
    %c0_75 = arith.constant 0 : index
    %94 = vector.load %arg1[%c10, %c0_74, %c0_75] : memref<28x2x28xf32, #tpu.memory_space<vmem>>, vector<1x2x28xf32>
    %95 = vector.shape_cast %94 : vector<1x2x28xf32> to vector<2x28xf32>
    %c11 = arith.constant 11 : index
    %c0_76 = arith.constant 0 : index
    %c0_77 = arith.constant 0 : index
    %96 = vector.load %arg1[%c11, %c0_76, %c0_77] : memref<28x2x28xf32, #tpu.memory_space<vmem>>, vector<1x2x28xf32>
    %97 = vector.shape_cast %96 : vector<1x2x28xf32> to vector<2x28xf32>
    %98 = tpu.concatenate %87, %89, %91, %93, %95, %97 in 1 : vector<2x28xf32>, vector<2x28xf32>, vector<2x28xf32>, vector<2x28xf32>, vector<2x28xf32>, vector<2x28xf32> -> vector<2x168xf32>
    %cst_78 = arith.constant dense<0.000000e+00> : vector<2x480xf32>
    %99 = tpu.matmul %98, %0, %cst_78 {dimension_numbers = #tpu.dot_dimension_numbers<[1], [0], [0], [1], [0, 0, 1, 1], [], []>} : vector<2x168xf32>, vector<168x480xf32>, vector<2x480xf32> -> vector<2x480xf32>
    %100 = vector.broadcast %1 : vector<1x480xf32> to vector<2x480xf32>
    %101 = arith.addf %99, %100 : vector<2x480xf32>
    %cst_79 = arith.constant 0.000000e+00 : f32
    %102 = vector.broadcast %cst_79 : f32 to vector<2x480xf32>
    %103 = arith.maximumf %101, %102 : vector<2x480xf32>
    %104 = vector.extract_strided_slice %103 {offsets = [0, 0], sizes = [2, 120], strides = [1, 1]} : vector<2x480xf32> to vector<2x120xf32>
    %105 = vector.extract_strided_slice %103 {offsets = [0, 120], sizes = [2, 120], strides = [1, 1]} : vector<2x480xf32> to vector<2x120xf32>
    %106 = arith.maximumf %104, %105 : vector<2x120xf32>
    %107 = vector.extract_strided_slice %103 {offsets = [0, 240], sizes = [2, 120], strides = [1, 1]} : vector<2x480xf32> to vector<2x120xf32>
    %108 = vector.extract_strided_slice %103 {offsets = [0, 360], sizes = [2, 120], strides = [1, 1]} : vector<2x480xf32> to vector<2x120xf32>
    %109 = arith.maximumf %107, %108 : vector<2x120xf32>
    %110 = arith.maximumf %106, %109 : vector<2x120xf32>
    %c3_80 = arith.constant 3 : index
    %c0_81 = arith.constant 0 : index
    %c0_82 = arith.constant 0 : index
    %111 = vector.load %arg11[%c3_80, %c0_81, %c0_82] : memref<12x2x120xf32, #tpu.memory_space<vmem>>, vector<1x2x120xf32>
    %112 = vector.shape_cast %111 : vector<1x2x120xf32> to vector<2x120xf32>
    %113 = vector.shape_cast %110 : vector<2x120xf32> to vector<1x2x120xf32>
    tpu.vector_store %arg11[%c3_80, %c0_81, %c0_82], %113 {strides = array<i32>} : memref<12x2x120xf32, #tpu.memory_space<vmem>>, vector<1x2x120xf32>,
    %c8_83 = arith.constant 8 : index
    %c0_84 = arith.constant 0 : index
    %c0_85 = arith.constant 0 : index
    %114 = vector.load %arg1[%c8_83, %c0_84, %c0_85] : memref<28x2x28xf32, #tpu.memory_space<vmem>>, vector<1x2x28xf32>
    %115 = vector.shape_cast %114 : vector<1x2x28xf32> to vector<2x28xf32>
    %c9_86 = arith.constant 9 : index
    %c0_87 = arith.constant 0 : index
    %c0_88 = arith.constant 0 : index
    %116 = vector.load %arg1[%c9_86, %c0_87, %c0_88] : memref<28x2x28xf32, #tpu.memory_space<vmem>>, vector<1x2x28xf32>
    %117 = vector.shape_cast %116 : vector<1x2x28xf32> to vector<2x28xf32>
    %c10_89 = arith.constant 10 : index
    %c0_90 = arith.constant 0 : index
    %c0_91 = arith.constant 0 : index
    %118 = vector.load %arg1[%c10_89, %c0_90, %c0_91] : memref<28x2x28xf32, #tpu.memory_space<vmem>>, vector<1x2x28xf32>
    %119 = vector.shape_cast %118 : vector<1x2x28xf32> to vector<2x28xf32>
    %c11_92 = arith.constant 11 : index
    %c0_93 = arith.constant 0 : index
    %c0_94 = arith.constant 0 : index
    %120 = vector.load %arg1[%c11_92, %c0_93, %c0_94] : memref<28x2x28xf32, #tpu.memory_space<vmem>>, vector<1x2x28xf32>
    %121 = vector.shape_cast %120 : vector<1x2x28xf32> to vector<2x28xf32>
    %c12 = arith.constant 12 : index
    %c0_95 = arith.constant 0 : index
    %c0_96 = arith.constant 0 : index
    %122 = vector.load %arg1[%c12, %c0_95, %c0_96] : memref<28x2x28xf32, #tpu.memory_space<vmem>>, vector<1x2x28xf32>
    %123 = vector.shape_cast %122 : vector<1x2x28xf32> to vector<2x28xf32>
    %c13 = arith.constant 13 : index
    %c0_97 = arith.constant 0 : index
    %c0_98 = arith.constant 0 : index
    %124 = vector.load %arg1[%c13, %c0_97, %c0_98] : memref<28x2x28xf32, #tpu.memory_space<vmem>>, vector<1x2x28xf32>
    %125 = vector.shape_cast %124 : vector<1x2x28xf32> to vector<2x28xf32>
    %126 = tpu.concatenate %115, %117, %119, %121, %123, %125 in 1 : vector<2x28xf32>, vector<2x28xf32>, vector<2x28xf32>, vector<2x28xf32>, vector<2x28xf32>, vector<2x28xf32> -> vector<2x168xf32>
    %cst_99 = arith.constant dense<0.000000e+00> : vector<2x480xf32>
    %127 = tpu.matmul %126, %0, %cst_99 {dimension_numbers = #tpu.dot_dimension_numbers<[1], [0], [0], [1], [0, 0, 1, 1], [], []>} : vector<2x168xf32>, vector<168x480xf32>, vector<2x480xf32> -> vector<2x480xf32>
    %128 = vector.broadcast %1 : vector<1x480xf32> to vector<2x480xf32>
    %129 = arith.addf %127, %128 : vector<2x480xf32>
    %cst_100 = arith.constant 0.000000e+00 : f32
    %130 = vector.broadcast %cst_100 : f32 to vector<2x480xf32>
    %131 = arith.maximumf %129, %130 : vector<2x480xf32>
    %132 = vector.extract_strided_slice %131 {offsets = [0, 0], sizes = [2, 120], strides = [1, 1]} : vector<2x480xf32> to vector<2x120xf32>
    %133 = vector.extract_strided_slice %131 {offsets = [0, 120], sizes = [2, 120], strides = [1, 1]} : vector<2x480xf32> to vector<2x120xf32>
    %134 = arith.maximumf %132, %133 : vector<2x120xf32>
    %135 = vector.extract_strided_slice %131 {offsets = [0, 240], sizes = [2, 120], strides = [1, 1]} : vector<2x480xf32> to vector<2x120xf32>
    %136 = vector.extract_strided_slice %131 {offsets = [0, 360], sizes = [2, 120], strides = [1, 1]} : vector<2x480xf32> to vector<2x120xf32>
    %137 = arith.maximumf %135, %136 : vector<2x120xf32>
    %138 = arith.maximumf %134, %137 : vector<2x120xf32>
    %c4_101 = arith.constant 4 : index
    %c0_102 = arith.constant 0 : index
    %c0_103 = arith.constant 0 : index
    %139 = vector.load %arg11[%c4_101, %c0_102, %c0_103] : memref<12x2x120xf32, #tpu.memory_space<vmem>>, vector<1x2x120xf32>
    %140 = vector.shape_cast %139 : vector<1x2x120xf32> to vector<2x120xf32>
    %141 = vector.shape_cast %138 : vector<2x120xf32> to vector<1x2x120xf32>
    tpu.vector_store %arg11[%c4_101, %c0_102, %c0_103], %141 {strides = array<i32>} : memref<12x2x120xf32, #tpu.memory_space<vmem>>, vector<1x2x120xf32>,
    %c10_104 = arith.constant 10 : index
    %c0_105 = arith.constant 0 : index
    %c0_106 = arith.constant 0 : index
    %142 = vector.load %arg1[%c10_104, %c0_105, %c0_106] : memref<28x2x28xf32, #tpu.memory_space<vmem>>, vector<1x2x28xf32>
    %143 = vector.shape_cast %142 : vector<1x2x28xf32> to vector<2x28xf32>
    %c11_107 = arith.constant 11 : index
    %c0_108 = arith.constant 0 : index
    %c0_109 = arith.constant 0 : index
    %144 = vector.load %arg1[%c11_107, %c0_108, %c0_109] : memref<28x2x28xf32, #tpu.memory_space<vmem>>, vector<1x2x28xf32>
    %145 = vector.shape_cast %144 : vector<1x2x28xf32> to vector<2x28xf32>
    %c12_110 = arith.constant 12 : index
    %c0_111 = arith.constant 0 : index
    %c0_112 = arith.constant 0 : index
    %146 = vector.load %arg1[%c12_110, %c0_111, %c0_112] : memref<28x2x28xf32, #tpu.memory_space<vmem>>, vector<1x2x28xf32>
    %147 = vector.shape_cast %146 : vector<1x2x28xf32> to vector<2x28xf32>
    %c13_113 = arith.constant 13 : index
    %c0_114 = arith.constant 0 : index
    %c0_115 = arith.constant 0 : index
    %148 = vector.load %arg1[%c13_113, %c0_114, %c0_115] : memref<28x2x28xf32, #tpu.memory_space<vmem>>, vector<1x2x28xf32>
    %149 = vector.shape_cast %148 : vector<1x2x28xf32> to vector<2x28xf32>
    %c14 = arith.constant 14 : index
    %c0_116 = arith.constant 0 : index
    %c0_117 = arith.constant 0 : index
    %150 = vector.load %arg1[%c14, %c0_116, %c0_117] : memref<28x2x28xf32, #tpu.memory_space<vmem>>, vector<1x2x28xf32>
    %151 = vector.shape_cast %150 : vector<1x2x28xf32> to vector<2x28xf32>
    %c15 = arith.constant 15 : index
    %c0_118 = arith.constant 0 : index
    %c0_119 = arith.constant 0 : index
    %152 = vector.load %arg1[%c15, %c0_118, %c0_119] : memref<28x2x28xf32, #tpu.memory_space<vmem>>, vector<1x2x28xf32>
    %153 = vector.shape_cast %152 : vector<1x2x28xf32> to vector<2x28xf32>
    %154 = tpu.concatenate %143, %145, %147, %149, %151, %153 in 1 : vector<2x28xf32>, vector<2x28xf32>, vector<2x28xf32>, vector<2x28xf32>, vector<2x28xf32>, vector<2x28xf32> -> vector<2x168xf32>
    %cst_120 = arith.constant dense<0.000000e+00> : vector<2x480xf32>
    %155 = tpu.matmul %154, %0, %cst_120 {dimension_numbers = #tpu.dot_dimension_numbers<[1], [0], [0], [1], [0, 0, 1, 1], [], []>} : vector<2x168xf32>, vector<168x480xf32>, vector<2x480xf32> -> vector<2x480xf32>
    %156 = vector.broadcast %1 : vector<1x480xf32> to vector<2x480xf32>
    %157 = arith.addf %155, %156 : vector<2x480xf32>
    %cst_121 = arith.constant 0.000000e+00 : f32
    %158 = vector.broadcast %cst_121 : f32 to vector<2x480xf32>
    %159 = arith.maximumf %157, %158 : vector<2x480xf32>
    %160 = vector.extract_strided_slice %159 {offsets = [0, 0], sizes = [2, 120], strides = [1, 1]} : vector<2x480xf32> to vector<2x120xf32>
    %161 = vector.extract_strided_slice %159 {offsets = [0, 120], sizes = [2, 120], strides = [1, 1]} : vector<2x480xf32> to vector<2x120xf32>
    %162 = arith.maximumf %160, %161 : vector<2x120xf32>
    %163 = vector.extract_strided_slice %159 {offsets = [0, 240], sizes = [2, 120], strides = [1, 1]} : vector<2x480xf32> to vector<2x120xf32>
    %164 = vector.extract_strided_slice %159 {offsets = [0, 360], sizes = [2, 120], strides = [1, 1]} : vector<2x480xf32> to vector<2x120xf32>
    %165 = arith.maximumf %163, %164 : vector<2x120xf32>
    %166 = arith.maximumf %162, %165 : vector<2x120xf32>
    %c5_122 = arith.constant 5 : index
    %c0_123 = arith.constant 0 : index
    %c0_124 = arith.constant 0 : index
    %167 = vector.load %arg11[%c5_122, %c0_123, %c0_124] : memref<12x2x120xf32, #tpu.memory_space<vmem>>, vector<1x2x120xf32>
    %168 = vector.shape_cast %167 : vector<1x2x120xf32> to vector<2x120xf32>
    %169 = vector.shape_cast %166 : vector<2x120xf32> to vector<1x2x120xf32>
    tpu.vector_store %arg11[%c5_122, %c0_123, %c0_124], %169 {strides = array<i32>} : memref<12x2x120xf32, #tpu.memory_space<vmem>>, vector<1x2x120xf32>,
    %c12_125 = arith.constant 12 : index
    %c0_126 = arith.constant 0 : index
    %c0_127 = arith.constant 0 : index
    %170 = vector.load %arg1[%c12_125, %c0_126, %c0_127] : memref<28x2x28xf32, #tpu.memory_space<vmem>>, vector<1x2x28xf32>
    %171 = vector.shape_cast %170 : vector<1x2x28xf32> to vector<2x28xf32>
    %c13_128 = arith.constant 13 : index
    %c0_129 = arith.constant 0 : index
    %c0_130 = arith.constant 0 : index
    %172 = vector.load %arg1[%c13_128, %c0_129, %c0_130] : memref<28x2x28xf32, #tpu.memory_space<vmem>>, vector<1x2x28xf32>
    %173 = vector.shape_cast %172 : vector<1x2x28xf32> to vector<2x28xf32>
    %c14_131 = arith.constant 14 : index
    %c0_132 = arith.constant 0 : index
    %c0_133 = arith.constant 0 : index
    %174 = vector.load %arg1[%c14_131, %c0_132, %c0_133] : memref<28x2x28xf32, #tpu.memory_space<vmem>>, vector<1x2x28xf32>
    %175 = vector.shape_cast %174 : vector<1x2x28xf32> to vector<2x28xf32>
    %c15_134 = arith.constant 15 : index
    %c0_135 = arith.constant 0 : index
    %c0_136 = arith.constant 0 : index
    %176 = vector.load %arg1[%c15_134, %c0_135, %c0_136] : memref<28x2x28xf32, #tpu.memory_space<vmem>>, vector<1x2x28xf32>
    %177 = vector.shape_cast %176 : vector<1x2x28xf32> to vector<2x28xf32>
    %c16 = arith.constant 16 : index
    %c0_137 = arith.constant 0 : index
    %c0_138 = arith.constant 0 : index
    %178 = vector.load %arg1[%c16, %c0_137, %c0_138] : memref<28x2x28xf32, #tpu.memory_space<vmem>>, vector<1x2x28xf32>
    %179 = vector.shape_cast %178 : vector<1x2x28xf32> to vector<2x28xf32>
    %c17 = arith.constant 17 : index
    %c0_139 = arith.constant 0 : index
    %c0_140 = arith.constant 0 : index
    %180 = vector.load %arg1[%c17, %c0_139, %c0_140] : memref<28x2x28xf32, #tpu.memory_space<vmem>>, vector<1x2x28xf32>
    %181 = vector.shape_cast %180 : vector<1x2x28xf32> to vector<2x28xf32>
    %182 = tpu.concatenate %171, %173, %175, %177, %179, %181 in 1 : vector<2x28xf32>, vector<2x28xf32>, vector<2x28xf32>, vector<2x28xf32>, vector<2x28xf32>, vector<2x28xf32> -> vector<2x168xf32>
    %cst_141 = arith.constant dense<0.000000e+00> : vector<2x480xf32>
    %183 = tpu.matmul %182, %0, %cst_141 {dimension_numbers = #tpu.dot_dimension_numbers<[1], [0], [0], [1], [0, 0, 1, 1], [], []>} : vector<2x168xf32>, vector<168x480xf32>, vector<2x480xf32> -> vector<2x480xf32>
    %184 = vector.broadcast %1 : vector<1x480xf32> to vector<2x480xf32>
    %185 = arith.addf %183, %184 : vector<2x480xf32>
    %cst_142 = arith.constant 0.000000e+00 : f32
    %186 = vector.broadcast %cst_142 : f32 to vector<2x480xf32>
    %187 = arith.maximumf %185, %186 : vector<2x480xf32>
    %188 = vector.extract_strided_slice %187 {offsets = [0, 0], sizes = [2, 120], strides = [1, 1]} : vector<2x480xf32> to vector<2x120xf32>
    %189 = vector.extract_strided_slice %187 {offsets = [0, 120], sizes = [2, 120], strides = [1, 1]} : vector<2x480xf32> to vector<2x120xf32>
    %190 = arith.maximumf %188, %189 : vector<2x120xf32>
    %191 = vector.extract_strided_slice %187 {offsets = [0, 240], sizes = [2, 120], strides = [1, 1]} : vector<2x480xf32> to vector<2x120xf32>
    %192 = vector.extract_strided_slice %187 {offsets = [0, 360], sizes = [2, 120], strides = [1, 1]} : vector<2x480xf32> to vector<2x120xf32>
    %193 = arith.maximumf %191, %192 : vector<2x120xf32>
    %194 = arith.maximumf %190, %193 : vector<2x120xf32>
    %c6_143 = arith.constant 6 : index
    %c0_144 = arith.constant 0 : index
    %c0_145 = arith.constant 0 : index
    %195 = vector.load %arg11[%c6_143, %c0_144, %c0_145] : memref<12x2x120xf32, #tpu.memory_space<vmem>>, vector<1x2x120xf32>
    %196 = vector.shape_cast %195 : vector<1x2x120xf32> to vector<2x120xf32>
    %197 = vector.shape_cast %194 : vector<2x120xf32> to vector<1x2x120xf32>
    tpu.vector_store %arg11[%c6_143, %c0_144, %c0_145], %197 {strides = array<i32>} : memref<12x2x120xf32, #tpu.memory_space<vmem>>, vector<1x2x120xf32>,
    %c14_146 = arith.constant 14 : index
    %c0_147 = arith.constant 0 : index
    %c0_148 = arith.constant 0 : index
    %198 = vector.load %arg1[%c14_146, %c0_147, %c0_148] : memref<28x2x28xf32, #tpu.memory_space<vmem>>, vector<1x2x28xf32>
    %199 = vector.shape_cast %198 : vector<1x2x28xf32> to vector<2x28xf32>
    %c15_149 = arith.constant 15 : index
    %c0_150 = arith.constant 0 : index
    %c0_151 = arith.constant 0 : index
    %200 = vector.load %arg1[%c15_149, %c0_150, %c0_151] : memref<28x2x28xf32, #tpu.memory_space<vmem>>, vector<1x2x28xf32>
    %201 = vector.shape_cast %200 : vector<1x2x28xf32> to vector<2x28xf32>
    %c16_152 = arith.constant 16 : index
    %c0_153 = arith.constant 0 : index
    %c0_154 = arith.constant 0 : index
    %202 = vector.load %arg1[%c16_152, %c0_153, %c0_154] : memref<28x2x28xf32, #tpu.memory_space<vmem>>, vector<1x2x28xf32>
    %203 = vector.shape_cast %202 : vector<1x2x28xf32> to vector<2x28xf32>
    %c17_155 = arith.constant 17 : index
    %c0_156 = arith.constant 0 : index
    %c0_157 = arith.constant 0 : index
    %204 = vector.load %arg1[%c17_155, %c0_156, %c0_157] : memref<28x2x28xf32, #tpu.memory_space<vmem>>, vector<1x2x28xf32>
    %205 = vector.shape_cast %204 : vector<1x2x28xf32> to vector<2x28xf32>
    %c18 = arith.constant 18 : index
    %c0_158 = arith.constant 0 : index
    %c0_159 = arith.constant 0 : index
    %206 = vector.load %arg1[%c18, %c0_158, %c0_159] : memref<28x2x28xf32, #tpu.memory_space<vmem>>, vector<1x2x28xf32>
    %207 = vector.shape_cast %206 : vector<1x2x28xf32> to vector<2x28xf32>
    %c19 = arith.constant 19 : index
    %c0_160 = arith.constant 0 : index
    %c0_161 = arith.constant 0 : index
    %208 = vector.load %arg1[%c19, %c0_160, %c0_161] : memref<28x2x28xf32, #tpu.memory_space<vmem>>, vector<1x2x28xf32>
    %209 = vector.shape_cast %208 : vector<1x2x28xf32> to vector<2x28xf32>
    %210 = tpu.concatenate %199, %201, %203, %205, %207, %209 in 1 : vector<2x28xf32>, vector<2x28xf32>, vector<2x28xf32>, vector<2x28xf32>, vector<2x28xf32>, vector<2x28xf32> -> vector<2x168xf32>
    %cst_162 = arith.constant dense<0.000000e+00> : vector<2x480xf32>
    %211 = tpu.matmul %210, %0, %cst_162 {dimension_numbers = #tpu.dot_dimension_numbers<[1], [0], [0], [1], [0, 0, 1, 1], [], []>} : vector<2x168xf32>, vector<168x480xf32>, vector<2x480xf32> -> vector<2x480xf32>
    %212 = vector.broadcast %1 : vector<1x480xf32> to vector<2x480xf32>
    %213 = arith.addf %211, %212 : vector<2x480xf32>
    %cst_163 = arith.constant 0.000000e+00 : f32
    %214 = vector.broadcast %cst_163 : f32 to vector<2x480xf32>
    %215 = arith.maximumf %213, %214 : vector<2x480xf32>
    %216 = vector.extract_strided_slice %215 {offsets = [0, 0], sizes = [2, 120], strides = [1, 1]} : vector<2x480xf32> to vector<2x120xf32>
    %217 = vector.extract_strided_slice %215 {offsets = [0, 120], sizes = [2, 120], strides = [1, 1]} : vector<2x480xf32> to vector<2x120xf32>
    %218 = arith.maximumf %216, %217 : vector<2x120xf32>
    %219 = vector.extract_strided_slice %215 {offsets = [0, 240], sizes = [2, 120], strides = [1, 1]} : vector<2x480xf32> to vector<2x120xf32>
    %220 = vector.extract_strided_slice %215 {offsets = [0, 360], sizes = [2, 120], strides = [1, 1]} : vector<2x480xf32> to vector<2x120xf32>
    %221 = arith.maximumf %219, %220 : vector<2x120xf32>
    %222 = arith.maximumf %218, %221 : vector<2x120xf32>
    %c7_164 = arith.constant 7 : index
    %c0_165 = arith.constant 0 : index
    %c0_166 = arith.constant 0 : index
    %223 = vector.load %arg11[%c7_164, %c0_165, %c0_166] : memref<12x2x120xf32, #tpu.memory_space<vmem>>, vector<1x2x120xf32>
    %224 = vector.shape_cast %223 : vector<1x2x120xf32> to vector<2x120xf32>
    %225 = vector.shape_cast %222 : vector<2x120xf32> to vector<1x2x120xf32>
    tpu.vector_store %arg11[%c7_164, %c0_165, %c0_166], %225 {strides = array<i32>} : memref<12x2x120xf32, #tpu.memory_space<vmem>>, vector<1x2x120xf32>,
    %c16_167 = arith.constant 16 : index
    %c0_168 = arith.constant 0 : index
    %c0_169 = arith.constant 0 : index
    %226 = vector.load %arg1[%c16_167, %c0_168, %c0_169] : memref<28x2x28xf32, #tpu.memory_space<vmem>>, vector<1x2x28xf32>
    %227 = vector.shape_cast %226 : vector<1x2x28xf32> to vector<2x28xf32>
    %c17_170 = arith.constant 17 : index
    %c0_171 = arith.constant 0 : index
    %c0_172 = arith.constant 0 : index
    %228 = vector.load %arg1[%c17_170, %c0_171, %c0_172] : memref<28x2x28xf32, #tpu.memory_space<vmem>>, vector<1x2x28xf32>
    %229 = vector.shape_cast %228 : vector<1x2x28xf32> to vector<2x28xf32>
    %c18_173 = arith.constant 18 : index
    %c0_174 = arith.constant 0 : index
    %c0_175 = arith.constant 0 : index
    %230 = vector.load %arg1[%c18_173, %c0_174, %c0_175] : memref<28x2x28xf32, #tpu.memory_space<vmem>>, vector<1x2x28xf32>
    %231 = vector.shape_cast %230 : vector<1x2x28xf32> to vector<2x28xf32>
    %c19_176 = arith.constant 19 : index
    %c0_177 = arith.constant 0 : index
    %c0_178 = arith.constant 0 : index
    %232 = vector.load %arg1[%c19_176, %c0_177, %c0_178] : memref<28x2x28xf32, #tpu.memory_space<vmem>>, vector<1x2x28xf32>
    %233 = vector.shape_cast %232 : vector<1x2x28xf32> to vector<2x28xf32>
    %c20 = arith.constant 20 : index
    %c0_179 = arith.constant 0 : index
    %c0_180 = arith.constant 0 : index
    %234 = vector.load %arg1[%c20, %c0_179, %c0_180] : memref<28x2x28xf32, #tpu.memory_space<vmem>>, vector<1x2x28xf32>
    %235 = vector.shape_cast %234 : vector<1x2x28xf32> to vector<2x28xf32>
    %c21 = arith.constant 21 : index
    %c0_181 = arith.constant 0 : index
    %c0_182 = arith.constant 0 : index
    %236 = vector.load %arg1[%c21, %c0_181, %c0_182] : memref<28x2x28xf32, #tpu.memory_space<vmem>>, vector<1x2x28xf32>
    %237 = vector.shape_cast %236 : vector<1x2x28xf32> to vector<2x28xf32>
    %238 = tpu.concatenate %227, %229, %231, %233, %235, %237 in 1 : vector<2x28xf32>, vector<2x28xf32>, vector<2x28xf32>, vector<2x28xf32>, vector<2x28xf32>, vector<2x28xf32> -> vector<2x168xf32>
    %cst_183 = arith.constant dense<0.000000e+00> : vector<2x480xf32>
    %239 = tpu.matmul %238, %0, %cst_183 {dimension_numbers = #tpu.dot_dimension_numbers<[1], [0], [0], [1], [0, 0, 1, 1], [], []>} : vector<2x168xf32>, vector<168x480xf32>, vector<2x480xf32> -> vector<2x480xf32>
    %240 = vector.broadcast %1 : vector<1x480xf32> to vector<2x480xf32>
    %241 = arith.addf %239, %240 : vector<2x480xf32>
    %cst_184 = arith.constant 0.000000e+00 : f32
    %242 = vector.broadcast %cst_184 : f32 to vector<2x480xf32>
    %243 = arith.maximumf %241, %242 : vector<2x480xf32>
    %244 = vector.extract_strided_slice %243 {offsets = [0, 0], sizes = [2, 120], strides = [1, 1]} : vector<2x480xf32> to vector<2x120xf32>
    %245 = vector.extract_strided_slice %243 {offsets = [0, 120], sizes = [2, 120], strides = [1, 1]} : vector<2x480xf32> to vector<2x120xf32>
    %246 = arith.maximumf %244, %245 : vector<2x120xf32>
    %247 = vector.extract_strided_slice %243 {offsets = [0, 240], sizes = [2, 120], strides = [1, 1]} : vector<2x480xf32> to vector<2x120xf32>
    %248 = vector.extract_strided_slice %243 {offsets = [0, 360], sizes = [2, 120], strides = [1, 1]} : vector<2x480xf32> to vector<2x120xf32>
    %249 = arith.maximumf %247, %248 : vector<2x120xf32>
    %250 = arith.maximumf %246, %249 : vector<2x120xf32>
    %c8_185 = arith.constant 8 : index
    %c0_186 = arith.constant 0 : index
    %c0_187 = arith.constant 0 : index
    %251 = vector.load %arg11[%c8_185, %c0_186, %c0_187] : memref<12x2x120xf32, #tpu.memory_space<vmem>>, vector<1x2x120xf32>
    %252 = vector.shape_cast %251 : vector<1x2x120xf32> to vector<2x120xf32>
    %253 = vector.shape_cast %250 : vector<2x120xf32> to vector<1x2x120xf32>
    tpu.vector_store %arg11[%c8_185, %c0_186, %c0_187], %253 {strides = array<i32>} : memref<12x2x120xf32, #tpu.memory_space<vmem>>, vector<1x2x120xf32>,
    %c18_188 = arith.constant 18 : index
    %c0_189 = arith.constant 0 : index
    %c0_190 = arith.constant 0 : index
    %254 = vector.load %arg1[%c18_188, %c0_189, %c0_190] : memref<28x2x28xf32, #tpu.memory_space<vmem>>, vector<1x2x28xf32>
    %255 = vector.shape_cast %254 : vector<1x2x28xf32> to vector<2x28xf32>
    %c19_191 = arith.constant 19 : index
    %c0_192 = arith.constant 0 : index
    %c0_193 = arith.constant 0 : index
    %256 = vector.load %arg1[%c19_191, %c0_192, %c0_193] : memref<28x2x28xf32, #tpu.memory_space<vmem>>, vector<1x2x28xf32>
    %257 = vector.shape_cast %256 : vector<1x2x28xf32> to vector<2x28xf32>
    %c20_194 = arith.constant 20 : index
    %c0_195 = arith.constant 0 : index
    %c0_196 = arith.constant 0 : index
    %258 = vector.load %arg1[%c20_194, %c0_195, %c0_196] : memref<28x2x28xf32, #tpu.memory_space<vmem>>, vector<1x2x28xf32>
    %259 = vector.shape_cast %258 : vector<1x2x28xf32> to vector<2x28xf32>
    %c21_197 = arith.constant 21 : index
    %c0_198 = arith.constant 0 : index
    %c0_199 = arith.constant 0 : index
    %260 = vector.load %arg1[%c21_197, %c0_198, %c0_199] : memref<28x2x28xf32, #tpu.memory_space<vmem>>, vector<1x2x28xf32>
    %261 = vector.shape_cast %260 : vector<1x2x28xf32> to vector<2x28xf32>
    %c22 = arith.constant 22 : index
    %c0_200 = arith.constant 0 : index
    %c0_201 = arith.constant 0 : index
    %262 = vector.load %arg1[%c22, %c0_200, %c0_201] : memref<28x2x28xf32, #tpu.memory_space<vmem>>, vector<1x2x28xf32>
    %263 = vector.shape_cast %262 : vector<1x2x28xf32> to vector<2x28xf32>
    %c23 = arith.constant 23 : index
    %c0_202 = arith.constant 0 : index
    %c0_203 = arith.constant 0 : index
    %264 = vector.load %arg1[%c23, %c0_202, %c0_203] : memref<28x2x28xf32, #tpu.memory_space<vmem>>, vector<1x2x28xf32>
    %265 = vector.shape_cast %264 : vector<1x2x28xf32> to vector<2x28xf32>
    %266 = tpu.concatenate %255, %257, %259, %261, %263, %265 in 1 : vector<2x28xf32>, vector<2x28xf32>, vector<2x28xf32>, vector<2x28xf32>, vector<2x28xf32>, vector<2x28xf32> -> vector<2x168xf32>
    %cst_204 = arith.constant dense<0.000000e+00> : vector<2x480xf32>
    %267 = tpu.matmul %266, %0, %cst_204 {dimension_numbers = #tpu.dot_dimension_numbers<[1], [0], [0], [1], [0, 0, 1, 1], [], []>} : vector<2x168xf32>, vector<168x480xf32>, vector<2x480xf32> -> vector<2x480xf32>
    %268 = vector.broadcast %1 : vector<1x480xf32> to vector<2x480xf32>
    %269 = arith.addf %267, %268 : vector<2x480xf32>
    %cst_205 = arith.constant 0.000000e+00 : f32
    %270 = vector.broadcast %cst_205 : f32 to vector<2x480xf32>
    %271 = arith.maximumf %269, %270 : vector<2x480xf32>
    %272 = vector.extract_strided_slice %271 {offsets = [0, 0], sizes = [2, 120], strides = [1, 1]} : vector<2x480xf32> to vector<2x120xf32>
    %273 = vector.extract_strided_slice %271 {offsets = [0, 120], sizes = [2, 120], strides = [1, 1]} : vector<2x480xf32> to vector<2x120xf32>
    %274 = arith.maximumf %272, %273 : vector<2x120xf32>
    %275 = vector.extract_strided_slice %271 {offsets = [0, 240], sizes = [2, 120], strides = [1, 1]} : vector<2x480xf32> to vector<2x120xf32>
    %276 = vector.extract_strided_slice %271 {offsets = [0, 360], sizes = [2, 120], strides = [1, 1]} : vector<2x480xf32> to vector<2x120xf32>
    %277 = arith.maximumf %275, %276 : vector<2x120xf32>
    %278 = arith.maximumf %274, %277 : vector<2x120xf32>
    %c9_206 = arith.constant 9 : index
    %c0_207 = arith.constant 0 : index
    %c0_208 = arith.constant 0 : index
    %279 = vector.load %arg11[%c9_206, %c0_207, %c0_208] : memref<12x2x120xf32, #tpu.memory_space<vmem>>, vector<1x2x120xf32>
    %280 = vector.shape_cast %279 : vector<1x2x120xf32> to vector<2x120xf32>
    %281 = vector.shape_cast %278 : vector<2x120xf32> to vector<1x2x120xf32>
    tpu.vector_store %arg11[%c9_206, %c0_207, %c0_208], %281 {strides = array<i32>} : memref<12x2x120xf32, #tpu.memory_space<vmem>>, vector<1x2x120xf32>,
    %c20_209 = arith.constant 20 : index
    %c0_210 = arith.constant 0 : index
    %c0_211 = arith.constant 0 : index
    %282 = vector.load %arg1[%c20_209, %c0_210, %c0_211] : memref<28x2x28xf32, #tpu.memory_space<vmem>>, vector<1x2x28xf32>
    %283 = vector.shape_cast %282 : vector<1x2x28xf32> to vector<2x28xf32>
    %c21_212 = arith.constant 21 : index
    %c0_213 = arith.constant 0 : index
    %c0_214 = arith.constant 0 : index
    %284 = vector.load %arg1[%c21_212, %c0_213, %c0_214] : memref<28x2x28xf32, #tpu.memory_space<vmem>>, vector<1x2x28xf32>
    %285 = vector.shape_cast %284 : vector<1x2x28xf32> to vector<2x28xf32>
    %c22_215 = arith.constant 22 : index
    %c0_216 = arith.constant 0 : index
    %c0_217 = arith.constant 0 : index
    %286 = vector.load %arg1[%c22_215, %c0_216, %c0_217] : memref<28x2x28xf32, #tpu.memory_space<vmem>>, vector<1x2x28xf32>
    %287 = vector.shape_cast %286 : vector<1x2x28xf32> to vector<2x28xf32>
    %c23_218 = arith.constant 23 : index
    %c0_219 = arith.constant 0 : index
    %c0_220 = arith.constant 0 : index
    %288 = vector.load %arg1[%c23_218, %c0_219, %c0_220] : memref<28x2x28xf32, #tpu.memory_space<vmem>>, vector<1x2x28xf32>
    %289 = vector.shape_cast %288 : vector<1x2x28xf32> to vector<2x28xf32>
    %c24 = arith.constant 24 : index
    %c0_221 = arith.constant 0 : index
    %c0_222 = arith.constant 0 : index
    %290 = vector.load %arg1[%c24, %c0_221, %c0_222] : memref<28x2x28xf32, #tpu.memory_space<vmem>>, vector<1x2x28xf32>
    %291 = vector.shape_cast %290 : vector<1x2x28xf32> to vector<2x28xf32>
    %c25 = arith.constant 25 : index
    %c0_223 = arith.constant 0 : index
    %c0_224 = arith.constant 0 : index
    %292 = vector.load %arg1[%c25, %c0_223, %c0_224] : memref<28x2x28xf32, #tpu.memory_space<vmem>>, vector<1x2x28xf32>
    %293 = vector.shape_cast %292 : vector<1x2x28xf32> to vector<2x28xf32>
    %294 = tpu.concatenate %283, %285, %287, %289, %291, %293 in 1 : vector<2x28xf32>, vector<2x28xf32>, vector<2x28xf32>, vector<2x28xf32>, vector<2x28xf32>, vector<2x28xf32> -> vector<2x168xf32>
    %cst_225 = arith.constant dense<0.000000e+00> : vector<2x480xf32>
    %295 = tpu.matmul %294, %0, %cst_225 {dimension_numbers = #tpu.dot_dimension_numbers<[1], [0], [0], [1], [0, 0, 1, 1], [], []>} : vector<2x168xf32>, vector<168x480xf32>, vector<2x480xf32> -> vector<2x480xf32>
    %296 = vector.broadcast %1 : vector<1x480xf32> to vector<2x480xf32>
    %297 = arith.addf %295, %296 : vector<2x480xf32>
    %cst_226 = arith.constant 0.000000e+00 : f32
    %298 = vector.broadcast %cst_226 : f32 to vector<2x480xf32>
    %299 = arith.maximumf %297, %298 : vector<2x480xf32>
    %300 = vector.extract_strided_slice %299 {offsets = [0, 0], sizes = [2, 120], strides = [1, 1]} : vector<2x480xf32> to vector<2x120xf32>
    %301 = vector.extract_strided_slice %299 {offsets = [0, 120], sizes = [2, 120], strides = [1, 1]} : vector<2x480xf32> to vector<2x120xf32>
    %302 = arith.maximumf %300, %301 : vector<2x120xf32>
    %303 = vector.extract_strided_slice %299 {offsets = [0, 240], sizes = [2, 120], strides = [1, 1]} : vector<2x480xf32> to vector<2x120xf32>
    %304 = vector.extract_strided_slice %299 {offsets = [0, 360], sizes = [2, 120], strides = [1, 1]} : vector<2x480xf32> to vector<2x120xf32>
    %305 = arith.maximumf %303, %304 : vector<2x120xf32>
    %306 = arith.maximumf %302, %305 : vector<2x120xf32>
    %c10_227 = arith.constant 10 : index
    %c0_228 = arith.constant 0 : index
    %c0_229 = arith.constant 0 : index
    %307 = vector.load %arg11[%c10_227, %c0_228, %c0_229] : memref<12x2x120xf32, #tpu.memory_space<vmem>>, vector<1x2x120xf32>
    %308 = vector.shape_cast %307 : vector<1x2x120xf32> to vector<2x120xf32>
    %309 = vector.shape_cast %306 : vector<2x120xf32> to vector<1x2x120xf32>
    tpu.vector_store %arg11[%c10_227, %c0_228, %c0_229], %309 {strides = array<i32>} : memref<12x2x120xf32, #tpu.memory_space<vmem>>, vector<1x2x120xf32>,
    %c22_230 = arith.constant 22 : index
    %c0_231 = arith.constant 0 : index
    %c0_232 = arith.constant 0 : index
    %310 = vector.load %arg1[%c22_230, %c0_231, %c0_232] : memref<28x2x28xf32, #tpu.memory_space<vmem>>, vector<1x2x28xf32>
    %311 = vector.shape_cast %310 : vector<1x2x28xf32> to vector<2x28xf32>
    %c23_233 = arith.constant 23 : index
    %c0_234 = arith.constant 0 : index
    %c0_235 = arith.constant 0 : index
    %312 = vector.load %arg1[%c23_233, %c0_234, %c0_235] : memref<28x2x28xf32, #tpu.memory_space<vmem>>, vector<1x2x28xf32>
    %313 = vector.shape_cast %312 : vector<1x2x28xf32> to vector<2x28xf32>
    %c24_236 = arith.constant 24 : index
    %c0_237 = arith.constant 0 : index
    %c0_238 = arith.constant 0 : index
    %314 = vector.load %arg1[%c24_236, %c0_237, %c0_238] : memref<28x2x28xf32, #tpu.memory_space<vmem>>, vector<1x2x28xf32>
    %315 = vector.shape_cast %314 : vector<1x2x28xf32> to vector<2x28xf32>
    %c25_239 = arith.constant 25 : index
    %c0_240 = arith.constant 0 : index
    %c0_241 = arith.constant 0 : index
    %316 = vector.load %arg1[%c25_239, %c0_240, %c0_241] : memref<28x2x28xf32, #tpu.memory_space<vmem>>, vector<1x2x28xf32>
    %317 = vector.shape_cast %316 : vector<1x2x28xf32> to vector<2x28xf32>
    %c26 = arith.constant 26 : index
    %c0_242 = arith.constant 0 : index
    %c0_243 = arith.constant 0 : index
    %318 = vector.load %arg1[%c26, %c0_242, %c0_243] : memref<28x2x28xf32, #tpu.memory_space<vmem>>, vector<1x2x28xf32>
    %319 = vector.shape_cast %318 : vector<1x2x28xf32> to vector<2x28xf32>
    %c27 = arith.constant 27 : index
    %c0_244 = arith.constant 0 : index
    %c0_245 = arith.constant 0 : index
    %320 = vector.load %arg1[%c27, %c0_244, %c0_245] : memref<28x2x28xf32, #tpu.memory_space<vmem>>, vector<1x2x28xf32>
    %321 = vector.shape_cast %320 : vector<1x2x28xf32> to vector<2x28xf32>
    %322 = tpu.concatenate %311, %313, %315, %317, %319, %321 in 1 : vector<2x28xf32>, vector<2x28xf32>, vector<2x28xf32>, vector<2x28xf32>, vector<2x28xf32>, vector<2x28xf32> -> vector<2x168xf32>
    %cst_246 = arith.constant dense<0.000000e+00> : vector<2x480xf32>
    %323 = tpu.matmul %322, %0, %cst_246 {dimension_numbers = #tpu.dot_dimension_numbers<[1], [0], [0], [1], [0, 0, 1, 1], [], []>} : vector<2x168xf32>, vector<168x480xf32>, vector<2x480xf32> -> vector<2x480xf32>
    %324 = vector.broadcast %1 : vector<1x480xf32> to vector<2x480xf32>
    %325 = arith.addf %323, %324 : vector<2x480xf32>
    %cst_247 = arith.constant 0.000000e+00 : f32
    %326 = vector.broadcast %cst_247 : f32 to vector<2x480xf32>
    %327 = arith.maximumf %325, %326 : vector<2x480xf32>
    %328 = vector.extract_strided_slice %327 {offsets = [0, 0], sizes = [2, 120], strides = [1, 1]} : vector<2x480xf32> to vector<2x120xf32>
    %329 = vector.extract_strided_slice %327 {offsets = [0, 120], sizes = [2, 120], strides = [1, 1]} : vector<2x480xf32> to vector<2x120xf32>
    %330 = arith.maximumf %328, %329 : vector<2x120xf32>
    %331 = vector.extract_strided_slice %327 {offsets = [0, 240], sizes = [2, 120], strides = [1, 1]} : vector<2x480xf32> to vector<2x120xf32>
    %332 = vector.extract_strided_slice %327 {offsets = [0, 360], sizes = [2, 120], strides = [1, 1]} : vector<2x480xf32> to vector<2x120xf32>
    %333 = arith.maximumf %331, %332 : vector<2x120xf32>
    %334 = arith.maximumf %330, %333 : vector<2x120xf32>
    %c11_248 = arith.constant 11 : index
    %c0_249 = arith.constant 0 : index
    %c0_250 = arith.constant 0 : index
    %335 = vector.load %arg11[%c11_248, %c0_249, %c0_250] : memref<12x2x120xf32, #tpu.memory_space<vmem>>, vector<1x2x120xf32>
    %336 = vector.shape_cast %335 : vector<1x2x120xf32> to vector<2x120xf32>
    %337 = vector.shape_cast %334 : vector<2x120xf32> to vector<1x2x120xf32>
    tpu.vector_store %arg11[%c11_248, %c0_249, %c0_250], %337 {strides = array<i32>} : memref<12x2x120xf32, #tpu.memory_space<vmem>>, vector<1x2x120xf32>,
    %c0_251 = arith.constant 0 : index
    %c0_252 = arith.constant 0 : index
    %338 = vector.load %arg4[%c0_251, %c0_252] : memref<360x200xf32, #tpu.memory_space<vmem>>, vector<360x200xf32>
    %c0_253 = arith.constant 0 : index
    %c0_254 = arith.constant 0 : index
    %339 = vector.load %arg5[%c0_253, %c0_254] : memref<1x200xf32, #tpu.memory_space<vmem>>, vector<1x200xf32>
    %cst_255 = arith.constant 0.000000e+00 : f32
    %340 = vector.broadcast %cst_255 : f32 to vector<2x500xf32>
    %c0_256 = arith.constant 0 : index
    %c0_257 = arith.constant 0 : index
    %c0_258 = arith.constant 0 : index
    %341 = vector.load %arg11[%c0_256, %c0_257, %c0_258] : memref<12x2x120xf32, #tpu.memory_space<vmem>>, vector<1x2x120xf32>
    %342 = vector.shape_cast %341 : vector<1x2x120xf32> to vector<2x120xf32>
    %c1_259 = arith.constant 1 : index
    %c0_260 = arith.constant 0 : index
    %c0_261 = arith.constant 0 : index
    %343 = vector.load %arg11[%c1_259, %c0_260, %c0_261] : memref<12x2x120xf32, #tpu.memory_space<vmem>>, vector<1x2x120xf32>
    %344 = vector.shape_cast %343 : vector<1x2x120xf32> to vector<2x120xf32>
    %c2_262 = arith.constant 2 : index
    %c0_263 = arith.constant 0 : index
    %c0_264 = arith.constant 0 : index
    %345 = vector.load %arg11[%c2_262, %c0_263, %c0_264] : memref<12x2x120xf32, #tpu.memory_space<vmem>>, vector<1x2x120xf32>
    %346 = vector.shape_cast %345 : vector<1x2x120xf32> to vector<2x120xf32>
    %347 = tpu.concatenate %342, %344, %346 in 1 : vector<2x120xf32>, vector<2x120xf32>, vector<2x120xf32> -> vector<2x360xf32>
    %cst_265 = arith.constant dense<0.000000e+00> : vector<2x200xf32>
    %348 = tpu.matmul %347, %338, %cst_265 {dimension_numbers = #tpu.dot_dimension_numbers<[1], [0], [0], [1], [0, 0, 1, 1], [], []>} : vector<2x360xf32>, vector<360x200xf32>, vector<2x200xf32> -> vector<2x200xf32>
    %349 = vector.broadcast %339 : vector<1x200xf32> to vector<2x200xf32>
    %350 = arith.addf %348, %349 : vector<2x200xf32>
    %cst_266 = arith.constant 0.000000e+00 : f32
    %351 = vector.broadcast %cst_266 : f32 to vector<2x200xf32>
    %352 = arith.maximumf %350, %351 : vector<2x200xf32>
    %c0_267 = arith.constant 0 : index
    %c0_268 = arith.constant 0 : index
    %c0_269 = arith.constant 0 : index
    %353 = vector.load %arg6[%c0_267, %c0_268, %c0_269] : memref<10x200x500xf32, #tpu.memory_space<vmem>>, vector<1x200x500xf32>
    %354 = vector.shape_cast %353 : vector<1x200x500xf32> to vector<200x500xf32>
    %cst_270 = arith.constant dense<0.000000e+00> : vector<2x500xf32>
    %355 = tpu.matmul %352, %354, %cst_270 {dimension_numbers = #tpu.dot_dimension_numbers<[1], [0], [0], [1], [0, 0, 1, 1], [], []>} : vector<2x200xf32>, vector<200x500xf32>, vector<2x500xf32> -> vector<2x500xf32>
    %356 = arith.addf %340, %355 : vector<2x500xf32>
    %c1_271 = arith.constant 1 : index
    %c0_272 = arith.constant 0 : index
    %c0_273 = arith.constant 0 : index
    %357 = vector.load %arg11[%c1_271, %c0_272, %c0_273] : memref<12x2x120xf32, #tpu.memory_space<vmem>>, vector<1x2x120xf32>
    %358 = vector.shape_cast %357 : vector<1x2x120xf32> to vector<2x120xf32>
    %c2_274 = arith.constant 2 : index
    %c0_275 = arith.constant 0 : index
    %c0_276 = arith.constant 0 : index
    %359 = vector.load %arg11[%c2_274, %c0_275, %c0_276] : memref<12x2x120xf32, #tpu.memory_space<vmem>>, vector<1x2x120xf32>
    %360 = vector.shape_cast %359 : vector<1x2x120xf32> to vector<2x120xf32>
    %c3_277 = arith.constant 3 : index
    %c0_278 = arith.constant 0 : index
    %c0_279 = arith.constant 0 : index
    %361 = vector.load %arg11[%c3_277, %c0_278, %c0_279] : memref<12x2x120xf32, #tpu.memory_space<vmem>>, vector<1x2x120xf32>
    %362 = vector.shape_cast %361 : vector<1x2x120xf32> to vector<2x120xf32>
    %363 = tpu.concatenate %358, %360, %362 in 1 : vector<2x120xf32>, vector<2x120xf32>, vector<2x120xf32> -> vector<2x360xf32>
    %cst_280 = arith.constant dense<0.000000e+00> : vector<2x200xf32>
    %364 = tpu.matmul %363, %338, %cst_280 {dimension_numbers = #tpu.dot_dimension_numbers<[1], [0], [0], [1], [0, 0, 1, 1], [], []>} : vector<2x360xf32>, vector<360x200xf32>, vector<2x200xf32> -> vector<2x200xf32>
    %365 = vector.broadcast %339 : vector<1x200xf32> to vector<2x200xf32>
    %366 = arith.addf %364, %365 : vector<2x200xf32>
    %cst_281 = arith.constant 0.000000e+00 : f32
    %367 = vector.broadcast %cst_281 : f32 to vector<2x200xf32>
    %368 = arith.maximumf %366, %367 : vector<2x200xf32>
    %c1_282 = arith.constant 1 : index
    %c0_283 = arith.constant 0 : index
    %c0_284 = arith.constant 0 : index
    %369 = vector.load %arg6[%c1_282, %c0_283, %c0_284] : memref<10x200x500xf32, #tpu.memory_space<vmem>>, vector<1x200x500xf32>
    %370 = vector.shape_cast %369 : vector<1x200x500xf32> to vector<200x500xf32>
    %cst_285 = arith.constant dense<0.000000e+00> : vector<2x500xf32>
    %371 = tpu.matmul %368, %370, %cst_285 {dimension_numbers = #tpu.dot_dimension_numbers<[1], [0], [0], [1], [0, 0, 1, 1], [], []>} : vector<2x200xf32>, vector<200x500xf32>, vector<2x500xf32> -> vector<2x500xf32>
    %372 = arith.addf %356, %371 : vector<2x500xf32>
    %c2_286 = arith.constant 2 : index
    %c0_287 = arith.constant 0 : index
    %c0_288 = arith.constant 0 : index
    %373 = vector.load %arg11[%c2_286, %c0_287, %c0_288] : memref<12x2x120xf32, #tpu.memory_space<vmem>>, vector<1x2x120xf32>
    %374 = vector.shape_cast %373 : vector<1x2x120xf32> to vector<2x120xf32>
    %c3_289 = arith.constant 3 : index
    %c0_290 = arith.constant 0 : index
    %c0_291 = arith.constant 0 : index
    %375 = vector.load %arg11[%c3_289, %c0_290, %c0_291] : memref<12x2x120xf32, #tpu.memory_space<vmem>>, vector<1x2x120xf32>
    %376 = vector.shape_cast %375 : vector<1x2x120xf32> to vector<2x120xf32>
    %c4_292 = arith.constant 4 : index
    %c0_293 = arith.constant 0 : index
    %c0_294 = arith.constant 0 : index
    %377 = vector.load %arg11[%c4_292, %c0_293, %c0_294] : memref<12x2x120xf32, #tpu.memory_space<vmem>>, vector<1x2x120xf32>
    %378 = vector.shape_cast %377 : vector<1x2x120xf32> to vector<2x120xf32>
    %379 = tpu.concatenate %374, %376, %378 in 1 : vector<2x120xf32>, vector<2x120xf32>, vector<2x120xf32> -> vector<2x360xf32>
    %cst_295 = arith.constant dense<0.000000e+00> : vector<2x200xf32>
    %380 = tpu.matmul %379, %338, %cst_295 {dimension_numbers = #tpu.dot_dimension_numbers<[1], [0], [0], [1], [0, 0, 1, 1], [], []>} : vector<2x360xf32>, vector<360x200xf32>, vector<2x200xf32> -> vector<2x200xf32>
    %381 = vector.broadcast %339 : vector<1x200xf32> to vector<2x200xf32>
    %382 = arith.addf %380, %381 : vector<2x200xf32>
    %cst_296 = arith.constant 0.000000e+00 : f32
    %383 = vector.broadcast %cst_296 : f32 to vector<2x200xf32>
    %384 = arith.maximumf %382, %383 : vector<2x200xf32>
    %c2_297 = arith.constant 2 : index
    %c0_298 = arith.constant 0 : index
    %c0_299 = arith.constant 0 : index
    %385 = vector.load %arg6[%c2_297, %c0_298, %c0_299] : memref<10x200x500xf32, #tpu.memory_space<vmem>>, vector<1x200x500xf32>
    %386 = vector.shape_cast %385 : vector<1x200x500xf32> to vector<200x500xf32>
    %cst_300 = arith.constant dense<0.000000e+00> : vector<2x500xf32>
    %387 = tpu.matmul %384, %386, %cst_300 {dimension_numbers = #tpu.dot_dimension_numbers<[1], [0], [0], [1], [0, 0, 1, 1], [], []>} : vector<2x200xf32>, vector<200x500xf32>, vector<2x500xf32> -> vector<2x500xf32>
    %388 = arith.addf %372, %387 : vector<2x500xf32>
    %c3_301 = arith.constant 3 : index
    %c0_302 = arith.constant 0 : index
    %c0_303 = arith.constant 0 : index
    %389 = vector.load %arg11[%c3_301, %c0_302, %c0_303] : memref<12x2x120xf32, #tpu.memory_space<vmem>>, vector<1x2x120xf32>
    %390 = vector.shape_cast %389 : vector<1x2x120xf32> to vector<2x120xf32>
    %c4_304 = arith.constant 4 : index
    %c0_305 = arith.constant 0 : index
    %c0_306 = arith.constant 0 : index
    %391 = vector.load %arg11[%c4_304, %c0_305, %c0_306] : memref<12x2x120xf32, #tpu.memory_space<vmem>>, vector<1x2x120xf32>
    %392 = vector.shape_cast %391 : vector<1x2x120xf32> to vector<2x120xf32>
    %c5_307 = arith.constant 5 : index
    %c0_308 = arith.constant 0 : index
    %c0_309 = arith.constant 0 : index
    %393 = vector.load %arg11[%c5_307, %c0_308, %c0_309] : memref<12x2x120xf32, #tpu.memory_space<vmem>>, vector<1x2x120xf32>
    %394 = vector.shape_cast %393 : vector<1x2x120xf32> to vector<2x120xf32>
    %395 = tpu.concatenate %390, %392, %394 in 1 : vector<2x120xf32>, vector<2x120xf32>, vector<2x120xf32> -> vector<2x360xf32>
    %cst_310 = arith.constant dense<0.000000e+00> : vector<2x200xf32>
    %396 = tpu.matmul %395, %338, %cst_310 {dimension_numbers = #tpu.dot_dimension_numbers<[1], [0], [0], [1], [0, 0, 1, 1], [], []>} : vector<2x360xf32>, vector<360x200xf32>, vector<2x200xf32> -> vector<2x200xf32>
    %397 = vector.broadcast %339 : vector<1x200xf32> to vector<2x200xf32>
    %398 = arith.addf %396, %397 : vector<2x200xf32>
    %cst_311 = arith.constant 0.000000e+00 : f32
    %399 = vector.broadcast %cst_311 : f32 to vector<2x200xf32>
    %400 = arith.maximumf %398, %399 : vector<2x200xf32>
    %c3_312 = arith.constant 3 : index
    %c0_313 = arith.constant 0 : index
    %c0_314 = arith.constant 0 : index
    %401 = vector.load %arg6[%c3_312, %c0_313, %c0_314] : memref<10x200x500xf32, #tpu.memory_space<vmem>>, vector<1x200x500xf32>
    %402 = vector.shape_cast %401 : vector<1x200x500xf32> to vector<200x500xf32>
    %cst_315 = arith.constant dense<0.000000e+00> : vector<2x500xf32>
    %403 = tpu.matmul %400, %402, %cst_315 {dimension_numbers = #tpu.dot_dimension_numbers<[1], [0], [0], [1], [0, 0, 1, 1], [], []>} : vector<2x200xf32>, vector<200x500xf32>, vector<2x500xf32> -> vector<2x500xf32>
    %404 = arith.addf %388, %403 : vector<2x500xf32>
    %c4_316 = arith.constant 4 : index
    %c0_317 = arith.constant 0 : index
    %c0_318 = arith.constant 0 : index
    %405 = vector.load %arg11[%c4_316, %c0_317, %c0_318] : memref<12x2x120xf32, #tpu.memory_space<vmem>>, vector<1x2x120xf32>
    %406 = vector.shape_cast %405 : vector<1x2x120xf32> to vector<2x120xf32>
    %c5_319 = arith.constant 5 : index
    %c0_320 = arith.constant 0 : index
    %c0_321 = arith.constant 0 : index
    %407 = vector.load %arg11[%c5_319, %c0_320, %c0_321] : memref<12x2x120xf32, #tpu.memory_space<vmem>>, vector<1x2x120xf32>
    %408 = vector.shape_cast %407 : vector<1x2x120xf32> to vector<2x120xf32>
    %c6_322 = arith.constant 6 : index
    %c0_323 = arith.constant 0 : index
    %c0_324 = arith.constant 0 : index
    %409 = vector.load %arg11[%c6_322, %c0_323, %c0_324] : memref<12x2x120xf32, #tpu.memory_space<vmem>>, vector<1x2x120xf32>
    %410 = vector.shape_cast %409 : vector<1x2x120xf32> to vector<2x120xf32>
    %411 = tpu.concatenate %406, %408, %410 in 1 : vector<2x120xf32>, vector<2x120xf32>, vector<2x120xf32> -> vector<2x360xf32>
    %cst_325 = arith.constant dense<0.000000e+00> : vector<2x200xf32>
    %412 = tpu.matmul %411, %338, %cst_325 {dimension_numbers = #tpu.dot_dimension_numbers<[1], [0], [0], [1], [0, 0, 1, 1], [], []>} : vector<2x360xf32>, vector<360x200xf32>, vector<2x200xf32> -> vector<2x200xf32>
    %413 = vector.broadcast %339 : vector<1x200xf32> to vector<2x200xf32>
    %414 = arith.addf %412, %413 : vector<2x200xf32>
    %cst_326 = arith.constant 0.000000e+00 : f32
    %415 = vector.broadcast %cst_326 : f32 to vector<2x200xf32>
    %416 = arith.maximumf %414, %415 : vector<2x200xf32>
    %c4_327 = arith.constant 4 : index
    %c0_328 = arith.constant 0 : index
    %c0_329 = arith.constant 0 : index
    %417 = vector.load %arg6[%c4_327, %c0_328, %c0_329] : memref<10x200x500xf32, #tpu.memory_space<vmem>>, vector<1x200x500xf32>
    %418 = vector.shape_cast %417 : vector<1x200x500xf32> to vector<200x500xf32>
    %cst_330 = arith.constant dense<0.000000e+00> : vector<2x500xf32>
    %419 = tpu.matmul %416, %418, %cst_330 {dimension_numbers = #tpu.dot_dimension_numbers<[1], [0], [0], [1], [0, 0, 1, 1], [], []>} : vector<2x200xf32>, vector<200x500xf32>, vector<2x500xf32> -> vector<2x500xf32>
    %420 = arith.addf %404, %419 : vector<2x500xf32>
    %c5_331 = arith.constant 5 : index
    %c0_332 = arith.constant 0 : index
    %c0_333 = arith.constant 0 : index
    %421 = vector.load %arg11[%c5_331, %c0_332, %c0_333] : memref<12x2x120xf32, #tpu.memory_space<vmem>>, vector<1x2x120xf32>
    %422 = vector.shape_cast %421 : vector<1x2x120xf32> to vector<2x120xf32>
    %c6_334 = arith.constant 6 : index
    %c0_335 = arith.constant 0 : index
    %c0_336 = arith.constant 0 : index
    %423 = vector.load %arg11[%c6_334, %c0_335, %c0_336] : memref<12x2x120xf32, #tpu.memory_space<vmem>>, vector<1x2x120xf32>
    %424 = vector.shape_cast %423 : vector<1x2x120xf32> to vector<2x120xf32>
    %c7_337 = arith.constant 7 : index
    %c0_338 = arith.constant 0 : index
    %c0_339 = arith.constant 0 : index
    %425 = vector.load %arg11[%c7_337, %c0_338, %c0_339] : memref<12x2x120xf32, #tpu.memory_space<vmem>>, vector<1x2x120xf32>
    %426 = vector.shape_cast %425 : vector<1x2x120xf32> to vector<2x120xf32>
    %427 = tpu.concatenate %422, %424, %426 in 1 : vector<2x120xf32>, vector<2x120xf32>, vector<2x120xf32> -> vector<2x360xf32>
    %cst_340 = arith.constant dense<0.000000e+00> : vector<2x200xf32>
    %428 = tpu.matmul %427, %338, %cst_340 {dimension_numbers = #tpu.dot_dimension_numbers<[1], [0], [0], [1], [0, 0, 1, 1], [], []>} : vector<2x360xf32>, vector<360x200xf32>, vector<2x200xf32> -> vector<2x200xf32>
    %429 = vector.broadcast %339 : vector<1x200xf32> to vector<2x200xf32>
    %430 = arith.addf %428, %429 : vector<2x200xf32>
    %cst_341 = arith.constant 0.000000e+00 : f32
    %431 = vector.broadcast %cst_341 : f32 to vector<2x200xf32>
    %432 = arith.maximumf %430, %431 : vector<2x200xf32>
    %c5_342 = arith.constant 5 : index
    %c0_343 = arith.constant 0 : index
    %c0_344 = arith.constant 0 : index
    %433 = vector.load %arg6[%c5_342, %c0_343, %c0_344] : memref<10x200x500xf32, #tpu.memory_space<vmem>>, vector<1x200x500xf32>
    %434 = vector.shape_cast %433 : vector<1x200x500xf32> to vector<200x500xf32>
    %cst_345 = arith.constant dense<0.000000e+00> : vector<2x500xf32>
    %435 = tpu.matmul %432, %434, %cst_345 {dimension_numbers = #tpu.dot_dimension_numbers<[1], [0], [0], [1], [0, 0, 1, 1], [], []>} : vector<2x200xf32>, vector<200x500xf32>, vector<2x500xf32> -> vector<2x500xf32>
    %436 = arith.addf %420, %435 : vector<2x500xf32>
    %c6_346 = arith.constant 6 : index
    %c0_347 = arith.constant 0 : index
    %c0_348 = arith.constant 0 : index
    %437 = vector.load %arg11[%c6_346, %c0_347, %c0_348] : memref<12x2x120xf32, #tpu.memory_space<vmem>>, vector<1x2x120xf32>
    %438 = vector.shape_cast %437 : vector<1x2x120xf32> to vector<2x120xf32>
    %c7_349 = arith.constant 7 : index
    %c0_350 = arith.constant 0 : index
    %c0_351 = arith.constant 0 : index
    %439 = vector.load %arg11[%c7_349, %c0_350, %c0_351] : memref<12x2x120xf32, #tpu.memory_space<vmem>>, vector<1x2x120xf32>
    %440 = vector.shape_cast %439 : vector<1x2x120xf32> to vector<2x120xf32>
    %c8_352 = arith.constant 8 : index
    %c0_353 = arith.constant 0 : index
    %c0_354 = arith.constant 0 : index
    %441 = vector.load %arg11[%c8_352, %c0_353, %c0_354] : memref<12x2x120xf32, #tpu.memory_space<vmem>>, vector<1x2x120xf32>
    %442 = vector.shape_cast %441 : vector<1x2x120xf32> to vector<2x120xf32>
    %443 = tpu.concatenate %438, %440, %442 in 1 : vector<2x120xf32>, vector<2x120xf32>, vector<2x120xf32> -> vector<2x360xf32>
    %cst_355 = arith.constant dense<0.000000e+00> : vector<2x200xf32>
    %444 = tpu.matmul %443, %338, %cst_355 {dimension_numbers = #tpu.dot_dimension_numbers<[1], [0], [0], [1], [0, 0, 1, 1], [], []>} : vector<2x360xf32>, vector<360x200xf32>, vector<2x200xf32> -> vector<2x200xf32>
    %445 = vector.broadcast %339 : vector<1x200xf32> to vector<2x200xf32>
    %446 = arith.addf %444, %445 : vector<2x200xf32>
    %cst_356 = arith.constant 0.000000e+00 : f32
    %447 = vector.broadcast %cst_356 : f32 to vector<2x200xf32>
    %448 = arith.maximumf %446, %447 : vector<2x200xf32>
    %c6_357 = arith.constant 6 : index
    %c0_358 = arith.constant 0 : index
    %c0_359 = arith.constant 0 : index
    %449 = vector.load %arg6[%c6_357, %c0_358, %c0_359] : memref<10x200x500xf32, #tpu.memory_space<vmem>>, vector<1x200x500xf32>
    %450 = vector.shape_cast %449 : vector<1x200x500xf32> to vector<200x500xf32>
    %cst_360 = arith.constant dense<0.000000e+00> : vector<2x500xf32>
    %451 = tpu.matmul %448, %450, %cst_360 {dimension_numbers = #tpu.dot_dimension_numbers<[1], [0], [0], [1], [0, 0, 1, 1], [], []>} : vector<2x200xf32>, vector<200x500xf32>, vector<2x500xf32> -> vector<2x500xf32>
    %452 = arith.addf %436, %451 : vector<2x500xf32>
    %c7_361 = arith.constant 7 : index
    %c0_362 = arith.constant 0 : index
    %c0_363 = arith.constant 0 : index
    %453 = vector.load %arg11[%c7_361, %c0_362, %c0_363] : memref<12x2x120xf32, #tpu.memory_space<vmem>>, vector<1x2x120xf32>
    %454 = vector.shape_cast %453 : vector<1x2x120xf32> to vector<2x120xf32>
    %c8_364 = arith.constant 8 : index
    %c0_365 = arith.constant 0 : index
    %c0_366 = arith.constant 0 : index
    %455 = vector.load %arg11[%c8_364, %c0_365, %c0_366] : memref<12x2x120xf32, #tpu.memory_space<vmem>>, vector<1x2x120xf32>
    %456 = vector.shape_cast %455 : vector<1x2x120xf32> to vector<2x120xf32>
    %c9_367 = arith.constant 9 : index
    %c0_368 = arith.constant 0 : index
    %c0_369 = arith.constant 0 : index
    %457 = vector.load %arg11[%c9_367, %c0_368, %c0_369] : memref<12x2x120xf32, #tpu.memory_space<vmem>>, vector<1x2x120xf32>
    %458 = vector.shape_cast %457 : vector<1x2x120xf32> to vector<2x120xf32>
    %459 = tpu.concatenate %454, %456, %458 in 1 : vector<2x120xf32>, vector<2x120xf32>, vector<2x120xf32> -> vector<2x360xf32>
    %cst_370 = arith.constant dense<0.000000e+00> : vector<2x200xf32>
    %460 = tpu.matmul %459, %338, %cst_370 {dimension_numbers = #tpu.dot_dimension_numbers<[1], [0], [0], [1], [0, 0, 1, 1], [], []>} : vector<2x360xf32>, vector<360x200xf32>, vector<2x200xf32> -> vector<2x200xf32>
    %461 = vector.broadcast %339 : vector<1x200xf32> to vector<2x200xf32>
    %462 = arith.addf %460, %461 : vector<2x200xf32>
    %cst_371 = arith.constant 0.000000e+00 : f32
    %463 = vector.broadcast %cst_371 : f32 to vector<2x200xf32>
    %464 = arith.maximumf %462, %463 : vector<2x200xf32>
    %c7_372 = arith.constant 7 : index
    %c0_373 = arith.constant 0 : index
    %c0_374 = arith.constant 0 : index
    %465 = vector.load %arg6[%c7_372, %c0_373, %c0_374] : memref<10x200x500xf32, #tpu.memory_space<vmem>>, vector<1x200x500xf32>
    %466 = vector.shape_cast %465 : vector<1x200x500xf32> to vector<200x500xf32>
    %cst_375 = arith.constant dense<0.000000e+00> : vector<2x500xf32>
    %467 = tpu.matmul %464, %466, %cst_375 {dimension_numbers = #tpu.dot_dimension_numbers<[1], [0], [0], [1], [0, 0, 1, 1], [], []>} : vector<2x200xf32>, vector<200x500xf32>, vector<2x500xf32> -> vector<2x500xf32>
    %468 = arith.addf %452, %467 : vector<2x500xf32>
    %c8_376 = arith.constant 8 : index
    %c0_377 = arith.constant 0 : index
    %c0_378 = arith.constant 0 : index
    %469 = vector.load %arg11[%c8_376, %c0_377, %c0_378] : memref<12x2x120xf32, #tpu.memory_space<vmem>>, vector<1x2x120xf32>
    %470 = vector.shape_cast %469 : vector<1x2x120xf32> to vector<2x120xf32>
    %c9_379 = arith.constant 9 : index
    %c0_380 = arith.constant 0 : index
    %c0_381 = arith.constant 0 : index
    %471 = vector.load %arg11[%c9_379, %c0_380, %c0_381] : memref<12x2x120xf32, #tpu.memory_space<vmem>>, vector<1x2x120xf32>
    %472 = vector.shape_cast %471 : vector<1x2x120xf32> to vector<2x120xf32>
    %c10_382 = arith.constant 10 : index
    %c0_383 = arith.constant 0 : index
    %c0_384 = arith.constant 0 : index
    %473 = vector.load %arg11[%c10_382, %c0_383, %c0_384] : memref<12x2x120xf32, #tpu.memory_space<vmem>>, vector<1x2x120xf32>
    %474 = vector.shape_cast %473 : vector<1x2x120xf32> to vector<2x120xf32>
    %475 = tpu.concatenate %470, %472, %474 in 1 : vector<2x120xf32>, vector<2x120xf32>, vector<2x120xf32> -> vector<2x360xf32>
    %cst_385 = arith.constant dense<0.000000e+00> : vector<2x200xf32>
    %476 = tpu.matmul %475, %338, %cst_385 {dimension_numbers = #tpu.dot_dimension_numbers<[1], [0], [0], [1], [0, 0, 1, 1], [], []>} : vector<2x360xf32>, vector<360x200xf32>, vector<2x200xf32> -> vector<2x200xf32>
    %477 = vector.broadcast %339 : vector<1x200xf32> to vector<2x200xf32>
    %478 = arith.addf %476, %477 : vector<2x200xf32>
    %cst_386 = arith.constant 0.000000e+00 : f32
    %479 = vector.broadcast %cst_386 : f32 to vector<2x200xf32>
    %480 = arith.maximumf %478, %479 : vector<2x200xf32>
    %c8_387 = arith.constant 8 : index
    %c0_388 = arith.constant 0 : index
    %c0_389 = arith.constant 0 : index
    %481 = vector.load %arg6[%c8_387, %c0_388, %c0_389] : memref<10x200x500xf32, #tpu.memory_space<vmem>>, vector<1x200x500xf32>
    %482 = vector.shape_cast %481 : vector<1x200x500xf32> to vector<200x500xf32>
    %cst_390 = arith.constant dense<0.000000e+00> : vector<2x500xf32>
    %483 = tpu.matmul %480, %482, %cst_390 {dimension_numbers = #tpu.dot_dimension_numbers<[1], [0], [0], [1], [0, 0, 1, 1], [], []>} : vector<2x200xf32>, vector<200x500xf32>, vector<2x500xf32> -> vector<2x500xf32>
    %484 = arith.addf %468, %483 : vector<2x500xf32>
    %c9_391 = arith.constant 9 : index
    %c0_392 = arith.constant 0 : index
    %c0_393 = arith.constant 0 : index
    %485 = vector.load %arg11[%c9_391, %c0_392, %c0_393] : memref<12x2x120xf32, #tpu.memory_space<vmem>>, vector<1x2x120xf32>
    %486 = vector.shape_cast %485 : vector<1x2x120xf32> to vector<2x120xf32>
    %c10_394 = arith.constant 10 : index
    %c0_395 = arith.constant 0 : index
    %c0_396 = arith.constant 0 : index
    %487 = vector.load %arg11[%c10_394, %c0_395, %c0_396] : memref<12x2x120xf32, #tpu.memory_space<vmem>>, vector<1x2x120xf32>
    %488 = vector.shape_cast %487 : vector<1x2x120xf32> to vector<2x120xf32>
    %c11_397 = arith.constant 11 : index
    %c0_398 = arith.constant 0 : index
    %c0_399 = arith.constant 0 : index
    %489 = vector.load %arg11[%c11_397, %c0_398, %c0_399] : memref<12x2x120xf32, #tpu.memory_space<vmem>>, vector<1x2x120xf32>
    %490 = vector.shape_cast %489 : vector<1x2x120xf32> to vector<2x120xf32>
    %491 = tpu.concatenate %486, %488, %490 in 1 : vector<2x120xf32>, vector<2x120xf32>, vector<2x120xf32> -> vector<2x360xf32>
    %cst_400 = arith.constant dense<0.000000e+00> : vector<2x200xf32>
    %492 = tpu.matmul %491, %338, %cst_400 {dimension_numbers = #tpu.dot_dimension_numbers<[1], [0], [0], [1], [0, 0, 1, 1], [], []>} : vector<2x360xf32>, vector<360x200xf32>, vector<2x200xf32> -> vector<2x200xf32>
    %493 = vector.broadcast %339 : vector<1x200xf32> to vector<2x200xf32>
    %494 = arith.addf %492, %493 : vector<2x200xf32>
    %cst_401 = arith.constant 0.000000e+00 : f32
    %495 = vector.broadcast %cst_401 : f32 to vector<2x200xf32>
    %496 = arith.maximumf %494, %495 : vector<2x200xf32>
    %c9_402 = arith.constant 9 : index
    %c0_403 = arith.constant 0 : index
    %c0_404 = arith.constant 0 : index
    %497 = vector.load %arg6[%c9_402, %c0_403, %c0_404] : memref<10x200x500xf32, #tpu.memory_space<vmem>>, vector<1x200x500xf32>
    %498 = vector.shape_cast %497 : vector<1x200x500xf32> to vector<200x500xf32>
    %cst_405 = arith.constant dense<0.000000e+00> : vector<2x500xf32>
    %499 = tpu.matmul %496, %498, %cst_405 {dimension_numbers = #tpu.dot_dimension_numbers<[1], [0], [0], [1], [0, 0, 1, 1], [], []>} : vector<2x200xf32>, vector<200x500xf32>, vector<2x500xf32> -> vector<2x500xf32>
    %500 = arith.addf %484, %499 : vector<2x500xf32>
    %c0_406 = arith.constant 0 : index
    %c0_407 = arith.constant 0 : index
    %501 = vector.load %arg7[%c0_406, %c0_407] : memref<1x500xf32, #tpu.memory_space<vmem>>, vector<1x500xf32>
    %502 = vector.broadcast %501 : vector<1x500xf32> to vector<2x500xf32>
    %503 = arith.addf %500, %502 : vector<2x500xf32>
    %cst_408 = arith.constant 0.000000e+00 : f32
    %504 = vector.broadcast %cst_408 : f32 to vector<2x500xf32>
    %505 = arith.maximumf %503, %504 : vector<2x500xf32>
    %c0_409 = arith.constant 0 : index
    %c0_410 = arith.constant 0 : index
    %506 = vector.load %arg8[%c0_409, %c0_410] : memref<500x10xf32, #tpu.memory_space<vmem>>, vector<500x10xf32>
    %cst_411 = arith.constant dense<0.000000e+00> : vector<2x10xf32>
    %507 = tpu.matmul %505, %506, %cst_411 {dimension_numbers = #tpu.dot_dimension_numbers<[1], [0], [0], [1], [0, 0, 1, 1], [], []>} : vector<2x500xf32>, vector<500x10xf32>, vector<2x10xf32> -> vector<2x10xf32>
    %c0_412 = arith.constant 0 : index
    %c0_413 = arith.constant 0 : index
    %508 = vector.load %arg9[%c0_412, %c0_413] : memref<1x10xf32, #tpu.memory_space<vmem>>, vector<1x10xf32>
    %509 = vector.broadcast %508 : vector<1x10xf32> to vector<2x10xf32>
    %510 = arith.addf %507, %509 : vector<2x10xf32>
    %cst_414 = arith.constant dense<0xFF800000> : vector<2xf32>
    %511 = vector.multi_reduction <maximumf>, %510, %cst_414 [1] : vector<2x10xf32> to vector<2xf32>
    %512 = vector.shape_cast %511 : vector<2xf32> to vector<2x1xf32>
    %513 = vector.broadcast %512 : vector<2x1xf32> to vector<2x10xf32>
    %514 = arith.subf %510, %513 : vector<2x10xf32>
    %515 = math.exp %514 : vector<2x10xf32>
    %cst_415 = arith.constant dense<0.000000e+00> : vector<2xf32>
    %516 = vector.multi_reduction <add>, %515, %cst_415 [1] : vector<2x10xf32> to vector<2xf32>
    %517 = vector.shape_cast %516 : vector<2xf32> to vector<2x1xf32>
    %518 = math.log %517 : vector<2x1xf32>
    %519 = vector.broadcast %518 : vector<2x1xf32> to vector<2x10xf32>
    %520 = arith.subf %514, %519 : vector<2x10xf32>
    %c0_416 = arith.constant 0 : index
    %c0_417 = arith.constant 0 : index
    %521 = vector.load %arg10[%c0_416, %c0_417] : memref<2x10xf32, #tpu.memory_space<vmem>>, vector<2x10xf32>
    tpu.vector_store %arg10[%c0_416, %c0_417], %520 {strides = array<i32>} : memref<2x10xf32, #tpu.memory_space<vmem>>, vector<2x10xf32>,
    return
  }
  func.func @transform_0(%arg0: i32) -> (i32, i32, i32) {
    %c0_i32 = arith.constant 0 : i32
    %c0_i32_0 = arith.constant 0 : i32
    %c0_i32_1 = arith.constant 0 : i32
    return %c0_i32, %arg0, %c0_i32_0 : i32, i32, i32
  }
  func.func @transform_1(%arg0: i32) -> (i32, i32) {
    %c0_i32 = arith.constant 0 : i32
    %c0_i32_0 = arith.constant 0 : i32
    %c0_i32_1 = arith.constant 0 : i32
    return %c0_i32, %c0_i32_0 : i32, i32
  }
  func.func @transform_2(%arg0: i32) -> (i32, i32) {
    %c0_i32 = arith.constant 0 : i32
    %c0_i32_0 = arith.constant 0 : i32
    %c0_i32_1 = arith.constant 0 : i32
    return %c0_i32, %c0_i32_0 : i32, i32
  }
  func.func @transform_3(%arg0: i32) -> (i32, i32) {
    %c0_i32 = arith.constant 0 : i32
    %c0_i32_0 = arith.constant 0 : i32
    %c0_i32_1 = arith.constant 0 : i32
    return %c0_i32, %c0_i32_0 : i32, i32
  }
  func.func @transform_4(%arg0: i32) -> (i32, i32) {
    %c0_i32 = arith.constant 0 : i32
    %c0_i32_0 = arith.constant 0 : i32
    %c0_i32_1 = arith.constant 0 : i32
    return %c0_i32, %c0_i32_0 : i32, i32
  }
  func.func @transform_5(%arg0: i32) -> (i32, i32, i32) {
    %c0_i32 = arith.constant 0 : i32
    %c0_i32_0 = arith.constant 0 : i32
    %c0_i32_1 = arith.constant 0 : i32
    %c0_i32_2 = arith.constant 0 : i32
    return %c0_i32, %c0_i32_0, %c0_i32_1 : i32, i32, i32
  }
  func.func @transform_6(%arg0: i32) -> (i32, i32) {
    %c0_i32 = arith.constant 0 : i32
    %c0_i32_0 = arith.constant 0 : i32
    %c0_i32_1 = arith.constant 0 : i32
    return %c0_i32, %c0_i32_0 : i32, i32
  }
  func.func @transform_7(%arg0: i32) -> (i32, i32) {
    %c0_i32 = arith.constant 0 : i32
    %c0_i32_0 = arith.constant 0 : i32
    %c0_i32_1 = arith.constant 0 : i32
    return %c0_i32, %c0_i32_0 : i32, i32
  }
  func.func @transform_8(%arg0: i32) -> (i32, i32) {
    %c0_i32 = arith.constant 0 : i32
    %c0_i32_0 = arith.constant 0 : i32
    %c0_i32_1 = arith.constant 0 : i32
    return %c0_i32, %c0_i32_0 : i32, i32
  }
  func.func @transform_9(%arg0: i32) -> (i32, i32) {
    %c0_i32 = arith.constant 0 : i32
    %c0_i32_0 = arith.constant 0 : i32
    return %arg0, %c0_i32 : i32, i32
  }
}

</mosaic_0001>

<bundles_post_ra>
// kernel: digit_forward.1
= control target key start
LH: loop header
LB: loop body
LE: loop exit
PB: predicated region body
PF: predicated region fallthrough
CT: control target
= control target key end

     0   :  { %14 = vsyncpa [#allocation4], 0  ;;  %s13305_s0 = inlined_call_operand.vmem [shape: f32[28,2,28], index: 0, kind: input, shape index: {}]   ;;  %s13306_s1 = inlined_call_operand.hbm [shape: f32[168,480], index: 1, kind: input, shape index: {}]   ;;  %s13307_s2 = inlined_call_operand.hbm [shape: f32[1,480], index: 2, kind: input, shape index: {}]   ;;  %s13308_s3 = inlined_call_operand.hbm [shape: f32[360,200], index: 3, kind: input, shape index: {}]   ;;  %s13309_s4 = inlined_call_operand.hbm [shape: f32[1,200], index: 4, kind: input, shape index: {}]   ;;  %s13310_s5 = inlined_call_operand.hbm [shape: f32[10,200,500], index: 5, kind: input, shape index: {}]   ;;  %s13311_s6 = inlined_call_operand.hbm [shape: f32[1,500], index: 6, kind: input, shape index: {}]   ;;  %s13312_s7 = inlined_call_operand.hbm [shape: f32[500,10], index: 7, kind: input, shape index: {}]   ;;  %s13313_s8 = inlined_call_operand.hbm [shape: f32[1,10], index: 8, kind: input, shape index: {}]   ;;  %s13314_s9 = inlined_call_operand.hbm [shape: f32[2,10], index: 9, kind: output, shape index: {}]  }
   0x1   :  { %15 = vsyncpa [#allocation7], 0 }
   0x2   :  { %16 = vsyncpa [#allocation10], 0 }
   0x3   :  { %17 = vsyncpa [#allocation13], 0 }
   0x4   :  { %18 = vsyncpa [#allocation16], 0 }
   0x5   :  { %19 = vsyncpa [#allocation5], 0  ;;  %s10620_s30 = smov [#allocation6]   ;;  %s10621_s11 = smov [#allocation9]  }
   0x6   :  { %s40_s10 = sshll.u32 %s10620_s30, 4  ;;  %s62_s12 = sshll.u32 %s10621_s11, 4  ;;  %s41_s10 = int_to_ptr.vmem [resolvable:$true] %s40_s10  ;;  %s63_s12 = int_to_ptr.vmem [resolvable:$true] %s62_s12 }
   0x7   :  { %s10410_s15 = scalar_lea.hbm %s13307_s2, 64 }
   0x8   :  { %p10411_p0 = scmp.ne.s32.totalorder %s13307_s2, %s10410_s15  ;;  %p10414_p1 = scmp.lt.u32.totalorder %s10410_s15, %s13307_s2 }
   0xa   :  { %p10416_p2 = pnand %p10414_p1, %p10411_p0 }
   0xc   :  { %10419 = shalt.err (!%p10416_p2)
}
   0xd   :  { %s10420_s20 = scalar_lea.vmem %s41_s10, 64  ;;  %p10425_p4 = scmp.lt.s32.totalorder %s41_s10, %s41_s10 }
   0xe   :  { %p10421_p3 = scmp.ne.s32.totalorder %s41_s10, %s10420_s20  ;;  %p10426_p5 = scmp.lt.s32.totalorder %s10420_s20, %s10420_s20 }
  0x10   :  { %p10427_p6 = por %p10426_p5, %p10425_p4 }
  0x12   :  { %p10428_p7 = pnand %p10427_p6, %p10421_p3 }
  0x14   :  { %10431 = shalt.err (!%p10428_p7)
}
  0x15   :  { %43 = dma.hbm_to_vmem [thread:$0]  %s13307_s2, 64, %s41_s10, [#allocation7]  }
  0x16   :  { %s10432_s25 = scalar_lea.hbm %s13309_s4, 32 }
  0x17   :  { %p10433_p8 = scmp.ne.s32.totalorder %s13309_s4, %s10432_s25  ;;  %p10436_p9 = scmp.lt.u32.totalorder %s10432_s25, %s13309_s4 }
  0x19   :  { %p10438_p10 = pnand %p10436_p9, %p10433_p8 }
  0x1b   :  { %10441 = shalt.err (!%p10438_p10)
}
  0x1c   :  { %s10442_s30 = scalar_lea.vmem %s63_s12, 32  ;;  %p10447_p12 = scmp.lt.s32.totalorder %s63_s12, %s63_s12 }
  0x1d   :  { %p10443_p11 = scmp.ne.s32.totalorder %s63_s12, %s10442_s30  ;;  %p10448_p13 = scmp.lt.s32.totalorder %s10442_s30, %s10442_s30 }
  0x1f   :  { %p10449_p0 = por %p10448_p13, %p10447_p12 }
  0x21   :  { %p10450_p1 = pnand %p10449_p0, %p10443_p11 }
  0x23   :  { %10453 = shalt.err (!%p10450_p1)
}
  0x24   :  { %65 = dma.hbm_to_vmem [thread:$0]  %s13309_s4, 32, %s63_s12, [#allocation10]  }
  0x25   :  { %s10622_s11 = smov [#allocation12]   ;;  %s10623_s14 = smov [#allocation3]  }
  0x26   :  { %s84_s13 = sshll.u32 %s10622_s11, 4  ;;  %s27_s15 = sshll.u32 %s10623_s14, 4  ;;  %s85_s13 = int_to_ptr.vmem [resolvable:$true] %s84_s13  ;;  %s10717_s15 = int_to_ptr.vmem [resolvable:$true] %s27_s15 }
  0x27   :  { %s10454_s18 = scalar_lea.hbm %s13311_s6, 64 }
  0x28   :  { %p10455_p2 = scmp.ne.s32.totalorder %s13311_s6, %s10454_s18  ;;  %p10458_p3 = scmp.lt.u32.totalorder %s10454_s18, %s13311_s6 }
  0x2a   :  { %p10460_p4 = pnand %p10458_p3, %p10455_p2 }
  0x2c   :  { %10463 = shalt.err (!%p10460_p4)
}
  0x2d   :  { %s10464_s4 = scalar_lea.vmem %s85_s13, 64  ;;  %p10469_p6 = scmp.lt.s32.totalorder %s85_s13, %s85_s13 }
  0x2e   :  { %p10465_p5 = scmp.ne.s32.totalorder %s85_s13, %s10464_s4  ;;  %p10470_p7 = scmp.lt.s32.totalorder %s10464_s4, %s10464_s4 }
  0x30   :  { %p10471_p8 = por %p10470_p7, %p10469_p6 }
  0x32   :  { %p10472_p9 = pnand %p10471_p8, %p10465_p5 }
  0x34   :  { %10475 = shalt.err (!%p10472_p9)
}
  0x35   :  { %87 = dma.hbm_to_vmem [thread:$0]  %s13311_s6, 64, %s85_s13, [#allocation13]  }
  0x36   :  { %s10476_s26 = scalar_lea.hbm %s13306_s1, 10752 }
  0x37   :  { %p10477_p10 = scmp.ne.s32.totalorder %s13306_s1, %s10476_s26  ;;  %p10480_p11 = scmp.lt.u32.totalorder %s10476_s26, %s13306_s1 }
  0x39   :  { %p10482_p12 = pnand %p10480_p11, %p10477_p10 }
  0x3b   :  { %10485 = shalt.err (!%p10482_p12)
}
  0x3c   :  { %s10486_s2 = scalar_lea.vmem %s10717_s15, 10752  ;;  %p10491_p0 = scmp.lt.s32.totalorder %s10717_s15, %s10717_s15 }
  0x3d   :  { %p10487_p13 = scmp.ne.s32.totalorder %s10717_s15, %s10486_s2  ;;  %p10492_p1 = scmp.lt.s32.totalorder %s10486_s2, %s10486_s2 }
  0x3f   :  { %p10493_p2 = por %p10492_p1, %p10491_p0 }
  0x41   :  { %p10494_p3 = pnand %p10493_p2, %p10487_p13 }
  0x43   :  { %10497 = shalt.err (!%p10494_p3)
}
  0x44   :  { %s10624_s6 = smov 512   ;;  %s10625_s10 = smov 32  }
  0x45   :  { %33 = dma.hbm_to_vmem [thread:$0]  %s13306_s1, 10752, %s10717_s15, [#allocation4], %s10624_s6, %s10624_s6, %s10625_s10  }
  0x46   :  { %s10626_s14 = smov [#allocation8]   ;;  %s10498_s19 = scalar_lea.hbm %s13308_s3, 11520 }
  0x47   :  { %s49_s16 = sshll.u32 %s10626_s14, 4  ;;  %p10499_p4 = scmp.ne.s32.totalorder %s13308_s3, %s10498_s19  ;;  %s50_s16 = int_to_ptr.vmem [resolvable:$true] %s49_s16 }
  0x48   :  { %p10502_p5 = scmp.lt.u32.totalorder %s10498_s19, %s13308_s3 }
  0x4a   :  { %p10504_p6 = pnand %p10502_p5, %p10499_p4 }
  0x4c   :  { %10507 = shalt.err (!%p10504_p6)
}
  0x4d   :  { %s10508_s12 = scalar_lea.vmem %s50_s16, 11520  ;;  %p10513_p8 = scmp.lt.s32.totalorder %s50_s16, %s50_s16 }
  0x4e   :  { %p10509_p7 = scmp.ne.s32.totalorder %s50_s16, %s10508_s12  ;;  %p10514_p9 = scmp.lt.s32.totalorder %s10508_s12, %s10508_s12 }
  0x50   :  { %p10515_p10 = por %p10514_p9, %p10513_p8 }
  0x52   :  { %p10516_p11 = pnand %p10515_p10, %p10509_p7 }
  0x54   :  { %10519 = shalt.err (!%p10516_p11)
}
  0x55   :  { %s10627_s1 = smov 256   ;;  %s10628_s15 = smov 16  }
  0x56   :  { %55 = dma.hbm_to_vmem [thread:$0]  %s13308_s3, 11520, %s50_s16, [#allocation7], %s10627_s1, %s10627_s1, %s10628_s15  }
  0x57   :  { %s10629_s25 = smov [#allocation11]   ;;  %s10630_s27 = smov [#allocation14]  }
  0x58   :  { %s71_s26 = sshll.u32 %s10629_s25, 4  ;;  %s93_s28 = sshll.u32 %s10630_s27, 4  ;;  %s72_s26 = int_to_ptr.vmem [resolvable:$true] %s71_s26  ;;  %s94_s28 = int_to_ptr.vmem [resolvable:$true] %s93_s28 }
  0x59   :  { %s10520_s2 = scalar_lea.hbm %s13310_s5, 128000 }
  0x5a   :  { %p10521_p12 = scmp.ne.s32.totalorder %s13310_s5, %s10520_s2  ;;  %p10524_p13 = scmp.lt.u32.totalorder %s10520_s2, %s13310_s5 }
  0x5c   :  { %p10526_p0 = pnand %p10524_p13, %p10521_p12 }
  0x5e   :  { %10529 = shalt.err (!%p10526_p0)
}
  0x5f   :  { %s10530_s3 = scalar_lea.vmem %s72_s26, 128000  ;;  %p10535_p2 = scmp.lt.s32.totalorder %s72_s26, %s72_s26 }
  0x60   :  { %p10531_p1 = scmp.ne.s32.totalorder %s72_s26, %s10530_s3  ;;  %p10536_p3 = scmp.lt.s32.totalorder %s10530_s3, %s10530_s3 }
  0x62   :  { %p10537_p4 = por %p10536_p3, %p10535_p2 }
  0x64   :  { %p10538_p5 = pnand %p10537_p4, %p10531_p1 }
  0x66   :  { %10541 = shalt.err (!%p10538_p5)
}
  0x67   :  { %77 = dma.hbm_to_vmem [thread:$0]  %s13310_s5, 128000, %s72_s26, [#allocation10], %s10624_s6, %s10624_s6, %s10625_s10  }
  0x68   :  { %s10542_s21 = scalar_lea.hbm %s13312_s7, 8064 }
  0x69   :  { %p10543_p6 = scmp.ne.s32.totalorder %s13312_s7, %s10542_s21  ;;  %p10546_p7 = scmp.lt.u32.totalorder %s10542_s21, %s13312_s7 }
  0x6b   :  { %p10548_p8 = pnand %p10546_p7, %p10543_p6 }
  0x6d   :  { %10551 = shalt.err (!%p10548_p8)
}
  0x6e   :  { %s10552_s23 = scalar_lea.vmem %s94_s28, 8064  ;;  %p10557_p10 = scmp.lt.s32.totalorder %s94_s28, %s94_s28 }
  0x6f   :  { %p10553_p9 = scmp.ne.s32.totalorder %s94_s28, %s10552_s23  ;;  %p10558_p11 = scmp.lt.s32.totalorder %s10552_s23, %s10552_s23 }
  0x71   :  { %p10559_p12 = por %p10558_p11, %p10557_p10 }
  0x73   :  { %p10560_p13 = pnand %p10559_p12, %p10553_p9 }
  0x75   :  { %10563 = shalt.err (!%p10560_p13)
}
  0x76   :  { %s10631_s5 = smov 128   ;;  %s10632_s6 = smov 8  }
  0x77   :  { %99 = dma.hbm_to_vmem [thread:$0]  %s13312_s7, 8064, %s94_s28, [#allocation13], %s10631_s5, %s10631_s5, %s10632_s6  }
  0x78   :  { %s10633_s25 = smov [#allocation15]   ;;  %s10564_s30 = scalar_lea.hbm %s13313_s8, 16 }
  0x79   :  { %s106_s26 = sshll.u32 %s10633_s25, 4  ;;  %p10565_p0 = scmp.ne.s32.totalorder %s13313_s8, %s10564_s30  ;;  %s107_s26 = int_to_ptr.vmem [resolvable:$true] %s106_s26 }
  0x7a   :  { %p10568_p1 = scmp.lt.u32.totalorder %s10564_s30, %s13313_s8 }
  0x7c   :  { %p10570_p2 = pnand %p10568_p1, %p10565_p0 }
  0x7e   :  { %10573 = shalt.err (!%p10570_p2)
}
  0x7f   :  { %s10574_s17 = scalar_lea.vmem %s107_s26, 16  ;;  %s10578_s7 = scalar_lea.vmem %s107_s26, 32 }
  0x80   :  { %p10575_p3 = scmp.ne.s32.totalorder %s107_s26, %s10574_s17  ;;  %p10579_p4 = scmp.lt.s32.totalorder %s107_s26, %s107_s26 }
  0x81   :  { %p10580_p5 = scmp.lt.s32.totalorder %s10578_s7, %s10574_s17 }
  0x83   :  { %p10581_p6 = por %p10580_p5, %p10579_p4 }
  0x85   :  { %p10582_p7 = pnand %p10581_p6, %p10575_p3 }
  0x87   :  { %10585 = shalt.err (!%p10582_p7)
}
  0x88   :  { %109 = dma.hbm_to_vmem [thread:$0]  %s13313_s8, 16, %s107_s26, [#allocation16]  }
  0x89   :  { %10608 = dma.done.wait [#allocation4], 10752  }
  0x8a   :  { %10609 = vsyncadd [#allocation4], 4294956544 }
  0x8b   :  { %10610 = dma.done.wait [#allocation7], 11584  }
  0x8c   :  { %10611 = vsyncadd [#allocation7], 4294955712 }
  0x8d   :  { %10612 = dma.done.wait [#allocation10], 128032  }
  0x8e   :  { %10613 = vsyncadd [#allocation10], 4294839264 }
  0x8f   :  { %10614 = dma.done.wait [#allocation13], 8128  }
  0x90   :  { %10615 = vsyncadd [#allocation13], 4294959168 }
  0x91   :  { %10616 = dma.done.wait [#allocation16], 16  }
  0x92   :  { %10617 = vsyncadd [#allocation16], 4294967280  ;;  %v7247_v0 = vld [vmem:[%s13305_s0 + $0x2] sm:$0x3]  ;;  %v7249_v1 = vld [vmem:[%s13305_s0 + $0x6] sm:$0x3] }
  0x93   :  { %s10634_s21 = smov 28   ;;  %s10635_s8 = smov 84   ;;  %v7248_v2 = vld [vmem:[%s13305_s0 + $0x4] sm:$0x3]  ;;  %v7250_v3 = vld [vmem:[%s13305_s0 + $0x8] sm:$0x3] }
  0x94   :  { %231 = vrot.lane.b32.xlu0 %v7247_v0, %s10634_s21  ;;  %239 = vrot.lane.b32.xlu1 %v7249_v1, %s10635_s8  ;;  %v135_v4 = vld [vmem:[#allocation3 + $0x8] sm:$0xff]  ;;  %v7251_v5 = vld [vmem:[%s13305_s0 + $0xa] sm:$0x3]  ;;  %s10636_s10 = smov 56   ;;  %s10637_s24 = smov 112   ;;  %v134_v10 = vld [vmem:[#allocation3] sm:$0xff] }
  0x95   :  { %v139_v6 = vld [vmem:[#allocation3 + $0x28] sm:$0xff]  ;;  %v137_v7 = vld [vmem:[#allocation3 + $0x18] sm:$0xff]  ;;  %v138_v11 = vld [vmem:[#allocation3 + $0x20] sm:$0xff]  ;;  %s10638_s11 = smov 12   ;;  %vm250_vm0 = vcmask 228352   ;;  %vm252_vm1 = vcmask 457728  }
  0x96   :  { %v10823_v8 = vpack.c.bf16 %v139_v6, %v135_v4  ;;  %v141_v9 = vld [vmem:[#allocation3 + $0x38] sm:$0xff]  ;;  %v7255_v12 = vld [vmem:[%s13305_s0 + $0x6] sm:$0x3]  ;;  %v10830_v14 = vpack.c.bf16 %v138_v11, %v134_v10  ;;  %v143_v18 = vld [vmem:[#allocation3 + $0x48] sm:$0xff]  ;;  %vm254_vm2 = vcmask 687104   ;;  %vm258_vm3 = vcmask 97280  }
  0x97   :  { %v10828_v13 = vpack.c.bf16 %v141_v9, %v137_v7  ;;  %v136_v15 = vld [vmem:[#allocation3 + $0x10] sm:$0xff]  ;;  %v147_v19 = vld [vmem:[#allocation3 + $0x68] sm:$0xff]  ;;  %v7256_v20 = vld [vmem:[%s13305_s0 + $0x8] sm:$0x3]  ;;  %vm281_vm4 = vcmask 326656   ;;  %vm256_vm5 = vcmask 916480  }
  0x98   :  { %235 = vrot.lane.b32.xlu0 %v7248_v2, %s10636_s10  ;;  %243 = vrot.lane.b32.xlu1 %v7250_v3, %s10637_s24  ;;  %v140_v16 = vld [vmem:[#allocation3 + $0x30] sm:$0xff]  ;;  %v7257_v21 = vld [vmem:[%s13305_s0 + $0xa] sm:$0x3]  ;;  %v10843_v22 = vpack.c.bf16 %v147_v19, %v143_v18  ;;  %v142_v25 = vld [vmem:[#allocation3 + $0x40] sm:$0xff]  ;;  %vm437_vm6 = vcmask 64512   ;;  %vm458_vm7 = vcmask 130048  }
  0x99   :  { %7411 = vmatprep.subr.bf16.mxu0 %v10823_v8  ;;  %v10833_v17 = vpack.c.bf16 %v140_v16, %v136_v15  ;;  %7451 = vmatprep.subr.bf16.mxu1 %v10828_v13  ;;  %v145_v23 = vld [vmem:[#allocation3 + $0x58] sm:$0xff]  ;;  %v146_v27 = vld [vmem:[#allocation3 + $0x60] sm:$0xff]  ;;  %v144_v28 = vld [vmem:[#allocation3 + $0x50] sm:$0xff]  ;;  %vm462_vm8 = vcmask 975872   ;;  %vm2909_vm9 = vcmask 982016   ;;  %vm2923_vm10 = vcmask 850944  }
  0x9a   :  { %7413 = vmatpush1.bf16.msra.mxu0 %v10830_v14  ;;  %v149_v24 = vld [vmem:[#allocation3 + $0x78] sm:$0xff]  ;;  %v148_v29 = vld [vmem:[#allocation3 + $0x70] sm:$0xff]  ;;  %v10851_v30 = vpack.c.bf16 %v146_v27, %v142_v25  ;;  %v151_v32 = vld [vmem:[#allocation3 + $0x88] sm:$0xff]  ;;  %vm3427_vm11 = vcmask 588800   ;;  %vm7070_vm12 = vcmask 1043456   ;;  %vm7066_vm13 = vcmask 949248  }
  0x9b   :  { %v10847_v26 = vpack.c.bf16 %v149_v24, %v145_v23  ;;  %7453 = vmatpush1.bf16.msra.mxu1 %v10833_v17  ;;  %7415 = vmatprep.subr.bf16.mxu0 %v10843_v22  ;;  %v10853_v31 = vpack.c.bf16 %v148_v29, %v144_v28  ;;  %v155_v33 = vld [vmem:[#allocation3 + $0xa8] sm:$0xff]  ;;  %v153_v34 = vld [vmem:[#allocation3 + $0x98] sm:$0xff]  ;;  %v150_v37 = vld [vmem:[#allocation3 + $0x80] sm:$0xff]  ;;  %vm7214_vm14 = vcmask 74752  }
  0x9c   :  { %247 = vrot.lane.b32.xlu0 %v7251_v5, %s10638_s11  ;;  %473 = vrot.lane.b32.xlu1 %v7255_v12, %s10634_s21  ;;  %v10856_v35 = vpack.c.bf16 %v155_v33, %v151_v32  ;;  %v157_v36 = vld [vmem:[#allocation3 + $0xb8] sm:$0xff]  ;;  %v154_v41 = vld [vmem:[#allocation3 + $0xa0] sm:$0xff]  ;;  %v152_v42 = vld [vmem:[#allocation3 + $0x90] sm:$0xff] }
  0x9d   :  { %7455 = vmatprep.subr.bf16.mxu1 %v10847_v26  ;;  %v7258_v38 = vld [vmem:[%s13305_s0 + $0xc] sm:$0x3]  ;;  %v7259_v39 = vld [vmem:[%s13305_s0 + $0xe] sm:$0x3]  ;;  %v10865_v40 = vpack.c.bf16 %v157_v36, %v153_v34  ;;  %v156_v43 = vld [vmem:[#allocation3 + $0xb0] sm:$0xff]  ;;  %v10869_v44 = vpack.c.bf16 %v154_v41, %v150_v37 }
  0x9e   :  { %7417 = vmatpush1.bf16.msra.mxu0 %v10851_v30  ;;  %v159_v45 = vld [vmem:[#allocation3 + $0xc8] sm:$0xff]  ;;  %v161_v47 = vld [vmem:[#allocation3 + $0xd8] sm:$0xff]  ;;  %v10873_v48 = vpack.c.bf16 %v156_v43, %v152_v42  ;;  %v158_v51 = vld [vmem:[#allocation3 + $0xc0] sm:$0xff] }
  0x9f   :  { %v163_v46 = vld [vmem:[#allocation3 + $0xe8] sm:$0xff]  ;;  %7457 = vmatpush1.bf16.msra.mxu1 %v10853_v31  ;;  %7419 = vmatprep.subr.bf16.mxu0 %v10856_v35  ;;  %v165_v50 = vld [vmem:[#allocation3 + $0xf8] sm:$0xff]  ;;  %v162_v52 = vld [vmem:[#allocation3 + $0xe0] sm:$0xff] }
  0xa0   :  { %477 = vrot.lane.b32.xlu0 %v7256_v20, %s10636_s10  ;;  %481 = vrot.lane.b32.xlu1 %v7257_v21, %s10635_s8  ;;  %v10875_v49 = vpack.c.bf16 %v163_v46, %v159_v45  ;;  %v10878_v53 = vpack.c.bf16 %v165_v50, %v161_v47  ;;  %v160_v54 = vld [vmem:[#allocation3 + $0xd0] sm:$0xff]  ;;  %v167_v56 = vld [vmem:[#allocation3 + $0x108] sm:$0xff]  ;;  %v10881_v57 = vpack.c.bf16 %v162_v52, %v158_v51  ;;  %v169_v59 = vld [vmem:[#allocation3 + $0x118] sm:$0xff] }
  0xa1   :  { %7459 = vmatprep.subr.bf16.mxu1 %v10865_v40  ;;  %v164_v55 = vld [vmem:[#allocation3 + $0xf0] sm:$0xff]  ;;  %v171_v58 = vld [vmem:[#allocation3 + $0x128] sm:$0xff]  ;;  %v173_v60 = vld [vmem:[#allocation3 + $0x138] sm:$0xff] }
  0xa2   :  { %7421 = vmatpush1.bf16.msra.mxu0 %v10869_v44  ;;  %v166_v61 = vld [vmem:[#allocation3 + $0x100] sm:$0xff]  ;;  %v7263_v63 = vld [vmem:[%s13305_s0 + $0xa] sm:$0x3]  ;;  %v7264_v0 = vld [vmem:[%s13305_s0 + $0xc] sm:$0x3]  ;;  %v10893_v1 = vpack.c.bf16 %v164_v55, %v160_v54  ;;  %v10895_v2 = vpack.c.bf16 %v171_v58, %v167_v56  ;;  %v10898_v4 = vpack.c.bf16 %v173_v60, %v169_v59 }
  0xa3   :  { %v170_v62 = vld [vmem:[#allocation3 + $0x120] sm:$0xff]  ;;  %7461 = vmatpush1.bf16.msra.mxu1 %v10873_v48  ;;  %7423 = vmatprep.subr.bf16.mxu0 %v10875_v49  ;;  %v168_v3 = vld [vmem:[#allocation3 + $0x110] sm:$0xff]  ;;  %v175_v6 = vld [vmem:[#allocation3 + $0x148] sm:$0xff] }
  0xa4   :  { %485 = vrot.lane.b32.xlu0 %v7258_v38, %s10637_s24  ;;  %489 = vrot.lane.b32.xlu1 %v7259_v39, %s10638_s11  ;;  %v172_v5 = vld [vmem:[#allocation3 + $0x130] sm:$0xff]  ;;  %v179_v7 = vld [vmem:[#allocation3 + $0x168] sm:$0xff]  ;;  %v10901_v9 = vpack.c.bf16 %v170_v62, %v166_v61  ;;  %v177_v10 = vld [vmem:[#allocation3 + $0x158] sm:$0xff] }
  0xa5   :  { %7463 = vmatprep.subr.bf16.mxu1 %v10878_v53  ;;  %v181_v11 = vld [vmem:[#allocation3 + $0x178] sm:$0xff]  ;;  %v174_v15 = vld [vmem:[#allocation3 + $0x140] sm:$0xff]  ;;  %v10913_v19 = vpack.c.bf16 %v172_v5, %v168_v3  ;;  %v10915_v20 = vpack.c.bf16 %v179_v7, %v175_v6  ;;  %v183_v21 = vld [vmem:[#allocation3 + $0x188] sm:$0xff] }
  0xa6   :  { %7425 = vmatpush1.bf16.msra.mxu0 %v10881_v57  ;;  %v7265_v12 = vld [vmem:[%s13305_s0 + $0xe] sm:$0x3]  ;;  %v178_v16 = vld [vmem:[#allocation3 + $0x160] sm:$0xff]  ;;  %v187_v23 = vld [vmem:[#allocation3 + $0x1a8] sm:$0xff]  ;;  %v10918_v24 = vpack.c.bf16 %v181_v11, %v177_v10 }
  0xa7   :  { %v7266_v18 = vld [vmem:[%s13305_s0 + $0x10] sm:$0x3]  ;;  %7465 = vmatpush1.bf16.msra.mxu1 %v10893_v1  ;;  %7427 = vmatprep.subr.bf16.mxu0 %v10895_v2  ;;  %v176_v25 = vld [vmem:[#allocation3 + $0x150] sm:$0xff]  ;;  %v10921_v28 = vpack.c.bf16 %v178_v16, %v174_v15  ;;  %v185_v29 = vld [vmem:[#allocation3 + $0x198] sm:$0xff]  ;;  %v10925_v33 = vpack.c.bf16 %v187_v23, %v183_v21 }
  0xa8   :  { %686 = vrot.lane.b32.xlu0 %v7263_v63, %s10634_s21  ;;  %690 = vrot.lane.b32.xlu1 %v7264_v0, %s10636_s10  ;;  %v180_v27 = vld [vmem:[#allocation3 + $0x170] sm:$0xff]  ;;  %v189_v32 = vld [vmem:[#allocation3 + $0x1b8] sm:$0xff]  ;;  %v182_v34 = vld [vmem:[#allocation3 + $0x180] sm:$0xff] }
  0xa9   :  { %7467 = vmatprep.subr.bf16.mxu1 %v10898_v4  ;;  %v186_v36 = vld [vmem:[#allocation3 + $0x1a0] sm:$0xff]  ;;  %v10932_v38 = vpack.c.bf16 %v180_v27, %v176_v25  ;;  %v191_v39 = vld [vmem:[#allocation3 + $0x1c8] sm:$0xff]  ;;  %v10935_v42 = vpack.c.bf16 %v189_v32, %v185_v29  ;;  %v184_v43 = vld [vmem:[#allocation3 + $0x190] sm:$0xff] }
  0xaa   :  { %7429 = vmatpush1.bf16.msra.mxu0 %v10901_v9  ;;  %v7267_v37 = vld [vmem:[%s13305_s0 + $0x12] sm:$0x3]  ;;  %v195_v41 = vld [vmem:[#allocation3 + $0x1e8] sm:$0xff]  ;;  %v188_v45 = vld [vmem:[#allocation3 + $0x1b0] sm:$0xff]  ;;  %v10938_v46 = vpack.c.bf16 %v186_v36, %v182_v34 }
  0xab   :  { %7469 = vmatpush1.bf16.msra.mxu1 %v10913_v19  ;;  %7431 = vmatprep.subr.bf16.mxu0 %v10915_v20  ;;  %v193_v47 = vld [vmem:[#allocation3 + $0x1d8] sm:$0xff]  ;;  %v10942_v51 = vpack.c.bf16 %v195_v41, %v191_v39  ;;  %v190_v52 = vld [vmem:[#allocation3 + $0x1c0] sm:$0xff]  ;;  %v10945_v55 = vpack.c.bf16 %v188_v45, %v184_v43  ;;  %v199_v56 = vld [vmem:[#allocation3 + $0x208] sm:$0xff] }
  0xac   :  { %694 = vrot.lane.b32.xlu0 %v7265_v12, %s10635_s8  ;;  %698 = vrot.lane.b32.xlu1 %v7266_v18, %s10637_s24  ;;  %v197_v50 = vld [vmem:[#allocation3 + $0x1f8] sm:$0xff]  ;;  %v194_v54 = vld [vmem:[#allocation3 + $0x1e0] sm:$0xff]  ;;  %v203_v58 = vld [vmem:[#allocation3 + $0x228] sm:$0xff] }
  0xad   :  { %7471 = vmatprep.subr.bf16.mxu1 %v10918_v24  ;;  %v10948_v59 = vpack.c.bf16 %v197_v50, %v193_v47  ;;  %v192_v60 = vld [vmem:[#allocation3 + $0x1d0] sm:$0xff]  ;;  %v10951_v62 = vpack.c.bf16 %v194_v54, %v190_v52  ;;  %v201_v63 = vld [vmem:[#allocation3 + $0x218] sm:$0xff]  ;;  %v10954_v3 = vpack.c.bf16 %v203_v58, %v199_v56  ;;  %v198_v5 = vld [vmem:[#allocation3 + $0x200] sm:$0xff] }
  0xae   :  { %7433 = vmatpush1.bf16.msra.mxu0 %v10921_v28  ;;  %v196_v61 = vld [vmem:[#allocation3 + $0x1f0] sm:$0xff]  ;;  %v205_v0 = vld [vmem:[#allocation3 + $0x238] sm:$0xff]  ;;  %v202_v6 = vld [vmem:[#allocation3 + $0x220] sm:$0xff] }
  0xaf   :  { %7435 = vmatprep.subr.bf16.mxu0 %v10925_v33  ;;  %7473 = vmatpush1.bf16.msra.mxu1 %v10932_v38  ;;  %v7271_v7 = vld [vmem:[%s13305_s0 + $0xe] sm:$0x3]  ;;  %v10960_v10 = vpack.c.bf16 %v196_v61, %v192_v60  ;;  %v207_v11 = vld [vmem:[#allocation3 + $0x248] sm:$0xff]  ;;  %v7272_v15 = vld [vmem:[%s13305_s0 + $0x10] sm:$0x3]  ;;  %v10967_v16 = vpack.c.bf16 %v205_v0, %v201_v63  ;;  %v10974_v25 = vpack.c.bf16 %v202_v6, %v198_v5 }
  0xb0   :  { %702 = vrot.lane.b32.xlu0 %v7267_v37, %s10638_s11  ;;  %7475 = vmatprep.subr.bf16.mxu1 %v10935_v42  ;;  %v211_v12 = vld [vmem:[#allocation3 + $0x268] sm:$0xff]  ;;  %v200_v18 = vld [vmem:[#allocation3 + $0x210] sm:$0xff]  ;;  %v7273_v23 = vld [vmem:[%s13305_s0 + $0x12] sm:$0x3] }
  0xb1   :  { %899 = vrot.lane.b32.xlu1 %v7271_v7, %s10634_s21  ;;  %v204_v21 = vld [vmem:[#allocation3 + $0x230] sm:$0xff]  ;;  %v209_v27 = vld [vmem:[#allocation3 + $0x258] sm:$0xff]  ;;  %v7274_v32 = vld [vmem:[%s13305_s0 + $0x14] sm:$0x3]  ;;  %v10980_v34 = vpack.c.bf16 %v211_v12, %v207_v11 }
  0xb2   :  { %7437 = vmatpush1.bf16.msra.mxu0 %v10938_v46  ;;  %v213_v29 = vld [vmem:[#allocation3 + $0x278] sm:$0xff]  ;;  %v206_v36 = vld [vmem:[#allocation3 + $0x240] sm:$0xff]  ;;  %v10983_v39 = vpack.c.bf16 %v204_v21, %v200_v18  ;;  %v208_v43 = vld [vmem:[#allocation3 + $0x250] sm:$0xff] }
  0xb3   :  { %7439 = vmatprep.subr.bf16.mxu0 %v10942_v51  ;;  %7477 = vmatpush1.bf16.msra.mxu1 %v10945_v55  ;;  %v210_v37 = vld [vmem:[#allocation3 + $0x260] sm:$0xff]  ;;  %v10987_v41 = vpack.c.bf16 %v213_v29, %v209_v27  ;;  %v212_v45 = vld [vmem:[#allocation3 + $0x270] sm:$0xff]  ;;  %v11000_v54 = vld [vmem:[#allocation3 + $0x288] sm:$0xff] }
  0xb4   :  { %7479 = vmatprep.subr.bf16.mxu1 %v10948_v59  ;;  %903 = vrot.lane.b32.xlu0 %v7272_v15, %s10636_s10  ;;  %v7275_v47 = vld [vmem:[%s13305_s0 + $0x16] sm:$0x3]  ;;  %v10994_v50 = vpack.c.bf16 %v210_v37, %v206_v36  ;;  %v10998_v52 = vpack.c.bf16 %v212_v45, %v208_v43  ;;  %v11005_v56 = vld [vmem:[#allocation3 + $0x298] sm:$0xff]  ;;  %v11012_v60 = vld [vmem:[#allocation3 + $0x290] sm:$0xff] }
  0xb5   :  { %907 = vrot.lane.b32.xlu1 %v7273_v23, %s10635_s8  ;;  %v11008_v58 = vld [vmem:[#allocation3 + $0x280] sm:$0xff]  ;;  %v7282_v5 = vld [vmem:[%s13305_s0 + $0x18] sm:$0x3]  ;;  %v7283_v6 = vld [vmem:[%s13305_s0 + $0x1a] sm:$0x3] }
  0xb6   :  { %7441 = vmatpush1.bf16.msra.mxu0 %v10951_v62  ;;  %v7279_v61 = vld [vmem:[%s13305_s0 + $0x12] sm:$0x3]  ;;  %v7280_v63 = vld [vmem:[%s13305_s0 + $0x14] sm:$0x3]  ;;  %v7281_v0 = vld [vmem:[%s13305_s0 + $0x16] sm:$0x3] }
  0xb7   :  { %7443 = vmatprep.subr.bf16.mxu0 %v10954_v3  ;;  %7481 = vmatpush1.bf16.msra.mxu1 %v10960_v10  ;;  %v7287_v7 = vld [vmem:[%s13305_s0 + $0x16] sm:$0x3]  ;;  %v7289_v11 = vld [vmem:[%s13305_s0 + $0x1a] sm:$0x3]  ;;  %v7288_v12 = vld [vmem:[%s13305_s0 + $0x18] sm:$0x3] }
  0xb8   :  { %7483 = vmatprep.subr.bf16.mxu1 %v10967_v16  ;;  %911 = vrot.lane.b32.xlu0 %v7274_v32, %s10637_s24  ;;  %v219_v21 = vld [vmem:[%s13305_s0] sm:$0x3]  ;;  %v7291_v23 = vld [vmem:[%s13305_s0 + $0x1e] sm:$0x3]  ;;  %v7290_v27 = vld [vmem:[%s13305_s0 + $0x1c] sm:$0x3] }
  0xb9   :  { %915 = vrot.lane.b32.xlu1 %v7275_v47, %s10638_s11 }
  0xba   :  { %7445 = vmatpush1.bf16.msra.mxu0 %v10974_v25 }
  0xbb   :  { %7447 = vmatprep.subr.bf16.mxu0 %v10980_v34  ;;  %7485 = vmatpush1.bf16.msra.mxu1 %v10983_v39 }
  0xbc   :  { %7487 = vmatprep.subr.bf16.mxu1 %v10987_v41  ;;  %1112 = vrot.lane.b32.xlu0 %v7279_v61, %s10634_s21 }
  0xbd   :  { %1116 = vrot.lane.b32.xlu1 %v7280_v63, %s10636_s10 }
  0xbe   :  { %7449 = vmatpush1.bf16.msra.mxu0 %v10994_v50 }
  0xbf   :  { %325 = vmatprep.subr.mxu0 %v11000_v54  ;;  %7489 = vmatpush1.bf16.msra.mxu1 %v10998_v52 }
  0xc0   :  { %396 = vmatprep.subr.mxu1 %v11005_v56  ;;  %1120 = vrot.lane.b32.xlu0 %v7281_v0, %s10635_s8 }
  0xc1   :  { %1124 = vrot.lane.b32.xlu1 %v7282_v5, %s10637_s24 }
  0xc2   :  { %326 = vmatpush1.msra.mxu0 %v11008_v58 }
  0xc3   :  { %7491 = vmatprep.subr.bf16.mxu0 %v10823_v8  ;;  %397 = vmatpush1.msra.mxu1 %v11012_v60 }
  0xc4   :  { %7531 = vmatprep.subr.bf16.mxu1 %v10828_v13  ;;  %1128 = vrot.lane.b32.xlu0 %v7283_v6, %s10638_s11  ;;  %v7295_v6 = vld [vmem:[%s13305_s0 + $0x1a] sm:$0x3] }
  0xc5   :  { %1325 = vrot.lane.b32.xlu1 %v7287_v7, %s10634_s21 }
  0xc8   :  { %1329 = vrot.lane.b32.xlu0 %v7288_v12, %s10636_s10 }
  0xc9   :  { %1333 = vrot.lane.b32.xlu1 %v7289_v11, %s10635_s8 }
  0xcc   :  { %1337 = vrot.lane.b32.xlu0 %v7290_v27, %s10637_s24  ;;  %v7254_v27 = vld [vmem:[%s13305_s0 + $0x4] sm:$0x3] }
  0xcd   :  { %1341 = vrot.lane.b32.xlu1 %v7291_v23, %s10638_s11  ;;  %v7299_v23 = vld [vmem:[%s13305_s0 + $0x22] sm:$0x3] }
  0xd0   :  { %1538 = vrot.lane.b32.xlu0 %v7295_v6, %s10634_s21  ;;  %v7305_v6 = vld [vmem:[%s13305_s0 + $0x22] sm:$0x3] }
 0x106   :  { %v232_v15 = vpop.permute.xlu0 %231  ;;  %v240_v18 = vpop.permute.xlu1 %239 }
 0x107   :  { %v251_v29 = vsel %vm250_vm0, %v219_v21, %v232_v15  ;;  %v7296_v15 = vld [vmem:[%s13305_s0 + $0x1c] sm:$0x3]  ;;  %v7298_v21 = vld [vmem:[%s13305_s0 + $0x20] sm:$0x3] }
 0x108   :  { %1542 = vrot.lane.b32.xlu1 %v7296_v15, %s10636_s10 }
 0x10a   :  { %v236_v32 = vpop.permute.xlu0 %235  ;;  %v244_v36 = vpop.permute.xlu1 %243 }
 0x10b   :  { %v253_v37 = vsel %vm252_vm1, %v251_v29, %v236_v32 }
 0x10c   :  { %v255_v43 = vsel %vm254_vm2, %v253_v37, %v240_v18  ;;  %v7297_v18 = vld [vmem:[%s13305_s0 + $0x1e] sm:$0x3]  ;;  %1550 = vrot.lane.b32.xlu1 %v7298_v21, %s10637_s24 }
 0x10d   :  { %v257_v63 = vsel %vm256_vm5, %v255_v43, %v244_v36  ;;  %1546 = vrot.lane.b32.xlu0 %v7297_v18, %s10635_s8  ;;  %v7262_v18 = vld [vmem:[%s13305_s0 + $0x8] sm:$0x3] }
 0x10e   :  { %v248_v45 = vpop.permute.xlu0 %247  ;;  %v474_v47 = vpop.permute.xlu1 %473 }
 0x10f   :  { %v259_v61 = vsel %vm258_vm3, %v244_v36, %v248_v45  ;;  %v492_v32 = vsel %vm250_vm0, %v7254_v27, %v474_v47 }
 0x110   :  { %7252 = vmatprep.mubr.msk.f32.mxu0 %vm281_vm4, %v259_v61  ;;  %7253 = vmatprep.mubr.msk.f32.mxu1 %vm281_vm4, %v259_v61 }
 0x111   :  { %350 = vmatmul.mubr.f32.vlgmr.msra.gmra.mrb[0].mxu0 %v257_v63  ;;  %421 = vmatmul.mubr.f32.vlgmr.msra.gmra.mrb[0].mxu1 %v257_v63 }
 0x112   :  { %7493 = vmatpush1.bf16.msra.mxu0 %v10830_v14  ;;  %7533 = vmatpush1.bf16.msra.mxu1 %v10833_v17  ;;  %v478_v0 = vpop.permute.xlu0 %477  ;;  %v482_v5 = vpop.permute.xlu1 %481 }
 0x113   :  { %7495 = vmatprep.subr.bf16.mxu0 %v10843_v22  ;;  %7535 = vmatprep.subr.bf16.mxu1 %v10847_v26  ;;  %v493_v36 = vsel %vm252_vm1, %v492_v32, %v478_v0 }
 0x114   :  { %1554 = vrot.lane.b32.xlu0 %v7299_v23, %s10638_s11  ;;  %v494_v45 = vsel %vm254_vm2, %v493_v36, %v482_v5  ;;  %v7303_v5 = vld [vmem:[%s13305_s0 + $0x1e] sm:$0x3] }
 0x115   :  { %1751 = vrot.lane.b32.xlu1 %v7303_v5, %s10634_s21  ;;  %v7315_v5 = vld [vmem:[%s13305_s0 + $0x2a] sm:$0x3] }
 0x116   :  { %7497 = vmatpush1.bf16.msra.mxu0 %v10851_v30  ;;  %7537 = vmatpush1.bf16.msra.mxu1 %v10853_v31  ;;  %v486_v7 = vpop.permute.xlu0 %485  ;;  %v490_v11 = vpop.permute.xlu1 %489 }
 0x117   :  { %7499 = vmatprep.subr.bf16.mxu0 %v10856_v35  ;;  %7539 = vmatprep.subr.bf16.mxu1 %v10865_v40  ;;  %v496_v12 = vsel %vm258_vm3, %v486_v7, %v490_v11  ;;  %v495_v61 = vsel %vm256_vm5, %v494_v45, %v486_v7  ;;  %v7304_v7 = vld [vmem:[%s13305_s0 + $0x20] sm:$0x3]  ;;  %v7307_v11 = vld [vmem:[%s13305_s0 + $0x26] sm:$0x3] }
 0x118   :  { %7260 = vmatprep.mubr.msk.f32.mxu0 %vm281_vm4, %v496_v12  ;;  %7261 = vmatprep.mubr.msk.f32.mxu1 %vm281_vm4, %v496_v12  ;;  %v7306_v12 = vld [vmem:[%s13305_s0 + $0x24] sm:$0x3] }
 0x119   :  { %1755 = vrot.lane.b32.xlu0 %v7304_v7, %s10636_s10  ;;  %1759 = vrot.lane.b32.xlu1 %v7305_v6, %s10635_s8  ;;  %v7319_v6 = vld [vmem:[%s13305_s0 + $0x26] sm:$0x3]  ;;  %v7320_v7 = vld [vmem:[%s13305_s0 + $0x28] sm:$0x3] }
 0x11a   :  { %7501 = vmatpush1.bf16.msra.mxu0 %v10869_v44  ;;  %7541 = vmatpush1.bf16.msra.mxu1 %v10873_v48  ;;  %v11126_v29 = vpop.permute.xlu0 %686  ;;  %v11134_v37 = vpop.permute.xlu1 %690 }
 0x11b   :  { %7503 = vmatprep.subr.bf16.mxu0 %v10875_v49  ;;  %7543 = vmatprep.subr.bf16.mxu1 %v10878_v53  ;;  %v705_v21 = vsel %vm250_vm0, %v7262_v18, %v11126_v29 }
 0x11c   :  { %v706_v32 = vsel %vm252_vm1, %v705_v21, %v11134_v37 }
 0x11d   :  { %1763 = vrot.lane.b32.xlu0 %v7306_v12, %s10637_s24  ;;  %1767 = vrot.lane.b32.xlu1 %v7307_v11, %s10638_s11  ;;  %v7321_v11 = vld [vmem:[%s13305_s0 + $0x2a] sm:$0x3]  ;;  %v7270_v12 = vld [vmem:[%s13305_s0 + $0xc] sm:$0x3] }
 0x11e   :  { %7505 = vmatpush1.bf16.msra.mxu0 %v10881_v57  ;;  %7545 = vmatpush1.bf16.msra.mxu1 %v10893_v1  ;;  %v11136_v43 = vpop.permute.xlu0 %694  ;;  %v11146_v63 = vpop.permute.xlu1 %698 }
 0x11f   :  { %7507 = vmatprep.subr.bf16.mxu0 %v10895_v2  ;;  %7547 = vmatprep.subr.bf16.mxu1 %v10898_v4  ;;  %v707_v29 = vsel %vm254_vm2, %v706_v32, %v11136_v43 }
 0x120   :  { %v708_v37 = vsel %vm256_vm5, %v707_v29, %v11146_v63 }
 0x122   :  { %7509 = vmatpush1.bf16.msra.mxu0 %v10901_v9  ;;  %7549 = vmatpush1.bf16.msra.mxu1 %v10913_v19  ;;  %v703_v47 = vpop.permute.xlu0 %702 }
 0x123   :  { %7511 = vmatprep.subr.bf16.mxu0 %v10915_v20  ;;  %7551 = vmatprep.subr.bf16.mxu1 %v10918_v24  ;;  %v709_v0 = vsel %vm258_vm3, %v11146_v63, %v703_v47  ;;  %v11202_v15 = vpop.permute.xlu1 %899  ;;  %v7311_v47 = vld [vmem:[%s13305_s0 + $0x22] sm:$0x3]  ;;  %v7313_v63 = vld [vmem:[%s13305_s0 + $0x26] sm:$0x3] }
 0x124   :  { %1964 = vrot.lane.b32.xlu0 %v7311_v47, %s10634_s21  ;;  %v918_v21 = vsel %vm250_vm0, %v7270_v12, %v11202_v15  ;;  %v7323_v47 = vld [vmem:[%s13305_s0 + $0x2e] sm:$0x3] }
 0x126   :  { %7513 = vmatpush1.bf16.msra.mxu0 %v10921_v28  ;;  %7553 = vmatpush1.bf16.msra.mxu1 %v10932_v38  ;;  %v11219_v27 = vpop.permute.xlu0 %903 }
 0x127   :  { %7515 = vmatprep.subr.bf16.mxu0 %v10925_v33  ;;  %7555 = vmatprep.subr.bf16.mxu1 %v10935_v42  ;;  %v11217_v23 = vpop.permute.xlu1 %907  ;;  %v919_v32 = vsel %vm252_vm1, %v918_v21, %v11219_v27 }
 0x128   :  { %1972 = vrot.lane.b32.xlu0 %v7313_v63, %s10635_s8  ;;  %v920_v15 = vsel %vm254_vm2, %v919_v32, %v11217_v23 }
 0x12a   :  { %7517 = vmatpush1.bf16.msra.mxu0 %v10938_v46  ;;  %7557 = vmatpush1.bf16.msra.mxu1 %v10945_v55  ;;  %v11229_v45 = vpop.permute.xlu0 %911 }
 0x12b   :  { %7519 = vmatprep.subr.bf16.mxu0 %v10942_v51  ;;  %7559 = vmatprep.subr.bf16.mxu1 %v10948_v59  ;;  %v916_v36 = vpop.permute.xlu1 %915  ;;  %v921_v27 = vsel %vm256_vm5, %v920_v15, %v11229_v45 }
 0x12c   :  { %v922_v43 = vsel %vm258_vm3, %v11229_v45, %v916_v36  ;;  %1980 = vrot.lane.b32.xlu0 %v7315_v5, %s10638_s11  ;;  %v7322_v45 = vld [vmem:[%s13305_s0 + $0x2c] sm:$0x3] }
 0x12e   :  { %7521 = vmatpush1.bf16.msra.mxu0 %v10951_v62  ;;  %7561 = vmatpush1.bf16.msra.mxu1 %v10960_v10  ;;  %v11304_v18 = vpop.permute.xlu0 %1112 }
 0x12f   :  { %7523 = vmatprep.subr.bf16.mxu0 %v10954_v3  ;;  %7563 = vmatprep.subr.bf16.mxu1 %v10967_v16  ;;  %v1117_v29 = vpop.permute.xlu1 %1116 }
 0x130   :  { %2181 = vrot.lane.b32.xlu0 %v7320_v7, %s10636_s10 }
 0x132   :  { %7525 = vmatpush1.bf16.msra.mxu0 %v10974_v25  ;;  %7565 = vmatpush1.bf16.msra.mxu1 %v10983_v39  ;;  %v11318_v36 = vpop.permute.xlu0 %1120 }
 0x133   :  { %7527 = vmatprep.subr.bf16.mxu0 %v10980_v34  ;;  %7567 = vmatprep.subr.bf16.mxu1 %v10987_v41 }
 0x134   :  { %2189 = vrot.lane.b32.xlu0 %v7322_v45, %s10637_s24 }
 0x136   :  { %7529 = vmatpush1.bf16.msra.mxu0 %v10994_v50  ;;  %7569 = vmatpush1.bf16.msra.mxu1 %v10998_v52 }
 0x137   :  { %540 = vmatprep.subr.mxu0 %v11000_v54  ;;  %611 = vmatprep.subr.mxu1 %v11005_v56 }
 0x13a   :  { %541 = vmatpush1.msra.mxu0 %v11008_v58  ;;  %612 = vmatpush1.msra.mxu1 %v11012_v60 }
 0x13b   :  { %565 = vmatmul.mubr.f32.vlgmr.msra.gmra.mrb[2].mxu0 %v495_v61  ;;  %636 = vmatmul.mubr.f32.vlgmr.msra.gmra.mrb[2].mxu1 %v495_v61  ;;  %v7312_v61 = vld [vmem:[%s13305_s0 + $0x24] sm:$0x3] }
 0x13c   :  { %7571 = vmatprep.subr.bf16.mxu0 %v10823_v8  ;;  %7611 = vmatprep.subr.bf16.mxu1 %v10828_v13 }
 0x13d   :  { %7573 = vmatpush1.bf16.msra.mxu0 %v10830_v14  ;;  %7613 = vmatpush1.bf16.msra.mxu1 %v10833_v17 }
 0x13e   :  { %7575 = vmatprep.subr.bf16.mxu0 %v10843_v22  ;;  %7615 = vmatprep.subr.bf16.mxu1 %v10847_v26 }
 0x13f   :  { %7268 = vmatprep.mubr.msk.f32.mxu0 %vm281_vm4, %v709_v0  ;;  %7269 = vmatprep.mubr.msk.f32.mxu1 %vm281_vm4, %v709_v0  ;;  %v7314_v0 = vld [vmem:[%s13305_s0 + $0x28] sm:$0x3] }
 0x140   :  { %1968 = vrot.lane.b32.xlu1 %v7312_v61, %s10636_s10  ;;  %v7278_v61 = vld [vmem:[%s13305_s0 + $0x10] sm:$0x3] }
 0x141   :  { %7577 = vmatpush1.bf16.msra.mxu0 %v10851_v30  ;;  %7617 = vmatpush1.bf16.msra.mxu1 %v10853_v31 }
 0x142   :  { %7579 = vmatprep.subr.bf16.mxu0 %v10856_v35  ;;  %7619 = vmatprep.subr.bf16.mxu1 %v10865_v40 }
 0x144   :  { %1976 = vrot.lane.b32.xlu1 %v7314_v0, %s10637_s24  ;;  %v1131_v0 = vsel %vm250_vm0, %v7278_v61, %v11304_v18 }
 0x145   :  { %7581 = vmatpush1.bf16.msra.mxu0 %v10869_v44  ;;  %7621 = vmatpush1.bf16.msra.mxu1 %v10873_v48  ;;  %v1132_v5 = vsel %vm252_vm1, %v1131_v0, %v1117_v29 }
 0x146   :  { %7583 = vmatprep.subr.bf16.mxu0 %v10875_v49  ;;  %7623 = vmatprep.subr.bf16.mxu1 %v10878_v53 }
 0x148   :  { %2177 = vrot.lane.b32.xlu1 %v7319_v6, %s10634_s21 }
 0x149   :  { %7585 = vmatpush1.bf16.msra.mxu0 %v10881_v57  ;;  %7625 = vmatpush1.bf16.msra.mxu1 %v10893_v1 }
 0x14a   :  { %7587 = vmatprep.subr.bf16.mxu0 %v10895_v2  ;;  %7627 = vmatprep.subr.bf16.mxu1 %v10898_v4 }
 0x14c   :  { %2185 = vrot.lane.b32.xlu1 %v7321_v11, %s10635_s8  ;;  %v1133_v11 = vsel %vm254_vm2, %v1132_v5, %v11318_v36  ;;  %v7286_v36 = vld [vmem:[%s13305_s0 + $0x14] sm:$0x3] }
 0x14d   :  { %7589 = vmatpush1.bf16.msra.mxu0 %v10901_v9  ;;  %7629 = vmatpush1.bf16.msra.mxu1 %v10913_v19 }
 0x14e   :  { %7591 = vmatprep.subr.bf16.mxu0 %v10915_v20  ;;  %7631 = vmatprep.subr.bf16.mxu1 %v10918_v24 }
 0x150   :  { %2193 = vrot.lane.b32.xlu1 %v7323_v47, %s10638_s11 }
 0x151   :  { %7593 = vmatpush1.bf16.msra.mxu0 %v10921_v28  ;;  %7633 = vmatpush1.bf16.msra.mxu1 %v10932_v38 }
 0x152   :  { %7595 = vmatprep.subr.bf16.mxu0 %v10925_v33  ;;  %7635 = vmatprep.subr.bf16.mxu1 %v10935_v42 }
 0x155   :  { %7597 = vmatpush1.bf16.msra.mxu0 %v10938_v46  ;;  %7637 = vmatpush1.bf16.msra.mxu1 %v10945_v55 }
 0x156   :  { %7599 = vmatprep.subr.bf16.mxu0 %v10942_v51  ;;  %7639 = vmatprep.subr.bf16.mxu1 %v10948_v59 }
 0x159   :  { %7601 = vmatpush1.bf16.msra.mxu0 %v10951_v62  ;;  %7641 = vmatpush1.bf16.msra.mxu1 %v10960_v10 }
 0x15a   :  { %7603 = vmatprep.subr.bf16.mxu0 %v10954_v3  ;;  %7643 = vmatprep.subr.bf16.mxu1 %v10967_v16 }
 0x15d   :  { %7605 = vmatpush1.bf16.msra.mxu0 %v10974_v25  ;;  %7645 = vmatpush1.bf16.msra.mxu1 %v10983_v39 }
 0x15e   :  { %7607 = vmatprep.subr.bf16.mxu0 %v10980_v34  ;;  %7647 = vmatprep.subr.bf16.mxu1 %v10987_v41 }
 0x161   :  { %7609 = vmatpush1.bf16.msra.mxu0 %v10994_v50  ;;  %7649 = vmatpush1.bf16.msra.mxu1 %v10998_v52 }
 0x162   :  { %753 = vmatprep.subr.mxu0 %v11000_v54  ;;  %824 = vmatprep.subr.mxu1 %v11005_v56 }
 0x165   :  { %754 = vmatpush1.msra.mxu0 %v11008_v58  ;;  %825 = vmatpush1.msra.mxu1 %v11012_v60 }
 0x166   :  { %778 = vmatmul.mubr.f32.vlgmr.msra.gmra.mrb[4].mxu0 %v708_v37  ;;  %849 = vmatmul.mubr.f32.vlgmr.msra.gmra.mrb[4].mxu1 %v708_v37  ;;  %v11328_v37 = vpop.permute.xlu1 %1124 }
 0x167   :  { %7651 = vmatprep.subr.bf16.mxu0 %v10823_v8  ;;  %7691 = vmatprep.subr.bf16.mxu1 %v10828_v13  ;;  %v1134_v12 = vsel %vm256_vm5, %v1133_v11, %v11328_v37  ;;  %v261_v11 = vlaneseq }
 0x168   :  { %7653 = vmatpush1.bf16.msra.mxu0 %v10830_v14  ;;  %7693 = vmatpush1.bf16.msra.mxu1 %v10833_v17 }
 0x169   :  { %7655 = vmatprep.subr.bf16.mxu0 %v10843_v22  ;;  %7695 = vmatprep.subr.bf16.mxu1 %v10847_v26 }
 0x16a   :  { %7276 = vmatprep.mubr.msk.f32.mxu0 %vm281_vm4, %v922_v43  ;;  %7277 = vmatprep.mubr.msk.f32.mxu1 %vm281_vm4, %v922_v43  ;;  %v1129_v43 = vpop.permute.xlu0 %1128  ;;  %v11377_v63 = vpop.permute.xlu1 %1325 }
 0x16b   :  { %v1135_v23 = vsel %vm258_vm3, %v11328_v37, %v1129_v43  ;;  %v1344_v15 = vsel %vm250_vm0, %v7286_v36, %v11377_v63 }
 0x16c   :  { %7657 = vmatpush1.bf16.msra.mxu0 %v10851_v30  ;;  %7697 = vmatpush1.bf16.msra.mxu1 %v10853_v31 }
 0x16d   :  { %7659 = vmatprep.subr.bf16.mxu0 %v10856_v35  ;;  %7699 = vmatprep.subr.bf16.mxu1 %v10865_v40 }
 0x16e   :  { %v1334_v6 = vpop.permute.xlu1 %1333  ;;  %v1330_v7 = vpop.permute.xlu0 %1329 }
 0x16f   :  { %v1345_v43 = vsel %vm252_vm1, %v1344_v15, %v1330_v7  ;;  %v11525_v15 = vld [vmem:[#allocation6] sm:$0xf] }
 0x170   :  { %7661 = vmatpush1.bf16.msra.mxu0 %v10869_v44  ;;  %7701 = vmatpush1.bf16.msra.mxu1 %v10873_v48 }
 0x171   :  { %7663 = vmatprep.subr.bf16.mxu0 %v10875_v49  ;;  %7703 = vmatprep.subr.bf16.mxu1 %v10878_v53 }
 0x172   :  { %v1342_v18 = vpop.permute.xlu1 %1341  ;;  %v11398_v21 = vpop.permute.xlu0 %1337 }
 0x173   :  { %v1348_v32 = vsel %vm258_vm3, %v11398_v21, %v1342_v18  ;;  %v11512_v18 = vshrl.u32 %v261_v11, 7 }
 0x174   :  { %7665 = vmatpush1.bf16.msra.mxu0 %v10881_v57  ;;  %7705 = vmatpush1.bf16.msra.mxu1 %v10893_v1 }
 0x175   :  { %7667 = vmatprep.subr.bf16.mxu0 %v10895_v2  ;;  %7707 = vmatprep.subr.bf16.mxu1 %v10898_v4  ;;  %13436 = vst [vmem:[#allocation26_spill] sm:$0xff] %v11512_v18  ;;  %v13315_v36 = vsub.s32 2, %v11512_v18 }
 0x176   :  { %v11436_v29 = vpop.permute.xlu0 %1538 }
 0x178   :  { %7669 = vmatpush1.bf16.msra.mxu0 %v10901_v9  ;;  %7709 = vmatpush1.bf16.msra.mxu1 %v10913_v19 }
 0x179   :  { %7671 = vmatprep.subr.bf16.mxu0 %v10915_v20  ;;  %7711 = vmatprep.subr.bf16.mxu1 %v10918_v24 }
 0x17c   :  { %7673 = vmatpush1.bf16.msra.mxu0 %v10921_v28  ;;  %7713 = vmatpush1.bf16.msra.mxu1 %v10932_v38 }
 0x17d   :  { %7675 = vmatprep.subr.bf16.mxu0 %v10925_v33  ;;  %7715 = vmatprep.subr.bf16.mxu1 %v10935_v42 }
 0x17f   :  { %v11449_v37 = vpop.permute.xlu0 %1546 }
 0x180   :  { %7677 = vmatpush1.bf16.msra.mxu0 %v10938_v46  ;;  %7717 = vmatpush1.bf16.msra.mxu1 %v10945_v55 }
 0x181   :  { %7679 = vmatprep.subr.bf16.mxu0 %v10942_v51  ;;  %7719 = vmatprep.subr.bf16.mxu1 %v10948_v59 }
 0x184   :  { %7681 = vmatpush1.bf16.msra.mxu0 %v10951_v62  ;;  %7721 = vmatpush1.bf16.msra.mxu1 %v10960_v10 }
 0x185   :  { %7683 = vmatprep.subr.bf16.mxu0 %v10954_v3  ;;  %7723 = vmatprep.subr.bf16.mxu1 %v10967_v16 }
 0x186   :  { %v1555_v47 = vpop.permute.xlu0 %1554 }
 0x188   :  { %7685 = vmatpush1.bf16.msra.mxu0 %v10974_v25  ;;  %7725 = vmatpush1.bf16.msra.mxu1 %v10983_v39 }
 0x189   :  { %7687 = vmatprep.subr.bf16.mxu0 %v10980_v34  ;;  %7727 = vmatprep.subr.bf16.mxu1 %v10987_v41 }
 0x18c   :  { %7689 = vmatpush1.bf16.msra.mxu0 %v10994_v50  ;;  %7729 = vmatpush1.bf16.msra.mxu1 %v10998_v52 }
 0x18d   :  { %966 = vmatprep.subr.mxu0 %v11000_v54  ;;  %1037 = vmatprep.subr.mxu1 %v11005_v56 }
 0x190   :  { %967 = vmatpush1.msra.mxu0 %v11008_v58  ;;  %1038 = vmatpush1.msra.mxu1 %v11012_v60 }
 0x191   :  { %991 = vmatmul.mubr.f32.vlgmr.msra.gmra.mrb[6].mxu0 %v921_v27  ;;  %1062 = vmatmul.mubr.f32.vlgmr.msra.gmra.mrb[6].mxu1 %v921_v27  ;;  %v11447_v27 = vpop.permute.xlu1 %1542 }
 0x192   :  { %7731 = vmatprep.subr.bf16.mxu0 %v10823_v8  ;;  %7771 = vmatprep.subr.bf16.mxu1 %v10828_v13 }
 0x193   :  { %7733 = vmatpush1.bf16.msra.mxu0 %v10830_v14  ;;  %7773 = vmatpush1.bf16.msra.mxu1 %v10833_v17 }
 0x194   :  { %7735 = vmatprep.subr.bf16.mxu0 %v10843_v22  ;;  %7775 = vmatprep.subr.bf16.mxu1 %v10847_v26 }
 0x195   :  { %7284 = vmatprep.mubr.msk.f32.mxu0 %vm281_vm4, %v1135_v23  ;;  %7285 = vmatprep.mubr.msk.f32.mxu1 %vm281_vm4, %v1135_v23  ;;  %v1346_v23 = vsel %vm254_vm2, %v1345_v43, %v1334_v6  ;;  %v11461_v45 = vpop.permute.xlu1 %1550  ;;  %v13316_v43 = vsub.s32 3, %v11512_v18 }
 0x196   :  { %v1347_v6 = vsel %vm256_vm5, %v1346_v23, %v11398_v21  ;;  %v1561_v7 = vsel %vm258_vm3, %v11461_v45, %v1555_v47 }
 0x197   :  { %7737 = vmatpush1.bf16.msra.mxu0 %v10851_v30  ;;  %7777 = vmatpush1.bf16.msra.mxu1 %v10853_v31 }
 0x198   :  { %7739 = vmatprep.subr.bf16.mxu0 %v10856_v35  ;;  %7779 = vmatprep.subr.bf16.mxu1 %v10865_v40 }
 0x199   :  { %v11516_v21 = vpop.permute.xlu1 %1751 }
 0x19b   :  { %7741 = vmatpush1.bf16.msra.mxu0 %v10869_v44  ;;  %7781 = vmatpush1.bf16.msra.mxu1 %v10873_v48 }
 0x19c   :  { %7743 = vmatprep.subr.bf16.mxu0 %v10875_v49  ;;  %7783 = vmatprep.subr.bf16.mxu1 %v10878_v53 }
 0x19d   :  { %v11532_v47 = vpop.permute.xlu1 %1759 }
 0x19f   :  { %7745 = vmatpush1.bf16.msra.mxu0 %v10881_v57  ;;  %7785 = vmatpush1.bf16.msra.mxu1 %v10893_v1 }
 0x1a0   :  { %7747 = vmatprep.subr.bf16.mxu0 %v10895_v2  ;;  %7787 = vmatprep.subr.bf16.mxu1 %v10898_v4 }
 0x1a3   :  { %7749 = vmatpush1.bf16.msra.mxu0 %v10901_v9  ;;  %7789 = vmatpush1.bf16.msra.mxu1 %v10913_v19 }
 0x1a4   :  { %7751 = vmatprep.subr.bf16.mxu0 %v10915_v20  ;;  %7791 = vmatprep.subr.bf16.mxu1 %v10918_v24 }
 0x1a7   :  { %7753 = vmatpush1.bf16.msra.mxu0 %v10921_v28  ;;  %7793 = vmatpush1.bf16.msra.mxu1 %v10932_v38 }
 0x1a8   :  { %7755 = vmatprep.subr.bf16.mxu0 %v10925_v33  ;;  %7795 = vmatprep.subr.bf16.mxu1 %v10935_v42 }
 0x1ab   :  { %7757 = vmatpush1.bf16.msra.mxu0 %v10938_v46  ;;  %7797 = vmatpush1.bf16.msra.mxu1 %v10945_v55 }
 0x1ac   :  { %7759 = vmatprep.subr.bf16.mxu0 %v10942_v51  ;;  %7799 = vmatprep.subr.bf16.mxu1 %v10948_v59 }
 0x1af   :  { %7761 = vmatpush1.bf16.msra.mxu0 %v10951_v62  ;;  %7801 = vmatpush1.bf16.msra.mxu1 %v10960_v10 }
 0x1b0   :  { %7763 = vmatprep.subr.bf16.mxu0 %v10954_v3  ;;  %7803 = vmatprep.subr.bf16.mxu1 %v10967_v16 }
 0x1b3   :  { %7765 = vmatpush1.bf16.msra.mxu0 %v10974_v25  ;;  %7805 = vmatpush1.bf16.msra.mxu1 %v10983_v39 }
 0x1b4   :  { %7767 = vmatprep.subr.bf16.mxu0 %v10980_v34  ;;  %7807 = vmatprep.subr.bf16.mxu1 %v10987_v41 }
 0x1b7   :  { %7769 = vmatpush1.bf16.msra.mxu0 %v10994_v50  ;;  %7809 = vmatpush1.bf16.msra.mxu1 %v10998_v52 }
 0x1b8   :  { %1179 = vmatprep.subr.mxu0 %v11000_v54  ;;  %1250 = vmatprep.subr.mxu1 %v11005_v56 }
 0x1bb   :  { %1180 = vmatpush1.msra.mxu0 %v11008_v58  ;;  %1251 = vmatpush1.msra.mxu1 %v11012_v60 }
 0x1bc   :  { %7811 = vmatprep.subr.bf16.mxu0 %v10823_v8  ;;  %7851 = vmatprep.subr.bf16.mxu1 %v10828_v13 }
 0x1bd   :  { %1204 = vmatmul.mubr.f32.vlgmr.msra.gmra.mrb[8].mxu0 %v1134_v12  ;;  %1275 = vmatmul.mubr.f32.vlgmr.msra.gmra.mrb[8].mxu1 %v1134_v12  ;;  %v7294_v12 = vld [vmem:[%s13305_s0 + $0x18] sm:$0x3] }
 0x1be   :  { %7813 = vmatpush1.bf16.msra.mxu0 %v10830_v14  ;;  %7853 = vmatpush1.bf16.msra.mxu1 %v10833_v17 }
 0x1bf   :  { %7815 = vmatprep.subr.bf16.mxu0 %v10843_v22  ;;  %7855 = vmatprep.subr.bf16.mxu1 %v10847_v26 }
 0x1c0   :  { %7292 = vmatprep.mubr.msk.f32.mxu0 %vm281_vm4, %v1348_v32  ;;  %7293 = vmatprep.mubr.msk.f32.mxu1 %vm281_vm4, %v1348_v32  ;;  %v1557_v32 = vsel %vm250_vm0, %v7294_v12, %v11436_v29  ;;  %v11534_v29 = vpop.permute.xlu0 %1755 }
 0x1c1   :  { %v1558_v23 = vsel %vm252_vm1, %v1557_v32, %v11447_v27  ;;  %v11548_v27 = vrot.slane %v11525_v15, %v13316_v43 }
 0x1c2   :  { %7817 = vmatpush1.bf16.msra.mxu0 %v10851_v30  ;;  %7857 = vmatpush1.bf16.msra.mxu1 %v10853_v31 }
 0x1c3   :  { %7819 = vmatprep.subr.bf16.mxu0 %v10856_v35  ;;  %7859 = vmatprep.subr.bf16.mxu1 %v10865_v40  ;;  %13438 = vst [vmem:[#allocation28_spill] sm:$0xff] %v11548_v27 }
 0x1c6   :  { %7821 = vmatpush1.bf16.msra.mxu0 %v10869_v44  ;;  %7861 = vmatpush1.bf16.msra.mxu1 %v10873_v48 }
 0x1c7   :  { %7823 = vmatprep.subr.bf16.mxu0 %v10875_v49  ;;  %7863 = vmatprep.subr.bf16.mxu1 %v10878_v53 }
 0x1ca   :  { %7825 = vmatpush1.bf16.msra.mxu0 %v10881_v57  ;;  %7865 = vmatpush1.bf16.msra.mxu1 %v10893_v1 }
 0x1cb   :  { %7827 = vmatprep.subr.bf16.mxu0 %v10895_v2  ;;  %7867 = vmatprep.subr.bf16.mxu1 %v10898_v4 }
 0x1ce   :  { %7829 = vmatpush1.bf16.msra.mxu0 %v10901_v9  ;;  %7869 = vmatpush1.bf16.msra.mxu1 %v10913_v19 }
 0x1cf   :  { %7831 = vmatprep.subr.bf16.mxu0 %v10915_v20  ;;  %7871 = vmatprep.subr.bf16.mxu1 %v10918_v24 }
 0x1d2   :  { %7833 = vmatpush1.bf16.msra.mxu0 %v10921_v28  ;;  %7873 = vmatpush1.bf16.msra.mxu1 %v10932_v38 }
 0x1d3   :  { %7835 = vmatprep.subr.bf16.mxu0 %v10925_v33  ;;  %7875 = vmatprep.subr.bf16.mxu1 %v10935_v42 }
 0x1d6   :  { %7837 = vmatpush1.bf16.msra.mxu0 %v10938_v46  ;;  %7877 = vmatpush1.bf16.msra.mxu1 %v10945_v55 }
 0x1d7   :  { %7839 = vmatprep.subr.bf16.mxu0 %v10942_v51  ;;  %7879 = vmatprep.subr.bf16.mxu1 %v10948_v59 }
 0x1da   :  { %7841 = vmatpush1.bf16.msra.mxu0 %v10951_v62  ;;  %7881 = vmatpush1.bf16.msra.mxu1 %v10960_v10 }
 0x1db   :  { %7843 = vmatprep.subr.bf16.mxu0 %v10954_v3  ;;  %7883 = vmatprep.subr.bf16.mxu1 %v10967_v16 }
 0x1de   :  { %7845 = vmatpush1.bf16.msra.mxu0 %v10974_v25  ;;  %7885 = vmatpush1.bf16.msra.mxu1 %v10983_v39 }
 0x1df   :  { %7847 = vmatprep.subr.bf16.mxu0 %v10980_v34  ;;  %7887 = vmatprep.subr.bf16.mxu1 %v10987_v41 }
 0x1e2   :  { %7849 = vmatpush1.bf16.msra.mxu0 %v10994_v50  ;;  %7889 = vmatpush1.bf16.msra.mxu1 %v10998_v52 }
 0x1e3   :  { %1392 = vmatprep.subr.mxu0 %v11000_v54  ;;  %1463 = vmatprep.subr.mxu1 %v11005_v56 }
 0x1e4   :  { %v11463_v61 = vpop.f32.mrb[0].mxu0  ;;  %v11465_v63 = vpop.f32.mrb[0].mxu1 }
 0x1e5   :  { %13434 = vst [vmem:[#allocation24_spill] sm:$0xff] %v11463_v61  ;;  %v11467_v0 = vpop.f32.mrb[1].mxu0  ;;  %v11469_v5 = vpop.f32.mrb[1].mxu1 }
 0x1e6   :  { %13435 = vst [vmem:[#allocation25_spill] sm:$0xff] %v11467_v0  ;;  %1393 = vmatpush1.msra.mxu0 %v11008_v58  ;;  %1464 = vmatpush1.msra.mxu1 %v11012_v60  ;;  %v11565_v61 = vpop.permute.xlu0 %1763 }
 0x1e7   :  { %7891 = vmatprep.subr.bf16.mxu0 %v10823_v8  ;;  %7931 = vmatprep.subr.bf16.mxu1 %v10828_v13 }
 0x1e8   :  { %1417 = vmatmul.mubr.f32.vlgmr.msra.gmra.mrb[10].mxu0 %v1347_v6  ;;  %1488 = vmatmul.mubr.f32.vlgmr.msra.gmra.mrb[10].mxu1 %v1347_v6  ;;  %v11539_v6 = vrot.slane %v11525_v15, %v13315_v36 }
 0x1e9   :  { %7893 = vmatpush1.bf16.msra.mxu0 %v10830_v14  ;;  %7933 = vmatpush1.bf16.msra.mxu1 %v10833_v17 }
 0x1ea   :  { %7895 = vmatprep.subr.bf16.mxu0 %v10843_v22  ;;  %7935 = vmatprep.subr.bf16.mxu1 %v10847_v26  ;;  %13437 = vst [vmem:[#allocation27_spill] sm:$0xff] %v11539_v6 }
 0x1eb   :  { %7300 = vmatprep.mubr.msk.f32.mxu0 %vm281_vm4, %v1561_v7  ;;  %7301 = vmatprep.mubr.msk.f32.mxu1 %vm281_vm4, %v1561_v7  ;;  %v1559_v7 = vsel %vm254_vm2, %v1558_v23, %v11449_v37 }
 0x1ec   :  { %v1560_v0 = vsel %vm256_vm5, %v1559_v7, %v11461_v45  ;;  %v11612_v45 = vpop.permute.xlu0 %1964 }
 0x1ed   :  { %7897 = vmatpush1.bf16.msra.mxu0 %v10851_v30  ;;  %7937 = vmatpush1.bf16.msra.mxu1 %v10853_v31 }
 0x1ee   :  { %7899 = vmatprep.subr.bf16.mxu0 %v10856_v35  ;;  %7939 = vmatprep.subr.bf16.mxu1 %v10865_v40 }
 0x1f1   :  { %7901 = vmatpush1.bf16.msra.mxu0 %v10869_v44  ;;  %7941 = vmatpush1.bf16.msra.mxu1 %v10873_v48 }
 0x1f2   :  { %7903 = vmatprep.subr.bf16.mxu0 %v10875_v49  ;;  %7943 = vmatprep.subr.bf16.mxu1 %v10878_v53 }
 0x1f5   :  { %7905 = vmatpush1.bf16.msra.mxu0 %v10881_v57  ;;  %7945 = vmatpush1.bf16.msra.mxu1 %v10893_v1 }
 0x1f6   :  { %7907 = vmatprep.subr.bf16.mxu0 %v10895_v2  ;;  %7947 = vmatprep.subr.bf16.mxu1 %v10898_v4 }
 0x1f9   :  { %7909 = vmatpush1.bf16.msra.mxu0 %v10901_v9  ;;  %7949 = vmatpush1.bf16.msra.mxu1 %v10913_v19 }
 0x1fa   :  { %7911 = vmatprep.subr.bf16.mxu0 %v10915_v20  ;;  %7951 = vmatprep.subr.bf16.mxu1 %v10918_v24 }
 0x1fd   :  { %7913 = vmatpush1.bf16.msra.mxu0 %v10921_v28  ;;  %7953 = vmatpush1.bf16.msra.mxu1 %v10932_v38 }
 0x1fe   :  { %7955 = vmatprep.subr.bf16.mxu1 %v10935_v42  ;;  %7915 = vmatprep.subr.bf16.mxu0 %v10925_v33 }
 0x201   :  { %7917 = vmatpush1.bf16.msra.mxu0 %v10938_v46  ;;  %7957 = vmatpush1.bf16.msra.mxu1 %v10945_v55 }
 0x202   :  { %7919 = vmatprep.subr.bf16.mxu0 %v10942_v51  ;;  %7959 = vmatprep.subr.bf16.mxu1 %v10948_v59 }
 0x205   :  { %7921 = vmatpush1.bf16.msra.mxu0 %v10951_v62  ;;  %7961 = vmatpush1.bf16.msra.mxu1 %v10960_v10 }
 0x206   :  { %7923 = vmatprep.subr.bf16.mxu0 %v10954_v3  ;;  %7963 = vmatprep.subr.bf16.mxu1 %v10967_v16 }
 0x209   :  { %7925 = vmatpush1.bf16.msra.mxu0 %v10974_v25  ;;  %7965 = vmatpush1.bf16.msra.mxu1 %v10983_v39 }
 0x20a   :  { %7927 = vmatprep.subr.bf16.mxu0 %v10980_v34  ;;  %7967 = vmatprep.subr.bf16.mxu1 %v10987_v41 }
 0x20d   :  { %7929 = vmatpush1.bf16.msra.mxu0 %v10994_v50  ;;  %7969 = vmatpush1.bf16.msra.mxu1 %v10998_v52 }
 0x20e   :  { %v11550_v11 = vpop.f32.mrb[2].mxu0  ;;  %v637_v12 = vpop.f32.mrb[2].mxu1  ;;  %1605 = vmatprep.subr.mxu0 %v11000_v54  ;;  %1676 = vmatprep.subr.mxu1 %v11005_v56 }
 0x20f   :  { %v11555_v32 = vadd.f32 %v637_v12, %v11539_v6  ;;  %v11557_v37 = vpop.f32.mrb[3].mxu0  ;;  %v639_v23 = vpop.f32.mrb[3].mxu1 }
 0x210   :  { %v640_v36 = vadd.f32 %v639_v23, %v11548_v27  ;;  %v1768_v54 = vpop.permute.xlu1 %1767  ;;  %v11624_v12 = vpop.permute.xlu0 %1972 }
 0x211   :  { %13439 = vst [vmem:[#allocation29_spill] sm:$0xff] %v11555_v32  ;;  %v13317_v43 = vmax.f32 %v11555_v32, 0.0  ;;  %1606 = vmatpush1.msra.mxu0 %v11008_v58  ;;  %1677 = vmatpush1.msra.mxu1 %v11012_v60  ;;  %v1774_v58 = vsel %vm258_vm3, %v11565_v61, %v1768_v54  ;;  %v7302_v60 = vld [vmem:[%s13305_s0 + $0x1c] sm:$0x3]  ;;  %13440 = vst [vmem:[#allocation30_spill] sm:$0xff] %v11624_v12  ;;  %v11645_v12 = vld [vmem:[#allocation3 + $0x280] sm:$0xff] }
 0x212   :  { %v645_v56 = vmax.f32 %v640_v36, 0.0  ;;  %7971 = vmatprep.subr.bf16.mxu0 %v10823_v8  ;;  %8011 = vmatprep.subr.bf16.mxu1 %v10828_v13 }
 0x213   :  { %657 = vrot.lane.b32.xlu0 %v13317_v43, %s10632_s6  ;;  %1630 = vmatmul.mubr.f32.vlgmr.msra.gmra.mrb[12].mxu0 %v1560_v0 }
 0x214   :  { %659 = vrot.lane.b32.xlu1 %v645_v56, %s10632_s6  ;;  %1701 = vmatmul.mubr.f32.vlgmr.msra.gmra.mrb[12].mxu1 %v1560_v0  ;;  %v1770_v0 = vsel %vm250_vm0, %v7302_v60, %v11516_v21  ;;  %v11622_v7 = vpop.permute.xlu1 %1968  ;;  %v11637_v60 = vld [vmem:[#allocation3 + $0x288] sm:$0xff] }
 0x215   :  { %7973 = vmatpush1.bf16.msra.mxu0 %v10830_v14  ;;  %8013 = vmatpush1.bf16.msra.mxu1 %v10833_v17  ;;  %v1771_v36 = vsel %vm252_vm1, %v1770_v0, %v11534_v29  ;;  %v11640_v0 = vld [vmem:[#allocation3 + $0x298] sm:$0xff] }
 0x216   :  { %7975 = vmatprep.subr.bf16.mxu0 %v10843_v22  ;;  %8015 = vmatprep.subr.bf16.mxu1 %v10847_v26  ;;  %v1772_v29 = vsel %vm254_vm2, %v1771_v36, %v11532_v47  ;;  %v1981_v36 = vpop.permute.xlu0 %1980 }
 0x217   :  { %7308 = vmatprep.mubr.msk.f32.mxu0 %vm281_vm4, %v1774_v58  ;;  %7309 = vmatprep.mubr.msk.f32.mxu1 %vm281_vm4, %v1774_v58  ;;  %v1773_v47 = vsel %vm256_vm5, %v1772_v29, %v11565_v61 }
 0x218   :  { %v11665_v61 = vpop.permute.xlu1 %1976 }
 0x219   :  { %7977 = vmatpush1.bf16.msra.mxu0 %v10851_v30  ;;  %8017 = vmatpush1.bf16.msra.mxu1 %v10853_v31  ;;  %v1987_v29 = vsel %vm258_vm3, %v11665_v61, %v1981_v36  ;;  %v11688_v36 = vadd.f32 %v11465_v63, %v11539_v6  ;;  %v7331_v63 = vld [vmem:[%s13305_s0 + $0x32] sm:$0x3] }
 0x21a   :  { %7979 = vmatprep.subr.bf16.mxu0 %v10856_v35  ;;  %8019 = vmatprep.subr.bf16.mxu1 %v10865_v40 }
 0x21b   :  { %13443 = vst [vmem:[#allocation33_spill] sm:$0xff] %v11688_v36 }
 0x21d   :  { %7981 = vmatpush1.bf16.msra.mxu0 %v10869_v44  ;;  %8021 = vmatpush1.bf16.msra.mxu1 %v10873_v48 }
 0x21e   :  { %7983 = vmatprep.subr.bf16.mxu0 %v10875_v49  ;;  %8023 = vmatprep.subr.bf16.mxu1 %v10878_v53 }
 0x221   :  { %7985 = vmatpush1.bf16.msra.mxu0 %v10881_v57  ;;  %8025 = vmatpush1.bf16.msra.mxu1 %v10893_v1 }
 0x222   :  { %7987 = vmatprep.subr.bf16.mxu0 %v10895_v2  ;;  %8027 = vmatprep.subr.bf16.mxu1 %v10898_v4 }
 0x225   :  { %7989 = vmatpush1.bf16.msra.mxu0 %v10901_v9  ;;  %8029 = vmatpush1.bf16.msra.mxu1 %v10913_v19 }
 0x226   :  { %7991 = vmatprep.subr.bf16.mxu0 %v10915_v20  ;;  %8031 = vmatprep.subr.bf16.mxu1 %v10918_v24 }
 0x229   :  { %7993 = vmatpush1.bf16.msra.mxu0 %v10921_v28  ;;  %8033 = vmatpush1.bf16.msra.mxu1 %v10932_v38 }
 0x22a   :  { %8035 = vmatprep.subr.bf16.mxu1 %v10935_v42  ;;  %7995 = vmatprep.subr.bf16.mxu0 %v10925_v33 }
 0x22d   :  { %7997 = vmatpush1.bf16.msra.mxu0 %v10938_v46  ;;  %8037 = vmatpush1.bf16.msra.mxu1 %v10945_v55 }
 0x22e   :  { %8039 = vmatprep.subr.bf16.mxu1 %v10948_v59  ;;  %7999 = vmatprep.subr.bf16.mxu0 %v10942_v51 }
 0x231   :  { %8001 = vmatpush1.bf16.msra.mxu0 %v10951_v62  ;;  %8041 = vmatpush1.bf16.msra.mxu1 %v10960_v10 }
 0x232   :  { %8043 = vmatprep.subr.bf16.mxu1 %v10967_v16  ;;  %8003 = vmatprep.subr.bf16.mxu0 %v10954_v3 }
 0x235   :  { %8005 = vmatpush1.bf16.msra.mxu0 %v10974_v25  ;;  %8045 = vmatpush1.bf16.msra.mxu1 %v10983_v39 }
 0x236   :  { %8047 = vmatprep.subr.bf16.mxu1 %v10987_v41  ;;  %8007 = vmatprep.subr.bf16.mxu0 %v10980_v34 }
 0x239   :  { %v11626_v23 = vpop.f32.mrb[4].mxu0  ;;  %v850_v54 = vpop.f32.mrb[4].mxu1  ;;  %8009 = vmatpush1.bf16.msra.mxu0 %v10994_v50  ;;  %8049 = vmatpush1.bf16.msra.mxu1 %v10998_v52 }
 0x23a   :  { %v11631_v21 = vadd.f32 %v850_v54, %v11539_v6  ;;  %v11633_v56 = vpop.f32.mrb[5].mxu0  ;;  %v852_v58 = vpop.f32.mrb[5].mxu1  ;;  %1818 = vmatprep.subr.mxu0 %v11637_v60  ;;  %1889 = vmatprep.subr.mxu1 %v11640_v0 }
 0x23b   :  { %13441 = vst [vmem:[#allocation31_spill] sm:$0xff] %v11633_v56  ;;  %v853_v43 = vadd.f32 %v852_v58, %v11548_v27  ;;  %v11648_v56 = vld [vmem:[#allocation3 + $0x290] sm:$0xff]  ;;  %v7328_v58 = vld [vmem:[%s13305_s0 + $0x2c] sm:$0x3] }
 0x23c   :  { %v13319_v32 = vmax.f32 %v11631_v21, 0.0 }
 0x23d   :  { %v858_v54 = vmax.f32 %v853_v43, 0.0  ;;  %1819 = vmatpush1.msra.mxu0 %v11645_v12  ;;  %1890 = vmatpush1.msra.mxu1 %v11648_v56  ;;  %v7327_v43 = vld [vmem:[%s13305_s0 + $0x2a] sm:$0x3] }
 0x23e   :  { %870 = vrot.lane.b32.xlu0 %v13319_v32, %s10632_s6  ;;  %8051 = vmatprep.subr.bf16.mxu0 %v10823_v8  ;;  %v7330_v32 = vld [vmem:[%s13305_s0 + $0x30] sm:$0x3] }
 0x23f   :  { %872 = vrot.lane.b32.xlu1 %v858_v54, %s10632_s6  ;;  %8091 = vmatprep.subr.bf16.mxu1 %v10828_v13  ;;  %v11674_v54 = vsub.s32 0, %v11512_v18 }
 0x240   :  { %1843 = vmatmul.mubr.f32.vlgmr.msra.gmra.mrb[14].mxu0 %v1773_v47  ;;  %1914 = vmatmul.mubr.f32.vlgmr.msra.gmra.mrb[14].mxu1 %v1773_v47  ;;  %v7329_v47 = vld [vmem:[%s13305_s0 + $0x2e] sm:$0x3] }
 0x241   :  { %8053 = vmatpush1.bf16.msra.mxu0 %v10830_v14  ;;  %8093 = vmatpush1.bf16.msra.mxu1 %v10833_v17  ;;  %13442 = vst [vmem:[#allocation32_spill] sm:$0xff] %v11674_v54 }
 0x242   :  { %2390 = vrot.lane.b32.xlu0 %v7327_v43, %s10634_s21  ;;  %8055 = vmatprep.subr.bf16.mxu0 %v10843_v22  ;;  %v11693_v43 = vsub.s32 1, %v11512_v18  ;;  %v13326_v18 = vmax.f32 %v11688_v36, 0.0 }
 0x243   :  { %2394 = vrot.lane.b32.xlu1 %v7328_v58, %s10636_s10  ;;  %8095 = vmatprep.subr.bf16.mxu1 %v10847_v26  ;;  %v11699_v58 = vrot.slane %v11525_v15, %v11674_v54 }
 0x244   :  { %7316 = vmatprep.mubr.msk.f32.mxu0 %vm281_vm4, %v1987_v29  ;;  %7317 = vmatprep.mubr.msk.f32.mxu1 %vm281_vm4, %v1987_v29  ;;  %13444 = vst [vmem:[#allocation34_spill] sm:$0xff] %v11693_v43  ;;  %v425_v29 = vadd.f32 %v11469_v5, %v11548_v27 }
 0x245   :  { %8057 = vmatpush1.bf16.msra.mxu0 %v10851_v30  ;;  %8097 = vmatpush1.bf16.msra.mxu1 %v10853_v31  ;;  %13445 = vst [vmem:[#allocation35_spill] sm:$0xff] %v11699_v58 }
 0x246   :  { %2398 = vrot.lane.b32.xlu0 %v7329_v47, %s10635_s8  ;;  %8059 = vmatprep.subr.bf16.mxu0 %v10856_v35  ;;  %v11711_v47 = vadd.f32 %v11550_v11, %v11699_v58  ;;  %v430_v5 = vmax.f32 %v425_v29, 0.0 }
 0x247   :  { %2402 = vrot.lane.b32.xlu1 %v7330_v32, %s10637_s24  ;;  %8099 = vmatprep.subr.bf16.mxu1 %v10865_v40  ;;  %v11717_v32 = vrot.slane %v11525_v15, %v11693_v43  ;;  %v11732_v15 = vadd.f32 %v11626_v23, %v11699_v58  ;;  %v7310_v23 = vld [vmem:[%s13305_s0 + $0x20] sm:$0x3] }
 0x248   :  { %13446 = vst [vmem:[#allocation36_spill] sm:$0xff] %v11711_v47  ;;  %v13325_v54 = vmax.f32 %v11711_v47, 0.0  ;;  %v1983_v29 = vsel %vm250_vm0, %v7310_v23, %v11612_v45 }
 0x249   :  { %8061 = vmatpush1.bf16.msra.mxu0 %v10869_v44  ;;  %8101 = vmatpush1.bf16.msra.mxu1 %v10873_v48  ;;  %13447 = vst [vmem:[#allocation37_spill] sm:$0xff] %v11717_v32  ;;  %v11727_v11 = vadd.f32 %v11557_v37, %v11717_v32  ;;  %13448 = vst [vmem:[#allocation38_spill] sm:$0xff] %v11732_v15 }
 0x24a   :  { %2406 = vrot.lane.b32.xlu0 %v7331_v63, %s10638_s11  ;;  %8063 = vmatprep.subr.bf16.mxu0 %v10875_v49  ;;  %v13324_v63 = vmax.f32 %v11732_v15, 0.0  ;;  %v13450_v15 = vld [vmem:[#allocation30_spill] sm:$0xff] }
 0x24b   :  { %443 = vrot.lane.b32.xlu1 %v13326_v18, %s10632_s6  ;;  %8103 = vmatprep.subr.bf16.mxu1 %v10878_v53  ;;  %v13327_v37 = vmax.f32 %v11727_v11, 0.0 }
 0x24d   :  { %8065 = vmatpush1.bf16.msra.mxu0 %v10881_v57  ;;  %8105 = vmatpush1.bf16.msra.mxu1 %v10893_v1 }
 0x24e   :  { %445 = vrot.lane.b32.xlu0 %v430_v5, %s10632_s6  ;;  %8067 = vmatprep.subr.bf16.mxu0 %v10895_v2  ;;  %v11771_v5 = vpop.permute.xlu1 %2177 }
 0x24f   :  { %648 = vrot.lane.b32.xlu1 %v13325_v54, %s10632_s6  ;;  %8107 = vmatprep.subr.bf16.mxu1 %v10898_v4 }
 0x251   :  { %8069 = vmatpush1.bf16.msra.mxu0 %v10901_v9  ;;  %8109 = vmatpush1.bf16.msra.mxu1 %v10913_v19 }
 0x252   :  { %650 = vrot.lane.b32.xlu0 %v13327_v37, %s10632_s6  ;;  %8071 = vmatprep.subr.bf16.mxu0 %v10915_v20 }
 0x253   :  { %861 = vrot.lane.b32.xlu1 %v13324_v63, %s10632_s6  ;;  %8111 = vmatprep.subr.bf16.mxu1 %v10918_v24  ;;  %v1984_v63 = vsel %vm252_vm1, %v1983_v29, %v11622_v7  ;;  %v11793_v7 = vpop.permute.xlu0 %2181 }
 0x254   :  { %v1985_v47 = vsel %vm254_vm2, %v1984_v63, %v13450_v15 }
 0x255   :  { %8073 = vmatpush1.bf16.msra.mxu0 %v10921_v28  ;;  %8113 = vmatpush1.bf16.msra.mxu1 %v10932_v38  ;;  %v1986_v15 = vsel %vm256_vm5, %v1985_v47, %v11665_v61 }
 0x256   :  { %8075 = vmatprep.subr.bf16.mxu0 %v10925_v33  ;;  %8115 = vmatprep.subr.bf16.mxu1 %v10935_v42 }
 0x259   :  { %8077 = vmatpush1.bf16.msra.mxu0 %v10938_v46  ;;  %8117 = vmatpush1.bf16.msra.mxu1 %v10945_v55 }
 0x25a   :  { %8079 = vmatprep.subr.bf16.mxu0 %v10942_v51  ;;  %8119 = vmatprep.subr.bf16.mxu1 %v10948_v59 }
 0x25d   :  { %8081 = vmatpush1.bf16.msra.mxu0 %v10951_v62  ;;  %8121 = vmatpush1.bf16.msra.mxu1 %v10960_v10 }
 0x25e   :  { %8083 = vmatprep.subr.bf16.mxu0 %v10954_v3  ;;  %8123 = vmatprep.subr.bf16.mxu1 %v10967_v16 }
 0x261   :  { %8085 = vmatpush1.bf16.msra.mxu0 %v10974_v25  ;;  %8125 = vmatpush1.bf16.msra.mxu1 %v10983_v39 }
 0x262   :  { %8087 = vmatprep.subr.bf16.mxu0 %v10980_v34  ;;  %8127 = vmatprep.subr.bf16.mxu1 %v10987_v41 }
 0x264   :  { %v11779_v54 = vpop.f32.mrb[6].mxu0  ;;  %v1063_v18 = vpop.f32.mrb[6].mxu1 }
 0x265   :  { %13449 = vst [vmem:[#allocation39_spill] sm:$0xff] %v11779_v54  ;;  %v11782_v37 = vadd.f32 %v1063_v18, %v11539_v6  ;;  %v11784_v45 = vpop.f32.mrb[7].mxu0  ;;  %v1065_v23 = vpop.f32.mrb[7].mxu1  ;;  %8089 = vmatpush1.bf16.msra.mxu0 %v10994_v50  ;;  %8129 = vmatpush1.bf16.msra.mxu1 %v10998_v52  ;;  %v13451_v6 = vld [vmem:[#allocation31_spill] sm:$0xff] }
 0x266   :  { %v1066_v43 = vadd.f32 %v1065_v23, %v11548_v27  ;;  %2031 = vmatprep.subr.mxu0 %v11637_v60  ;;  %2102 = vmatprep.subr.mxu1 %v11640_v0  ;;  %v11795_v18 = vpop.permute.xlu1 %2185  ;;  %v11800_v36 = vadd.f32 %v13451_v6, %v11717_v32  ;;  %v7335_v23 = vld [vmem:[%s13305_s0 + $0x2e] sm:$0x3] }
 0x267   :  { %v13335_v29 = vmax.f32 %v11782_v37, 0.0 }
 0x268   :  { %v1071_v54 = vmax.f32 %v1066_v43, 0.0  ;;  %v13336_v6 = vmax.f32 %v11800_v36, 0.0  ;;  %v11813_v43 = vpop.permute.xlu0 %2189 }
 0x269   :  { %1083 = vrot.lane.b32.xlu1 %v13335_v29, %s10632_s6  ;;  %2032 = vmatpush1.msra.mxu0 %v11645_v12  ;;  %v13453_v29 = vld [vmem:[#allocation29_spill] sm:$0xff] }
 0x26a   :  { %1085 = vrot.lane.b32.xlu0 %v1071_v54, %s10632_s6  ;;  %2103 = vmatpush1.msra.mxu1 %v11648_v56  ;;  %v2194_v63 = vpop.permute.xlu1 %2193 }
 0x26b   :  { %8131 = vmatprep.subr.bf16.mxu0 %v10823_v8  ;;  %8171 = vmatprep.subr.bf16.mxu1 %v10828_v13  ;;  %v2200_v61 = vsel %vm258_vm3, %v11813_v43, %v2194_v63 }
 0x26c   :  { %2056 = vmatmul.mubr.f32.vlgmr.msra.gmra.mrb[16].mxu0 %v1986_v15  ;;  %2127 = vmatmul.mubr.f32.vlgmr.msra.gmra.mrb[16].mxu1 %v1986_v15  ;;  %v13452_v15 = vmax.f32 %v11727_v11, 0.0 }
 0x26d   :  { %8133 = vmatpush1.bf16.msra.mxu0 %v10830_v14  ;;  %8173 = vmatpush1.bf16.msra.mxu1 %v10833_v17 }
 0x26e   :  { %863 = vrot.lane.b32.xlu0 %v13336_v6, %s10632_s6  ;;  %8135 = vmatprep.subr.bf16.mxu0 %v10843_v22  ;;  %v13454_v6 = vmax.f32 %v13453_v29, 0.0 }
 0x26f   :  { %8175 = vmatprep.subr.bf16.mxu1 %v10847_v26  ;;  %2603 = vrot.lane.b32.xlu1 %v7335_v23, %s10634_s21  ;;  %v7318_v23 = vld [vmem:[%s13305_s0 + $0x24] sm:$0x3] }
 0x270   :  { %7324 = vmatprep.mubr.msk.f32.mxu0 %vm281_vm4, %v2200_v61  ;;  %7325 = vmatprep.mubr.msk.f32.mxu1 %vm281_vm4, %v2200_v61  ;;  %v2196_v11 = vsel %vm250_vm0, %v7318_v23, %v11771_v5 }
 0x271   :  { %8137 = vmatpush1.bf16.msra.mxu0 %v10851_v30  ;;  %8177 = vmatpush1.bf16.msra.mxu1 %v10853_v31 }
 0x272   :  { %8139 = vmatprep.subr.bf16.mxu0 %v10856_v35  ;;  %8179 = vmatprep.subr.bf16.mxu1 %v10865_v40 }
 0x275   :  { %8141 = vmatpush1.bf16.msra.mxu0 %v10869_v44  ;;  %8181 = vmatpush1.bf16.msra.mxu1 %v10873_v48 }
 0x276   :  { %8183 = vmatprep.subr.bf16.mxu1 %v10878_v53  ;;  %8143 = vmatprep.subr.bf16.mxu0 %v10875_v49 }
 0x279   :  { %8145 = vmatpush1.bf16.msra.mxu0 %v10881_v57  ;;  %8185 = vmatpush1.bf16.msra.mxu1 %v10893_v1 }
 0x27a   :  { %8147 = vmatprep.subr.bf16.mxu0 %v10895_v2  ;;  %8187 = vmatprep.subr.bf16.mxu1 %v10898_v4 }
 0x27d   :  { %8149 = vmatpush1.bf16.msra.mxu0 %v10901_v9  ;;  %8189 = vmatpush1.bf16.msra.mxu1 %v10913_v19 }
 0x27e   :  { %8151 = vmatprep.subr.bf16.mxu0 %v10915_v20  ;;  %8191 = vmatprep.subr.bf16.mxu1 %v10918_v24 }
 0x281   :  { %8153 = vmatpush1.bf16.msra.mxu0 %v10921_v28  ;;  %8193 = vmatpush1.bf16.msra.mxu1 %v10932_v38 }
 0x282   :  { %8155 = vmatprep.subr.bf16.mxu0 %v10925_v33  ;;  %8195 = vmatprep.subr.bf16.mxu1 %v10935_v42 }
 0x285   :  { %v658_v54 = vpop.permute.xlu0 %657  ;;  %8157 = vmatpush1.bf16.msra.mxu0 %v10938_v46  ;;  %8197 = vmatpush1.bf16.msra.mxu1 %v10945_v55 }
 0x286   :  { %v660_v47 = vpop.permute.xlu1 %659  ;;  %v664_v63 = vmax.f32 %v13452_v15, %v658_v54  ;;  %8159 = vmatprep.subr.bf16.mxu0 %v10942_v51  ;;  %8199 = vmatprep.subr.bf16.mxu1 %v10948_v59  ;;  %v13456_v15 = vmax.f32 %v11800_v36, 0.0  ;;  %v7337_v36 = vld [vmem:[%s13305_s0 + $0x32] sm:$0x3] }
 0x287   :  { %v661_v61 = vsel %vm437_vm6, %v658_v54, %v660_v47  ;;  %v2197_v54 = vsel %vm252_vm1, %v2196_v11, %v11793_v7  ;;  %v13457_v11 = vmax.f32 %v11631_v21, 0.0  ;;  %v7336_v21 = vld [vmem:[%s13305_s0 + $0x30] sm:$0x3] }
 0x288   :  { %668 = vrot.lane.b32.xlu1 %v664_v63, %s10628_s15  ;;  %v665_v27 = vmax.f32 %v13454_v6, %v661_v61  ;;  %v2198_v5 = vsel %vm254_vm2, %v2197_v54, %v11795_v18  ;;  %v7326_v61 = vld [vmem:[%s13305_s0 + $0x28] sm:$0x3] }
 0x289   :  { %8161 = vmatpush1.bf16.msra.mxu0 %v10951_v62  ;;  %8201 = vmatpush1.bf16.msra.mxu1 %v10960_v10  ;;  %v2199_v47 = vsel %vm256_vm5, %v2198_v5, %v11813_v43 }
 0x28a   :  { %670 = vrot.lane.b32.xlu0 %v665_v27, %s10628_s15  ;;  %8163 = vmatprep.subr.bf16.mxu0 %v10954_v3 }
 0x28b   :  { %8203 = vmatprep.subr.bf16.mxu1 %v10967_v16 }
 0x28d   :  { %8165 = vmatpush1.bf16.msra.mxu0 %v10974_v25  ;;  %8205 = vmatpush1.bf16.msra.mxu1 %v10983_v39 }
 0x28e   :  { %8167 = vmatprep.subr.bf16.mxu0 %v10980_v34  ;;  %8207 = vmatprep.subr.bf16.mxu1 %v10987_v41 }
 0x290   :  { %v11878_v29 = vpop.f32.mrb[8].mxu0  ;;  %v11880_v27 = vpop.f32.mrb[8].mxu1 }
 0x291   :  { %8169 = vmatpush1.bf16.msra.mxu0 %v10994_v50  ;;  %8209 = vmatpush1.bf16.msra.mxu1 %v10998_v52  ;;  %v11884_v7 = vpop.f32.mrb[9].mxu0  ;;  %v11886_v6 = vpop.f32.mrb[9].mxu1 }
 0x292   :  { %13455 = vst [vmem:[#allocation30_spill] sm:$0xff] %v11884_v7  ;;  %2244 = vmatprep.subr.mxu0 %v11637_v60  ;;  %2315 = vmatprep.subr.mxu1 %v11640_v0 }
 0x295   :  { %2245 = vmatpush1.msra.mxu0 %v11645_v12  ;;  %2316 = vmatpush1.msra.mxu1 %v11648_v56 }
 0x296   :  { %2269 = vmatmul.mubr.f32.vlgmr.msra.gmra.mrb[18].mxu0 %v2199_v47  ;;  %2340 = vmatmul.mubr.f32.vlgmr.msra.gmra.mrb[18].mxu1 %v2199_v47 }
 0x297   :  { %8211 = vmatprep.subr.bf16.mxu0 %v10823_v8  ;;  %8251 = vmatprep.subr.bf16.mxu1 %v10828_v13 }
 0x298   :  { %8213 = vmatpush1.bf16.msra.mxu0 %v10830_v14  ;;  %8253 = vmatpush1.bf16.msra.mxu1 %v10833_v17 }
 0x299   :  { %8215 = vmatprep.subr.bf16.mxu0 %v10843_v22  ;;  %8255 = vmatprep.subr.bf16.mxu1 %v10847_v26 }
 0x29c   :  { %8217 = vmatpush1.bf16.msra.mxu0 %v10851_v30  ;;  %8257 = vmatpush1.bf16.msra.mxu1 %v10853_v31 }
 0x29d   :  { %8219 = vmatprep.subr.bf16.mxu0 %v10856_v35  ;;  %8259 = vmatprep.subr.bf16.mxu1 %v10865_v40 }
 0x2a0   :  { %8261 = vmatpush1.bf16.msra.mxu1 %v10873_v48  ;;  %8221 = vmatpush1.bf16.msra.mxu0 %v10869_v44 }
 0x2a1   :  { %8223 = vmatprep.subr.bf16.mxu0 %v10875_v49  ;;  %8263 = vmatprep.subr.bf16.mxu1 %v10878_v53 }
 0x2a4   :  { %8265 = vmatpush1.bf16.msra.mxu1 %v10893_v1  ;;  %8225 = vmatpush1.bf16.msra.mxu0 %v10881_v57 }
 0x2a5   :  { %8227 = vmatprep.subr.bf16.mxu0 %v10895_v2  ;;  %8267 = vmatprep.subr.bf16.mxu1 %v10898_v4 }
 0x2a8   :  { %8269 = vmatpush1.bf16.msra.mxu1 %v10913_v19  ;;  %8229 = vmatpush1.bf16.msra.mxu0 %v10901_v9 }
 0x2a9   :  { %8231 = vmatprep.subr.bf16.mxu0 %v10915_v20  ;;  %8271 = vmatprep.subr.bf16.mxu1 %v10918_v24 }
 0x2ac   :  { %8273 = vmatpush1.bf16.msra.mxu1 %v10932_v38  ;;  %8233 = vmatpush1.bf16.msra.mxu0 %v10921_v28 }
 0x2ad   :  { %8235 = vmatprep.subr.bf16.mxu0 %v10925_v33  ;;  %8275 = vmatprep.subr.bf16.mxu1 %v10935_v42 }
 0x2b0   :  { %v871_v18 = vpop.permute.xlu0 %870  ;;  %8277 = vmatpush1.bf16.msra.mxu1 %v10945_v55  ;;  %8237 = vmatpush1.bf16.msra.mxu0 %v10938_v46 }
 0x2b1   :  { %v873_v43 = vpop.permute.xlu1 %872  ;;  %v877_v63 = vmax.f32 %v13456_v15, %v871_v18  ;;  %8239 = vmatprep.subr.bf16.mxu0 %v10942_v51  ;;  %8279 = vmatprep.subr.bf16.mxu1 %v10948_v59 }
 0x2b2   :  { %v874_v23 = vsel %vm437_vm6, %v871_v18, %v873_v43 }
 0x2b3   :  { %881 = vrot.lane.b32.xlu1 %v877_v63, %s10628_s15  ;;  %v878_v54 = vmax.f32 %v13457_v11, %v874_v23  ;;  %v7339_v63 = vld [vmem:[%s13305_s0 + $0x36] sm:$0x3]  ;;  %v11954_v23 = vadd.f32 %v11784_v45, %v11717_v32  ;;  %v7338_v11 = vld [vmem:[%s13305_s0 + $0x34] sm:$0x3] }
 0x2b4   :  { %v2391_v5 = vpop.permute.xlu0 %2390  ;;  %8241 = vmatpush1.bf16.msra.mxu0 %v10951_v62  ;;  %8281 = vmatpush1.bf16.msra.mxu1 %v10960_v10 }
 0x2b5   :  { %v2409_v47 = vsel %vm250_vm0, %v7326_v61, %v2391_v5  ;;  %v2395_v18 = vpop.permute.xlu1 %2394  ;;  %883 = vrot.lane.b32.xlu0 %v878_v54, %s10628_s15  ;;  %8243 = vmatprep.subr.bf16.mxu0 %v10954_v3  ;;  %v13458_v54 = vld [vmem:[#allocation39_spill] sm:$0xff]  ;;  %v1069_v7 = vmax.f32 %v11954_v23, 0.0 }
 0x2b6   :  { %8283 = vmatprep.subr.bf16.mxu1 %v10967_v16  ;;  %v2410_v43 = vsel %vm252_vm1, %v2409_v47, %v2395_v18  ;;  %v11964_v5 = vadd.f32 %v13458_v54, %v11699_v58 }
 0x2b7   :  { %2611 = vrot.lane.b32.xlu1 %v7337_v36, %s10635_s8 }
 0x2b8   :  { %v2399_v15 = vpop.permute.xlu0 %2398  ;;  %8245 = vmatpush1.bf16.msra.mxu0 %v10974_v25  ;;  %8285 = vmatpush1.bf16.msra.mxu1 %v10983_v39 }
 0x2b9   :  { %2607 = vrot.lane.b32.xlu0 %v7336_v21, %s10636_s10  ;;  %8247 = vmatprep.subr.bf16.mxu0 %v10980_v34  ;;  %v2403_v61 = vpop.permute.xlu1 %2402  ;;  %v2411_v36 = vsel %vm254_vm2, %v2410_v43, %v2399_v15  ;;  %s10639_s10 = smov 120  }
 0x2ba   :  { %8287 = vmatprep.subr.bf16.mxu1 %v10987_v41  ;;  %v2412_v15 = vsel %vm256_vm5, %v2411_v36, %v2403_v61 }
 0x2bb   :  { %2619 = vrot.lane.b32.xlu1 %v7339_v63, %s10638_s11  ;;  %v11968_v45 = vpop.f32.mrb[10].mxu0  ;;  %v11970_v47 = vpop.f32.mrb[10].mxu1  ;;  %v1068_v63 = vmax.f32 %v11964_v5, 0.0  ;;  %v2849_v5 = vld [vmem:[#allocation8 + $0x150] sm:$0xff] }
 0x2bc   :  { %v2407_v18 = vpop.permute.xlu0 %2406  ;;  %8249 = vmatpush1.bf16.msra.mxu0 %v10994_v50  ;;  %8289 = vmatpush1.bf16.msra.mxu1 %v10998_v52  ;;  %v11974_v21 = vpop.f32.mrb[11].mxu0 }
 0x2bd   :  { %v2413_v54 = vsel %vm258_vm3, %v2403_v61, %v2407_v18  ;;  %2615 = vrot.lane.b32.xlu0 %v7338_v11, %s10637_s24  ;;  %2457 = vmatprep.subr.mxu0 %v11637_v60  ;;  %v11980_v43 = vpop.f32.mrb[11].mxu1  ;;  %v444_v23 = vpop.permute.xlu1 %443  ;;  %v7334_v18 = vld [vmem:[%s13305_s0 + $0x2c] sm:$0x3]  ;;  %s10642_s0 = smov [#allocation17]  }
 0x2be   :  { %2528 = vmatprep.subr.mxu1 %v11640_v0  ;;  %7332 = vmatprep.mubr.msk.f32.mxu0 %vm281_vm4, %v2413_v54 }
 0x2bf   :  { %1076 = vrot.lane.b32.xlu1 %v1069_v7, %s10632_s6  ;;  %7333 = vmatprep.mubr.msk.f32.mxu1 %vm281_vm4, %v2413_v54 }
 0x2c0   :  { %2458 = vmatpush1.msra.mxu0 %v11645_v12  ;;  %2529 = vmatpush1.msra.mxu1 %v11648_v56 }
 0x2c1   :  { %1074 = vrot.lane.b32.xlu0 %v1068_v63, %s10632_s6  ;;  %2482 = vmatmul.mubr.f32.vlgmr.msra.gmra.mrb[20].mxu0 %v2412_v15 }
 0x2c2   :  { %2553 = vmatmul.mubr.f32.vlgmr.msra.gmra.mrb[20].mxu1 %v2412_v15  ;;  %8291 = vmatprep.subr.bf16.mxu0 %v10823_v8  ;;  %v649_v8 = vpop.permute.xlu1 %648 }
 0x2c3   :  { %8331 = vmatprep.subr.bf16.mxu1 %v10828_v13  ;;  %8293 = vmatpush1.bf16.msra.mxu0 %v10830_v14  ;;  %v446_v13 = vpop.permute.xlu0 %445 }
 0x2c4   :  { %8333 = vmatpush1.bf16.msra.mxu1 %v10833_v17  ;;  %8295 = vmatprep.subr.bf16.mxu0 %v10843_v22 }
 0x2c5   :  { %8335 = vmatprep.subr.bf16.mxu1 %v10847_v26  ;;  %v13459_v26 = vld [vmem:[#allocation24_spill] sm:$0xff] }
 0x2c6   :  { %v12015_v14 = vpop.permute.xlu1 %861 }
 0x2c7   :  { %8297 = vmatpush1.bf16.msra.mxu0 %v10851_v30  ;;  %v651_v17 = vpop.permute.xlu0 %650  ;;  %v12024_v30 = vadd.f32 %v13459_v26, %v11699_v58  ;;  %v2812_v26 = vld [vmem:[#allocation8 + $0x28] sm:$0xff] }
 0x2c8   :  { %8337 = vmatpush1.bf16.msra.mxu1 %v10853_v31  ;;  %8299 = vmatprep.subr.bf16.mxu0 %v10856_v35 }
 0x2c9   :  { %8339 = vmatprep.subr.bf16.mxu1 %v10865_v40 }
 0x2cb   :  { %8301 = vmatpush1.bf16.msra.mxu0 %v10869_v44  ;;  %v13460_v44 = vld [vmem:[#allocation25_spill] sm:$0xff] }
 0x2cc   :  { %8341 = vmatpush1.bf16.msra.mxu1 %v10873_v48  ;;  %8303 = vmatprep.subr.bf16.mxu0 %v10875_v49  ;;  %v354_v48 = vadd.f32 %v13460_v44, %v11717_v32  ;;  %v13461_v49 = vmax.f32 %v11782_v37, 0.0 }
 0x2cd   :  { %8343 = vmatprep.subr.bf16.mxu1 %v10878_v53 }
 0x2cf   :  { %8305 = vmatpush1.bf16.msra.mxu0 %v10881_v57  ;;  %v427_v57 = vmax.f32 %v12024_v30, 0.0 }
 0x2d0   :  { %8345 = vmatpush1.bf16.msra.mxu1 %v10893_v1  ;;  %8307 = vmatprep.subr.bf16.mxu0 %v10895_v2  ;;  %v428_v1 = vmax.f32 %v354_v48, 0.0  ;;  %v447_v2 = vsel %vm437_vm6, %v444_v23, %v446_v13 }
 0x2d1   :  { %8347 = vmatprep.subr.bf16.mxu1 %v10898_v4 }
 0x2d2   :  { %v450_v4 = vmax.f32 %v428_v1, %v444_v23 }
 0x2d3   :  { %8309 = vmatpush1.bf16.msra.mxu0 %v10901_v9  ;;  %v2808_v9 = vld [vmem:[#allocation8 + $0x8] sm:$0xff] }
 0x2d4   :  { %8349 = vmatpush1.bf16.msra.mxu1 %v10913_v19  ;;  %8311 = vmatprep.subr.bf16.mxu0 %v10915_v20  ;;  %v2810_v19 = vld [vmem:[#allocation8 + $0x18] sm:$0xff] }
 0x2d5   :  { %8351 = vmatprep.subr.bf16.mxu1 %v10918_v24  ;;  %v13462_v20 = vld [vmem:[#allocation33_spill] sm:$0xff] }
 0x2d6   :  { %v13463_v24 = vmax.f32 %v13462_v20, 0.0 }
 0x2d7   :  { %8313 = vmatpush1.bf16.msra.mxu0 %v10921_v28 }
 0x2d8   :  { %8353 = vmatpush1.bf16.msra.mxu1 %v10932_v38  ;;  %8315 = vmatprep.subr.bf16.mxu0 %v10925_v33  ;;  %v451_v28 = vmax.f32 %v13463_v24, %v447_v2  ;;  %v2816_v24 = vld [vmem:[#allocation8 + $0x48] sm:$0xff] }
 0x2d9   :  { %8355 = vmatprep.subr.bf16.mxu1 %v10935_v42 }
 0x2db   :  { %v1084_v22 = vpop.permute.xlu1 %1083  ;;  %8317 = vmatpush1.bf16.msra.mxu0 %v10938_v46 }
 0x2dc   :  { %v1086_v31 = vpop.permute.xlu0 %1085  ;;  %v1090_v35 = vmax.f32 %v1069_v7, %v1084_v22  ;;  %8357 = vmatpush1.bf16.msra.mxu1 %v10945_v55  ;;  %8319 = vmatprep.subr.bf16.mxu0 %v10942_v51  ;;  %v12064_v51 = vpack.c.bf16 %v2810_v19, %v2808_v9  ;;  %v13471_v7 = vld [vmem:[#allocation38_spill] sm:$0xff]  ;;  %v2813_v19 = vld [vmem:[#allocation8 + $0x30] sm:$0xff] }
 0x2dd   :  { %v1087_v40 = vsel %vm437_vm6, %v1084_v22, %v1086_v31  ;;  %8359 = vmatprep.subr.bf16.mxu1 %v10948_v59  ;;  %v13472_v61 = vmax.f32 %v13471_v7, 0.0  ;;  %v2809_v22 = vld [vmem:[#allocation8 + $0x10] sm:$0xff]  ;;  %v2814_v31 = vld [vmem:[#allocation8 + $0x38] sm:$0xff]  ;;  %v2811_v9 = vld [vmem:[#allocation8 + $0x20] sm:$0xff] }
 0x2de   :  { %1094 = vrot.lane.b32.xlu0 %v1090_v35, %s10628_s15  ;;  %v1091_v53 = vmax.f32 %v13461_v49, %v1087_v40  ;;  %v2826_v7 = vld [vmem:[#allocation8 + $0x98] sm:$0xff] }
 0x2df   :  { %8321 = vmatpush1.bf16.msra.mxu0 %v10951_v62  ;;  %v652_v62 = vsel %vm437_vm6, %v649_v8, %v651_v17  ;;  %v2807_v17 = vld [vmem:[#allocation8] sm:$0xff] }
 0x2e0   :  { %1096 = vrot.lane.b32.xlu1 %v1091_v53, %s10628_s15  ;;  %8361 = vmatpush1.bf16.msra.mxu1 %v10960_v10  ;;  %v864_v59 = vpop.permute.xlu0 %863  ;;  %v12103_v53 = vpack.c.bf16 %v2809_v22, %v2807_v17 }
 0x2e1   :  { %8323 = vmatprep.subr.bf16.mxu0 %v10954_v3  ;;  %8363 = vmatprep.subr.bf16.mxu1 %v10967_v16  ;;  %v2604_v55 = vpop.permute.xlu1 %2603  ;;  %v13465_v3 = vld [vmem:[#allocation36_spill] sm:$0xff] }
 0x2e2   :  { %433 = vrot.lane.b32.xlu0 %v427_v57, %s10632_s6  ;;  %v13466_v10 = vmax.f32 %v13465_v3, 0.0  ;;  %v2622_v8 = vsel %vm250_vm0, %v7334_v18, %v2604_v55  ;;  %v12121_v55 = vadd.f32 %v11878_v29, %v11699_v58  ;;  %v2815_v3 = vld [vmem:[#allocation8 + $0x40] sm:$0xff]  ;;  %v2825_v18 = vld [vmem:[#allocation8 + $0x90] sm:$0xff] }
 0x2e3   :  { %8325 = vmatpush1.bf16.msra.mxu0 %v10974_v25 }
 0x2e4   :  { %435 = vrot.lane.b32.xlu1 %v428_v1, %s10632_s6  ;;  %8365 = vmatpush1.bf16.msra.mxu1 %v10983_v39  ;;  %v654_v16 = vmax.f32 %v13466_v10, %v652_v62  ;;  %v13473_v1 = vld [vmem:[#allocation27_spill] sm:$0xff] }
 0x2e5   :  { %8327 = vmatprep.subr.bf16.mxu0 %v10980_v34  ;;  %8367 = vmatprep.subr.bf16.mxu1 %v10987_v41  ;;  %v12107_v2 = vadd.f32 %v11880_v27, %v13473_v1  ;;  %v12116_v27 = vpack.c.bf16 %v2813_v19, %v2811_v9  ;;  %v2817_v10 = vld [vmem:[#allocation8 + $0x50] sm:$0xff]  ;;  %v2836_v19 = vld [vmem:[#allocation8 + $0xe8] sm:$0xff] }
 0x2e6   :  { %454 = vrot.lane.b32.xlu0 %v450_v4, %s10628_s15  ;;  %v12053_v33 = vpop.f32.mrb[12].mxu0  ;;  %v12111_v4 = vpack.c.bf16 %v2814_v31, %v2812_v26  ;;  %v12132_v29 = vpack.c.bf16 %v2817_v10, %v2815_v3  ;;  %v2827_v26 = vld [vmem:[#allocation8 + $0xa0] sm:$0xff]  ;;  %v2829_v31 = vld [vmem:[#allocation8 + $0xb0] sm:$0xff] }
 0x2e7   :  { %8329 = vmatpush1.bf16.msra.mxu0 %v10994_v50  ;;  %v12056_v38 = vpop.f32.mrb[12].mxu1  ;;  %v12058_v42 = vpop.f32.mrb[13].mxu0  ;;  %v2833_v9 = vld [vmem:[#allocation8 + $0xd0] sm:$0xff]  ;;  %v2835_v3 = vld [vmem:[#allocation8 + $0xe0] sm:$0xff] }
 0x2e8   :  { %456 = vrot.lane.b32.xlu1 %v451_v28, %s10628_s15  ;;  %8369 = vmatpush1.bf16.msra.mxu1 %v10998_v52  ;;  %v12062_v46 = vpop.f32.mrb[13].mxu1  ;;  %v2818_v28 = vld [vmem:[#allocation8 + $0x58] sm:$0xff]  ;;  %v2837_v10 = vld [vmem:[#allocation8 + $0xf0] sm:$0xff] }
 0x2e9   :  { %13464 = vst [vmem:[#allocation31_spill] sm:$0xff] %v12062_v46  ;;  %2670 = vmatprep.subr.mxu0 %v11637_v60  ;;  %2741 = vmatprep.subr.mxu1 %v11640_v0  ;;  %v865_v0 = vsel %vm437_vm6, %v12015_v14, %v864_v59  ;;  %v13340_v59 = vmax.f32 %v12107_v2, 0.0  ;;  %v12125_v62 = vpack.c.bf16 %v2818_v28, %v2816_v24  ;;  %v2880_v46 = vld [vmem:[#allocation8 + $0x248] sm:$0xff] }
 0x2ea   :  { %v867_v11 = vmax.f32 %v13472_v61, %v865_v0  ;;  %v2821_v0 = vld [vmem:[#allocation8 + $0x70] sm:$0xff] }
 0x2eb   :  { %2671 = vmatpush1.msra.mxu0 %v11645_v12 }
 0x2ec   :  { %2742 = vmatpush1.msra.mxu1 %v11648_v56  ;;  %8371 = vmatprep.subr.bf16.mxu0 %v12064_v51 }
 0x2ed   :  { %8459 = vmatprep.subr.bf16.mxu1 %v12064_v51 }
 0x2fa   :  { %v669_v25 = vpop.permute.xlu1 %668 }
 0x2fc   :  { %v671_v34 = vpop.permute.xlu0 %670 }
 0x2fd   :  { %v672_v39 = vsel %vm458_vm7, %v669_v25, %v671_v34  ;;  %v2822_v25 = vld [vmem:[#allocation8 + $0x78] sm:$0xff]  ;;  %v13339_v34 = vmax.f32 %v12121_v55, 0.0 }
 0x2fe   :  { %v674_v41 = vmax.f32 %v654_v16, %v672_v39  ;;  %v2820_v16 = vld [vmem:[#allocation8 + $0x68] sm:$0xff] }
 0x2ff   :  { %v12137_v39 = vpack.c.bf16 %v2822_v25, %v2820_v16  ;;  %v2840_v16 = vld [vmem:[#allocation8 + $0x108] sm:$0xff]  ;;  %v2842_v25 = vld [vmem:[#allocation8 + $0x118] sm:$0xff] }
 0x300   :  { %676 = vst.msk [vmem:[#allocation2 + $0x2] sm:$0x3] %vm462_vm8, %v674_v41  ;;  %v2819_v41 = vld [vmem:[#allocation8 + $0x60] sm:$0xff] }
 0x301   :  { %v12144_v61 = vpack.c.bf16 %v2821_v0, %v2819_v41  ;;  %v12184_v0 = vpack.c.bf16 %v2837_v10, %v2835_v3  ;;  %v2848_v3 = vld [vmem:[#allocation8 + $0x148] sm:$0xff]  ;;  %v2850_v10 = vld [vmem:[#allocation8 + $0x158] sm:$0xff] }
 0x307   :  { %v12077_v50 = vld [vmem:[#allocation2 + $0x2] sm:$0x3] }
 0x308   :  { %2902 = vrot.lane.b32.xlu0 %v12077_v50, %s10639_s10 }
 0x313   :  { %v12081_v52 = vpop.f32.mrb[14].mxu0  ;;  %v12083_v12 = vpop.f32.mrb[14].mxu1 }
 0x314   :  { %13467 = vst [vmem:[#allocation29_spill] sm:$0xff] %v12081_v52  ;;  %13468 = vst [vmem:[#allocation39_spill] sm:$0xff] %v12083_v12  ;;  %v12085_v56 = vpop.f32.mrb[15].mxu0  ;;  %v12087_v60 = vpop.f32.mrb[15].mxu1 }
 0x315   :  { %13469 = vst [vmem:[#allocation24_spill] sm:$0xff] %v12085_v56  ;;  %13470 = vst [vmem:[#allocation25_spill] sm:$0xff] %v12087_v60 }
 0x325   :  { %v882_v37 = vpop.permute.xlu1 %881 }
 0x327   :  { %v884_v36 = vpop.permute.xlu0 %883 }
 0x328   :  { %v885_v54 = vsel %vm458_vm7, %v882_v37, %v884_v36  ;;  %v2824_v37 = vld [vmem:[#allocation8 + $0x88] sm:$0xff]  ;;  %v2823_v36 = vld [vmem:[#allocation8 + $0x80] sm:$0xff] }
 0x329   :  { %v887_v15 = vmax.f32 %v867_v11, %v885_v54  ;;  %v2612_v23 = vpop.permute.xlu1 %2611  ;;  %v12148_v11 = vpack.c.bf16 %v2826_v7, %v2824_v37  ;;  %v2828_v54 = vld [vmem:[#allocation8 + $0xa8] sm:$0xff]  ;;  %v12160_v17 = vpack.c.bf16 %v2825_v18, %v2823_v36  ;;  %v12188_v37 = vpack.c.bf16 %v2842_v25, %v2840_v16  ;;  %v2839_v7 = vld [vmem:[#allocation8 + $0x100] sm:$0xff]  ;;  %v2841_v36 = vld [vmem:[#allocation8 + $0x110] sm:$0xff] }
 0x32b   :  { %889 = vst.msk [vmem:[#allocation2 + $0x4] sm:$0x3] %vm462_vm8, %v887_v15  ;;  %v2608_v13 = vpop.permute.xlu0 %2607  ;;  %v2830_v15 = vld [vmem:[#allocation8 + $0xb8] sm:$0xff] }
 0x32c   :  { %v2623_v14 = vsel %vm252_vm1, %v2622_v8, %v2608_v13  ;;  %v12164_v22 = vpack.c.bf16 %v2830_v15, %v2828_v54  ;;  %v2844_v54 = vld [vmem:[#allocation8 + $0x128] sm:$0xff]  ;;  %v2846_v15 = vld [vmem:[#allocation8 + $0x138] sm:$0xff] }
 0x32d   :  { %v2620_v35 = vpop.permute.xlu1 %2619  ;;  %v2624_v44 = vsel %vm254_vm2, %v2623_v14, %v2612_v23 }
 0x32f   :  { %v2616_v40 = vpop.permute.xlu0 %2615 }
 0x330   :  { %v2625_v48 = vsel %vm256_vm5, %v2624_v44, %v2616_v40  ;;  %v2626_v49 = vsel %vm258_vm3, %v2616_v40, %v2620_v35  ;;  %v2832_v35 = vld [vmem:[#allocation8 + $0xc8] sm:$0xff]  ;;  %v2834_v40 = vld [vmem:[#allocation8 + $0xd8] sm:$0xff]  ;;  %v12168_v44 = vpack.c.bf16 %v2829_v31, %v2827_v26 }
 0x331   :  { %7340 = vmatprep.mubr.msk.f32.mxu0 %vm281_vm4, %v2626_v49  ;;  %7341 = vmatprep.mubr.msk.f32.mxu1 %vm281_vm4, %v2626_v49  ;;  %v2831_v49 = vld [vmem:[#allocation8 + $0xc0] sm:$0xff]  ;;  %v1077_v18 = vpop.permute.xlu1 %1076 }
 0x332   :  { %2695 = vmatmul.mubr.f32.vlgmr.msra.gmra.mrb[22].mxu0 %v2625_v48  ;;  %2766 = vmatmul.mubr.f32.vlgmr.msra.gmra.mrb[22].mxu1 %v2625_v48  ;;  %v2900_v20 = vld [vmem:[#allocation2 + $0x4] sm:$0x3]  ;;  %v12172_v48 = vpack.c.bf16 %v2834_v40, %v2832_v35  ;;  %v12176_v24 = vpack.c.bf16 %v2833_v9, %v2831_v49  ;;  %v12193_v35 = vpack.c.bf16 %v2841_v36, %v2839_v7  ;;  %v2843_v49 = vld [vmem:[#allocation8 + $0x120] sm:$0xff]  ;;  %v2845_v9 = vld [vmem:[#allocation8 + $0x130] sm:$0xff] }
 0x333   :  { %2906 = vrot.lane.b32.xlu1 %v2900_v20, %s10637_s24  ;;  %3171 = vrot.lane.b32.xlu0 %v2900_v20, %s10639_s10  ;;  %v2838_v20 = vld [vmem:[#allocation8 + $0xf8] sm:$0xff]  ;;  %v1075_v41 = vpop.permute.xlu0 %1074  ;;  %v12197_v40 = vpack.c.bf16 %v2846_v15, %v2844_v54  ;;  %v12204_v7 = vpack.c.bf16 %v2845_v9, %v2843_v49  ;;  %v12208_v36 = vpack.c.bf16 %v2850_v10, %v2848_v3  ;;  %v2852_v54 = vld [vmem:[#allocation8 + $0x168] sm:$0xff]  ;;  %v2851_v9 = vld [vmem:[#allocation8 + $0x160] sm:$0xff] }
 0x334   :  { %8373 = vmatpush1.bf16.msra.mxu0 %v12103_v53  ;;  %8461 = vmatpush1.bf16.msra.mxu1 %v12103_v53  ;;  %v12180_v28 = vpack.c.bf16 %v2838_v20, %v2836_v19  ;;  %v1078_v26 = vsel %vm437_vm6, %v1075_v41, %v1077_v18  ;;  %v2847_v18 = vld [vmem:[#allocation8 + $0x140] sm:$0xff]  ;;  %v2854_v15 = vld [vmem:[#allocation8 + $0x178] sm:$0xff] }
 0x335   :  { %8375 = vmatprep.subr.bf16.mxu0 %v12111_v4  ;;  %8463 = vmatprep.subr.bf16.mxu1 %v12111_v4  ;;  %v1080_v19 = vmax.f32 %v1068_v63, %v1078_v26  ;;  %v12218_v49 = vpack.c.bf16 %v2854_v15, %v2852_v54 }
 0x337   :  { %1296 = vrot.lane.b32.xlu0 %v13340_v59, %s10632_s6  ;;  %v2867_v59 = vld [vmem:[#allocation8 + $0x1e0] sm:$0xff] }
 0x338   :  { %8377 = vmatpush1.bf16.msra.mxu0 %v12116_v27  ;;  %8465 = vmatpush1.bf16.msra.mxu1 %v12116_v27 }
 0x339   :  { %8379 = vmatprep.subr.bf16.mxu0 %v12125_v62  ;;  %8467 = vmatprep.subr.bf16.mxu1 %v12125_v62 }
 0x33b   :  { %1287 = vrot.lane.b32.xlu0 %v13339_v34, %s10632_s6  ;;  %v2870_v34 = vld [vmem:[#allocation8 + $0x1f8] sm:$0xff] }
 0x33c   :  { %8381 = vmatpush1.bf16.msra.mxu0 %v12132_v29  ;;  %8469 = vmatpush1.bf16.msra.mxu1 %v12132_v29 }
 0x33d   :  { %8383 = vmatprep.subr.bf16.mxu0 %v12137_v39  ;;  %8471 = vmatprep.subr.bf16.mxu1 %v12137_v39 }
 0x33f   :  { %v12151_v23 = vpop.f32.mrb[16].mxu0  ;;  %v12153_v8 = vpop.f32.mrb[16].mxu1 }
 0x340   :  { %13474 = vst [vmem:[#allocation33_spill] sm:$0xff] %v12151_v23  ;;  %13475 = vst [vmem:[#allocation36_spill] sm:$0xff] %v12153_v8  ;;  %v12155_v13 = vpop.f32.mrb[17].mxu0  ;;  %v12157_v14 = vpop.f32.mrb[17].mxu1  ;;  %8385 = vmatpush1.bf16.msra.mxu0 %v12144_v61  ;;  %8473 = vmatpush1.bf16.msra.mxu1 %v12144_v61 }
 0x341   :  { %13476 = vst [vmem:[#allocation38_spill] sm:$0xff] %v12155_v13  ;;  %13477 = vst [vmem:[#allocation40_spill] sm:$0xff] %v12157_v14  ;;  %8387 = vmatprep.subr.bf16.mxu0 %v12148_v11  ;;  %8475 = vmatprep.subr.bf16.mxu1 %v12148_v11  ;;  %v2869_v14 = vld [vmem:[#allocation8 + $0x1f0] sm:$0xff] }
 0x342   :  { %v12281_v23 = vpack.c.bf16 %v2869_v14, %v2867_v59 }
 0x344   :  { %8389 = vmatpush1.bf16.msra.mxu0 %v12160_v17  ;;  %8477 = vmatpush1.bf16.msra.mxu1 %v12160_v17  ;;  %13488 = vst [vmem:[#allocation48_spill] sm:$0xff] %v12281_v23 }
 0x345   :  { %8391 = vmatprep.subr.bf16.mxu0 %v12164_v22  ;;  %8479 = vmatprep.subr.bf16.mxu1 %v12164_v22 }
 0x348   :  { %8393 = vmatpush1.bf16.msra.mxu0 %v12168_v44  ;;  %8481 = vmatpush1.bf16.msra.mxu1 %v12168_v44 }
 0x349   :  { %8395 = vmatprep.subr.bf16.mxu0 %v12172_v48  ;;  %8483 = vmatprep.subr.bf16.mxu1 %v12172_v48 }
 0x34c   :  { %8397 = vmatpush1.bf16.msra.mxu0 %v12176_v24  ;;  %8485 = vmatpush1.bf16.msra.mxu1 %v12176_v24 }
 0x34d   :  { %8399 = vmatprep.subr.bf16.mxu0 %v12180_v28  ;;  %8487 = vmatprep.subr.bf16.mxu1 %v12180_v28 }
 0x350   :  { %v1095_v31 = vpop.permute.xlu0 %1094  ;;  %8401 = vmatpush1.bf16.msra.mxu0 %v12184_v0  ;;  %8489 = vmatpush1.bf16.msra.mxu1 %v12184_v0 }
 0x351   :  { %8403 = vmatprep.subr.bf16.mxu0 %v12188_v37  ;;  %8491 = vmatprep.subr.bf16.mxu1 %v12188_v37 }
 0x352   :  { %v1097_v20 = vpop.permute.xlu1 %1096 }
 0x353   :  { %v1098_v16 = vsel %vm458_vm7, %v1095_v31, %v1097_v20  ;;  %v12214_v31 = vpack.c.bf16 %v2849_v5, %v2847_v18  ;;  %v13478_v18 = vld [vmem:[#allocation28_spill] sm:$0xff] }
 0x354   :  { %v1100_v25 = vmax.f32 %v1080_v19, %v1098_v16  ;;  %v434_v41 = vpop.permute.xlu0 %433  ;;  %8405 = vmatpush1.bf16.msra.mxu0 %v12193_v35  ;;  %8493 = vmatpush1.bf16.msra.mxu1 %v12193_v35  ;;  %v2853_v19 = vld [vmem:[#allocation8 + $0x170] sm:$0xff]  ;;  %v2856_v16 = vld [vmem:[#allocation8 + $0x188] sm:$0xff]  ;;  %v1279_v5 = vadd.f32 %v11886_v6, %v13478_v18 }
 0x355   :  { %8407 = vmatprep.subr.bf16.mxu0 %v12197_v40  ;;  %8495 = vmatprep.subr.bf16.mxu1 %v12197_v40  ;;  %v12227_v54 = vpack.c.bf16 %v2853_v19, %v2851_v9  ;;  %v2860_v6 = vld [vmem:[#allocation8 + $0x1a8] sm:$0xff]  ;;  %v2862_v9 = vld [vmem:[#allocation8 + $0x1b8] sm:$0xff] }
 0x356   :  { %1102 = vst.msk [vmem:[#allocation2 + $0x6] sm:$0x3] %vm462_vm8, %v1100_v25  ;;  %v436_v63 = vpop.permute.xlu1 %435  ;;  %v2858_v25 = vld [vmem:[#allocation8 + $0x198] sm:$0xff]  ;;  %v13479_v19 = vld [vmem:[#allocation30_spill] sm:$0xff] }
 0x357   :  { %v438_v26 = vsel %vm437_vm6, %v434_v41, %v436_v63  ;;  %v12233_v30 = vpack.c.bf16 %v2858_v25, %v2856_v16  ;;  %v12248_v16 = vpack.c.bf16 %v2862_v9, %v2860_v6  ;;  %v2859_v25 = vld [vmem:[#allocation8 + $0x1a0] sm:$0xff]  ;;  %v2865_v9 = vld [vmem:[#allocation8 + $0x1d0] sm:$0xff] }
 0x358   :  { %8409 = vmatpush1.bf16.msra.mxu0 %v12204_v7  ;;  %8497 = vmatpush1.bf16.msra.mxu1 %v12204_v7  ;;  %v440_v20 = vmax.f32 %v427_v57, %v438_v26  ;;  %v455_v3 = vpop.permute.xlu0 %454  ;;  %v2855_v57 = vld [vmem:[#allocation8 + $0x180] sm:$0xff]  ;;  %v2857_v26 = vld [vmem:[#allocation8 + $0x190] sm:$0xff] }
 0x359   :  { %8411 = vmatprep.subr.bf16.mxu0 %v12208_v36  ;;  %8499 = vmatprep.subr.bf16.mxu1 %v12208_v36  ;;  %v2863_v6 = vld [vmem:[#allocation8 + $0x1c0] sm:$0xff] }
 0x35a   :  { %v457_v10 = vpop.permute.xlu1 %456 }
 0x35b   :  { %v459_v41 = vsel %vm458_vm7, %v455_v3, %v457_v10  ;;  %v1284_v3 = vmax.f32 %v1279_v5, 0.0  ;;  %v12244_v10 = vpack.c.bf16 %v2857_v26, %v2855_v57 }
 0x35c   :  { %v461_v63 = vmax.f32 %v440_v20, %v459_v41  ;;  %8413 = vmatpush1.bf16.msra.mxu0 %v12214_v31  ;;  %8501 = vmatpush1.bf16.msra.mxu1 %v12214_v31  ;;  %v12241_v20 = vadd.f32 %v13479_v19, %v11717_v32  ;;  %v2861_v41 = vld [vmem:[#allocation8 + $0x1b0] sm:$0xff]  ;;  %v2866_v19 = vld [vmem:[#allocation8 + $0x1d8] sm:$0xff] }
 0x35d   :  { %v12230_v15 = vld [vmem:[#allocation2 + $0x6] sm:$0x3]  ;;  %8415 = vmatprep.subr.bf16.mxu0 %v12218_v49  ;;  %8503 = vmatprep.subr.bf16.mxu1 %v12218_v49  ;;  %v12254_v57 = vpack.c.bf16 %v2861_v41, %v2859_v25  ;;  %v12265_v25 = vpack.c.bf16 %v2865_v9, %v2863_v6  ;;  %v2874_v9 = vld [vmem:[#allocation8 + $0x218] sm:$0xff] }
 0x35e   :  { %463 = vst.msk [vmem:[#allocation2] sm:$0x3] %vm462_vm8, %v461_v63  ;;  %3175 = vrot.lane.b32.xlu1 %v12230_v15, %s10637_s24  ;;  %v2864_v63 = vld [vmem:[#allocation8 + $0x1c8] sm:$0xff]  ;;  %v13341_v5 = vmax.f32 %v12241_v20, 0.0 }
 0x35f   :  { %13480 = vst [vmem:[#allocation30_spill] sm:$0xff] %v12254_v57  ;;  %v12258_v26 = vpack.c.bf16 %v2866_v19, %v2864_v63  ;;  %13482 = vst [vmem:[#allocation42_spill] sm:$0xff] %v12265_v25  ;;  %v2872_v6 = vld [vmem:[#allocation8 + $0x208] sm:$0xff] }
 0x360   :  { %8417 = vmatpush1.bf16.msra.mxu0 %v12227_v54  ;;  %8505 = vmatpush1.bf16.msra.mxu1 %v12227_v54 }
 0x361   :  { %8419 = vmatprep.subr.bf16.mxu0 %v12233_v30  ;;  %8507 = vmatprep.subr.bf16.mxu1 %v12233_v30  ;;  %13481 = vst [vmem:[#allocation41_spill] sm:$0xff] %v12258_v26 }
 0x362   :  { %1298 = vrot.lane.b32.xlu1 %v1284_v3, %s10632_s6  ;;  %v2868_v3 = vld [vmem:[#allocation8 + $0x1e8] sm:$0xff] }
 0x363   :  { %v12273_v19 = vpack.c.bf16 %v2870_v34, %v2868_v3  ;;  %v12285_v34 = vpack.c.bf16 %v2874_v9, %v2872_v6  ;;  %v2873_v6 = vld [vmem:[#allocation8 + $0x210] sm:$0xff]  ;;  %v2876_v9 = vld [vmem:[#allocation8 + $0x228] sm:$0xff] }
 0x364   :  { %8421 = vmatpush1.bf16.msra.mxu0 %v12244_v10  ;;  %8509 = vmatpush1.bf16.msra.mxu1 %v12244_v10 }
 0x365   :  { %8423 = vmatprep.subr.bf16.mxu0 %v12248_v16  ;;  %8511 = vmatprep.subr.bf16.mxu1 %v12248_v16  ;;  %13485 = vst [vmem:[#allocation45_spill] sm:$0xff] %v12273_v19  ;;  %13489 = vst [vmem:[#allocation49_spill] sm:$0xff] %v12285_v34  ;;  %v2898_v52 = vld [vmem:[#allocation2] sm:$0x3] }
 0x366   :  { %1289 = vrot.lane.b32.xlu1 %v13341_v5, %s10632_s6 }
 0x368   :  { %8425 = vmatpush1.bf16.msra.mxu0 %v12254_v57  ;;  %8513 = vmatpush1.bf16.msra.mxu1 %v12254_v57  ;;  %v2894_v57 = vld [vmem:[#allocation8 + $0x2b8] sm:$0xff] }
 0x369   :  { %v12268_v41 = vpop.f32.mrb[18].mxu0  ;;  %v12270_v63 = vpop.f32.mrb[18].mxu1  ;;  %8427 = vmatprep.subr.bf16.mxu0 %v12258_v26  ;;  %8515 = vmatprep.subr.bf16.mxu1 %v12258_v26  ;;  %v2892_v26 = vld [vmem:[#allocation8 + $0x2a8] sm:$0xff] }
 0x36a   :  { %13483 = vst [vmem:[#allocation43_spill] sm:$0xff] %v12268_v41  ;;  %13484 = vst [vmem:[#allocation44_spill] sm:$0xff] %v12270_v63  ;;  %v12276_v5 = vpop.f32.mrb[19].mxu0  ;;  %v12278_v13 = vpop.f32.mrb[19].mxu1  ;;  %v2871_v41 = vld [vmem:[#allocation8 + $0x200] sm:$0xff]  ;;  %v2878_v63 = vld [vmem:[#allocation8 + $0x238] sm:$0xff] }
 0x36b   :  { %13486 = vst [vmem:[#allocation46_spill] sm:$0xff] %v12276_v5  ;;  %13487 = vst [vmem:[#allocation47_spill] sm:$0xff] %v12278_v13  ;;  %v12303_v56 = vpack.c.bf16 %v2873_v6, %v2871_v41  ;;  %v13348_v6 = vmov 0.0  }
 0x36c   :  { %8429 = vmatpush1.bf16.msra.mxu0 %v12265_v25  ;;  %8517 = vmatpush1.bf16.msra.mxu1 %v12265_v25  ;;  %v2886_v25 = vld [vmem:[#allocation8 + $0x278] sm:$0xff] }
 0x36d   :  { %8431 = vmatprep.subr.bf16.mxu0 %v12273_v19  ;;  %8519 = vmatprep.subr.bf16.mxu1 %v12273_v19  ;;  %13494 = vst [vmem:[#allocation54_spill] sm:$0xff] %v12303_v56 }
 0x370   :  { %8433 = vmatpush1.bf16.msra.mxu0 %v12281_v23  ;;  %8521 = vmatpush1.bf16.msra.mxu1 %v12281_v23  ;;  %v2882_v23 = vld [vmem:[#allocation8 + $0x258] sm:$0xff] }
 0x371   :  { %8435 = vmatprep.subr.bf16.mxu0 %v12285_v34 }
 0x37a   :  { %v2903_v5 = vpop.permute.xlu0 %2902 }
 0x37b   :  { %v2910_v12 = vsel %vm2909_vm9, %v2898_v52, %v2903_v5  ;;  %v12320_v52 = vpack.c.bf16 %v2882_v23, %v2880_v46  ;;  %v2883_v46 = vld [vmem:[#allocation8 + $0x260] sm:$0xff]  ;;  %v2885_v23 = vld [vmem:[#allocation8 + $0x270] sm:$0xff] }
 0x37d   :  { %13498 = vst [vmem:[#allocation57_spill] sm:$0xff] %v12320_v52 }
 0x394   :  { %v12291_v3 = vpop.f32.mrb[20].mxu0 }
 0x395   :  { %13490 = vst [vmem:[#allocation50_spill] sm:$0xff] %v12291_v3  ;;  %v12293_v13 = vpop.f32.mrb[20].mxu1  ;;  %v12295_v59 = vpop.f32.mrb[21].mxu0 }
 0x396   :  { %13491 = vst [vmem:[#allocation51_spill] sm:$0xff] %v12293_v13  ;;  %13492 = vst [vmem:[#allocation52_spill] sm:$0xff] %v12295_v59  ;;  %v12297_v14 = vpop.f32.mrb[21].mxu1  ;;  %v12307_v13 = vpack.c.bf16 %v2878_v63, %v2876_v9  ;;  %v2875_v59 = vld [vmem:[#allocation8 + $0x220] sm:$0xff]  ;;  %v13497_v63 = vmax.f32 %v12241_v20, 0.0 }
 0x397   :  { %13493 = vst [vmem:[#allocation53_spill] sm:$0xff] %v12297_v14  ;;  %v2877_v14 = vld [vmem:[#allocation8 + $0x230] sm:$0xff] }
 0x398   :  { %13495 = vst [vmem:[#allocation55_spill] sm:$0xff] %v12307_v13  ;;  %v12313_v41 = vpack.c.bf16 %v2877_v14, %v2875_v59  ;;  %v12328_v14 = vadd.f32 %v11970_v47, %v13473_v1 }
 0x39a   :  { %13496 = vst [vmem:[#allocation56_spill] sm:$0xff] %v12313_v41  ;;  %v13355_v47 = vmax.f32 %v12328_v14, 0.0 }
 0x3a5   :  { %v12299_v8 = vpop.permute.xlu1 %2906  ;;  %v12301_v60 = vpop.permute.xlu0 %3171 }
 0x3a6   :  { %v2911_v3 = vsel %vm256_vm5, %v2903_v5, %v12299_v8  ;;  %v2879_v5 = vld [vmem:[#allocation8 + $0x240] sm:$0xff] }
 0x3a7   :  { %2990 = vmatprep.mubr.f32.mxu0 %v2911_v3  ;;  %v2881_v3 = vld [vmem:[#allocation8 + $0x250] sm:$0xff] }
 0x3a8   :  { %2991 = vmatmul.mubr.f32.vlgmr.msra.gmra.mrb[24].mxu0 %v2910_v12  ;;  %v2884_v12 = vld [vmem:[#allocation8 + $0x268] sm:$0xff]  ;;  %v12324_v59 = vpack.c.bf16 %v2881_v3, %v2879_v5  ;;  %v12340_v5 = vadd.f32 %v11968_v45, %v11699_v58  ;;  %v2887_v3 = vld [vmem:[#allocation8 + $0x280] sm:$0xff] }
 0x3a9   :  { %8437 = vmatpush1.bf16.msra.mxu0 %v12303_v56  ;;  %v12311_v19 = vpop.permute.xlu0 %1296  ;;  %3061 = vmatprep.mubr.f32.mxu0 %v13348_v6  ;;  %v12331_v20 = vpack.c.bf16 %v2886_v25, %v2884_v12  ;;  %v2890_v6 = vld [vmem:[#allocation8 + $0x298] sm:$0xff]  ;;  %v2889_v12 = vld [vmem:[#allocation8 + $0x290] sm:$0xff] }
 0x3aa   :  { %8439 = vmatprep.subr.bf16.mxu0 %v12307_v13  ;;  %v1303_v9 = vmax.f32 %v13497_v63, %v12311_v19  ;;  %13499 = vst [vmem:[#allocation58_spill] sm:$0xff] %v12324_v59  ;;  %v2888_v63 = vld [vmem:[#allocation8 + $0x288] sm:$0xff]  ;;  %13502 = vst [vmem:[#allocation61_spill] sm:$0xff] %v12340_v5  ;;  %v13354_v45 = vmax.f32 %v12340_v5, 0.0 }
 0x3ab   :  { %13500 = vst [vmem:[#allocation59_spill] sm:$0xff] %v12331_v20  ;;  %v12344_v25 = vpack.c.bf16 %v2890_v6, %v2888_v63  ;;  %v2891_v6 = vld [vmem:[#allocation8 + $0x2a0] sm:$0xff] }
 0x3ac   :  { %1307 = vrot.lane.b32.xlu0 %v1303_v9, %s10628_s15  ;;  %v12336_v9 = vpack.c.bf16 %v2885_v23, %v2883_v46  ;;  %v12354_v46 = vpack.c.bf16 %v2894_v57, %v2892_v26  ;;  %v2893_v23 = vld [vmem:[#allocation8 + $0x2b0] sm:$0xff]  ;;  %v13507_v57 = vmov 0.0  }
 0x3ad   :  { %8441 = vmatpush1.bf16.msra.mxu0 %v12313_v41  ;;  %13503 = vst [vmem:[#allocation62_spill] sm:$0xff] %v12344_v25  ;;  %v12360_v63 = vpack.c.bf16 %v2893_v23, %v2891_v6  ;;  %v3178_v6 = vsel %vm2909_vm9, %v12077_v50, %v12301_v60  ;;  %v3328_v50 = vld [vmem:[#allocation11 + $0x328] sm:$0xff] }
 0x3ae   :  { %8443 = vmatprep.subr.bf16.mxu0 %v12320_v52  ;;  %13501 = vst [vmem:[#allocation60_spill] sm:$0xff] %v12336_v9  ;;  %13505 = vst [vmem:[#allocation64_spill] sm:$0xff] %v12354_v46 }
 0x3af   :  { %13506 = vst [vmem:[#allocation65_spill] sm:$0xff] %v12360_v63 }
 0x3b0   :  { %3719 = vrot.lane.b32.xlu0 %v12230_v15, %s10639_s10  ;;  %v12350_v15 = vpack.c.bf16 %v2889_v12, %v2887_v3  ;;  %v2896_v3 = vld [vmem:[#allocation8 + $0x2c8] sm:$0xff]  ;;  %v2895_v12 = vld [vmem:[#allocation8 + $0x2c0] sm:$0xff] }
 0x3b1   :  { %8445 = vmatpush1.bf16.msra.mxu0 %v12324_v59 }
 0x3b2   :  { %8447 = vmatprep.subr.bf16.mxu0 %v12331_v20  ;;  %13504 = vst [vmem:[#allocation63_spill] sm:$0xff] %v12350_v15 }
 0x3b4   :  { %1509 = vrot.lane.b32.xlu0 %v13355_v47, %s10632_s6  ;;  %v13508_v47 = vmax.f32 %v12107_v2, 0.0  ;;  %v3333_v2 = vld [vmem:[#allocation11 + $0x350] sm:$0xff] }
 0x3b5   :  { %8449 = vmatpush1.bf16.msra.mxu0 %v12336_v9 }
 0x3b6   :  { %8451 = vmatprep.subr.bf16.mxu0 %v12344_v25 }
 0x3b8   :  { %1500 = vrot.lane.b32.xlu0 %v13354_v45, %s10632_s6 }
 0x3b9   :  { %8453 = vmatpush1.bf16.msra.mxu0 %v12350_v15 }
 0x3ba   :  { %8455 = vmatprep.subr.bf16.mxu0 %v12354_v46 }
 0x3bd   :  { %8457 = vmatpush1.bf16.msra.mxu0 %v12360_v63 }
 0x3be   :  { %3021 = vmatprep.subr.mxu0 %v2896_v3 }
 0x3c1   :  { %3022 = vmatpush1.msra.mxu0 %v2895_v12 }
 0x3c2   :  { %7342 = vmatmul.mubr.msk.f32.vlgmr.msra.gmra.mrb[24].mxu0 %vm2923_vm10, %v12299_v8  ;;  %8523 = vmatprep.subr.bf16.mxu0 %v12285_v34 }
 0x3c3   :  { %8525 = vmatpush1.bf16.msra.mxu0 %v12303_v56  ;;  %3317 = vmatprep.mubr.f32.mxu0 %v13507_v57  ;;  %v3366_v57 = vld [vmem:[#allocation11 + $0x458] sm:$0xff]  ;;  %v3421_v56 = vld [vmem:[#allocation11 + $0x610] sm:$0xff] }
 0x3c4   :  { %8527 = vmatprep.subr.bf16.mxu0 %v12307_v13  ;;  %v3362_v13 = vld [vmem:[#allocation11 + $0x438] sm:$0xff] }
 0x3c7   :  { %8529 = vmatpush1.bf16.msra.mxu0 %v12313_v41 }
 0x3c8   :  { %8531 = vmatprep.subr.bf16.mxu0 %v12320_v52  ;;  %v3341_v52 = vld [vmem:[#allocation11 + $0x390] sm:$0xff] }
 0x3cb   :  { %8533 = vmatpush1.bf16.msra.mxu0 %v12324_v59  ;;  %v3339_v59 = vld [vmem:[#allocation11 + $0x380] sm:$0xff] }
 0x3cc   :  { %8535 = vmatprep.subr.bf16.mxu0 %v12331_v20  ;;  %v3335_v20 = vld [vmem:[#allocation11 + $0x360] sm:$0xff] }
 0x3cf   :  { %8537 = vmatpush1.bf16.msra.mxu0 %v12336_v9 }
 0x3d0   :  { %v3176_v26 = vpop.permute.xlu1 %3175  ;;  %8539 = vmatprep.subr.bf16.mxu0 %v12344_v25  ;;  %v3331_v25 = vld [vmem:[#allocation11 + $0x340] sm:$0xff] }
 0x3d1   :  { %v3179_v8 = vsel %vm256_vm5, %v12301_v60, %v3176_v26  ;;  %v3332_v60 = vld [vmem:[#allocation11 + $0x348] sm:$0xff] }
 0x3d2   :  { %3246 = vmatprep.mubr.f32.mxu1 %v3179_v8  ;;  %v3330_v8 = vld [vmem:[#allocation11 + $0x338] sm:$0xff] }
 0x3d3   :  { %3247 = vmatmul.mubr.f32.vlgmr.msra.gmra.mrb[24].mxu1 %v3178_v6  ;;  %8541 = vmatpush1.bf16.msra.mxu0 %v12350_v15  ;;  %v8546_v6 = vpack.c.bf16 %v3332_v60, %v3328_v50  ;;  %v3334_v15 = vld [vmem:[#allocation11 + $0x358] sm:$0xff]  ;;  %v3337_v50 = vld [vmem:[#allocation11 + $0x370] sm:$0xff]  ;;  %v8552_v60 = vpack.c.bf16 %v3339_v59, %v3335_v20 }
 0x3d4   :  { %v1299_v23 = vpop.permute.xlu1 %1298  ;;  %8543 = vmatprep.subr.bf16.mxu0 %v12354_v46  ;;  %v3327_v46 = vld [vmem:[#allocation11 + $0x320] sm:$0xff]  ;;  %v8594_v9 = vpack.c.bf16 %v3334_v15, %v3330_v8  ;;  %v3344_v15 = vld [vmem:[#allocation11 + $0x3a8] sm:$0xff] }
 0x3d5   :  { %v1300_v45 = vsel %vm437_vm6, %v12311_v19, %v1299_v23  ;;  %v8548_v19 = vpack.c.bf16 %v3331_v25, %v3327_v46  ;;  %v3329_v23 = vld [vmem:[#allocation11 + $0x330] sm:$0xff]  ;;  %v3348_v25 = vld [vmem:[#allocation11 + $0x3c8] sm:$0xff]  ;;  %v8600_v46 = vpack.c.bf16 %v3341_v52, %v3337_v50  ;;  %v3355_v52 = vld [vmem:[#allocation11 + $0x400] sm:$0xff] }
 0x3d6   :  { %v1304_v5 = vmax.f32 %v13508_v47, %v1300_v45  ;;  %v3336_v47 = vld [vmem:[#allocation11 + $0x368] sm:$0xff]  ;;  %v8596_v45 = vpack.c.bf16 %v3333_v2, %v3329_v23  ;;  %8595 = vmatprep.subr.bf16.mxu1 %v8594_v9  ;;  %v8554_v8 = vpack.c.bf16 %v3348_v25, %v3344_v15  ;;  %v3350_v23 = vld [vmem:[#allocation11 + $0x3d8] sm:$0xff]  ;;  %v3343_v2 = vld [vmem:[#allocation11 + $0x3a0] sm:$0xff] }
 0x3d7   :  { %8545 = vmatpush1.bf16.msra.mxu0 %v12360_v63  ;;  %v3340_v63 = vld [vmem:[#allocation11 + $0x388] sm:$0xff]  ;;  %v3347_v9 = vld [vmem:[#allocation11 + $0x3c0] sm:$0xff]  ;;  %v3353_v15 = vld [vmem:[#allocation11 + $0x3f0] sm:$0xff] }
 0x3d8   :  { %1309 = vrot.lane.b32.xlu1 %v1304_v5, %s10628_s15  ;;  %3277 = vmatprep.subr.mxu0 %v2896_v3  ;;  %v3338_v5 = vld [vmem:[#allocation11 + $0x378] sm:$0xff]  ;;  %v3357_v25 = vld [vmem:[#allocation11 + $0x410] sm:$0xff] }
 0x3d9   :  { %v3342_v3 = vld [vmem:[#allocation11 + $0x398] sm:$0xff]  ;;  %8597 = vmatpush1.bf16.msra.mxu1 %v8596_v45 }
 0x3da   :  { %v3354_v45 = vld [vmem:[#allocation11 + $0x3f8] sm:$0xff] }
 0x3db   :  { %3278 = vmatpush1.msra.mxu0 %v2895_v12  ;;  %v8550_v12 = vpack.c.bf16 %v3340_v63, %v3336_v47  ;;  %v3349_v63 = vld [vmem:[#allocation11 + $0x3d0] sm:$0xff]  ;;  %v8556_v47 = vpack.c.bf16 %v3347_v9, %v3343_v2  ;;  %v8608_v2 = vpack.c.bf16 %v3357_v25, %v3353_v15  ;;  %v3363_v9 = vld [vmem:[#allocation11 + $0x440] sm:$0xff] }
 0x3dc   :  { %7343 = vmatmul.mubr.msk.f32.vlgmr.msra.gmra.mrb[26].mxu0 %vm2923_vm10, %v3176_v26  ;;  %8547 = vmatprep.subr.bf16.mxu0 %v8546_v6  ;;  %v8598_v26 = vpack.c.bf16 %v3342_v3, %v3338_v5  ;;  %v3346_v6 = vld [vmem:[#allocation11 + $0x3b8] sm:$0xff]  ;;  %v3352_v5 = vld [vmem:[#allocation11 + $0x3e8] sm:$0xff]  ;;  %v3371_v15 = vld [vmem:[#allocation11 + $0x480] sm:$0xff] }
 0x3dd   :  { %8549 = vmatpush1.bf16.msra.mxu0 %v8548_v19  ;;  %v8602_v41 = vpack.c.bf16 %v3350_v23, %v3346_v6  ;;  %v3345_v19 = vld [vmem:[#allocation11 + $0x3b0] sm:$0xff]  ;;  %v3356_v3 = vld [vmem:[#allocation11 + $0x408] sm:$0xff] }
 0x3de   :  { %8551 = vmatprep.subr.bf16.mxu0 %v8550_v12  ;;  %8599 = vmatprep.subr.bf16.mxu1 %v8598_v26  ;;  %v8604_v59 = vpack.c.bf16 %v3349_v63, %v3345_v19  ;;  %v8558_v20 = vpack.c.bf16 %v3356_v3, %v3352_v5  ;;  %v3358_v12 = vld [vmem:[#allocation11 + $0x418] sm:$0xff]  ;;  %v3351_v26 = vld [vmem:[#allocation11 + $0x3e0] sm:$0xff]  ;;  %v3360_v6 = vld [vmem:[#allocation11 + $0x428] sm:$0xff]  ;;  %v8610_v19 = vpack.c.bf16 %v3366_v57, %v3362_v13 }
 0x3df   :  { %8601 = vmatpush1.bf16.msra.mxu1 %v8600_v46  ;;  %v8606_v50 = vpack.c.bf16 %v3358_v12, %v3354_v45  ;;  %v3364_v23 = vld [vmem:[#allocation11 + $0x448] sm:$0xff]  ;;  %v3361_v63 = vld [vmem:[#allocation11 + $0x430] sm:$0xff]  ;;  %v3370_v57 = vld [vmem:[#allocation11 + $0x478] sm:$0xff] }
 0x3e0   :  { %8603 = vmatprep.subr.bf16.mxu1 %v8602_v41  ;;  %v8562_v46 = vpack.c.bf16 %v3364_v23, %v3360_v6  ;;  %v3365_v5 = vld [vmem:[#allocation11 + $0x450] sm:$0xff]  ;;  %v3368_v12 = vld [vmem:[#allocation11 + $0x468] sm:$0xff] }
 0x3e1   :  { %8553 = vmatpush1.bf16.msra.mxu0 %v8552_v60  ;;  %v8560_v60 = vpack.c.bf16 %v3355_v52, %v3351_v26  ;;  %v8612_v3 = vpack.c.bf16 %v3365_v5, %v3361_v63  ;;  %v3372_v13 = vld [vmem:[#allocation11 + $0x488] sm:$0xff]  ;;  %v3374_v52 = vld [vmem:[#allocation11 + $0x498] sm:$0xff]  ;;  %v3369_v23 = vld [vmem:[#allocation11 + $0x470] sm:$0xff] }
 0x3e2   :  { %8555 = vmatprep.subr.bf16.mxu0 %v8554_v8  ;;  %v3359_v8 = vld [vmem:[#allocation11 + $0x420] sm:$0xff]  ;;  %v8566_v26 = vpack.c.bf16 %v3372_v13, %v3368_v12  ;;  %v8614_v25 = vpack.c.bf16 %v3374_v52, %v3370_v57  ;;  %v3382_v63 = vld [vmem:[#allocation11 + $0x4d8] sm:$0xff]  ;;  %v3377_v57 = vld [vmem:[#allocation11 + $0x4b0] sm:$0xff] }
 0x3e3   :  { %8605 = vmatpush1.bf16.msra.mxu1 %v8604_v59  ;;  %v8564_v41 = vpack.c.bf16 %v3363_v9, %v3359_v8  ;;  %v3380_v8 = vld [vmem:[#allocation11 + $0x4c8] sm:$0xff]  ;;  %v3378_v9 = vld [vmem:[#allocation11 + $0x4b8] sm:$0xff]  ;;  %v3375_v5 = vld [vmem:[#allocation11 + $0x4a0] sm:$0xff] }
 0x3e4   :  { %8607 = vmatprep.subr.bf16.mxu1 %v8606_v50  ;;  %v3367_v50 = vld [vmem:[#allocation11 + $0x460] sm:$0xff]  ;;  %v8618_v12 = vpack.c.bf16 %v3382_v63, %v3378_v9  ;;  %v3381_v52 = vld [vmem:[#allocation11 + $0x4d0] sm:$0xff]  ;;  %v3392_v9 = vld [vmem:[#allocation11 + $0x528] sm:$0xff] }
 0x3e5   :  { %8557 = vmatpush1.bf16.msra.mxu0 %v8556_v47  ;;  %v8568_v6 = vpack.c.bf16 %v3371_v15, %v3367_v50  ;;  %v8620_v50 = vpack.c.bf16 %v3381_v52, %v3377_v57  ;;  %v3388_v15 = vld [vmem:[#allocation11 + $0x508] sm:$0xff]  ;;  %v3398_v57 = vld [vmem:[#allocation11 + $0x558] sm:$0xff]  ;;  %v3391_v52 = vld [vmem:[#allocation11 + $0x520] sm:$0xff] }
 0x3e6   :  { %8559 = vmatprep.subr.bf16.mxu0 %v8558_v20 }
 0x3e7   :  { %8609 = vmatpush1.bf16.msra.mxu1 %v8608_v2 }
 0x3e8   :  { %8611 = vmatprep.subr.bf16.mxu1 %v8610_v19 }
 0x3e9   :  { %8561 = vmatpush1.bf16.msra.mxu0 %v8560_v60  ;;  %v3373_v60 = vld [vmem:[#allocation11 + $0x490] sm:$0xff] }
 0x3ea   :  { %8563 = vmatprep.subr.bf16.mxu0 %v8562_v46  ;;  %v8616_v2 = vpack.c.bf16 %v3373_v60, %v3369_v23  ;;  %v3376_v46 = vld [vmem:[#allocation11 + $0x4a8] sm:$0xff]  ;;  %v3390_v23 = vld [vmem:[#allocation11 + $0x518] sm:$0xff]  ;;  %v3383_v60 = vld [vmem:[#allocation11 + $0x4e0] sm:$0xff] }
 0x3eb   :  { %8613 = vmatpush1.bf16.msra.mxu1 %v8612_v3  ;;  %v8570_v19 = vpack.c.bf16 %v3380_v8, %v3376_v46  ;;  %v12398_v3 = vpop.permute.xlu0 %1287 }
 0x3ec   :  { %8615 = vmatprep.subr.bf16.mxu1 %v8614_v25  ;;  %v3386_v25 = vld [vmem:[#allocation11 + $0x4f8] sm:$0xff] }
 0x3ed   :  { %8565 = vmatpush1.bf16.msra.mxu0 %v8564_v41  ;;  %v3379_v41 = vld [vmem:[#allocation11 + $0x4c0] sm:$0xff]  ;;  %v8622_v46 = vpack.c.bf16 %v3390_v23, %v3386_v25  ;;  %v3397_v25 = vld [vmem:[#allocation11 + $0x550] sm:$0xff]  ;;  %v12404_v23 = vadd.f32 %v11974_v21, %v11717_v32 }
 0x3ee   :  { %8567 = vmatprep.subr.bf16.mxu0 %v8566_v26  ;;  %v8572_v13 = vpack.c.bf16 %v3379_v41, %v3375_v5  ;;  %v3384_v26 = vld [vmem:[#allocation11 + $0x4e8] sm:$0xff]  ;;  %v3394_v41 = vld [vmem:[#allocation11 + $0x538] sm:$0xff] }
 0x3ef   :  { %8617 = vmatpush1.bf16.msra.mxu1 %v8616_v2  ;;  %v3387_v2 = vld [vmem:[#allocation11 + $0x500] sm:$0xff]  ;;  %v3396_v5 = vld [vmem:[#allocation11 + $0x548] sm:$0xff] }
 0x3f0   :  { %8619 = vmatprep.subr.bf16.mxu1 %v8618_v12  ;;  %v8576_v8 = vpack.c.bf16 %v3387_v2, %v3383_v60  ;;  %v8578_v12 = vpack.c.bf16 %v3396_v5, %v3392_v9  ;;  %v3404_v60 = vld [vmem:[#allocation11 + $0x588] sm:$0xff]  ;;  %v3402_v2 = vld [vmem:[#allocation11 + $0x578] sm:$0xff]  ;;  %v3399_v5 = vld [vmem:[#allocation11 + $0x560] sm:$0xff] }
 0x3f1   :  { %8569 = vmatpush1.bf16.msra.mxu0 %v8568_v6  ;;  %v8574_v6 = vpack.c.bf16 %v3388_v15, %v3384_v26  ;;  %v3395_v26 = vld [vmem:[#allocation11 + $0x540] sm:$0xff]  ;;  %v3393_v15 = vld [vmem:[#allocation11 + $0x530] sm:$0xff]  ;;  %v3406_v9 = vld [vmem:[#allocation11 + $0x598] sm:$0xff] }
 0x3f2   :  { %8571 = vmatprep.subr.bf16.mxu0 %v8570_v19  ;;  %v8630_v21 = vpack.c.bf16 %v3406_v9, %v3402_v2  ;;  %v3411_v2 = vld [vmem:[#allocation11 + $0x5c0] sm:$0xff] }
 0x3f3   :  { %8621 = vmatpush1.bf16.msra.mxu1 %v8620_v50  ;;  %v8580_v50 = vpack.c.bf16 %v3395_v26, %v3391_v52  ;;  %v3405_v52 = vld [vmem:[#allocation11 + $0x590] sm:$0xff] }
 0x3f4   :  { %8623 = vmatprep.subr.bf16.mxu1 %v8622_v46  ;;  %v13377_v46 = vmax.f32 %v12404_v23, 0.0 }
 0x3f5   :  { %8573 = vmatpush1.bf16.msra.mxu0 %v8572_v13  ;;  %v8626_v13 = vpack.c.bf16 %v3398_v57, %v3394_v41  ;;  %v3403_v41 = vld [vmem:[#allocation11 + $0x580] sm:$0xff] }
 0x3f6   :  { %8575 = vmatprep.subr.bf16.mxu0 %v8574_v6  ;;  %v8628_v6 = vpack.c.bf16 %v3397_v25, %v3393_v15  ;;  %v3408_v15 = vld [vmem:[#allocation11 + $0x5a8] sm:$0xff]  ;;  %v3410_v25 = vld [vmem:[#allocation11 + $0x5b8] sm:$0xff] }
 0x3f9   :  { %8577 = vmatpush1.bf16.msra.mxu0 %v8576_v8 }
 0x3fa   :  { %8579 = vmatprep.subr.bf16.mxu0 %v8578_v12  ;;  %v3401_v12 = vld [vmem:[#allocation11 + $0x570] sm:$0xff] }
 0x3fb   :  { %v8632_v26 = vpack.c.bf16 %v3405_v52, %v3401_v12  ;;  %v3422_v52 = vld [vmem:[#allocation11 + $0x618] sm:$0xff] }
 0x3fd   :  { %8581 = vmatpush1.bf16.msra.mxu0 %v8580_v50  ;;  %v3412_v50 = vld [vmem:[#allocation11 + $0x5c8] sm:$0xff] }
 0x405   :  { %v12390_v47 = vpop.f32.mrb[22].mxu0  ;;  %v12392_v45 = vpop.f32.mrb[22].mxu1 }
 0x406   :  { %13509 = vst [vmem:[#allocation66_spill] sm:$0xff] %v12390_v47  ;;  %13510 = vst [vmem:[#allocation67_spill] sm:$0xff] %v12392_v45  ;;  %v12394_v59 = vpop.f32.mrb[23].mxu0  ;;  %v12396_v20 = vpop.f32.mrb[23].mxu1  ;;  %v3413_v47 = vld [vmem:[#allocation11 + $0x5d0] sm:$0xff] }
 0x407   :  { %13511 = vst [vmem:[#allocation68_spill] sm:$0xff] %v12394_v59  ;;  %13512 = vst [vmem:[#allocation69_spill] sm:$0xff] %v12396_v20  ;;  %v3385_v20 = vld [vmem:[#allocation11 + $0x4f0] sm:$0xff] }
 0x408   :  { %v3389_v59 = vld [vmem:[#allocation11 + $0x510] sm:$0xff] }
 0x409   :  { %v8624_v19 = vpack.c.bf16 %v3389_v59, %v3385_v20  ;;  %v3400_v20 = vld [vmem:[#allocation11 + $0x568] sm:$0xff]  ;;  %v3417_v45 = vld [vmem:[#allocation11 + $0x5f0] sm:$0xff] }
 0x40a   :  { %v8582_v8 = vpack.c.bf16 %v3404_v60, %v3400_v20  ;;  %v3414_v20 = vld [vmem:[#allocation11 + $0x5d8] sm:$0xff]  ;;  %v3407_v60 = vld [vmem:[#allocation11 + $0x5a0] sm:$0xff] }
 0x40b   :  { %8625 = vmatpush1.bf16.msra.mxu1 %v8624_v19  ;;  %v8584_v19 = vpack.c.bf16 %v3403_v41, %v3399_v5  ;;  %v8634_v9 = vpack.c.bf16 %v3414_v20, %v3410_v25  ;;  %v8588_v5 = vpack.c.bf16 %v3411_v2, %v3407_v60  ;;  %v3409_v41 = vld [vmem:[#allocation11 + $0x5b0] sm:$0xff]  ;;  %v8640_v25 = vpack.c.bf16 %v3421_v56, %v3417_v45  ;;  %v3071_v20 = vld [vmem:[#allocation11 + $0x8] sm:$0xff]  ;;  %v3423_v60 = vld [vmem:[#allocation11 + $0x620] sm:$0xff]  ;;  %v1290_v56 = vpop.permute.xlu1 %1289 }
 0x40c   :  { %8627 = vmatprep.subr.bf16.mxu1 %v8626_v13  ;;  %8583 = vmatprep.subr.bf16.mxu0 %v8582_v8  ;;  %v3416_v8 = vld [vmem:[#allocation11 + $0x5e8] sm:$0xff]  ;;  %v1291_v45 = vsel %vm437_vm6, %v12398_v3, %v1290_v56  ;;  %v12432_v3 = vadd.f32 %v12053_v33, %v11699_v58 }
 0x40d   :  { %8585 = vmatpush1.bf16.msra.mxu0 %v8584_v19  ;;  %v3418_v19 = vld [vmem:[#allocation11 + $0x5f8] sm:$0xff]  ;;  %v3075_v2 = vld [vmem:[#allocation11 + $0x28] sm:$0xff] }
 0x40e   :  { %13515 = vst [vmem:[#allocation71_spill] sm:$0xff] %v12432_v3  ;;  %v3131_v58 = vld [vmem:[#allocation11 + $0x1e8] sm:$0xff] }
 0x40f   :  { %8629 = vmatpush1.bf16.msra.mxu1 %v8628_v6  ;;  %v8586_v6 = vpack.c.bf16 %v3412_v50, %v3408_v15  ;;  %v8638_v15 = vpack.c.bf16 %v3422_v52, %v3418_v19 }
 0x410   :  { %8631 = vmatprep.subr.bf16.mxu1 %v8630_v21  ;;  %v3420_v21 = vld [vmem:[#allocation11 + $0x608] sm:$0xff] }
 0x411   :  { %8587 = vmatprep.subr.bf16.mxu0 %v8586_v6  ;;  %v8590_v12 = vpack.c.bf16 %v3420_v21, %v3416_v8  ;;  %v3426_v6 = vld [vmem:[#allocation11 + $0x638] sm:$0xff]  ;;  %v13513_v21 = vmax.f32 %v12121_v55, 0.0 }
 0x412   :  { %8589 = vmatpush1.bf16.msra.mxu0 %v8588_v5  ;;  %v3073_v5 = vld [vmem:[#allocation11 + $0x18] sm:$0xff] }
 0x413   :  { %8633 = vmatpush1.bf16.msra.mxu1 %v8632_v26  ;;  %v3419_v26 = vld [vmem:[#allocation11 + $0x600] sm:$0xff]  ;;  %8591 = vmatprep.subr.bf16.mxu0 %v8590_v12  ;;  %v1293_v19 = vmax.f32 %v13513_v21, %v1291_v45 }
 0x414   :  { %8635 = vmatprep.subr.bf16.mxu1 %v8634_v9  ;;  %v8642_v9 = vpack.c.bf16 %v3075_v2, %v3071_v20  ;;  %v2897_v20 = vld [vmem:[#allocation9] sm:$0x3]  ;;  %v13518_v2 = vld [vmem:[#allocation34_spill] sm:$0xff]  ;;  %v3074_v21 = vld [vmem:[#allocation11 + $0x20] sm:$0xff] }
 0x41e   :  { %v12400_v63 = vpop.permute.xlu0 %1307 }
 0x422   :  { %v12406_v59 = vpop.permute.xlu0 %3719 }
 0x426   :  { %v12409_v57 = vpop.permute.xlu0 %1509 }
 0x427   :  { %v1516_v13 = vmax.f32 %v13377_v46, %v12409_v57  ;;  %v8636_v46 = vpack.c.bf16 %v3413_v47, %v3409_v41  ;;  %v3424_v47 = vld [vmem:[#allocation11 + $0x628] sm:$0xff]  ;;  %v3077_v41 = vld [vmem:[#allocation11 + $0x38] sm:$0xff] }
 0x428   :  { %v8690_v8 = vpack.c.bf16 %v3077_v41, %v3073_v5 }
 0x429   :  { %1520 = vrot.lane.b32.xlu0 %v1516_v13, %s10628_s15  ;;  %8637 = vmatpush1.bf16.msra.mxu1 %v8636_v46  ;;  %v3415_v13 = vld [vmem:[#allocation11 + $0x5e0] sm:$0xff]  ;;  %v3425_v46 = vld [vmem:[#allocation11 + $0x630] sm:$0xff] }
 0x42a   :  { %v8592_v50 = vpack.c.bf16 %v3419_v26, %v3415_v13  ;;  %8639 = vmatprep.subr.bf16.mxu1 %v8638_v15  ;;  %v1492_v26 = vadd.f32 %v11980_v43, %v13478_v18  ;;  %v12426_v15 = vadd.f32 %v12056_v38, %v13473_v1  ;;  %v13380_v43 = vmax.f32 %v12432_v3, 0.0  ;;  %v3089_v3 = vld [vmem:[#allocation11 + $0x98] sm:$0xff]  ;;  %v3134_v1 = vld [vmem:[#allocation11 + $0x200] sm:$0xff] }
 0x42b   :  { %v13516_v38 = vmax.f32 %v12404_v23, 0.0  ;;  %v3138_v18 = vld [vmem:[#allocation11 + $0x220] sm:$0xff] }
 0x42c   :  { %8593 = vmatpush1.bf16.msra.mxu0 %v8592_v50  ;;  %13514 = vst [vmem:[#allocation70_spill] sm:$0xff] %v12426_v15  ;;  %v1497_v55 = vmax.f32 %v1492_v26, 0.0 }
 0x42d   :  { %8641 = vmatpush1.bf16.msra.mxu1 %v8640_v25  ;;  %3479 = vmatprep.subr.mxu0 %v3424_v47 }
 0x42e   :  { %3550 = vmatprep.subr.mxu1 %v3426_v6 }
 0x430   :  { %3480 = vmatpush1.msra.mxu0 %v3423_v60  ;;  %v13517_v60 = vld [vmem:[#allocation32_spill] sm:$0xff] }
 0x431   :  { %3551 = vmatpush1.msra.mxu1 %v3425_v46  ;;  %8643 = vmatprep.subr.bf16.mxu0 %v8642_v9  ;;  %v12449_v46 = vrot.slane %v2897_v20, %v13517_v60  ;;  %v12452_v9 = vrot.slane %v2897_v20, %v13518_v2  ;;  %v3080_v60 = vld [vmem:[#allocation11 + $0x50] sm:$0xff] }
 0x432   :  { %8691 = vmatprep.subr.bf16.mxu1 %v8690_v8  ;;  %v3070_v8 = vld [vmem:[#allocation11] sm:$0xff] }
 0x433   :  { %13519 = vst [vmem:[#allocation72_spill] sm:$0xff] %v12452_v9 }
 0x44a   :  { %v1310_v12 = vpop.permute.xlu1 %1309 }
 0x44b   :  { %v1311_v52 = vsel %vm458_vm7, %v12400_v63, %v1310_v12  ;;  %v13381_v63 = vmax.f32 %v12426_v15, 0.0  ;;  %v3076_v12 = vld [vmem:[#allocation11 + $0x30] sm:$0xff] }
 0x44c   :  { %v1313_v13 = vmax.f32 %v1293_v19, %v1311_v52  ;;  %v3072_v19 = vld [vmem:[#allocation11 + $0x10] sm:$0xff] }
 0x44e   :  { %1315 = vst.msk [vmem:[#allocation2 + $0x8] sm:$0x3] %vm462_vm8, %v1313_v13  ;;  %v3079_v13 = vld [vmem:[#allocation11 + $0x48] sm:$0xff] }
 0x455   :  { %v3718_v50 = vld [vmem:[#allocation2 + $0x8] sm:$0x3] }
 0x456   :  { %3723 = vrot.lane.b32.xlu1 %v3718_v50, %s10637_s24  ;;  %4125 = vrot.lane.b32.xlu0 %v3718_v50, %s10639_s10  ;;  %v3083_v50 = vld [vmem:[#allocation11 + $0x68] sm:$0xff] }
 0x45a   :  { %1511 = vrot.lane.b32.xlu1 %v1497_v55, %s10632_s6  ;;  %1722 = vrot.lane.b32.xlu0 %v13381_v63, %s10632_s6  ;;  %v3081_v55 = vld [vmem:[#allocation11 + $0x58] sm:$0xff]  ;;  %v3078_v63 = vld [vmem:[#allocation11 + $0x40] sm:$0xff] }
 0x45e   :  { %1502 = vrot.lane.b32.xlu1 %v13516_v38, %s10632_s6  ;;  %1713 = vrot.lane.b32.xlu0 %v13380_v43, %s10632_s6  ;;  %v3085_v38 = vld [vmem:[#allocation11 + $0x78] sm:$0xff]  ;;  %v8644_v43 = vpack.c.bf16 %v3074_v21, %v3070_v8 }
 0x495   :  { %v12446_v33 = vpop.f32.mrb[24].mxu0 }
 0x496   :  { %v3065_v25 = vpop.f32.mrb[25].mxu0 }
 0x497   :  { %v10288_v26 = vadd.f32 %v3065_v25, %v12452_v9  ;;  %v3091_v25 = vld [vmem:[#allocation11 + $0xa8] sm:$0xff] }
 0x499   :  { %v3069_v15 = vmax.f32 %v10288_v26, 0.0  ;;  %v3099_v26 = vld [vmem:[#allocation11 + $0xe8] sm:$0xff] }
 0x4a6   :  { %v3248_v47 = vpop.f32.mrb[24].mxu1 }
 0x4a7   :  { %v3250_v6 = vpop.f32.mrb[25].mxu1  ;;  %v3249_v5 = vadd.f32 %v3248_v47, %v12449_v46  ;;  %v8692_v47 = vpack.c.bf16 %v3076_v12, %v3072_v19  ;;  %v3090_v19 = vld [vmem:[#allocation11 + $0xa0] sm:$0xff] }
 0x4a8   :  { %v3251_v23 = vadd.f32 %v3250_v6, %v12452_v9  ;;  %v3082_v6 = vld [vmem:[#allocation11 + $0x60] sm:$0xff]  ;;  %v3093_v9 = vld [vmem:[#allocation11 + $0xb8] sm:$0xff] }
 0x4a9   :  { %v8648_v8 = vpack.c.bf16 %v3082_v6, %v3078_v63  ;;  %v3096_v6 = vld [vmem:[#allocation11 + $0xd0] sm:$0xff] }
 0x4af   :  { %v3319_v41 = vpop.f32.mrb[26].mxu0 }
 0x4b0   :  { %v3320_v56 = vadd.f32 %v3319_v41, %v3249_v5  ;;  %v3321_v45 = vpop.f32.mrb[27].mxu0  ;;  %v3084_v5 = vld [vmem:[#allocation11 + $0x70] sm:$0xff]  ;;  %v3087_v41 = vld [vmem:[#allocation11 + $0x88] sm:$0xff] }
 0x4b1   :  { %v3322_v52 = vadd.f32 %v3321_v45, %v3251_v23  ;;  %v8646_v23 = vpack.c.bf16 %v3083_v50, %v3079_v13  ;;  %v8694_v45 = vpack.c.bf16 %v3085_v38, %v3081_v55  ;;  %v8696_v21 = vpack.c.bf16 %v3084_v5, %v3080_v60  ;;  %v3088_v13 = vld [vmem:[#allocation11 + $0x90] sm:$0xff]  ;;  %v3095_v55 = vld [vmem:[#allocation11 + $0xc8] sm:$0xff]  ;;  %v3097_v38 = vld [vmem:[#allocation11 + $0xd8] sm:$0xff] }
 0x4b2   :  { %v3324_v2 = vmax.f32 %v3320_v56, 0.0  ;;  %v3086_v56 = vld [vmem:[#allocation11 + $0x80] sm:$0xff]  ;;  %v8650_v12 = vpack.c.bf16 %v3091_v25, %v3087_v41  ;;  %v3092_v50 = vld [vmem:[#allocation11 + $0xb0] sm:$0xff]  ;;  %v3107_v5 = vld [vmem:[#allocation11 + $0x128] sm:$0xff] }
 0x4b3   :  { %v3325_v20 = vmax.f32 %v3322_v52, 0.0  ;;  %v8698_v52 = vpack.c.bf16 %v3093_v9, %v3089_v3  ;;  %v8652_v63 = vpack.c.bf16 %v3090_v19, %v3086_v56  ;;  %v3094_v60 = vld [vmem:[#allocation11 + $0xc0] sm:$0xff]  ;;  %v3100_v3 = vld [vmem:[#allocation11 + $0xf0] sm:$0xff]  ;;  %v3103_v9 = vld [vmem:[#allocation11 + $0x108] sm:$0xff]  ;;  %v12461_v56 = vpop.permute.xlu0 %1500 }
 0x4b4   :  { %v3105_v41 = vld [vmem:[#allocation11 + $0x118] sm:$0xff]  ;;  %v8704_v25 = vpack.c.bf16 %v3100_v3, %v3096_v6  ;;  %v8658_v19 = vpack.c.bf16 %v3107_v5, %v3103_v9  ;;  %v3112_v6 = vld [vmem:[#allocation11 + $0x150] sm:$0xff]  ;;  %v3119_v9 = vld [vmem:[#allocation11 + $0x188] sm:$0xff] }
 0x4b5   :  { %7344 = vmatprep.mubr.msk.f32.mxu0 %vm3427_vm11, %v3325_v20  ;;  %7345 = vmatprep.mubr.msk.f32.mxu1 %vm3427_vm11, %v3325_v20  ;;  %v3098_v20 = vld [vmem:[#allocation11 + $0xe0] sm:$0xff]  ;;  %v3116_v3 = vld [vmem:[#allocation11 + $0x170] sm:$0xff]  ;;  %v3123_v5 = vld [vmem:[#allocation11 + $0x1a8] sm:$0xff] }
 0x4b6   :  { %3496 = vmatmul.mubr.f32.vlgmr.msra.gmra.mrb[28].mxu0 %v3324_v2  ;;  %3567 = vmatmul.mubr.f32.vlgmr.msra.gmra.mrb[26].mxu1 %v3324_v2  ;;  %v3101_v2 = vld [vmem:[#allocation11 + $0xf8] sm:$0xff] }
 0x4b7   :  { %8645 = vmatpush1.bf16.msra.mxu0 %v8644_v43  ;;  %8693 = vmatpush1.bf16.msra.mxu1 %v8692_v47  ;;  %v8700_v43 = vpack.c.bf16 %v3092_v50, %v3088_v13  ;;  %v8654_v47 = vpack.c.bf16 %v3099_v26, %v3095_v55  ;;  %v3108_v13 = vld [vmem:[#allocation11 + $0x130] sm:$0xff]  ;;  %v3111_v50 = vld [vmem:[#allocation11 + $0x148] sm:$0xff]  ;;  %v3113_v26 = vld [vmem:[#allocation11 + $0x158] sm:$0xff] }
 0x4b8   :  { %7346 = vmatprep.mubr.msk.f32.mxu0 %vm3427_vm11, %v3069_v15  ;;  %7347 = vmatprep.mubr.msk.f32.mxu1 %vm3427_vm11, %v3069_v15  ;;  %v8702_v15 = vpack.c.bf16 %v3101_v2, %v3097_v38  ;;  %v3115_v55 = vld [vmem:[#allocation11 + $0x168] sm:$0xff]  ;;  %v3117_v38 = vld [vmem:[#allocation11 + $0x178] sm:$0xff] }
 0x4b9   :  { %8647 = vmatprep.subr.bf16.mxu0 %v8646_v23  ;;  %8695 = vmatprep.subr.bf16.mxu1 %v8694_v45  ;;  %v3109_v23 = vld [vmem:[#allocation11 + $0x138] sm:$0xff]  ;;  %v8656_v45 = vpack.c.bf16 %v3098_v20, %v3094_v60  ;;  %v3114_v60 = vld [vmem:[#allocation11 + $0x160] sm:$0xff]  ;;  %v12463_v20 = vpop.permute.xlu0 %1520 }
 0x4bb   :  { %8649 = vmatpush1.bf16.msra.mxu0 %v8648_v8  ;;  %8697 = vmatpush1.bf16.msra.mxu1 %v8696_v21  ;;  %v3102_v8 = vld [vmem:[#allocation11 + $0x100] sm:$0xff] }
 0x4bc   :  { %8651 = vmatprep.subr.bf16.mxu0 %v8650_v12  ;;  %8699 = vmatprep.subr.bf16.mxu1 %v8698_v52  ;;  %v3106_v21 = vld [vmem:[#allocation11 + $0x120] sm:$0xff]  ;;  %v8706_v12 = vpack.c.bf16 %v3109_v23, %v3105_v41  ;;  %v3104_v52 = vld [vmem:[#allocation11 + $0x110] sm:$0xff]  ;;  %v3121_v41 = vld [vmem:[#allocation11 + $0x198] sm:$0xff] }
 0x4bd   :  { %v8660_v2 = vpack.c.bf16 %v3106_v21, %v3102_v8  ;;  %v3125_v23 = vld [vmem:[#allocation11 + $0x1b8] sm:$0xff]  ;;  %v8712_v8 = vpack.c.bf16 %v3116_v3, %v3112_v6  ;;  %v3118_v21 = vld [vmem:[#allocation11 + $0x180] sm:$0xff] }
 0x4be   :  { %v3130_v6 = vld [vmem:[#allocation11 + $0x1e0] sm:$0xff] }
 0x4bf   :  { %8653 = vmatpush1.bf16.msra.mxu0 %v8652_v63  ;;  %8701 = vmatpush1.bf16.msra.mxu1 %v8700_v43  ;;  %v8708_v63 = vpack.c.bf16 %v3108_v13, %v3104_v52  ;;  %v3110_v43 = vld [vmem:[#allocation11 + $0x140] sm:$0xff]  ;;  %v8714_v13 = vpack.c.bf16 %v3125_v23, %v3121_v41 }
 0x4c0   :  { %8655 = vmatprep.subr.bf16.mxu0 %v8654_v47  ;;  %8703 = vmatprep.subr.bf16.mxu1 %v8702_v15  ;;  %v8662_v47 = vpack.c.bf16 %v3115_v55, %v3111_v50  ;;  %v8710_v15 = vpack.c.bf16 %v3117_v38, %v3113_v26  ;;  %v3122_v50 = vld [vmem:[#allocation11 + $0x1a0] sm:$0xff]  ;;  %v3120_v55 = vld [vmem:[#allocation11 + $0x190] sm:$0xff]  ;;  %v3127_v38 = vld [vmem:[#allocation11 + $0x1c8] sm:$0xff] }
 0x4c1   :  { %v3124_v26 = vld [vmem:[#allocation11 + $0x1b0] sm:$0xff] }
 0x4c3   :  { %8657 = vmatpush1.bf16.msra.mxu0 %v8656_v45  ;;  %8705 = vmatpush1.bf16.msra.mxu1 %v8704_v25  ;;  %v12467_v45 = vadd.f32 %v12058_v42, %v11717_v32  ;;  %v8664_v25 = vpack.c.bf16 %v3114_v60, %v3110_v43  ;;  %v3129_v42 = vld [vmem:[#allocation11 + $0x1d8] sm:$0xff]  ;;  %v8716_v43 = vpack.c.bf16 %v3124_v26, %v3120_v55  ;;  %v3126_v60 = vld [vmem:[#allocation11 + $0x1c0] sm:$0xff]  ;;  %v13521_v26 = vmax.f32 %v12328_v14, 0.0 }
 0x4c4   :  { %8659 = vmatprep.subr.bf16.mxu0 %v8658_v19  ;;  %8707 = vmatprep.subr.bf16.mxu1 %v8706_v12  ;;  %v8666_v12 = vpack.c.bf16 %v3123_v5, %v3119_v9  ;;  %v3133_v32 = vld [vmem:[#allocation11 + $0x1f8] sm:$0xff]  ;;  %v3132_v9 = vld [vmem:[#allocation11 + $0x1f0] sm:$0xff]  ;;  %v3135_v5 = vld [vmem:[#allocation11 + $0x208] sm:$0xff] }
 0x4c5   :  { %v3141_v55 = vld [vmem:[#allocation11 + $0x238] sm:$0xff] }
 0x4c6   :  { %v3145_v14 = vld [vmem:[#allocation11 + $0x258] sm:$0xff] }
 0x4c7   :  { %8661 = vmatpush1.bf16.msra.mxu0 %v8660_v2  ;;  %8709 = vmatpush1.bf16.msra.mxu1 %v8708_v63  ;;  %v13393_v2 = vmax.f32 %v12467_v45, 0.0  ;;  %v8668_v63 = vpack.c.bf16 %v3122_v50, %v3118_v21  ;;  %v3139_v21 = vld [vmem:[#allocation11 + $0x228] sm:$0xff]  ;;  %v3137_v50 = vld [vmem:[#allocation11 + $0x218] sm:$0xff] }
 0x4c8   :  { %v12469_v52 = vpop.permute.xlu1 %3723  ;;  %v12471_v19 = vpop.permute.xlu0 %4125  ;;  %8663 = vmatprep.subr.bf16.mxu0 %v8662_v47  ;;  %8711 = vmatprep.subr.bf16.mxu1 %v8710_v15  ;;  %v3128_v15 = vld [vmem:[#allocation11 + $0x1d0] sm:$0xff] }
 0x4c9   :  { %13520 = vst [vmem:[#allocation73_spill] sm:$0xff] %v12471_v19 }
 0x4cb   :  { %8665 = vmatpush1.bf16.msra.mxu0 %v8664_v25  ;;  %8713 = vmatpush1.bf16.msra.mxu1 %v8712_v8  ;;  %v8670_v25 = vpack.c.bf16 %v3131_v58, %v3127_v38  ;;  %v8718_v8 = vpack.c.bf16 %v3133_v32, %v3129_v42  ;;  %v3136_v58 = vld [vmem:[#allocation11 + $0x210] sm:$0xff]  ;;  %v3143_v38 = vld [vmem:[#allocation11 + $0x248] sm:$0xff] }
 0x4cc   :  { %v1512_v3 = vpop.permute.xlu1 %1511  ;;  %v12474_v47 = vpop.permute.xlu0 %1722  ;;  %8667 = vmatprep.subr.bf16.mxu0 %v8666_v12  ;;  %8715 = vmatprep.subr.bf16.mxu1 %v8714_v13  ;;  %v8672_v12 = vpack.c.bf16 %v3130_v6, %v3126_v60  ;;  %v8720_v13 = vpack.c.bf16 %v3132_v9, %v3128_v15  ;;  %v3140_v32 = vld [vmem:[#allocation11 + $0x230] sm:$0xff]  ;;  %v3147_v42 = vld [vmem:[#allocation11 + $0x268] sm:$0xff]  ;;  %v3142_v60 = vld [vmem:[#allocation11 + $0x240] sm:$0xff] }
 0x4cd   :  { %v1513_v41 = vsel %vm437_vm6, %v12409_v57, %v1512_v3  ;;  %v1729_v23 = vmax.f32 %v13393_v2, %v12474_v47  ;;  %v8674_v57 = vpack.c.bf16 %v3139_v21, %v3135_v5  ;;  %v8722_v3 = vpack.c.bf16 %v3141_v55, %v3137_v50  ;;  %v3146_v6 = vld [vmem:[#allocation11 + $0x260] sm:$0xff]  ;;  %v3144_v9 = vld [vmem:[#allocation11 + $0x250] sm:$0xff]  ;;  %v3155_v21 = vld [vmem:[#allocation11 + $0x2a8] sm:$0xff] }
 0x4ce   :  { %v1517_v19 = vmax.f32 %v13521_v26, %v1513_v41  ;;  %v3149_v41 = vld [vmem:[#allocation11 + $0x278] sm:$0xff]  ;;  %v8678_v15 = vpack.c.bf16 %v3147_v42, %v3143_v38  ;;  %v3148_v5 = vld [vmem:[#allocation11 + $0x270] sm:$0xff]  ;;  %v3150_v26 = vld [vmem:[#allocation11 + $0x280] sm:$0xff] }
 0x4cf   :  { %8669 = vmatpush1.bf16.msra.mxu0 %v8668_v63  ;;  %8717 = vmatpush1.bf16.msra.mxu1 %v8716_v43  ;;  %v8676_v63 = vpack.c.bf16 %v3138_v18, %v3134_v1  ;;  %v8724_v43 = vpack.c.bf16 %v3140_v32, %v3136_v58  ;;  %v3153_v50 = vld [vmem:[#allocation11 + $0x298] sm:$0xff]  ;;  %v8728_v55 = vpack.c.bf16 %v3148_v5, %v3144_v9  ;;  %v3163_v58 = vld [vmem:[#allocation11 + $0x2e8] sm:$0xff]  ;;  %v13543_v2 = vld [vmem:[#allocation28_spill] sm:$0xff] }
 0x4d0   :  { %1733 = vrot.lane.b32.xlu0 %v1729_v23, %s10628_s15  ;;  %1522 = vrot.lane.b32.xlu1 %v1517_v19, %s10628_s15  ;;  %v8726_v19 = vpack.c.bf16 %v3149_v41, %v3145_v14  ;;  %v3151_v23 = vld [vmem:[#allocation11 + $0x288] sm:$0xff]  ;;  %v3161_v32 = vld [vmem:[#allocation11 + $0x2d8] sm:$0xff]  ;;  %v3158_v41 = vld [vmem:[#allocation11 + $0x2c0] sm:$0xff] }
 0x4d1   :  { %8671 = vmatprep.subr.bf16.mxu0 %v8670_v25  ;;  %8719 = vmatprep.subr.bf16.mxu1 %v8718_v8  ;;  %v3157_v25 = vld [vmem:[#allocation11 + $0x2b8] sm:$0xff]  ;;  %v8680_v8 = vpack.c.bf16 %v3146_v6, %v3142_v60  ;;  %v8682_v1 = vpack.c.bf16 %v3155_v21, %v3151_v23  ;;  %v3162_v60 = vld [vmem:[#allocation11 + $0x2e0] sm:$0xff]  ;;  %v3160_v6 = vld [vmem:[#allocation11 + $0x2d0] sm:$0xff]  ;;  %v10287_v21 = vadd.f32 %v12446_v33, %v12449_v46 }
 0x4d2   :  { %v8730_v18 = vpack.c.bf16 %v3157_v25, %v3153_v50  ;;  %v3165_v38 = vld [vmem:[#allocation11 + $0x2f8] sm:$0xff]  ;;  %v3167_v5 = vld [vmem:[#allocation11 + $0x308] sm:$0xff]  ;;  %v3166_v50 = vld [vmem:[#allocation11 + $0x300] sm:$0xff] }
 0x4d3   :  { %8673 = vmatpush1.bf16.msra.mxu0 %v8672_v12  ;;  %8721 = vmatpush1.bf16.msra.mxu1 %v8720_v13  ;;  %v3154_v12 = vld [vmem:[#allocation11 + $0x2a0] sm:$0xff]  ;;  %v3152_v13 = vld [vmem:[#allocation11 + $0x290] sm:$0xff]  ;;  %v3169_v23 = vld [vmem:[#allocation11 + $0x318] sm:$0xff] }
 0x4d4   :  { %8675 = vmatprep.subr.bf16.mxu0 %v8674_v57  ;;  %8723 = vmatprep.subr.bf16.mxu1 %v8722_v3  ;;  %v3156_v57 = vld [vmem:[#allocation11 + $0x2b0] sm:$0xff]  ;;  %v3159_v3 = vld [vmem:[#allocation11 + $0x2c8] sm:$0xff]  ;;  %v8684_v42 = vpack.c.bf16 %v3154_v12, %v3150_v26 }
 0x4d5   :  { %v8732_v14 = vpack.c.bf16 %v3156_v57, %v3152_v13  ;;  %v3168_v25 = vld [vmem:[#allocation11 + $0x310] sm:$0xff]  ;;  %v13523_v26 = vld [vmem:[#allocation41_spill] sm:$0xff] }
 0x4d6   :  { %v13522_v33 = vld [vmem:[#allocation30_spill] sm:$0xff] }
 0x4d7   :  { %8677 = vmatpush1.bf16.msra.mxu0 %v8676_v63  ;;  %8725 = vmatpush1.bf16.msra.mxu1 %v8724_v43  ;;  %v8686_v63 = vpack.c.bf16 %v3163_v58, %v3159_v3  ;;  %v8734_v43 = vpack.c.bf16 %v3165_v38, %v3161_v32  ;;  %v13524_v12 = vld [vmem:[#allocation42_spill] sm:$0xff]  ;;  %v13528_v58 = vmov 0.0   ;;  %v13529_v32 = vld [vmem:[#allocation55_spill] sm:$0xff]  ;;  %v13530_v38 = vld [vmem:[#allocation56_spill] sm:$0xff] }
 0x4d8   :  { %8679 = vmatprep.subr.bf16.mxu0 %v8678_v15  ;;  %8727 = vmatprep.subr.bf16.mxu1 %v8726_v19  ;;  %v3164_v15 = vld [vmem:[#allocation11 + $0x2f0] sm:$0xff]  ;;  %v8688_v19 = vpack.c.bf16 %v3162_v60, %v3158_v41  ;;  %v13533_v41 = vld [vmem:[#allocation59_spill] sm:$0xff]  ;;  %v13537_v60 = vld [vmem:[#allocation64_spill] sm:$0xff] }
 0x4d9   :  { %v8736_v9 = vpack.c.bf16 %v3164_v15, %v3160_v6  ;;  %v10394_v13 = vld [vmem:[#allocation2 + $0x4] sm:$0x3]  ;;  %v1503_v6 = vpop.permute.xlu1 %1502  ;;  %v13538_v15 = vld [vmem:[#allocation65_spill] sm:$0xff] }
 0x4da   :  { %v3726_v57 = vsel %vm2909_vm9, %v10394_v13, %v12406_v59  ;;  %v13527_v3 = vld [vmem:[#allocation54_spill] sm:$0xff]  ;;  %v3882_v13 = vld [vmem:[#allocation11 + $0x678] sm:$0xff] }
 0x4db   :  { %8681 = vmatpush1.bf16.msra.mxu0 %v8680_v8  ;;  %8729 = vmatpush1.bf16.msra.mxu1 %v8728_v55  ;;  %v3068_v8 = vmax.f32 %v10287_v21, 0.0  ;;  %v3727_v55 = vsel %vm256_vm5, %v12406_v59, %v12469_v52  ;;  %v13536_v59 = vld [vmem:[#allocation63_spill] sm:$0xff] }
 0x4dc   :  { %8683 = vmatprep.subr.bf16.mxu0 %v8682_v1  ;;  %8731 = vmatprep.subr.bf16.mxu1 %v8730_v18  ;;  %v13525_v1 = vld [vmem:[#allocation45_spill] sm:$0xff]  ;;  %v13526_v18 = vld [vmem:[#allocation48_spill] sm:$0xff] }
 0x4df   :  { %8685 = vmatpush1.bf16.msra.mxu0 %v8684_v42  ;;  %8733 = vmatpush1.bf16.msra.mxu1 %v8732_v14  ;;  %v13531_v42 = vld [vmem:[#allocation57_spill] sm:$0xff]  ;;  %v13532_v14 = vld [vmem:[#allocation58_spill] sm:$0xff] }
 0x4e0   :  { %8687 = vmatprep.subr.bf16.mxu0 %v8686_v63  ;;  %8735 = vmatprep.subr.bf16.mxu1 %v8734_v43  ;;  %v13534_v63 = vld [vmem:[#allocation60_spill] sm:$0xff]  ;;  %v13535_v43 = vld [vmem:[#allocation62_spill] sm:$0xff] }
 0x4e3   :  { %8689 = vmatpush1.bf16.msra.mxu0 %v8688_v19  ;;  %8737 = vmatpush1.bf16.msra.mxu1 %v8736_v9  ;;  %v1504_v19 = vsel %vm437_vm6, %v12461_v56, %v1503_v6  ;;  %v12539_v9 = vld [vmem:[#allocation8 + $0x2c8] sm:$0xff] }
 0x4e4   :  { %3624 = vmatprep.subr.mxu0 %v3167_v5  ;;  %3695 = vmatprep.subr.mxu1 %v3169_v23  ;;  %13539 = vst [vmem:[#allocation74_spill] sm:$0xff] %v12539_v9  ;;  %v13540_v5 = vld [vmem:[#allocation61_spill] sm:$0xff]  ;;  %v3878_v56 = vld [vmem:[#allocation11 + $0x658] sm:$0xff] }
 0x4e5   :  { %v13541_v23 = vmax.f32 %v13540_v5, 0.0  ;;  %v8874_v6 = vpack.c.bf16 %v3882_v13, %v3878_v56  ;;  %v3880_v5 = vld [vmem:[#allocation11 + $0x668] sm:$0xff] }
 0x4e6   :  { %v3884_v56 = vld [vmem:[#allocation11 + $0x688] sm:$0xff] }
 0x4e7   :  { %3625 = vmatpush1.msra.mxu0 %v3166_v50  ;;  %3696 = vmatpush1.msra.mxu1 %v3168_v25  ;;  %v1506_v21 = vmax.f32 %v13541_v23, %v1504_v19  ;;  %v12544_v50 = vld [vmem:[#allocation8 + $0x2c0] sm:$0xff] }
 0x4e8   :  { %3641 = vmatmul.mubr.f32.vlgmr.msra.gmra.mrb[28].mxu0 %v3068_v8  ;;  %3712 = vmatmul.mubr.f32.vlgmr.msra.gmra.mrb[26].mxu1 %v3068_v8  ;;  %13542 = vst [vmem:[#allocation61_spill] sm:$0xff] %v12544_v50  ;;  %v3877_v19 = vld [vmem:[#allocation11 + $0x650] sm:$0xff] }
 0x4e9   :  { %8739 = vmatprep.subr.bf16.mxu0 %v12064_v51  ;;  %3794 = vmatprep.mubr.f32.mxu0 %v3727_v55  ;;  %v3881_v23 = vld [vmem:[#allocation11 + $0x670] sm:$0xff] }
 0x4ea   :  { %8741 = vmatpush1.bf16.msra.mxu0 %v12103_v53  ;;  %8875 = vmatprep.subr.bf16.mxu1 %v8874_v6  ;;  %v13548_v6 = vld [vmem:[#allocation35_spill] sm:$0xff] }
 0x4eb   :  { %8743 = vmatprep.subr.bf16.mxu0 %v12111_v4 }
 0x4ee   :  { %8745 = vmatpush1.bf16.msra.mxu0 %v12116_v27 }
 0x4ef   :  { %8747 = vmatprep.subr.bf16.mxu0 %v12125_v62 }
 0x4f2   :  { %8749 = vmatpush1.bf16.msra.mxu0 %v12132_v29 }
 0x4f3   :  { %8751 = vmatprep.subr.bf16.mxu0 %v12137_v39 }
 0x4f6   :  { %8753 = vmatpush1.bf16.msra.mxu0 %v12144_v61 }
 0x4f7   :  { %8755 = vmatprep.subr.bf16.mxu0 %v12148_v11 }
 0x4fa   :  { %8757 = vmatpush1.bf16.msra.mxu0 %v12160_v17 }
 0x4fb   :  { %8759 = vmatprep.subr.bf16.mxu0 %v12164_v22 }
 0x4fe   :  { %8761 = vmatpush1.bf16.msra.mxu0 %v12168_v44 }
 0x4ff   :  { %8763 = vmatprep.subr.bf16.mxu0 %v12172_v48 }
 0x502   :  { %8765 = vmatpush1.bf16.msra.mxu0 %v12176_v24 }
 0x503   :  { %8767 = vmatprep.subr.bf16.mxu0 %v12180_v28 }
 0x506   :  { %8769 = vmatpush1.bf16.msra.mxu0 %v12184_v0 }
 0x507   :  { %8771 = vmatprep.subr.bf16.mxu0 %v12188_v37 }
 0x50a   :  { %8773 = vmatpush1.bf16.msra.mxu0 %v12193_v35 }
 0x50b   :  { %8775 = vmatprep.subr.bf16.mxu0 %v12197_v40 }
 0x50e   :  { %8777 = vmatpush1.bf16.msra.mxu0 %v12204_v7 }
 0x50f   :  { %8779 = vmatprep.subr.bf16.mxu0 %v12208_v36 }
 0x512   :  { %8781 = vmatpush1.bf16.msra.mxu0 %v12214_v31 }
 0x513   :  { %8783 = vmatprep.subr.bf16.mxu0 %v12218_v49 }
 0x516   :  { %8785 = vmatpush1.bf16.msra.mxu0 %v12227_v54 }
 0x517   :  { %8787 = vmatprep.subr.bf16.mxu0 %v12233_v30 }
 0x51a   :  { %8789 = vmatpush1.bf16.msra.mxu0 %v12244_v10 }
 0x51b   :  { %8791 = vmatprep.subr.bf16.mxu0 %v12248_v16 }
 0x51e   :  { %8793 = vmatpush1.bf16.msra.mxu0 %v13522_v33 }
 0x51f   :  { %8795 = vmatprep.subr.bf16.mxu0 %v13523_v26 }
 0x522   :  { %8797 = vmatpush1.bf16.msra.mxu0 %v13524_v12 }
 0x523   :  { %8799 = vmatprep.subr.bf16.mxu0 %v13525_v1 }
 0x526   :  { %8801 = vmatpush1.bf16.msra.mxu0 %v13526_v18 }
 0x527   :  { %8803 = vmatprep.subr.bf16.mxu0 %v12285_v34 }
 0x529   :  { %3795 = vmatmul.mubr.f32.vlgmr.msra.gmra.mrb[30].mxu0 %v3726_v57  ;;  %v3876_v57 = vld [vmem:[#allocation11 + $0x648] sm:$0xff] }
 0x52a   :  { %8805 = vmatpush1.bf16.msra.mxu0 %v13527_v3  ;;  %3865 = vmatprep.mubr.f32.mxu0 %v13528_v58  ;;  %v3914_v58 = vld [vmem:[#allocation11 + $0x778] sm:$0xff]  ;;  %v3920_v3 = vld [vmem:[#allocation11 + $0x7a8] sm:$0xff] }
 0x52b   :  { %8807 = vmatprep.subr.bf16.mxu0 %v13529_v32  ;;  %v3896_v32 = vld [vmem:[#allocation11 + $0x6e8] sm:$0xff] }
 0x52e   :  { %8809 = vmatpush1.bf16.msra.mxu0 %v13530_v38 }
 0x52f   :  { %8811 = vmatprep.subr.bf16.mxu0 %v13531_v42 }
 0x532   :  { %8813 = vmatpush1.bf16.msra.mxu0 %v13532_v14  ;;  %v3889_v14 = vld [vmem:[#allocation11 + $0x6b0] sm:$0xff] }
 0x533   :  { %8815 = vmatprep.subr.bf16.mxu0 %v13533_v41  ;;  %v3885_v41 = vld [vmem:[#allocation11 + $0x690] sm:$0xff] }
 0x536   :  { %8817 = vmatpush1.bf16.msra.mxu0 %v13534_v63  ;;  %v3890_v63 = vld [vmem:[#allocation11 + $0x6b8] sm:$0xff] }
 0x537   :  { %8819 = vmatprep.subr.bf16.mxu0 %v13535_v43  ;;  %v8876_v43 = vpack.c.bf16 %v3881_v23, %v3877_v19  ;;  %v3887_v19 = vld [vmem:[#allocation11 + $0x6a0] sm:$0xff]  ;;  %v3894_v23 = vld [vmem:[#allocation11 + $0x6d8] sm:$0xff] }
 0x539   :  { %8877 = vmatpush1.bf16.msra.mxu1 %v8876_v43 }
 0x53a   :  { %8821 = vmatpush1.bf16.msra.mxu0 %v13536_v59 }
 0x53b   :  { %8823 = vmatprep.subr.bf16.mxu0 %v13537_v60  ;;  %v13546_v60 = vld [vmem:[#allocation39_spill] sm:$0xff] }
 0x53e   :  { %8825 = vmatpush1.bf16.msra.mxu0 %v13538_v15  ;;  %v13545_v15 = vld [vmem:[#allocation27_spill] sm:$0xff] }
 0x53f   :  { %3825 = vmatprep.subr.mxu0 %v12539_v9  ;;  %v13544_v9 = vld [vmem:[#allocation31_spill] sm:$0xff]  ;;  %v12556_v59 = vadd.f32 %v13546_v60, %v13545_v15 }
 0x541   :  { %13547 = vst [vmem:[#allocation28_spill] sm:$0xff] %v12556_v59  ;;  %v13397_v38 = vmax.f32 %v12556_v59, 0.0  ;;  %v3903_v59 = vld [vmem:[#allocation11 + $0x720] sm:$0xff] }
 0x542   :  { %3826 = vmatpush1.msra.mxu0 %v12544_v50  ;;  %v1523_v25 = vpop.permute.xlu1 %1522  ;;  %v1705_v50 = vadd.f32 %v13544_v9, %v13543_v2  ;;  %v3888_v9 = vld [vmem:[#allocation11 + $0x6a8] sm:$0xff] }
 0x543   :  { %7348 = vmatmul.mubr.msk.f32.vlgmr.msra.gmra.mrb[30].mxu0 %vm2923_vm10, %v12469_v52  ;;  %v1524_v8 = vsel %vm458_vm7, %v12463_v20, %v1523_v25  ;;  %v8826_v52 = vpack.c.bf16 %v3880_v5, %v3876_v57  ;;  %v3875_v20 = vld [vmem:[#allocation11 + $0x640] sm:$0xff]  ;;  %v3886_v25 = vld [vmem:[#allocation11 + $0x698] sm:$0xff]  ;;  %v8830_v60 = vpack.c.bf16 %v3888_v9, %v3884_v56  ;;  %v8880_v57 = vpack.c.bf16 %v3889_v14, %v3885_v41  ;;  %v3893_v14 = vld [vmem:[#allocation11 + $0x6d0] sm:$0xff] }
 0x544   :  { %v1526_v55 = vmax.f32 %v1506_v21, %v1524_v8  ;;  %v3879_v21 = vld [vmem:[#allocation11 + $0x660] sm:$0xff]  ;;  %v8878_v13 = vpack.c.bf16 %v3890_v63, %v3886_v25  ;;  %v1710_v42 = vmax.f32 %v1705_v50, 0.0  ;;  %v3898_v25 = vld [vmem:[#allocation11 + $0x6f8] sm:$0xff]  ;;  %v3897_v41 = vld [vmem:[#allocation11 + $0x6f0] sm:$0xff] }
 0x545   :  { %8827 = vmatprep.subr.bf16.mxu0 %v8826_v52  ;;  %v3883_v5 = vld [vmem:[#allocation11 + $0x680] sm:$0xff]  ;;  %v8882_v43 = vpack.c.bf16 %v3898_v25, %v3894_v23  ;;  %v3902_v9 = vld [vmem:[#allocation11 + $0x718] sm:$0xff]  ;;  %v3905_v25 = vld [vmem:[#allocation11 + $0x730] sm:$0xff] }
 0x546   :  { %1528 = vst.msk [vmem:[#allocation2 + $0xa] sm:$0x3] %vm462_vm8, %v1526_v55  ;;  %v8828_v55 = vpack.c.bf16 %v3879_v21, %v3875_v20  ;;  %v13549_v20 = vld [vmem:[#allocation29_spill] sm:$0xff]  ;;  %8879 = vmatprep.subr.bf16.mxu1 %v8878_v13  ;;  %v8832_v63 = vpack.c.bf16 %v3887_v19, %v3883_v5  ;;  %v3891_v56 = vld [vmem:[#allocation11 + $0x6c0] sm:$0xff]  ;;  %v8884_v13 = vpack.c.bf16 %v3897_v41, %v3893_v14 }
 0x547   :  { %v12562_v21 = vadd.f32 %v13549_v20, %v13548_v6  ;;  %v3895_v50 = vld [vmem:[#allocation11 + $0x6e0] sm:$0xff]  ;;  %8881 = vmatpush1.bf16.msra.mxu1 %v8880_v57  ;;  %v3900_v5 = vld [vmem:[#allocation11 + $0x708] sm:$0xff]  ;;  %v3901_v20 = vld [vmem:[#allocation11 + $0x710] sm:$0xff]  ;;  %v13550_v57 = vmax.f32 %v12467_v45, 0.0 }
 0x548   :  { %8829 = vmatpush1.bf16.msra.mxu0 %v8828_v55  ;;  %v3906_v55 = vld [vmem:[#allocation11 + $0x738] sm:$0xff]  ;;  %v3904_v19 = vld [vmem:[#allocation11 + $0x728] sm:$0xff]  ;;  %8883 = vmatprep.subr.bf16.mxu1 %v8882_v43  ;;  %v8888_v14 = vpack.c.bf16 %v3905_v25, %v3901_v20 }
 0x549   :  { %8831 = vmatprep.subr.bf16.mxu0 %v8830_v60  ;;  %v13398_v60 = vmax.f32 %v12562_v21, 0.0  ;;  %v8886_v23 = vpack.c.bf16 %v3906_v55, %v3902_v9  ;;  %v3912_v43 = vld [vmem:[#allocation11 + $0x768] sm:$0xff]  ;;  %v3907_v9 = vld [vmem:[#allocation11 + $0x740] sm:$0xff]  ;;  %v3918_v45 = vld [vmem:[#allocation11 + $0x798] sm:$0xff] }
 0x54a   :  { %v3926_v25 = vld [vmem:[#allocation11 + $0x7d8] sm:$0xff] }
 0x54b   :  { %8885 = vmatpush1.bf16.msra.mxu1 %v8884_v13 }
 0x54c   :  { %8833 = vmatpush1.bf16.msra.mxu0 %v8832_v63  ;;  %v3908_v63 = vld [vmem:[#allocation11 + $0x748] sm:$0xff]  ;;  %8887 = vmatprep.subr.bf16.mxu1 %v8886_v23  ;;  %v3921_v23 = vld [vmem:[#allocation11 + $0x7b0] sm:$0xff] }
 0x54d   :  { %v4124_v8 = vld [vmem:[#allocation2 + $0xa] sm:$0x3]  ;;  %v8842_v55 = vpack.c.bf16 %v3912_v43, %v3908_v63  ;;  %v3928_v63 = vld [vmem:[#allocation11 + $0x7e8] sm:$0xff] }
 0x54e   :  { %4129 = vrot.lane.b32.xlu1 %v4124_v8, %s10637_s24  ;;  %4531 = vrot.lane.b32.xlu0 %v4124_v8, %s10639_s10  ;;  %v3892_v8 = vld [vmem:[#allocation11 + $0x6c8] sm:$0xff] }
 0x54f   :  { %v8834_v52 = vpack.c.bf16 %v3896_v32, %v3892_v8  ;;  %v8836_v32 = vpack.c.bf16 %v3895_v50, %v3891_v56  ;;  %v8838_v8 = vpack.c.bf16 %v3904_v19, %v3900_v5  ;;  %v3909_v56 = vld [vmem:[#allocation11 + $0x750] sm:$0xff]  ;;  %v3911_v5 = vld [vmem:[#allocation11 + $0x760] sm:$0xff]  ;;  %v3922_v19 = vld [vmem:[#allocation11 + $0x7b8] sm:$0xff]  ;;  %8889 = vmatpush1.bf16.msra.mxu1 %v8888_v14 }
 0x550   :  { %v3913_v50 = vld [vmem:[#allocation11 + $0x770] sm:$0xff]  ;;  %v8844_v13 = vpack.c.bf16 %v3911_v5, %v3907_v9  ;;  %v8894_v20 = vpack.c.bf16 %v3922_v19, %v3918_v45  ;;  %v3927_v5 = vld [vmem:[#allocation11 + $0x7e0] sm:$0xff]  ;;  %v3934_v45 = vld [vmem:[#allocation11 + $0x818] sm:$0xff] }
 0x551   :  { %8835 = vmatprep.subr.bf16.mxu0 %v8834_v52  ;;  %v3936_v19 = vld [vmem:[#allocation11 + $0x828] sm:$0xff] }
 0x552   :  { %1724 = vrot.lane.b32.xlu1 %v1710_v42, %s10632_s6  ;;  %1935 = vrot.lane.b32.xlu0 %v13397_v38, %s10632_s6  ;;  %v3899_v42 = vld [vmem:[#allocation11 + $0x700] sm:$0xff]  ;;  %v3910_v38 = vld [vmem:[#allocation11 + $0x758] sm:$0xff] }
 0x553   :  { %8837 = vmatpush1.bf16.msra.mxu0 %v8836_v32  ;;  %v8840_v41 = vpack.c.bf16 %v3903_v59, %v3899_v42  ;;  %v8890_v52 = vpack.c.bf16 %v3914_v58, %v3910_v38  ;;  %v3917_v32 = vld [vmem:[#allocation11 + $0x790] sm:$0xff]  ;;  %v3915_v59 = vld [vmem:[#allocation11 + $0x780] sm:$0xff]  ;;  %v3930_v42 = vld [vmem:[#allocation11 + $0x7f8] sm:$0xff] }
 0x554   :  { %8839 = vmatprep.subr.bf16.mxu0 %v8838_v8  ;;  %v3919_v38 = vld [vmem:[#allocation11 + $0x7a0] sm:$0xff]  ;;  %v3924_v8 = vld [vmem:[#allocation11 + $0x7c8] sm:$0xff]  ;;  %v8896_v43 = vpack.c.bf16 %v3921_v23, %v3917_v32 }
 0x555   :  { %8891 = vmatprep.subr.bf16.mxu1 %v8890_v52  ;;  %v8848_v14 = vpack.c.bf16 %v3919_v38, %v3915_v59  ;;  %v3929_v52 = vld [vmem:[#allocation11 + $0x7f0] sm:$0xff]  ;;  %v8850_v9 = vpack.c.bf16 %v3928_v63, %v3924_v8  ;;  %v3931_v23 = vld [vmem:[#allocation11 + $0x800] sm:$0xff]  ;;  %v3944_v8 = vld [vmem:[#allocation11 + $0x868] sm:$0xff] }
 0x556   :  { %1715 = vrot.lane.b32.xlu1 %v13550_v57, %s10632_s6  ;;  %1926 = vrot.lane.b32.xlu0 %v13398_v60, %s10632_s6  ;;  %v3916_v57 = vld [vmem:[#allocation11 + $0x788] sm:$0xff]  ;;  %v8892_v60 = vpack.c.bf16 %v3913_v50, %v3909_v56  ;;  %v8898_v56 = vpack.c.bf16 %v3930_v42, %v3926_v25  ;;  %v3923_v50 = vld [vmem:[#allocation11 + $0x7c0] sm:$0xff]  ;;  %v3942_v25 = vld [vmem:[#allocation11 + $0x858] sm:$0xff] }
 0x557   :  { %8841 = vmatpush1.bf16.msra.mxu0 %v8840_v41  ;;  %v8846_v58 = vpack.c.bf16 %v3920_v3, %v3916_v57  ;;  %v3925_v41 = vld [vmem:[#allocation11 + $0x7d0] sm:$0xff]  ;;  %v3932_v3 = vld [vmem:[#allocation11 + $0x808] sm:$0xff]  ;;  %v3935_v38 = vld [vmem:[#allocation11 + $0x820] sm:$0xff] }
 0x558   :  { %8843 = vmatprep.subr.bf16.mxu0 %v8842_v55  ;;  %8893 = vmatpush1.bf16.msra.mxu1 %v8892_v60  ;;  %v3938_v55 = vld [vmem:[#allocation11 + $0x838] sm:$0xff]  ;;  %v8900_v57 = vpack.c.bf16 %v3929_v52, %v3925_v41  ;;  %v8852_v60 = vpack.c.bf16 %v3927_v5, %v3923_v50  ;;  %v8854_v59 = vpack.c.bf16 %v3936_v19, %v3932_v3  ;;  %v3940_v42 = vld [vmem:[#allocation11 + $0x848] sm:$0xff]  ;;  %v3939_v52 = vld [vmem:[#allocation11 + $0x840] sm:$0xff] }
 0x559   :  { %8895 = vmatprep.subr.bf16.mxu1 %v8894_v20  ;;  %v8902_v32 = vpack.c.bf16 %v3938_v55, %v3934_v45  ;;  %v3937_v20 = vld [vmem:[#allocation11 + $0x830] sm:$0xff]  ;;  %v8858_v50 = vpack.c.bf16 %v3944_v8, %v3940_v42  ;;  %v3943_v5 = vld [vmem:[#allocation11 + $0x860] sm:$0xff]  ;;  %v3950_v45 = vld [vmem:[#allocation11 + $0x898] sm:$0xff] }
 0x55a   :  { %v3948_v55 = vld [vmem:[#allocation11 + $0x888] sm:$0xff] }
 0x55b   :  { %8845 = vmatpush1.bf16.msra.mxu0 %v8844_v13  ;;  %v3933_v13 = vld [vmem:[#allocation11 + $0x810] sm:$0xff]  ;;  %v3952_v3 = vld [vmem:[#allocation11 + $0x8a8] sm:$0xff] }
 0x55c   :  { %8847 = vmatprep.subr.bf16.mxu0 %v8846_v58  ;;  %8897 = vmatpush1.bf16.msra.mxu1 %v8896_v43  ;;  %v3946_v58 = vld [vmem:[#allocation11 + $0x878] sm:$0xff]  ;;  %v8904_v63 = vpack.c.bf16 %v3937_v20, %v3933_v13  ;;  %v8856_v43 = vpack.c.bf16 %v3935_v38, %v3931_v23  ;;  %v3947_v20 = vld [vmem:[#allocation11 + $0x880] sm:$0xff]  ;;  %v8862_v23 = vpack.c.bf16 %v3952_v3, %v3948_v55  ;;  %v3960_v42 = vld [vmem:[#allocation11 + $0x8e8] sm:$0xff] }
 0x55d   :  { %8899 = vmatprep.subr.bf16.mxu1 %v8898_v56  ;;  %v8906_v41 = vpack.c.bf16 %v3946_v58, %v3942_v25  ;;  %v3945_v56 = vld [vmem:[#allocation11 + $0x870] sm:$0xff]  ;;  %v3951_v38 = vld [vmem:[#allocation11 + $0x8a0] sm:$0xff]  ;;  %v3958_v25 = vld [vmem:[#allocation11 + $0x8d8] sm:$0xff] }
 0x55e   :  { %v3956_v58 = vld [vmem:[#allocation11 + $0x8c8] sm:$0xff]  ;;  %v3970_v55 = vld [vmem:[#allocation11 + $0x938] sm:$0xff] }
 0x55f   :  { %8849 = vmatpush1.bf16.msra.mxu0 %v8848_v14  ;;  %v3941_v14 = vld [vmem:[#allocation11 + $0x850] sm:$0xff] }
 0x560   :  { %8851 = vmatprep.subr.bf16.mxu0 %v8850_v9  ;;  %8901 = vmatpush1.bf16.msra.mxu1 %v8900_v57  ;;  %v3954_v9 = vld [vmem:[#allocation11 + $0x8b8] sm:$0xff]  ;;  %v8908_v19 = vpack.c.bf16 %v3945_v56, %v3941_v14  ;;  %v8860_v57 = vpack.c.bf16 %v3943_v5, %v3939_v52  ;;  %v8866_v56 = vpack.c.bf16 %v3960_v42, %v3956_v58  ;;  %v3955_v52 = vld [vmem:[#allocation11 + $0x8c0] sm:$0xff]  ;;  %v3972_v58 = vld [vmem:[#allocation11 + $0x948] sm:$0xff] }
 0x561   :  { %8903 = vmatprep.subr.bf16.mxu1 %v8902_v32  ;;  %v8910_v13 = vpack.c.bf16 %v3954_v9, %v3950_v45  ;;  %v3953_v32 = vld [vmem:[#allocation11 + $0x8b0] sm:$0xff]  ;;  %v3959_v5 = vld [vmem:[#allocation11 + $0x8e0] sm:$0xff]  ;;  %v3966_v9 = vld [vmem:[#allocation11 + $0x918] sm:$0xff] }
 0x562   :  { %v8868_v45 = vpack.c.bf16 %v3959_v5, %v3955_v52  ;;  %v8918_v3 = vpack.c.bf16 %v3970_v55, %v3966_v9  ;;  %v3973_v42 = vld [vmem:[#allocation11 + $0x950] sm:$0xff] }
 0x563   :  { %8853 = vmatpush1.bf16.msra.mxu0 %v8852_v60  ;;  %v3949_v60 = vld [vmem:[#allocation11 + $0x890] sm:$0xff] }
 0x564   :  { %8855 = vmatprep.subr.bf16.mxu0 %v8854_v59  ;;  %8905 = vmatpush1.bf16.msra.mxu1 %v8904_v63  ;;  %v3962_v59 = vld [vmem:[#allocation11 + $0x8f8] sm:$0xff]  ;;  %v8912_v8 = vpack.c.bf16 %v3953_v32, %v3949_v60  ;;  %v8864_v63 = vpack.c.bf16 %v3951_v38, %v3947_v20  ;;  %v3969_v32 = vld [vmem:[#allocation11 + $0x930] sm:$0xff]  ;;  %v3963_v20 = vld [vmem:[#allocation11 + $0x900] sm:$0xff] }
 0x565   :  { %8907 = vmatprep.subr.bf16.mxu1 %v8906_v41  ;;  %v8914_v14 = vpack.c.bf16 %v3962_v59, %v3958_v25  ;;  %v3961_v41 = vld [vmem:[#allocation11 + $0x8f0] sm:$0xff]  ;;  %v3974_v59 = vld [vmem:[#allocation11 + $0x958] sm:$0xff] }
 0x567   :  { %8857 = vmatpush1.bf16.msra.mxu0 %v8856_v43  ;;  %v3957_v43 = vld [vmem:[#allocation11 + $0x8d0] sm:$0xff] }
 0x568   :  { %8859 = vmatprep.subr.bf16.mxu0 %v8858_v50  ;;  %8909 = vmatpush1.bf16.msra.mxu1 %v8908_v19  ;;  %v8916_v50 = vpack.c.bf16 %v3961_v41, %v3957_v43  ;;  %v3964_v19 = vld [vmem:[#allocation11 + $0x908] sm:$0xff]  ;;  %v13552_v41 = vld [vmem:[#allocation24_spill] sm:$0xff] }
 0x569   :  { %8911 = vmatprep.subr.bf16.mxu1 %v8910_v13  ;;  %v3965_v13 = vld [vmem:[#allocation11 + $0x910] sm:$0xff]  ;;  %v13551_v43 = vld [vmem:[#allocation37_spill] sm:$0xff] }
 0x56a   :  { %v8920_v38 = vpack.c.bf16 %v3969_v32, %v3965_v13 }
 0x56b   :  { %8861 = vmatpush1.bf16.msra.mxu0 %v8860_v57  ;;  %v3968_v57 = vld [vmem:[#allocation11 + $0x928] sm:$0xff] }
 0x56c   :  { %8863 = vmatprep.subr.bf16.mxu0 %v8862_v23  ;;  %8913 = vmatpush1.bf16.msra.mxu1 %v8912_v8  ;;  %v8870_v60 = vpack.c.bf16 %v3968_v57, %v3964_v19  ;;  %v3967_v23 = vld [vmem:[#allocation11 + $0x920] sm:$0xff]  ;;  %v13553_v19 = vld [vmem:[#allocation70_spill] sm:$0xff] }
 0x56d   :  { %8915 = vmatprep.subr.bf16.mxu1 %v8914_v14  ;;  %v8872_v25 = vpack.c.bf16 %v3967_v23, %v3963_v20  ;;  %v3971_v8 = vld [vmem:[#allocation11 + $0x940] sm:$0xff]  ;;  %v13554_v57 = vmax.f32 %v13553_v19, 0.0 }
 0x56e   :  { %v13555_v23 = vld [vmem:[#allocation72_spill] sm:$0xff] }
 0x56f   :  { %8865 = vmatpush1.bf16.msra.mxu0 %v8864_v63  ;;  %v1714_v63 = vpop.permute.xlu0 %1713 }
 0x570   :  { %8867 = vmatprep.subr.bf16.mxu0 %v8866_v56  ;;  %8917 = vmatpush1.bf16.msra.mxu1 %v8916_v50  ;;  %v12579_v56 = vadd.f32 %v13552_v41, %v13551_v43  ;;  %v13557_v41 = vld [vmem:[#allocation71_spill] sm:$0xff] }
 0x571   :  { %8919 = vmatprep.subr.bf16.mxu1 %v8918_v3 }
 0x572   :  { %v1921_v50 = vmax.f32 %v12579_v56, 0.0 }
 0x573   :  { %8869 = vmatpush1.bf16.msra.mxu0 %v8868_v45  ;;  %v1734_v14 = vpop.permute.xlu0 %1733 }
 0x574   :  { %8871 = vmatprep.subr.bf16.mxu0 %v8870_v60  ;;  %8921 = vmatpush1.bf16.msra.mxu1 %v8920_v38 }
 0x575   :  { %4097 = vmatprep.subr.mxu1 %v3974_v59 }
 0x577   :  { %8873 = vmatpush1.bf16.msra.mxu0 %v8872_v25 }
 0x578   :  { %4026 = vmatprep.subr.mxu0 %v3972_v58  ;;  %4098 = vmatpush1.msra.mxu1 %v3973_v42 }
 0x579   :  { %8923 = vmatprep.subr.bf16.mxu1 %v12064_v51 }
 0x57b   :  { %4027 = vmatpush1.msra.mxu0 %v3971_v8 }
 0x5c0   :  { %v12581_v52 = vpop.permute.xlu1 %4129  ;;  %v12583_v5 = vpop.permute.xlu0 %4531 }
 0x5c4   :  { %v1725_v45 = vpop.permute.xlu1 %1724  ;;  %v12586_v9 = vpop.permute.xlu0 %1935 }
 0x5c5   :  { %v1726_v55 = vsel %vm437_vm6, %v12474_v47, %v1725_v45  ;;  %v1942_v3 = vmax.f32 %v1921_v50, %v12586_v9  ;;  %v13556_v47 = vld [vmem:[#allocation73_spill] sm:$0xff]  ;;  %v13558_v45 = vmax.f32 %v13557_v41, 0.0 }
 0x5c6   :  { %v1730_v13 = vmax.f32 %v13554_v57, %v1726_v55  ;;  %v4133_v58 = vsel %vm256_vm5, %v13556_v47, %v12581_v52  ;;  %v4294_v41 = vld [vmem:[#allocation11 + $0x9c8] sm:$0xff] }
 0x5c7   :  { %1946 = vrot.lane.b32.xlu0 %v1942_v3, %s10628_s15 }
 0x5c8   :  { %1735 = vrot.lane.b32.xlu1 %v1730_v13, %s10628_s15  ;;  %v1716_v42 = vpop.permute.xlu1 %1715  ;;  %v4286_v13 = vld [vmem:[#allocation11 + $0x988] sm:$0xff] }
 0x5c9   :  { %v1717_v8 = vsel %vm437_vm6, %v1714_v63, %v1716_v42  ;;  %v4282_v63 = vld [vmem:[#allocation11 + $0x968] sm:$0xff] }
 0x5ca   :  { %v1719_v55 = vmax.f32 %v13558_v45, %v1717_v8  ;;  %v4289_v45 = vld [vmem:[#allocation11 + $0x9a0] sm:$0xff] }
 0x616   :  { %v3867_v60 = vpop.f32.mrb[30].mxu0 }
 0x617   :  { %v10293_v32 = vadd.f32 %v3867_v60, %v12449_v46  ;;  %v3869_v20 = vpop.f32.mrb[31].mxu0  ;;  %v4281_v60 = vld [vmem:[#allocation11 + $0x960] sm:$0xff] }
 0x618   :  { %v10294_v38 = vadd.f32 %v3869_v20, %v13555_v23  ;;  %v4285_v20 = vld [vmem:[#allocation11 + $0x980] sm:$0xff] }
 0x619   :  { %v3872_v59 = vmax.f32 %v10293_v32, 0.0  ;;  %v9010_v32 = vpack.c.bf16 %v4286_v13, %v4282_v63  ;;  %v4302_v13 = vld [vmem:[#allocation11 + $0xa08] sm:$0xff] }
 0x61a   :  { %v3873_v25 = vmax.f32 %v10294_v38, 0.0  ;;  %v13559_v38 = vld [vmem:[#allocation25_spill] sm:$0xff] }
 0x61b   :  { %9011 = vmatprep.subr.bf16.mxu0 %v9010_v32 }
 0x61c   :  { %7349 = vmatprep.mubr.msk.f32.mxu0 %vm3427_vm11, %v3873_v25  ;;  %7350 = vmatprep.mubr.msk.f32.mxu1 %vm3427_vm11, %v3873_v25  ;;  %v1918_v25 = vadd.f32 %v13559_v38, %v13543_v2 }
 0x61d   :  { %4043 = vmatmul.mubr.f32.vlgmr.msra.gmra.mrb[28].mxu0 %v3872_v59  ;;  %4114 = vmatmul.mubr.f32.vlgmr.msra.gmra.mrb[26].mxu1 %v3872_v59  ;;  %v4290_v59 = vld [vmem:[#allocation11 + $0x9a8] sm:$0xff] }
 0x61e   :  { %8925 = vmatpush1.bf16.msra.mxu1 %v12103_v53  ;;  %4200 = vmatprep.mubr.f32.mxu1 %v4133_v58  ;;  %v13560_v58 = vld [vmem:[#allocation36_spill] sm:$0xff] }
 0x61f   :  { %8927 = vmatprep.subr.bf16.mxu1 %v12111_v4  ;;  %v12633_v42 = vadd.f32 %v13560_v58, %v13545_v15  ;;  %v4297_v58 = vld [vmem:[#allocation11 + $0x9e0] sm:$0xff] }
 0x621   :  { %13561 = vst [vmem:[#allocation31_spill] sm:$0xff] %v12633_v42 }
 0x622   :  { %8929 = vmatpush1.bf16.msra.mxu1 %v12116_v27 }
 0x623   :  { %8931 = vmatprep.subr.bf16.mxu1 %v12125_v62 }
 0x626   :  { %8933 = vmatpush1.bf16.msra.mxu1 %v12132_v29 }
 0x627   :  { %8935 = vmatprep.subr.bf16.mxu1 %v12137_v39 }
 0x62a   :  { %8937 = vmatpush1.bf16.msra.mxu1 %v12144_v61 }
 0x62b   :  { %8939 = vmatprep.subr.bf16.mxu1 %v12148_v11 }
 0x62e   :  { %8941 = vmatpush1.bf16.msra.mxu1 %v12160_v17 }
 0x62f   :  { %8943 = vmatprep.subr.bf16.mxu1 %v12164_v22 }
 0x632   :  { %8945 = vmatpush1.bf16.msra.mxu1 %v12168_v44 }
 0x633   :  { %8947 = vmatprep.subr.bf16.mxu1 %v12172_v48 }
 0x636   :  { %8949 = vmatpush1.bf16.msra.mxu1 %v12176_v24 }
 0x637   :  { %8951 = vmatprep.subr.bf16.mxu1 %v12180_v28 }
 0x63a   :  { %8953 = vmatpush1.bf16.msra.mxu1 %v12184_v0  ;;  %v1736_v3 = vpop.permute.xlu1 %1735 }
 0x63b   :  { %8955 = vmatprep.subr.bf16.mxu1 %v12188_v37  ;;  %v1737_v19 = vsel %vm458_vm7, %v1734_v14, %v1736_v3  ;;  %v9012_v14 = vpack.c.bf16 %v4285_v20, %v4281_v60  ;;  %v4293_v3 = vld [vmem:[#allocation11 + $0x9c0] sm:$0xff]  ;;  %v13562_v60 = vld [vmem:[#allocation33_spill] sm:$0xff]  ;;  %v13400_v20 = vmax.f32 %v12633_v42, 0.0 }
 0x63c   :  { %v1739_v57 = vmax.f32 %v1719_v55, %v1737_v19  ;;  %v9014_v55 = vpack.c.bf16 %v4294_v41, %v4290_v59  ;;  %v4298_v19 = vld [vmem:[#allocation11 + $0x9e8] sm:$0xff]  ;;  %v9016_v63 = vpack.c.bf16 %v4293_v3, %v4289_v45  ;;  %v12641_v32 = vadd.f32 %v13562_v60, %v13548_v6  ;;  %v4301_v59 = vld [vmem:[#allocation11 + $0xa00] sm:$0xff] }
 0x63d   :  { %9013 = vmatpush1.bf16.msra.mxu0 %v9012_v14  ;;  %v9018_v38 = vpack.c.bf16 %v4302_v13, %v4298_v19  ;;  %v4310_v41 = vld [vmem:[#allocation11 + $0xa48] sm:$0xff]  ;;  %v4309_v3 = vld [vmem:[#allocation11 + $0xa40] sm:$0xff] }
 0x63e   :  { %1741 = vst.msk [vmem:[#allocation2 + $0xc] sm:$0x3] %vm462_vm8, %v1739_v57  ;;  %8957 = vmatpush1.bf16.msra.mxu1 %v12193_v35  ;;  %v1923_v57 = vmax.f32 %v1918_v25, 0.0  ;;  %13563 = vst [vmem:[#allocation27_spill] sm:$0xff] %v12641_v32  ;;  %9015 = vmatprep.subr.bf16.mxu0 %v9014_v55  ;;  %v9020_v25 = vpack.c.bf16 %v4301_v59, %v4297_v58  ;;  %v13399_v14 = vmax.f32 %v12641_v32, 0.0  ;;  %v4305_v55 = vld [vmem:[#allocation11 + $0xa20] sm:$0xff] }
 0x63f   :  { %8959 = vmatprep.subr.bf16.mxu1 %v12197_v40  ;;  %v4314_v19 = vld [vmem:[#allocation11 + $0xa68] sm:$0xff]  ;;  %v4313_v60 = vld [vmem:[#allocation11 + $0xa60] sm:$0xff] }
 0x640   :  { %v4322_v58 = vld [vmem:[#allocation11 + $0xaa8] sm:$0xff] }
 0x641   :  { %9017 = vmatpush1.bf16.msra.mxu0 %v9016_v63  ;;  %v9024_v63 = vpack.c.bf16 %v4309_v3, %v4305_v55  ;;  %v4326_v59 = vld [vmem:[#allocation11 + $0xac8] sm:$0xff]  ;;  %v13564_v3 = vld [vmem:[#allocation54_spill] sm:$0xff] }
 0x642   :  { %8961 = vmatpush1.bf16.msra.mxu1 %v12204_v7  ;;  %9019 = vmatprep.subr.bf16.mxu0 %v9018_v38  ;;  %v4317_v38 = vld [vmem:[#allocation11 + $0xa80] sm:$0xff] }
 0x643   :  { %8963 = vmatprep.subr.bf16.mxu1 %v12208_v36  ;;  %v9028_v56 = vpack.c.bf16 %v4317_v38, %v4313_v60  ;;  %v13569_v60 = vld [vmem:[#allocation58_spill] sm:$0xff]  ;;  %v13570_v38 = vld [vmem:[#allocation59_spill] sm:$0xff] }
 0x645   :  { %v4530_v8 = vld [vmem:[#allocation2 + $0xc] sm:$0x3]  ;;  %9021 = vmatpush1.bf16.msra.mxu0 %v9020_v25 }
 0x646   :  { %8965 = vmatpush1.bf16.msra.mxu1 %v12214_v31  ;;  %4535 = vrot.lane.b32.xlu1 %v4530_v8, %s10637_s24 }
 0x647   :  { %8967 = vmatprep.subr.bf16.mxu1 %v12218_v49  ;;  %4937 = vrot.lane.b32.xlu0 %v4530_v8, %s10639_s10  ;;  %v4306_v8 = vld [vmem:[#allocation11 + $0xa28] sm:$0xff] }
 0x648   :  { %v9022_v45 = vpack.c.bf16 %v4310_v41, %v4306_v8  ;;  %v4321_v8 = vld [vmem:[#allocation11 + $0xaa0] sm:$0xff] }
 0x649   :  { %v4325_v41 = vld [vmem:[#allocation11 + $0xac0] sm:$0xff] }
 0x64a   :  { %8969 = vmatpush1.bf16.msra.mxu1 %v12227_v54  ;;  %1937 = vrot.lane.b32.xlu1 %v1923_v57, %s10632_s6  ;;  %v4318_v57 = vld [vmem:[#allocation11 + $0xa88] sm:$0xff]  ;;  %v9032_v25 = vpack.c.bf16 %v4325_v41, %v4321_v8  ;;  %v4288_v8 = vld [vmem:[#allocation11 + $0x998] sm:$0xff]  ;;  %v4283_v41 = vld [vmem:[#allocation11 + $0x970] sm:$0xff] }
 0x64b   :  { %8971 = vmatprep.subr.bf16.mxu1 %v12233_v30  ;;  %2148 = vrot.lane.b32.xlu0 %v13400_v20, %s10632_s6  ;;  %v9026_v13 = vpack.c.bf16 %v4318_v57, %v4314_v19  ;;  %v13565_v19 = vmov 0.0   ;;  %v13566_v57 = vld [vmem:[#allocation55_spill] sm:$0xff]  ;;  %v13576_v20 = vld [vmem:[#allocation74_spill] sm:$0xff] }
 0x64c   :  { %9023 = vmatprep.subr.bf16.mxu0 %v9022_v45  ;;  %v10397_v45 = vld [vmem:[#allocation2 + $0x6] sm:$0x3] }
 0x64d   :  { %9025 = vmatpush1.bf16.msra.mxu0 %v9024_v63  ;;  %v4132_v55 = vsel %vm2909_vm9, %v10397_v45, %v13556_v47  ;;  %v13567_v63 = vld [vmem:[#allocation56_spill] sm:$0xff]  ;;  %v13573_v47 = vld [vmem:[#allocation63_spill] sm:$0xff]  ;;  %v13575_v45 = vld [vmem:[#allocation65_spill] sm:$0xff] }
 0x64e   :  { %8973 = vmatpush1.bf16.msra.mxu1 %v12244_v10  ;;  %1928 = vrot.lane.b32.xlu1 %v1921_v50, %s10632_s6  ;;  %v9030_v50 = vpack.c.bf16 %v4326_v59, %v4322_v58  ;;  %v13571_v58 = vld [vmem:[#allocation60_spill] sm:$0xff]  ;;  %v13572_v59 = vld [vmem:[#allocation62_spill] sm:$0xff] }
 0x64f   :  { %8975 = vmatprep.subr.bf16.mxu1 %v12248_v16  ;;  %2139 = vrot.lane.b32.xlu0 %v13399_v14, %s10632_s6  ;;  %v4296_v14 = vld [vmem:[#allocation11 + $0x9d8] sm:$0xff] }
 0x650   :  { %9027 = vmatprep.subr.bf16.mxu0 %v9026_v13  ;;  %v13568_v13 = vld [vmem:[#allocation57_spill] sm:$0xff] }
 0x651   :  { %9029 = vmatpush1.bf16.msra.mxu0 %v9028_v56  ;;  %v13574_v56 = vld [vmem:[#allocation64_spill] sm:$0xff] }
 0x652   :  { %8977 = vmatpush1.bf16.msra.mxu1 %v13522_v33  ;;  %9031 = vmatprep.subr.bf16.mxu0 %v9030_v50  ;;  %v4284_v50 = vld [vmem:[#allocation11 + $0x978] sm:$0xff] }
 0x653   :  { %8979 = vmatprep.subr.bf16.mxu1 %v13523_v26  ;;  %v9058_v32 = vpack.c.bf16 %v4288_v8, %v4284_v50  ;;  %v4312_v50 = vld [vmem:[#allocation11 + $0xa58] sm:$0xff] }
 0x655   :  { %9033 = vmatpush1.bf16.msra.mxu0 %v9032_v25  ;;  %v4287_v25 = vld [vmem:[#allocation11 + $0x990] sm:$0xff] }
 0x656   :  { %8981 = vmatpush1.bf16.msra.mxu1 %v13524_v12  ;;  %v9060_v42 = vpack.c.bf16 %v4287_v25, %v4283_v41  ;;  %v4307_v41 = vld [vmem:[#allocation11 + $0xa30] sm:$0xff]  ;;  %v4316_v25 = vld [vmem:[#allocation11 + $0xa78] sm:$0xff] }
 0x657   :  { %8983 = vmatprep.subr.bf16.mxu1 %v13525_v1 }
 0x65a   :  { %8985 = vmatpush1.bf16.msra.mxu1 %v13526_v18  ;;  %v4347_v18 = vld [vmem:[#allocation11 + $0xb70] sm:$0xff] }
 0x65b   :  { %8987 = vmatprep.subr.bf16.mxu1 %v12285_v34 }
 0x65d   :  { %4201 = vmatmul.mubr.f32.vlgmr.msra.gmra.mrb[28].mxu1 %v4132_v55  ;;  %v4292_v55 = vld [vmem:[#allocation11 + $0x9b8] sm:$0xff] }
 0x65e   :  { %8989 = vmatpush1.bf16.msra.mxu1 %v13564_v3  ;;  %4271 = vmatprep.mubr.f32.mxu1 %v13565_v19 }
 0x65f   :  { %8991 = vmatprep.subr.bf16.mxu1 %v13566_v57  ;;  %v4303_v57 = vld [vmem:[#allocation11 + $0xa10] sm:$0xff] }
 0x662   :  { %8993 = vmatpush1.bf16.msra.mxu1 %v13567_v63  ;;  %v4299_v63 = vld [vmem:[#allocation11 + $0x9f0] sm:$0xff] }
 0x663   :  { %8995 = vmatprep.subr.bf16.mxu1 %v13568_v13  ;;  %v4304_v13 = vld [vmem:[#allocation11 + $0xa18] sm:$0xff] }
 0x666   :  { %8997 = vmatpush1.bf16.msra.mxu1 %v13569_v60  ;;  %v4295_v60 = vld [vmem:[#allocation11 + $0x9d0] sm:$0xff] }
 0x667   :  { %8999 = vmatprep.subr.bf16.mxu1 %v13570_v38  ;;  %v9062_v38 = vpack.c.bf16 %v4296_v14, %v4292_v55  ;;  %v9068_v14 = vpack.c.bf16 %v4303_v57, %v4299_v63  ;;  %v4320_v55 = vld [vmem:[#allocation11 + $0xa98] sm:$0xff]  ;;  %v4327_v57 = vld [vmem:[#allocation11 + $0xad0] sm:$0xff] }
 0x66a   :  { %9001 = vmatpush1.bf16.msra.mxu1 %v13571_v58  ;;  %v4291_v58 = vld [vmem:[#allocation11 + $0x9b0] sm:$0xff] }
 0x66b   :  { %9003 = vmatprep.subr.bf16.mxu1 %v13572_v59  ;;  %v13577_v59 = vld [vmem:[#allocation61_spill] sm:$0xff] }
 0x66e   :  { %9005 = vmatpush1.bf16.msra.mxu1 %v13573_v47  ;;  %v4300_v47 = vld [vmem:[#allocation11 + $0x9f8] sm:$0xff] }
 0x66f   :  { %9007 = vmatprep.subr.bf16.mxu1 %v13574_v56  ;;  %v9064_v56 = vpack.c.bf16 %v4295_v60, %v4291_v58  ;;  %v4324_v60 = vld [vmem:[#allocation11 + $0xab8] sm:$0xff] }
 0x672   :  { %9009 = vmatpush1.bf16.msra.mxu1 %v13575_v45  ;;  %v9066_v45 = vpack.c.bf16 %v4304_v13, %v4300_v47  ;;  %v4328_v13 = vld [vmem:[#allocation11 + $0xad8] sm:$0xff]  ;;  %v4323_v47 = vld [vmem:[#allocation11 + $0xab0] sm:$0xff] }
 0x673   :  { %4231 = vmatprep.subr.mxu1 %v13576_v20  ;;  %v4308_v20 = vld [vmem:[#allocation11 + $0xa38] sm:$0xff]  ;;  %v9078_v58 = vpack.c.bf16 %v4328_v13, %v4324_v60  ;;  %v9080_v63 = vpack.c.bf16 %v4327_v57, %v4323_v47  ;;  %v4338_v60 = vld [vmem:[#allocation11 + $0xb28] sm:$0xff]  ;;  %v4341_v47 = vld [vmem:[#allocation11 + $0xb40] sm:$0xff] }
 0x674   :  { %v9070_v8 = vpack.c.bf16 %v4312_v50, %v4308_v20  ;;  %v4334_v20 = vld [vmem:[#allocation11 + $0xb08] sm:$0xff]  ;;  %v4340_v57 = vld [vmem:[#allocation11 + $0xb38] sm:$0xff] }
 0x675   :  { %v4342_v13 = vld [vmem:[#allocation11 + $0xb48] sm:$0xff] }
 0x676   :  { %4232 = vmatpush1.msra.mxu1 %v13577_v59  ;;  %v4311_v59 = vld [vmem:[#allocation11 + $0xa50] sm:$0xff] }
 0x677   :  { %7351 = vmatmul.mubr.msk.f32.vlgmr.msra.gmra.mrb[28].mxu1 %vm2923_vm10, %v12581_v52  ;;  %9059 = vmatprep.subr.bf16.mxu1 %v9058_v32  ;;  %v9072_v19 = vpack.c.bf16 %v4311_v59, %v4307_v41  ;;  %v9074_v52 = vpack.c.bf16 %v4320_v55, %v4316_v25  ;;  %v4319_v32 = vld [vmem:[#allocation11 + $0xa90] sm:$0xff]  ;;  %v4332_v41 = vld [vmem:[#allocation11 + $0xaf8] sm:$0xff] }
 0x678   :  { %9061 = vmatpush1.bf16.msra.mxu1 %v9060_v42  ;;  %v4315_v42 = vld [vmem:[#allocation11 + $0xa70] sm:$0xff]  ;;  %v4336_v25 = vld [vmem:[#allocation11 + $0xb18] sm:$0xff] }
 0x679   :  { %9063 = vmatprep.subr.bf16.mxu1 %v9062_v38  ;;  %v9076_v38 = vpack.c.bf16 %v4319_v32, %v4315_v42  ;;  %v4331_v55 = vld [vmem:[#allocation11 + $0xaf0] sm:$0xff]  ;;  %v9082_v42 = vpack.c.bf16 %v4336_v25, %v4332_v41  ;;  %v4346_v25 = vld [vmem:[#allocation11 + $0xb68] sm:$0xff] }
 0x67a   :  { %v4343_v41 = vld [vmem:[#allocation11 + $0xb50] sm:$0xff] }
 0x67c   :  { %9065 = vmatpush1.bf16.msra.mxu1 %v9064_v56  ;;  %v12683_v56 = vpop.permute.xlu0 %1926 }
 0x67d   :  { %9067 = vmatprep.subr.bf16.mxu1 %v9066_v45  ;;  %v4330_v45 = vld [vmem:[#allocation11 + $0xae8] sm:$0xff] }
 0x67e   :  { %v9034_v50 = vpack.c.bf16 %v4334_v20, %v4330_v45  ;;  %v13578_v45 = vld [vmem:[#allocation38_spill] sm:$0xff] }
 0x67f   :  { %v12689_v20 = vadd.f32 %v13578_v45, %v13551_v43  ;;  %v4348_v45 = vld [vmem:[#allocation11 + $0xb78] sm:$0xff] }
 0x680   :  { %9069 = vmatpush1.bf16.msra.mxu1 %v9068_v14  ;;  %v4329_v14 = vld [vmem:[#allocation11 + $0xae0] sm:$0xff]  ;;  %v12685_v59 = vpop.permute.xlu0 %1946  ;;  %9035 = vmatprep.subr.bf16.mxu0 %v9034_v50  ;;  %v4339_v50 = vld [vmem:[#allocation11 + $0xb30] sm:$0xff]  ;;  %v4352_v43 = vld [vmem:[#allocation11 + $0xb98] sm:$0xff] }
 0x681   :  { %9071 = vmatprep.subr.bf16.mxu1 %v9070_v8  ;;  %v4333_v8 = vld [vmem:[#allocation11 + $0xb00] sm:$0xff] }
 0x684   :  { %9073 = vmatpush1.bf16.msra.mxu1 %v9072_v19  ;;  %v9036_v19 = vpack.c.bf16 %v4333_v8, %v4329_v14 }
 0x685   :  { %9075 = vmatprep.subr.bf16.mxu1 %v9074_v52  ;;  %v4335_v52 = vld [vmem:[#allocation11 + $0xb10] sm:$0xff] }
 0x686   :  { %v9084_v32 = vpack.c.bf16 %v4335_v52, %v4331_v55  ;;  %9037 = vmatpush1.bf16.msra.mxu0 %v9036_v19  ;;  %v9088_v19 = vpack.c.bf16 %v4343_v41, %v4339_v50  ;;  %v4350_v52 = vld [vmem:[#allocation11 + $0xb88] sm:$0xff] }
 0x687   :  { %v9042_v34 = vpack.c.bf16 %v4350_v52, %v4346_v25  ;;  %v4358_v52 = vld [vmem:[#allocation11 + $0xbc8] sm:$0xff] }
 0x688   :  { %9077 = vmatpush1.bf16.msra.mxu1 %v9076_v38  ;;  %v4337_v38 = vld [vmem:[#allocation11 + $0xb20] sm:$0xff] }
 0x689   :  { %9079 = vmatprep.subr.bf16.mxu1 %v9078_v58  ;;  %v9038_v58 = vpack.c.bf16 %v4342_v13, %v4338_v60  ;;  %v9040_v14 = vpack.c.bf16 %v4341_v47, %v4337_v38  ;;  %v4345_v60 = vld [vmem:[#allocation11 + $0xb60] sm:$0xff]  ;;  %v9090_v38 = vpack.c.bf16 %v4352_v43, %v4348_v45  ;;  %v4351_v47 = vld [vmem:[#allocation11 + $0xb90] sm:$0xff]  ;;  %v4354_v43 = vld [vmem:[#allocation11 + $0xba8] sm:$0xff] }
 0x68a   :  { %v4349_v13 = vld [vmem:[#allocation11 + $0xb80] sm:$0xff]  ;;  %v9092_v50 = vpack.c.bf16 %v4351_v47, %v4347_v18  ;;  %v4356_v45 = vld [vmem:[#allocation11 + $0xbb8] sm:$0xff]  ;;  %v4355_v47 = vld [vmem:[#allocation11 + $0xbb0] sm:$0xff] }
 0x68b   :  { %9039 = vmatprep.subr.bf16.mxu0 %v9038_v58 }
 0x68c   :  { %9081 = vmatpush1.bf16.msra.mxu1 %v9080_v63  ;;  %v4344_v63 = vld [vmem:[#allocation11 + $0xb58] sm:$0xff]  ;;  %9041 = vmatpush1.bf16.msra.mxu0 %v9040_v14 }
 0x68d   :  { %9083 = vmatprep.subr.bf16.mxu1 %v9082_v42  ;;  %v9086_v8 = vpack.c.bf16 %v4344_v63, %v4340_v57  ;;  %v9044_v42 = vpack.c.bf16 %v4349_v13, %v4345_v60  ;;  %v13407_v57 = vmax.f32 %v12689_v20, 0.0  ;;  %9043 = vmatprep.subr.bf16.mxu0 %v9042_v34  ;;  %v4353_v60 = vld [vmem:[#allocation11 + $0xba0] sm:$0xff]  ;;  %v9046_v34 = vpack.c.bf16 %v4358_v52, %v4354_v43  ;;  %v4364_v52 = vld [vmem:[#allocation11 + $0xbf8] sm:$0xff] }
 0x68e   :  { %v4357_v13 = vld [vmem:[#allocation11 + $0xbc0] sm:$0xff] }
 0x68f   :  { %v9048_v18 = vpack.c.bf16 %v4357_v13, %v4353_v60  ;;  %v4365_v43 = vld [vmem:[#allocation11 + $0xc00] sm:$0xff] }
 0x690   :  { %9085 = vmatpush1.bf16.msra.mxu1 %v9084_v32  ;;  %9045 = vmatpush1.bf16.msra.mxu0 %v9044_v42 }
 0x691   :  { %9087 = vmatprep.subr.bf16.mxu1 %v9086_v8  ;;  %v13581_v8 = vld [vmem:[#allocation28_spill] sm:$0xff]  ;;  %9047 = vmatprep.subr.bf16.mxu0 %v9046_v34  ;;  %v4374_v34 = vld [vmem:[#allocation11 + $0xc48] sm:$0xff] }
 0x692   :  { %v13582_v41 = vmax.f32 %v13581_v8, 0.0  ;;  %v4366_v8 = vld [vmem:[#allocation11 + $0xc08] sm:$0xff] }
 0x694   :  { %9089 = vmatpush1.bf16.msra.mxu1 %v9088_v19  ;;  %9049 = vmatpush1.bf16.msra.mxu0 %v9048_v18 }
 0x695   :  { %9091 = vmatprep.subr.bf16.mxu1 %v9090_v38  ;;  %v4362_v38 = vld [vmem:[#allocation11 + $0xbe8] sm:$0xff] }
 0x696   :  { %v9050_v42 = vpack.c.bf16 %v4366_v8, %v4362_v38  ;;  %v4375_v38 = vld [vmem:[#allocation11 + $0xc50] sm:$0xff] }
 0x698   :  { %9093 = vmatpush1.bf16.msra.mxu1 %v9092_v50  ;;  %9051 = vmatprep.subr.bf16.mxu0 %v9050_v42  ;;  %v4370_v50 = vld [vmem:[#allocation11 + $0xc28] sm:$0xff] }
 0x699   :  { %v9054_v13 = vpack.c.bf16 %v4374_v34, %v4370_v50  ;;  %v13584_v34 = vld [vmem:[#allocation40_spill] sm:$0xff] }
 0x6b8   :  { %v12691_v3 = vpop.permute.xlu1 %4535 }
 0x6b9   :  { %v12693_v55 = vpop.permute.xlu0 %4937 }
 0x6ba   :  { %13579 = vst [vmem:[#allocation39_spill] sm:$0xff] %v12693_v55 }
 0x6bc   :  { %v1938_v63 = vpop.permute.xlu1 %1937 }
 0x6bd   :  { %v1939_v32 = vsel %vm437_vm6, %v12586_v9, %v1938_v63  ;;  %v12698_v58 = vpop.permute.xlu0 %2148  ;;  %v4360_v9 = vld [vmem:[#allocation11 + $0xbd8] sm:$0xff]  ;;  %v4359_v63 = vld [vmem:[#allocation11 + $0xbd0] sm:$0xff] }
 0x6be   :  { %13580 = vst [vmem:[#allocation35_spill] sm:$0xff] %v12698_v58  ;;  %v1943_v25 = vmax.f32 %v13582_v41, %v1939_v32  ;;  %v2155_v14 = vmax.f32 %v13407_v57, %v12698_v58  ;;  %v9094_v19 = vpack.c.bf16 %v4360_v9, %v4356_v45  ;;  %v9096_v32 = vpack.c.bf16 %v4359_v63, %v4355_v47  ;;  %v4361_v41 = vld [vmem:[#allocation11 + $0xbe0] sm:$0xff]  ;;  %v4368_v57 = vld [vmem:[#allocation11 + $0xc18] sm:$0xff]  ;;  %v4363_v58 = vld [vmem:[#allocation11 + $0xbf0] sm:$0xff] }
 0x6bf   :  { %v9052_v55 = vpack.c.bf16 %v4365_v43, %v4361_v41  ;;  %v4369_v45 = vld [vmem:[#allocation11 + $0xc20] sm:$0xff]  ;;  %v4376_v47 = vld [vmem:[#allocation11 + $0xc58] sm:$0xff]  ;;  %v4371_v63 = vld [vmem:[#allocation11 + $0xc30] sm:$0xff] }
 0x6c0   :  { %2159 = vrot.lane.b32.xlu0 %v2155_v14, %s10628_s15  ;;  %1948 = vrot.lane.b32.xlu1 %v1943_v25, %s10628_s15  ;;  %v9098_v14 = vpack.c.bf16 %v4368_v57, %v4364_v52  ;;  %v4367_v25 = vld [vmem:[#allocation11 + $0xc10] sm:$0xff]  ;;  %v4373_v9 = vld [vmem:[#allocation11 + $0xc40] sm:$0xff]  ;;  %v9104_v8 = vpack.c.bf16 %v4375_v38, %v4371_v63  ;;  %v1929_v42 = vpop.permute.xlu1 %1928  ;;  %v13583_v52 = vmax.f32 %v12562_v21, 0.0  ;;  %v13588_v63 = vmax.f32 %v12689_v20, 0.0 }
 0x6c1   :  { %9095 = vmatprep.subr.bf16.mxu1 %v9094_v19  ;;  %v9100_v60 = vpack.c.bf16 %v4367_v25, %v4363_v58  ;;  %9053 = vmatpush1.bf16.msra.mxu0 %v9052_v55  ;;  %v4372_v19 = vld [vmem:[#allocation11 + $0xc38] sm:$0xff]  ;;  %v9056_v18 = vpack.c.bf16 %v4373_v9, %v4369_v45  ;;  %v4378_v58 = vld [vmem:[#allocation11 + $0xc68] sm:$0xff]  ;;  %v4377_v55 = vld [vmem:[#allocation11 + $0xc60] sm:$0xff]  ;;  %v1930_v43 = vsel %vm437_vm6, %v12683_v56, %v1929_v42 }
 0x6c2   :  { %9097 = vmatpush1.bf16.msra.mxu1 %v9096_v32  ;;  %9055 = vmatprep.subr.bf16.mxu0 %v9054_v13  ;;  %v9102_v57 = vpack.c.bf16 %v4376_v47, %v4372_v19  ;;  %v4380_v32 = vld [vmem:[#allocation11 + $0xc78] sm:$0xff]  ;;  %v4379_v41 = vld [vmem:[#allocation11 + $0xc70] sm:$0xff]  ;;  %v2131_v13 = vadd.f32 %v13584_v34, %v13543_v2  ;;  %v13585_v45 = vld [vmem:[#allocation44_spill] sm:$0xff]  ;;  %v4539_v20 = vsel %vm256_vm5, %v12583_v5, %v12691_v3 }
 0x6c3   :  { %9099 = vmatprep.subr.bf16.mxu1 %v9098_v14  ;;  %v1932_v14 = vmax.f32 %v13583_v52, %v1930_v43  ;;  %v12719_v9 = vadd.f32 %v13585_v45, %v13545_v15  ;;  %v13586_v56 = vld [vmem:[#allocation43_spill] sm:$0xff]  ;;  %v13590_v42 = vld [vmem:[#allocation49_spill] sm:$0xff] }
 0x6c4   :  { %v2136_v21 = vmax.f32 %v2131_v13, 0.0  ;;  %v10398_v43 = vld [vmem:[#allocation2 + $0x8] sm:$0x3]  ;;  %v13595_v34 = vld [vmem:[#allocation57_spill] sm:$0xff]  ;;  %v13596_v13 = vld [vmem:[#allocation58_spill] sm:$0xff] }
 0x6c5   :  { %9057 = vmatpush1.bf16.msra.mxu0 %v9056_v18  ;;  %v12725_v18 = vadd.f32 %v13586_v56, %v13548_v6  ;;  %v4538_v52 = vsel %vm2909_vm9, %v10398_v43, %v12583_v5  ;;  %v13597_v45 = vld [vmem:[#allocation59_spill] sm:$0xff]  ;;  %v13601_v56 = vld [vmem:[#allocation64_spill] sm:$0xff] }
 0x6c6   :  { %9101 = vmatpush1.bf16.msra.mxu1 %v9100_v60  ;;  %4432 = vmatprep.subr.mxu0 %v4378_v58  ;;  %v13600_v5 = vld [vmem:[#allocation63_spill] sm:$0xff] }
 0x6c7   :  { %9103 = vmatprep.subr.bf16.mxu1 %v9102_v57  ;;  %13587 = vst [vmem:[#allocation29_spill] sm:$0xff] %v12725_v18  ;;  %v13410_v47 = vmax.f32 %v12725_v18, 0.0 }
 0x6c9   :  { %4433 = vmatpush1.msra.mxu0 %v4377_v55 }
 0x6ca   :  { %9105 = vmatpush1.bf16.msra.mxu1 %v9104_v8  ;;  %9107 = vmatprep.subr.bf16.mxu0 %v12064_v51 }
 0x6cb   :  { %4503 = vmatprep.subr.mxu1 %v4380_v32 }
 0x6ce   :  { %4504 = vmatpush1.msra.mxu1 %v4379_v41  ;;  %v13589_v41 = vld [vmem:[#allocation48_spill] sm:$0xff] }
 0x732   :  { %v1949_v25 = vpop.permute.xlu1 %1948 }
 0x733   :  { %v1950_v60 = vsel %vm458_vm7, %v12685_v59, %v1949_v25  ;;  %v13411_v59 = vmax.f32 %v12719_v9, 0.0  ;;  %v13592_v25 = vmov 0.0  }
 0x734   :  { %v1952_v50 = vmax.f32 %v1932_v14, %v1950_v60  ;;  %v13591_v14 = vld [vmem:[#allocation54_spill] sm:$0xff]  ;;  %v13593_v60 = vld [vmem:[#allocation55_spill] sm:$0xff] }
 0x736   :  { %1954 = vst.msk [vmem:[#allocation2 + $0xe] sm:$0x3] %vm462_vm8, %v1952_v50  ;;  %v13594_v50 = vld [vmem:[#allocation56_spill] sm:$0xff] }
 0x73d   :  { %v4936_v19 = vld [vmem:[#allocation2 + $0xe] sm:$0x3] }
 0x73e   :  { %4941 = vrot.lane.b32.xlu1 %v4936_v19, %s10637_s24  ;;  %5343 = vrot.lane.b32.xlu0 %v4936_v19, %s10639_s10  ;;  %v13598_v19 = vld [vmem:[#allocation60_spill] sm:$0xff] }
 0x742   :  { %2150 = vrot.lane.b32.xlu1 %v2136_v21, %s10632_s6  ;;  %2361 = vrot.lane.b32.xlu0 %v13411_v59, %s10632_s6  ;;  %v13599_v21 = vld [vmem:[#allocation62_spill] sm:$0xff] }
 0x746   :  { %2141 = vrot.lane.b32.xlu1 %v13588_v63, %s10632_s6  ;;  %2352 = vrot.lane.b32.xlu0 %v13410_v47, %s10632_s6  ;;  %v13602_v63 = vld [vmem:[#allocation65_spill] sm:$0xff] }
 0x74a   :  { %v4273_v38 = vpop.f32.mrb[28].mxu1 }
 0x74b   :  { %v10295_v57 = vadd.f32 %v4273_v38, %v12449_v46  ;;  %v4275_v8 = vpop.f32.mrb[29].mxu1  ;;  %v12792_v38 = vld [vmem:[#allocation8 + $0x2c8] sm:$0xff] }
 0x74c   :  { %v10296_v58 = vadd.f32 %v4275_v8, %v13555_v23  ;;  %13603 = vst [vmem:[#allocation24_spill] sm:$0xff] %v12792_v38  ;;  %v12797_v8 = vld [vmem:[#allocation8 + $0x2c0] sm:$0xff] }
 0x74d   :  { %v4278_v32 = vmax.f32 %v10295_v57, 0.0  ;;  %v12795_v57 = vpop.permute.xlu0 %2139  ;;  %13604 = vst [vmem:[#allocation70_spill] sm:$0xff] %v12797_v8 }
 0x74e   :  { %v4279_v55 = vmax.f32 %v10296_v58, 0.0 }
 0x750   :  { %7352 = vmatprep.mubr.msk.f32.mxu0 %vm3427_vm11, %v4279_v55  ;;  %7353 = vmatprep.mubr.msk.f32.mxu1 %vm3427_vm11, %v4279_v55  ;;  %v13605_v55 = vld [vmem:[#allocation37_spill] sm:$0xff] }
 0x751   :  { %4449 = vmatmul.mubr.f32.vlgmr.msra.gmra.mrb[28].mxu0 %v4278_v32  ;;  %4520 = vmatmul.mubr.f32.vlgmr.msra.gmra.mrb[26].mxu1 %v4278_v32  ;;  %v12802_v58 = vpop.permute.xlu0 %2159  ;;  %v13606_v32 = vld [vmem:[#allocation46_spill] sm:$0xff] }
 0x752   :  { %9109 = vmatpush1.bf16.msra.mxu0 %v12103_v53  ;;  %4606 = vmatprep.mubr.f32.mxu0 %v4539_v20  ;;  %v12806_v20 = vadd.f32 %v13606_v32, %v13605_v55 }
 0x753   :  { %9111 = vmatprep.subr.bf16.mxu0 %v12111_v4 }
 0x754   :  { %v13416_v47 = vmax.f32 %v12806_v20, 0.0 }
 0x756   :  { %9113 = vmatpush1.bf16.msra.mxu0 %v12116_v27 }
 0x757   :  { %9115 = vmatprep.subr.bf16.mxu0 %v12125_v62 }
 0x75a   :  { %9117 = vmatpush1.bf16.msra.mxu0 %v12132_v29 }
 0x75b   :  { %9119 = vmatprep.subr.bf16.mxu0 %v12137_v39 }
 0x75e   :  { %9121 = vmatpush1.bf16.msra.mxu0 %v12144_v61 }
 0x75f   :  { %9123 = vmatprep.subr.bf16.mxu0 %v12148_v11 }
 0x762   :  { %9125 = vmatpush1.bf16.msra.mxu0 %v12160_v17 }
 0x763   :  { %9127 = vmatprep.subr.bf16.mxu0 %v12164_v22 }
 0x766   :  { %9129 = vmatpush1.bf16.msra.mxu0 %v12168_v44 }
 0x767   :  { %9131 = vmatprep.subr.bf16.mxu0 %v12172_v48 }
 0x76a   :  { %9133 = vmatpush1.bf16.msra.mxu0 %v12176_v24 }
 0x76b   :  { %9135 = vmatprep.subr.bf16.mxu0 %v12180_v28 }
 0x76e   :  { %9137 = vmatpush1.bf16.msra.mxu0 %v12184_v0 }
 0x76f   :  { %9139 = vmatprep.subr.bf16.mxu0 %v12188_v37 }
 0x772   :  { %9141 = vmatpush1.bf16.msra.mxu0 %v12193_v35 }
 0x773   :  { %9143 = vmatprep.subr.bf16.mxu0 %v12197_v40 }
 0x776   :  { %9145 = vmatpush1.bf16.msra.mxu0 %v12204_v7 }
 0x777   :  { %9147 = vmatprep.subr.bf16.mxu0 %v12208_v36 }
 0x77a   :  { %9149 = vmatpush1.bf16.msra.mxu0 %v12214_v31 }
 0x77b   :  { %9151 = vmatprep.subr.bf16.mxu0 %v12218_v49 }
 0x77e   :  { %9153 = vmatpush1.bf16.msra.mxu0 %v12227_v54 }
 0x77f   :  { %9155 = vmatprep.subr.bf16.mxu0 %v12233_v30 }
 0x782   :  { %9157 = vmatpush1.bf16.msra.mxu0 %v12244_v10 }
 0x783   :  { %9159 = vmatprep.subr.bf16.mxu0 %v12248_v16 }
 0x786   :  { %9161 = vmatpush1.bf16.msra.mxu0 %v13522_v33 }
 0x787   :  { %9163 = vmatprep.subr.bf16.mxu0 %v13523_v26  ;;  %v4724_v26 = vld [vmem:[#allocation11 + $0xda8] sm:$0xff] }
 0x78a   :  { %9165 = vmatpush1.bf16.msra.mxu0 %v13524_v12  ;;  %v4720_v12 = vld [vmem:[#allocation11 + $0xd88] sm:$0xff] }
 0x78b   :  { %9167 = vmatprep.subr.bf16.mxu0 %v13525_v1 }
 0x78e   :  { %9169 = vmatpush1.bf16.msra.mxu0 %v13589_v41  ;;  %v4699_v41 = vld [vmem:[#allocation11 + $0xce0] sm:$0xff] }
 0x78f   :  { %9171 = vmatprep.subr.bf16.mxu0 %v13590_v42  ;;  %v4701_v42 = vld [vmem:[#allocation11 + $0xcf0] sm:$0xff] }
 0x791   :  { %4607 = vmatmul.mubr.f32.vlgmr.msra.gmra.mrb[32].mxu0 %v4538_v52 }
 0x792   :  { %9173 = vmatpush1.bf16.msra.mxu0 %v13591_v14  ;;  %4677 = vmatprep.mubr.f32.mxu0 %v13592_v25  ;;  %v4698_v25 = vld [vmem:[#allocation11 + $0xcd8] sm:$0xff]  ;;  %v4697_v14 = vld [vmem:[#allocation11 + $0xcd0] sm:$0xff] }
 0x793   :  { %9175 = vmatprep.subr.bf16.mxu0 %v13593_v60  ;;  %v4691_v60 = vld [vmem:[#allocation11 + $0xca0] sm:$0xff] }
 0x796   :  { %9177 = vmatpush1.bf16.msra.mxu0 %v13594_v50 }
 0x797   :  { %9179 = vmatprep.subr.bf16.mxu0 %v13595_v34  ;;  %v4693_v34 = vld [vmem:[#allocation11 + $0xcb0] sm:$0xff] }
 0x79a   :  { %9181 = vmatpush1.bf16.msra.mxu0 %v13596_v13  ;;  %v4689_v13 = vld [vmem:[#allocation11 + $0xc90] sm:$0xff] }
 0x79b   :  { %9183 = vmatprep.subr.bf16.mxu0 %v13597_v45  ;;  %v4692_v45 = vld [vmem:[#allocation11 + $0xca8] sm:$0xff] }
 0x79e   :  { %9185 = vmatpush1.bf16.msra.mxu0 %v13598_v19 }
 0x79f   :  { %9187 = vmatprep.subr.bf16.mxu0 %v13599_v21  ;;  %v4688_v21 = vld [vmem:[#allocation11 + $0xc88] sm:$0xff] }
 0x7a0   :  { %v9194_v50 = vpack.c.bf16 %v4692_v45, %v4688_v21  ;;  %v4706_v45 = vld [vmem:[#allocation11 + $0xd18] sm:$0xff]  ;;  %v4708_v21 = vld [vmem:[#allocation11 + $0xd28] sm:$0xff] }
 0x7a2   :  { %9189 = vmatpush1.bf16.msra.mxu0 %v13600_v5  ;;  %v4694_v5 = vld [vmem:[#allocation11 + $0xcb8] sm:$0xff] }
 0x7a3   :  { %9191 = vmatprep.subr.bf16.mxu0 %v13601_v56 }
 0x7a6   :  { %9193 = vmatpush1.bf16.msra.mxu0 %v13602_v63  ;;  %v13609_v63 = vld [vmem:[#allocation31_spill] sm:$0xff] }
 0x7a7   :  { %4637 = vmatprep.subr.mxu0 %v12792_v38  ;;  %v13608_v38 = vld [vmem:[#allocation35_spill] sm:$0xff]  ;;  %v13610_v56 = vmax.f32 %v13609_v63, 0.0 }
 0x7a8   :  { %v4702_v63 = vld [vmem:[#allocation11 + $0xcf8] sm:$0xff] }
 0x7aa   :  { %4638 = vmatpush1.msra.mxu0 %v12797_v8 }
 0x7ab   :  { %7354 = vmatmul.mubr.msk.f32.vlgmr.msra.gmra.mrb[32].mxu0 %vm2923_vm10, %v12691_v3  ;;  %9195 = vmatprep.subr.bf16.mxu0 %v9194_v50  ;;  %v4709_v50 = vld [vmem:[#allocation11 + $0xd30] sm:$0xff] }
 0x7b0   :  { %v12808_v43 = vpop.permute.xlu1 %4941  ;;  %v12810_v52 = vpop.permute.xlu0 %5343 }
 0x7b1   :  { %13607 = vst [vmem:[#allocation72_spill] sm:$0xff] %v12810_v52  ;;  %v4690_v52 = vld [vmem:[#allocation11 + $0xc98] sm:$0xff] }
 0x7b2   :  { %v9242_v19 = vpack.c.bf16 %v4694_v5, %v4690_v52  ;;  %v4695_v5 = vld [vmem:[#allocation11 + $0xcc0] sm:$0xff]  ;;  %v9248_v52 = vpack.c.bf16 %v4701_v42, %v4697_v14 }
 0x7b4   :  { %v2151_v59 = vpop.permute.xlu1 %2150  ;;  %v12813_v18 = vpop.permute.xlu0 %2361  ;;  %9243 = vmatprep.subr.bf16.mxu1 %v9242_v19 }
 0x7b5   :  { %v2152_v8 = vsel %vm437_vm6, %v13608_v38, %v2151_v59  ;;  %v2368_v3 = vmax.f32 %v13416_v47, %v12813_v18  ;;  %v9244_v59 = vpack.c.bf16 %v4693_v34, %v4689_v13  ;;  %v4687_v38 = vld [vmem:[#allocation11 + $0xc80] sm:$0xff]  ;;  %v4710_v34 = vld [vmem:[#allocation11 + $0xd38] sm:$0xff]  ;;  %v9200_v13 = vpack.c.bf16 %v4699_v41, %v4695_v5  ;;  %v4717_v41 = vld [vmem:[#allocation11 + $0xd70] sm:$0xff] }
 0x7b6   :  { %v2156_v32 = vmax.f32 %v13610_v56, %v2152_v8  ;;  %v9196_v47 = vpack.c.bf16 %v4691_v60, %v4687_v38  ;;  %v4696_v56 = vld [vmem:[#allocation11 + $0xcc8] sm:$0xff]  ;;  %v9250_v19 = vpack.c.bf16 %v4710_v34, %v4706_v45  ;;  %v4705_v38 = vld [vmem:[#allocation11 + $0xd10] sm:$0xff]  ;;  %v4711_v45 = vld [vmem:[#allocation11 + $0xd40] sm:$0xff] }
 0x7b7   :  { %2372 = vrot.lane.b32.xlu0 %v2368_v3, %s10628_s15  ;;  %v4700_v8 = vld [vmem:[#allocation11 + $0xce8] sm:$0xff]  ;;  %9245 = vmatpush1.bf16.msra.mxu1 %v9244_v59  ;;  %v9246_v3 = vpack.c.bf16 %v4702_v63, %v4698_v25  ;;  %v4703_v59 = vld [vmem:[#allocation11 + $0xd00] sm:$0xff]  ;;  %v9252_v63 = vpack.c.bf16 %v4709_v50, %v4705_v38  ;;  %v4725_v50 = vld [vmem:[#allocation11 + $0xdb0] sm:$0xff] }
 0x7b8   :  { %2161 = vrot.lane.b32.xlu1 %v2156_v32, %s10628_s15  ;;  %v9198_v32 = vpack.c.bf16 %v4700_v8, %v4696_v56  ;;  %9197 = vmatpush1.bf16.msra.mxu0 %v9196_v47  ;;  %v4704_v60 = vld [vmem:[#allocation11 + $0xd08] sm:$0xff]  ;;  %v4707_v25 = vld [vmem:[#allocation11 + $0xd20] sm:$0xff]  ;;  %v4714_v56 = vld [vmem:[#allocation11 + $0xd58] sm:$0xff] }
 0x7b9   :  { %9247 = vmatprep.subr.bf16.mxu1 %v9246_v3  ;;  %v9202_v1 = vpack.c.bf16 %v4708_v21, %v4704_v60  ;;  %v4718_v8 = vld [vmem:[#allocation11 + $0xd78] sm:$0xff]  ;;  %v4712_v47 = vld [vmem:[#allocation11 + $0xd48] sm:$0xff]  ;;  %v9204_v42 = vpack.c.bf16 %v4707_v25, %v4703_v59  ;;  %v4715_v34 = vld [vmem:[#allocation11 + $0xd60] sm:$0xff]  ;;  %v9210_v25 = vpack.c.bf16 %v4724_v26, %v4720_v12 }
 0x7ba   :  { %9199 = vmatprep.subr.bf16.mxu0 %v9198_v32  ;;  %v9254_v14 = vpack.c.bf16 %v4718_v8, %v4714_v56  ;;  %v4716_v3 = vld [vmem:[#allocation11 + $0xd68] sm:$0xff]  ;;  %v4713_v32 = vld [vmem:[#allocation11 + $0xd50] sm:$0xff]  ;;  %v4722_v60 = vld [vmem:[#allocation11 + $0xd98] sm:$0xff]  ;;  %v9208_v38 = vpack.c.bf16 %v4715_v34, %v4711_v45 }
 0x7bb   :  { %9249 = vmatpush1.bf16.msra.mxu1 %v9248_v52  ;;  %v9206_v5 = vpack.c.bf16 %v4716_v3, %v4712_v47  ;;  %v4726_v21 = vld [vmem:[#allocation11 + $0xdb8] sm:$0xff]  ;;  %v9256_v52 = vpack.c.bf16 %v4717_v41, %v4713_v32  ;;  %v4719_v59 = vld [vmem:[#allocation11 + $0xd80] sm:$0xff]  ;;  %v4728_v47 = vld [vmem:[#allocation11 + $0xdc8] sm:$0xff] }
 0x7bc   :  { %9201 = vmatpush1.bf16.msra.mxu0 %v9200_v13  ;;  %9251 = vmatprep.subr.bf16.mxu1 %v9250_v19  ;;  %v9258_v13 = vpack.c.bf16 %v4726_v21, %v4722_v60  ;;  %v4721_v19 = vld [vmem:[#allocation11 + $0xd90] sm:$0xff]  ;;  %v4723_v56 = vld [vmem:[#allocation11 + $0xda0] sm:$0xff]  ;;  %v4734_v8 = vld [vmem:[#allocation11 + $0xdf8] sm:$0xff] }
 0x7bd   :  { %9203 = vmatprep.subr.bf16.mxu0 %v9202_v1  ;;  %v4730_v1 = vld [vmem:[#allocation11 + $0xdd8] sm:$0xff]  ;;  %v4732_v3 = vld [vmem:[#allocation11 + $0xde8] sm:$0xff]  ;;  %v9260_v33 = vpack.c.bf16 %v4725_v50, %v4721_v19  ;;  %v4727_v41 = vld [vmem:[#allocation11 + $0xdc0] sm:$0xff] }
 0x7be   :  { %v9262_v32 = vpack.c.bf16 %v4734_v8, %v4730_v1  ;;  %v9214_v45 = vpack.c.bf16 %v4732_v3, %v4728_v47  ;;  %v4731_v34 = vld [vmem:[#allocation11 + $0xde0] sm:$0xff]  ;;  %v4738_v60 = vld [vmem:[#allocation11 + $0xe18] sm:$0xff]  ;;  %v4736_v26 = vld [vmem:[#allocation11 + $0xe08] sm:$0xff] }
 0x7bf   :  { %9253 = vmatpush1.bf16.msra.mxu1 %v9252_v63  ;;  %v9212_v63 = vpack.c.bf16 %v4723_v56, %v4719_v59  ;;  %v4740_v12 = vld [vmem:[#allocation11 + $0xe28] sm:$0xff]  ;;  %v4735_v50 = vld [vmem:[#allocation11 + $0xe00] sm:$0xff]  ;;  %v4746_v1 = vld [vmem:[#allocation11 + $0xe58] sm:$0xff] }
 0x7c0   :  { %9205 = vmatpush1.bf16.msra.mxu0 %v9204_v42  ;;  %9255 = vmatprep.subr.bf16.mxu1 %v9254_v14  ;;  %v4729_v42 = vld [vmem:[#allocation11 + $0xdd0] sm:$0xff]  ;;  %v9218_v59 = vpack.c.bf16 %v4740_v12, %v4736_v26  ;;  %v4739_v56 = vld [vmem:[#allocation11 + $0xe20] sm:$0xff]  ;;  %v4744_v8 = vld [vmem:[#allocation11 + $0xe48] sm:$0xff] }
 0x7c1   :  { %9207 = vmatprep.subr.bf16.mxu0 %v9206_v5  ;;  %v4733_v14 = vld [vmem:[#allocation11 + $0xdf0] sm:$0xff]  ;;  %v4742_v5 = vld [vmem:[#allocation11 + $0xe38] sm:$0xff]  ;;  %v4748_v47 = vld [vmem:[#allocation11 + $0xe68] sm:$0xff] }
 0x7c2   :  { %v9264_v21 = vpack.c.bf16 %v4733_v14, %v4729_v42  ;;  %v9266_v19 = vpack.c.bf16 %v4742_v5, %v4738_v60  ;;  %v4743_v14 = vld [vmem:[#allocation11 + $0xe40] sm:$0xff]  ;;  %v4754_v60 = vld [vmem:[#allocation11 + $0xe98] sm:$0xff]  ;;  %v4752_v5 = vld [vmem:[#allocation11 + $0xe88] sm:$0xff] }
 0x7c3   :  { %9257 = vmatpush1.bf16.msra.mxu1 %v9256_v52  ;;  %v9216_v52 = vpack.c.bf16 %v4731_v34, %v4727_v41  ;;  %v9222_v41 = vpack.c.bf16 %v4748_v47, %v4744_v8  ;;  %v4747_v34 = vld [vmem:[#allocation11 + $0xe60] sm:$0xff]  ;;  %v4756_v26 = vld [vmem:[#allocation11 + $0xea8] sm:$0xff] }
 0x7c4   :  { %9209 = vmatpush1.bf16.msra.mxu0 %v9208_v38  ;;  %9259 = vmatprep.subr.bf16.mxu1 %v9258_v13  ;;  %v4737_v38 = vld [vmem:[#allocation11 + $0xe10] sm:$0xff]  ;;  %v4764_v8 = vld [vmem:[#allocation11 + $0xee8] sm:$0xff] }
 0x7c5   :  { %9211 = vmatprep.subr.bf16.mxu0 %v9210_v25  ;;  %v4741_v13 = vld [vmem:[#allocation11 + $0xe30] sm:$0xff]  ;;  %v4750_v25 = vld [vmem:[#allocation11 + $0xe78] sm:$0xff] }
 0x7c6   :  { %v9268_v3 = vpack.c.bf16 %v4741_v13, %v4737_v38  ;;  %v9270_v42 = vpack.c.bf16 %v4750_v25, %v4746_v1  ;;  %v4751_v13 = vld [vmem:[#allocation11 + $0xe80] sm:$0xff]  ;;  %v4762_v1 = vld [vmem:[#allocation11 + $0xed8] sm:$0xff]  ;;  %v4760_v25 = vld [vmem:[#allocation11 + $0xec8] sm:$0xff] }
 0x7c7   :  { %9261 = vmatpush1.bf16.msra.mxu1 %v9260_v33  ;;  %v9220_v33 = vpack.c.bf16 %v4739_v56, %v4735_v50  ;;  %v9226_v50 = vpack.c.bf16 %v4756_v26, %v4752_v5  ;;  %v4755_v56 = vld [vmem:[#allocation11 + $0xea0] sm:$0xff]  ;;  %v4772_v5 = vld [vmem:[#allocation11 + $0xf28] sm:$0xff] }
 0x7c8   :  { %9213 = vmatpush1.bf16.msra.mxu0 %v9212_v63  ;;  %9263 = vmatprep.subr.bf16.mxu1 %v9262_v32  ;;  %v4745_v63 = vld [vmem:[#allocation11 + $0xe50] sm:$0xff] }
 0x7c9   :  { %9215 = vmatprep.subr.bf16.mxu0 %v9214_v45  ;;  %v4749_v32 = vld [vmem:[#allocation11 + $0xe70] sm:$0xff]  ;;  %v4758_v45 = vld [vmem:[#allocation11 + $0xeb8] sm:$0xff] }
 0x7ca   :  { %v9272_v12 = vpack.c.bf16 %v4749_v32, %v4745_v63  ;;  %v9274_v38 = vpack.c.bf16 %v4758_v45, %v4754_v60  ;;  %v4759_v32 = vld [vmem:[#allocation11 + $0xec0] sm:$0xff]  ;;  %v4770_v60 = vld [vmem:[#allocation11 + $0xf18] sm:$0xff]  ;;  %v4768_v45 = vld [vmem:[#allocation11 + $0xf08] sm:$0xff] }
 0x7cb   :  { %9265 = vmatpush1.bf16.msra.mxu1 %v9264_v21  ;;  %v9224_v21 = vpack.c.bf16 %v4747_v34, %v4743_v14  ;;  %v9230_v14 = vpack.c.bf16 %v4764_v8, %v4760_v25  ;;  %v4763_v34 = vld [vmem:[#allocation11 + $0xee0] sm:$0xff]  ;;  %v4782_v25 = vld [vmem:[#allocation11 + $0xf78] sm:$0xff] }
 0x7cc   :  { %9217 = vmatpush1.bf16.msra.mxu0 %v9216_v52  ;;  %9267 = vmatprep.subr.bf16.mxu1 %v9266_v19  ;;  %v4753_v52 = vld [vmem:[#allocation11 + $0xe90] sm:$0xff] }
 0x7cd   :  { %9219 = vmatprep.subr.bf16.mxu0 %v9218_v59  ;;  %v4757_v19 = vld [vmem:[#allocation11 + $0xeb0] sm:$0xff]  ;;  %v4766_v59 = vld [vmem:[#allocation11 + $0xef8] sm:$0xff] }
 0x7ce   :  { %v9276_v47 = vpack.c.bf16 %v4757_v19, %v4753_v52  ;;  %v9278_v63 = vpack.c.bf16 %v4766_v59, %v4762_v1  ;;  %v9234_v19 = vpack.c.bf16 %v4772_v5, %v4768_v45  ;;  %v4778_v59 = vld [vmem:[#allocation11 + $0xf58] sm:$0xff]  ;;  %v4784_v45 = vld [vmem:[#allocation11 + $0xf88] sm:$0xff]  ;;  %v4785_v5 = vld [vmem:[#allocation11 + $0xf90] sm:$0xff] }
 0x7cf   :  { %9269 = vmatpush1.bf16.msra.mxu1 %v9268_v3  ;;  %v9228_v3 = vpack.c.bf16 %v4755_v56, %v4751_v13  ;;  %v4767_v13 = vld [vmem:[#allocation11 + $0xf00] sm:$0xff]  ;;  %v9286_v8 = vpack.c.bf16 %v4782_v25, %v4778_v59  ;;  %v13614_v25 = vld [vmem:[#allocation51_spill] sm:$0xff] }
 0x7d0   :  { %9221 = vmatpush1.bf16.msra.mxu0 %v9220_v33  ;;  %9271 = vmatprep.subr.bf16.mxu1 %v9270_v42  ;;  %v4761_v33 = vld [vmem:[#allocation11 + $0xed0] sm:$0xff]  ;;  %v4771_v56 = vld [vmem:[#allocation11 + $0xf20] sm:$0xff] }
 0x7d1   :  { %9223 = vmatprep.subr.bf16.mxu0 %v9222_v41  ;;  %v4765_v42 = vld [vmem:[#allocation11 + $0xef0] sm:$0xff]  ;;  %v4774_v41 = vld [vmem:[#allocation11 + $0xf38] sm:$0xff]  ;;  %v9236_v1 = vpack.c.bf16 %v4771_v56, %v4767_v13 }
 0x7d2   :  { %v9280_v26 = vpack.c.bf16 %v4765_v42, %v4761_v33  ;;  %v9282_v52 = vpack.c.bf16 %v4774_v41, %v4770_v60  ;;  %v4781_v42 = vld [vmem:[#allocation11 + $0xf70] sm:$0xff]  ;;  %v4786_v41 = vld [vmem:[#allocation11 + $0xf98] sm:$0xff] }
 0x7d3   :  { %9273 = vmatpush1.bf16.msra.mxu1 %v9272_v12  ;;  %v9232_v12 = vpack.c.bf16 %v4763_v34, %v4759_v32  ;;  %v4775_v32 = vld [vmem:[#allocation11 + $0xf40] sm:$0xff] }
 0x7d4   :  { %9225 = vmatpush1.bf16.msra.mxu0 %v9224_v21  ;;  %9275 = vmatprep.subr.bf16.mxu1 %v9274_v38  ;;  %v4769_v21 = vld [vmem:[#allocation11 + $0xf10] sm:$0xff] }
 0x7d5   :  { %9227 = vmatprep.subr.bf16.mxu0 %v9226_v50  ;;  %v4773_v38 = vld [vmem:[#allocation11 + $0xf30] sm:$0xff] }
 0x7d6   :  { %v9284_v50 = vpack.c.bf16 %v4773_v38, %v4769_v21  ;;  %v13611_v21 = vld [vmem:[#allocation27_spill] sm:$0xff] }
 0x7d7   :  { %9277 = vmatpush1.bf16.msra.mxu1 %v9276_v47  ;;  %v4776_v47 = vld [vmem:[#allocation11 + $0xf48] sm:$0xff]  ;;  %v13612_v38 = vmax.f32 %v13611_v21, 0.0 }
 0x7d8   :  { %9229 = vmatpush1.bf16.msra.mxu0 %v9228_v3  ;;  %9279 = vmatprep.subr.bf16.mxu1 %v9278_v63  ;;  %v4780_v3 = vld [vmem:[#allocation11 + $0xf68] sm:$0xff]  ;;  %v4777_v63 = vld [vmem:[#allocation11 + $0xf50] sm:$0xff] }
 0x7d9   :  { %9231 = vmatprep.subr.bf16.mxu0 %v9230_v14  ;;  %v9238_v33 = vpack.c.bf16 %v4780_v3, %v4776_v47  ;;  %v4779_v14 = vld [vmem:[#allocation11 + $0xf60] sm:$0xff]  ;;  %v9288_v34 = vpack.c.bf16 %v4781_v42, %v4777_v63  ;;  %v13615_v3 = vld [vmem:[#allocation50_spill] sm:$0xff]  ;;  %v13617_v42 = vmax.f32 %v12806_v20, 0.0  ;;  %v13618_v20 = vld [vmem:[#allocation39_spill] sm:$0xff] }
 0x7da   :  { %v9240_v60 = vpack.c.bf16 %v4779_v14, %v4775_v32  ;;  %v12842_v63 = vadd.f32 %v13615_v3, %v13548_v6  ;;  %v5093_v3 = vld [vmem:[#allocation11 + $0xfa0] sm:$0xff] }
 0x7db   :  { %9281 = vmatpush1.bf16.msra.mxu1 %v9280_v26  ;;  %v4783_v26 = vld [vmem:[#allocation11 + $0xf80] sm:$0xff] }
 0x7dc   :  { %9233 = vmatpush1.bf16.msra.mxu0 %v9232_v12  ;;  %9283 = vmatprep.subr.bf16.mxu1 %v9282_v52  ;;  %v2142_v12 = vpop.permute.xlu1 %2141  ;;  %13616 = vst [vmem:[#allocation73_spill] sm:$0xff] %v12842_v63 }
 0x7dd   :  { %9235 = vmatprep.subr.bf16.mxu0 %v9234_v19  ;;  %v2143_v52 = vsel %vm437_vm6, %v12795_v57, %v2142_v12 }
 0x7de   :  { %v2145_v19 = vmax.f32 %v13612_v38, %v2143_v52  ;;  %v13619_v52 = vld [vmem:[#allocation52_spill] sm:$0xff] }
 0x7df   :  { %9285 = vmatpush1.bf16.msra.mxu1 %v9284_v50  ;;  %v12886_v21 = vadd.f32 %v13619_v52, %v13605_v55 }
 0x7e0   :  { %9237 = vmatpush1.bf16.msra.mxu0 %v9236_v1  ;;  %9287 = vmatprep.subr.bf16.mxu1 %v9286_v8  ;;  %v13613_v1 = vld [vmem:[#allocation47_spill] sm:$0xff]  ;;  %v12836_v8 = vadd.f32 %v13614_v25, %v13545_v15  ;;  %v13621_v25 = vmax.f32 %v12719_v9, 0.0  ;;  %v5097_v9 = vld [vmem:[#allocation11 + $0xfc0] sm:$0xff] }
 0x7e1   :  { %9239 = vmatprep.subr.bf16.mxu0 %v9238_v33  ;;  %v2344_v59 = vadd.f32 %v13613_v1, %v13543_v2  ;;  %v13421_v33 = vmax.f32 %v12842_v63, 0.0  ;;  %v13630_v63 = vld [vmem:[#allocation55_spill] sm:$0xff] }
 0x7e3   :  { %9289 = vmatpush1.bf16.msra.mxu1 %v9288_v34  ;;  %v2349_v57 = vmax.f32 %v2344_v59, 0.0 }
 0x7e4   :  { %9241 = vmatpush1.bf16.msra.mxu0 %v9240_v60  ;;  %4909 = vmatprep.subr.mxu1 %v4786_v41 }
 0x7e5   :  { %4838 = vmatprep.subr.mxu0 %v4784_v45 }
 0x7e7   :  { %4910 = vmatpush1.msra.mxu1 %v4785_v5  ;;  %v4945_v5 = vsel %vm256_vm5, %v13618_v20, %v12808_v43 }
 0x7e8   :  { %4839 = vmatpush1.msra.mxu0 %v4783_v26  ;;  %9291 = vmatprep.subr.bf16.mxu1 %v12064_v51  ;;  %v12877_v26 = vpop.permute.xlu0 %2352 }
 0x829   :  { %v12881_v12 = vpop.permute.xlu0 %2372 }
 0x82a   :  { %v2162_v13 = vpop.permute.xlu1 %2161 }
 0x82b   :  { %v2163_v56 = vsel %vm458_vm7, %v12802_v58, %v2162_v13  ;;  %v13422_v58 = vmax.f32 %v12836_v8, 0.0  ;;  %v13423_v13 = vmax.f32 %v12886_v21, 0.0 }
 0x82c   :  { %v2165_v50 = vmax.f32 %v2145_v19, %v2163_v56 }
 0x82e   :  { %2167 = vst.msk [vmem:[#allocation2 + $0x10] sm:$0x3] %vm462_vm8, %v2165_v50 }
 0x835   :  { %v5342_v47 = vld [vmem:[#allocation2 + $0x10] sm:$0x3] }
 0x836   :  { %5347 = vrot.lane.b32.xlu1 %v5342_v47, %s10637_s24  ;;  %5749 = vrot.lane.b32.xlu0 %v5342_v47, %s10639_s10 }
 0x83a   :  { %2363 = vrot.lane.b32.xlu1 %v2349_v57, %s10632_s6  ;;  %2574 = vrot.lane.b32.xlu0 %v13422_v58, %s10632_s6  ;;  %v5098_v57 = vld [vmem:[#allocation11 + $0xfc8] sm:$0xff]  ;;  %v13626_v58 = vld [vmem:[#allocation48_spill] sm:$0xff] }
 0x83e   :  { %2354 = vrot.lane.b32.xlu1 %v13617_v42, %s10632_s6  ;;  %2565 = vrot.lane.b32.xlu0 %v13421_v33, %s10632_s6  ;;  %v13625_v33 = vld [vmem:[#allocation45_spill] sm:$0xff] }
 0x87e   :  { %v4679_v32 = vpop.f32.mrb[32].mxu0 }
 0x87f   :  { %v10297_v14 = vadd.f32 %v4679_v32, %v12449_v46  ;;  %v4681_v34 = vpop.f32.mrb[33].mxu0  ;;  %v9380_v32 = vpack.c.bf16 %v5097_v9, %v5093_v3  ;;  %v5122_v9 = vld [vmem:[#allocation11 + $0x1088] sm:$0xff] }
 0x880   :  { %v10298_v60 = vadd.f32 %v4681_v34, %v13555_v23  ;;  %v5106_v34 = vld [vmem:[#allocation11 + $0x1008] sm:$0xff] }
 0x881   :  { %v4684_v45 = vmax.f32 %v10297_v14, 0.0  ;;  %v5102_v14 = vld [vmem:[#allocation11 + $0xfe8] sm:$0xff] }
 0x882   :  { %v4685_v41 = vmax.f32 %v10298_v60, 0.0  ;;  %v5101_v60 = vld [vmem:[#allocation11 + $0xfe0] sm:$0xff] }
 0x884   :  { %7355 = vmatprep.mubr.msk.f32.mxu0 %vm3427_vm11, %v4685_v41  ;;  %7356 = vmatprep.mubr.msk.f32.mxu1 %vm3427_vm11, %v4685_v41  ;;  %v5105_v41 = vld [vmem:[#allocation11 + $0x1000] sm:$0xff] }
 0x885   :  { %4855 = vmatmul.mubr.f32.vlgmr.msra.gmra.mrb[28].mxu0 %v4684_v45  ;;  %4926 = vmatmul.mubr.f32.vlgmr.msra.gmra.mrb[26].mxu1 %v4684_v45  ;;  %v13622_v45 = vld [vmem:[#allocation30_spill] sm:$0xff]  ;;  %v9384_v52 = vpack.c.bf16 %v5105_v41, %v5101_v60  ;;  %v5126_v60 = vld [vmem:[#allocation11 + $0x10a8] sm:$0xff] }
 0x886   :  { %9293 = vmatpush1.bf16.msra.mxu1 %v12103_v53  ;;  %5012 = vmatprep.mubr.f32.mxu1 %v4945_v5  ;;  %v9382_v5 = vpack.c.bf16 %v5106_v34, %v5102_v14  ;;  %v5117_v14 = vld [vmem:[#allocation11 + $0x1060] sm:$0xff]  ;;  %v5130_v41 = vld [vmem:[#allocation11 + $0x10c8] sm:$0xff] }
 0x887   :  { %9295 = vmatprep.subr.bf16.mxu1 %v12111_v4  ;;  %v5121_v34 = vld [vmem:[#allocation11 + $0x1080] sm:$0xff] }
 0x88a   :  { %9297 = vmatpush1.bf16.msra.mxu1 %v12116_v27 }
 0x88b   :  { %9299 = vmatprep.subr.bf16.mxu1 %v12125_v62 }
 0x88e   :  { %9301 = vmatpush1.bf16.msra.mxu1 %v12132_v29 }
 0x88f   :  { %9303 = vmatprep.subr.bf16.mxu1 %v12137_v39 }
 0x892   :  { %9305 = vmatpush1.bf16.msra.mxu1 %v12144_v61 }
 0x893   :  { %9307 = vmatprep.subr.bf16.mxu1 %v12148_v11 }
 0x896   :  { %9309 = vmatpush1.bf16.msra.mxu1 %v12160_v17 }
 0x897   :  { %9311 = vmatprep.subr.bf16.mxu1 %v12164_v22 }
 0x89a   :  { %9313 = vmatpush1.bf16.msra.mxu1 %v12168_v44 }
 0x89b   :  { %9315 = vmatprep.subr.bf16.mxu1 %v12172_v48 }
 0x89e   :  { %9317 = vmatpush1.bf16.msra.mxu1 %v12176_v24 }
 0x89f   :  { %9319 = vmatprep.subr.bf16.mxu1 %v12180_v28 }
 0x8a2   :  { %9321 = vmatpush1.bf16.msra.mxu1 %v12184_v0 }
 0x8a3   :  { %9323 = vmatprep.subr.bf16.mxu1 %v12188_v37 }
 0x8a6   :  { %9325 = vmatpush1.bf16.msra.mxu1 %v12193_v35 }
 0x8a7   :  { %9327 = vmatprep.subr.bf16.mxu1 %v12197_v40 }
 0x8a8   :  { %v12889_v38 = vpop.permute.xlu1 %5347  ;;  %v12891_v19 = vpop.permute.xlu0 %5749 }
 0x8a9   :  { %13620 = vst [vmem:[#allocation71_spill] sm:$0xff] %v12891_v19  ;;  %v13629_v19 = vmov 0.0  }
 0x8aa   :  { %9329 = vmatpush1.bf16.msra.mxu1 %v12204_v7 }
 0x8ab   :  { %9331 = vmatprep.subr.bf16.mxu1 %v12208_v36 }
 0x8ac   :  { %v2364_v56 = vpop.permute.xlu1 %2363  ;;  %v12896_v50 = vpop.permute.xlu0 %2574 }
 0x8ad   :  { %v2365_v1 = vsel %vm437_vm6, %v12813_v18, %v2364_v56  ;;  %v2581_v59 = vmax.f32 %v13423_v13, %v12896_v50  ;;  %v5094_v18 = vld [vmem:[#allocation11 + $0xfa8] sm:$0xff]  ;;  %v5129_v13 = vld [vmem:[#allocation11 + $0x10c0] sm:$0xff] }
 0x8ae   :  { %9333 = vmatpush1.bf16.msra.mxu1 %v12214_v31  ;;  %v2369_v47 = vmax.f32 %v13621_v25, %v2365_v1  ;;  %v9378_v42 = vpack.c.bf16 %v5098_v57, %v5094_v18  ;;  %v13623_v56 = vld [vmem:[#allocation41_spill] sm:$0xff]  ;;  %v5113_v18 = vld [vmem:[#allocation11 + $0x1040] sm:$0xff]  ;;  %v13624_v57 = vld [vmem:[#allocation42_spill] sm:$0xff] }
 0x8af   :  { %9335 = vmatprep.subr.bf16.mxu1 %v12218_v49  ;;  %2585 = vrot.lane.b32.xlu0 %v2581_v59, %s10628_s15  ;;  %v5110_v1 = vld [vmem:[#allocation11 + $0x1028] sm:$0xff] }
 0x8b0   :  { %2374 = vrot.lane.b32.xlu1 %v2369_v47, %s10628_s15  ;;  %9379 = vmatprep.subr.bf16.mxu0 %v9378_v42  ;;  %v5114_v59 = vld [vmem:[#allocation11 + $0x1048] sm:$0xff]  ;;  %v5109_v47 = vld [vmem:[#allocation11 + $0x1020] sm:$0xff] }
 0x8b1   :  { %9381 = vmatpush1.bf16.msra.mxu0 %v9380_v32  ;;  %v9386_v25 = vpack.c.bf16 %v5114_v59, %v5110_v1  ;;  %v9388_v3 = vpack.c.bf16 %v5113_v18, %v5109_v47  ;;  %v5118_v42 = vld [vmem:[#allocation11 + $0x1068] sm:$0xff]  ;;  %v9392_v1 = vpack.c.bf16 %v5121_v34, %v5117_v14  ;;  %v10401_v59 = vld [vmem:[#allocation2 + $0xa] sm:$0x3]  ;;  %v9394_v47 = vpack.c.bf16 %v5130_v41, %v5126_v60  ;;  %v5125_v18 = vld [vmem:[#allocation11 + $0x10a0] sm:$0xff] }
 0x8b2   :  { %9337 = vmatpush1.bf16.msra.mxu1 %v12227_v54  ;;  %9383 = vmatprep.subr.bf16.mxu0 %v9382_v5  ;;  %v9390_v32 = vpack.c.bf16 %v5122_v9, %v5118_v42  ;;  %v13627_v5 = vld [vmem:[#allocation49_spill] sm:$0xff]  ;;  %v13628_v9 = vld [vmem:[#allocation54_spill] sm:$0xff]  ;;  %v5133_v14 = vld [vmem:[#allocation11 + $0x10e0] sm:$0xff] }
 0x8b3   :  { %9339 = vmatprep.subr.bf16.mxu1 %v12233_v30  ;;  %v5138_v42 = vld [vmem:[#allocation11 + $0x1108] sm:$0xff]  ;;  %v5137_v34 = vld [vmem:[#allocation11 + $0x1100] sm:$0xff] }
 0x8b4   :  { %v13631_v60 = vld [vmem:[#allocation56_spill] sm:$0xff]  ;;  %v13632_v41 = vld [vmem:[#allocation57_spill] sm:$0xff] }
 0x8b5   :  { %9385 = vmatpush1.bf16.msra.mxu0 %v9384_v52  ;;  %v4944_v52 = vsel %vm2909_vm9, %v10401_v59, %v13618_v20  ;;  %v5146_v20 = vld [vmem:[#allocation11 + $0x1148] sm:$0xff]  ;;  %v9400_v59 = vpack.c.bf16 %v5137_v34, %v5133_v14  ;;  %v13638_v14 = vld [vmem:[#allocation64_spill] sm:$0xff]  ;;  %v5096_v34 = vld [vmem:[#allocation11 + $0xfb8] sm:$0xff] }
 0x8b6   :  { %9341 = vmatpush1.bf16.msra.mxu1 %v12244_v10  ;;  %9387 = vmatprep.subr.bf16.mxu0 %v9386_v25  ;;  %v5134_v25 = vld [vmem:[#allocation11 + $0x10e8] sm:$0xff] }
 0x8b7   :  { %9343 = vmatprep.subr.bf16.mxu1 %v12248_v16 }
 0x8b9   :  { %9389 = vmatpush1.bf16.msra.mxu0 %v9388_v3  ;;  %v9396_v3 = vpack.c.bf16 %v5129_v13, %v5125_v18  ;;  %v13634_v13 = vld [vmem:[#allocation59_spill] sm:$0xff] }
 0x8ba   :  { %9345 = vmatpush1.bf16.msra.mxu1 %v13622_v45  ;;  %9391 = vmatprep.subr.bf16.mxu0 %v9390_v32  ;;  %v9398_v32 = vpack.c.bf16 %v5138_v42, %v5134_v25  ;;  %v5149_v25 = vld [vmem:[#allocation11 + $0x1160] sm:$0xff] }
 0x8bb   :  { %9347 = vmatprep.subr.bf16.mxu1 %v13623_v56  ;;  %v5153_v42 = vld [vmem:[#allocation11 + $0x1180] sm:$0xff] }
 0x8bd   :  { %9393 = vmatpush1.bf16.msra.mxu0 %v9392_v1  ;;  %v13633_v1 = vld [vmem:[#allocation58_spill] sm:$0xff] }
 0x8be   :  { %9349 = vmatpush1.bf16.msra.mxu1 %v13624_v57  ;;  %9395 = vmatprep.subr.bf16.mxu0 %v9394_v47 }
 0x8bf   :  { %9351 = vmatprep.subr.bf16.mxu1 %v13625_v33 }
 0x8c1   :  { %9397 = vmatpush1.bf16.msra.mxu0 %v9396_v3  ;;  %v13636_v3 = vld [vmem:[#allocation62_spill] sm:$0xff] }
 0x8c2   :  { %9353 = vmatpush1.bf16.msra.mxu1 %v13626_v58  ;;  %9399 = vmatprep.subr.bf16.mxu0 %v9398_v32  ;;  %v5150_v58 = vld [vmem:[#allocation11 + $0x1168] sm:$0xff]  ;;  %v13637_v32 = vld [vmem:[#allocation63_spill] sm:$0xff] }
 0x8c3   :  { %9355 = vmatprep.subr.bf16.mxu1 %v13627_v5  ;;  %v5142_v5 = vld [vmem:[#allocation11 + $0x1128] sm:$0xff] }
 0x8c5   :  { %5013 = vmatmul.mubr.f32.vlgmr.msra.gmra.mrb[30].mxu1 %v4944_v52  ;;  %v9402_v52 = vpack.c.bf16 %v5146_v20, %v5142_v5  ;;  %9401 = vmatpush1.bf16.msra.mxu0 %v9400_v59  ;;  %v9408_v5 = vpack.c.bf16 %v5153_v42, %v5149_v25  ;;  %v5100_v20 = vld [vmem:[#allocation11 + $0xfd8] sm:$0xff]  ;;  %v5095_v59 = vld [vmem:[#allocation11 + $0xfb0] sm:$0xff] }
 0x8c6   :  { %9357 = vmatpush1.bf16.msra.mxu1 %v13628_v9  ;;  %5083 = vmatprep.mubr.f32.mxu1 %v13629_v19  ;;  %v5141_v9 = vld [vmem:[#allocation11 + $0x1120] sm:$0xff]  ;;  %v5103_v25 = vld [vmem:[#allocation11 + $0xff0] sm:$0xff] }
 0x8c7   :  { %9359 = vmatprep.subr.bf16.mxu1 %v13630_v63  ;;  %v5145_v19 = vld [vmem:[#allocation11 + $0x1140] sm:$0xff]  ;;  %v5154_v63 = vld [vmem:[#allocation11 + $0x1188] sm:$0xff]  ;;  %9403 = vmatprep.subr.bf16.mxu0 %v9402_v52  ;;  %v13641_v42 = vld [vmem:[#allocation70_spill] sm:$0xff] }
 0x8c8   :  { %v9404_v47 = vpack.c.bf16 %v5145_v19, %v5141_v9  ;;  %v9406_v18 = vpack.c.bf16 %v5154_v63, %v5150_v58  ;;  %v5099_v19 = vld [vmem:[#allocation11 + $0xfd0] sm:$0xff]  ;;  %v13639_v9 = vld [vmem:[#allocation65_spill] sm:$0xff]  ;;  %v5104_v63 = vld [vmem:[#allocation11 + $0xff8] sm:$0xff] }
 0x8c9   :  { %v5108_v58 = vld [vmem:[#allocation11 + $0x1018] sm:$0xff]  ;;  %v13640_v52 = vld [vmem:[#allocation24_spill] sm:$0xff] }
 0x8ca   :  { %9361 = vmatpush1.bf16.msra.mxu1 %v13631_v60  ;;  %v13635_v60 = vld [vmem:[#allocation60_spill] sm:$0xff]  ;;  %9405 = vmatpush1.bf16.msra.mxu0 %v9404_v47  ;;  %v9430_v47 = vpack.c.bf16 %v5108_v58, %v5104_v63  ;;  %v5123_v63 = vld [vmem:[#allocation11 + $0x1090] sm:$0xff]  ;;  %v5128_v58 = vld [vmem:[#allocation11 + $0x10b8] sm:$0xff] }
 0x8cb   :  { %9363 = vmatprep.subr.bf16.mxu1 %v13632_v41  ;;  %9407 = vmatprep.subr.bf16.mxu0 %v9406_v18  ;;  %v5107_v18 = vld [vmem:[#allocation11 + $0x1010] sm:$0xff] }
 0x8ce   :  { %9365 = vmatpush1.bf16.msra.mxu1 %v13633_v1  ;;  %9409 = vmatpush1.bf16.msra.mxu0 %v9408_v5  ;;  %v9432_v5 = vpack.c.bf16 %v5107_v18, %v5103_v25  ;;  %v5115_v1 = vld [vmem:[#allocation11 + $0x1050] sm:$0xff] }
 0x8cf   :  { %9367 = vmatprep.subr.bf16.mxu1 %v13634_v13  ;;  %v5111_v13 = vld [vmem:[#allocation11 + $0x1030] sm:$0xff] }
 0x8d0   :  { %v5135_v18 = vld [vmem:[#allocation11 + $0x10f0] sm:$0xff] }
 0x8d2   :  { %9369 = vmatpush1.bf16.msra.mxu1 %v13635_v60  ;;  %v9426_v60 = vpack.c.bf16 %v5100_v20, %v5096_v34  ;;  %v5124_v34 = vld [vmem:[#allocation11 + $0x1098] sm:$0xff]  ;;  %v9436_v20 = vpack.c.bf16 %v5115_v1, %v5111_v13  ;;  %v5139_v1 = vld [vmem:[#allocation11 + $0x1110] sm:$0xff] }
 0x8d3   :  { %9371 = vmatprep.subr.bf16.mxu1 %v13636_v3  ;;  %v9428_v3 = vpack.c.bf16 %v5099_v19, %v5095_v59  ;;  %v5119_v19 = vld [vmem:[#allocation11 + $0x1070] sm:$0xff]  ;;  %v5144_v13 = vld [vmem:[#allocation11 + $0x1138] sm:$0xff] }
 0x8d4   :  { %v9440_v41 = vpack.c.bf16 %v5123_v63, %v5119_v19  ;;  %v5156_v19 = vld [vmem:[#allocation11 + $0x1198] sm:$0xff] }
 0x8d6   :  { %9373 = vmatpush1.bf16.msra.mxu1 %v13637_v32  ;;  %v5112_v32 = vld [vmem:[#allocation11 + $0x1038] sm:$0xff] }
 0x8d7   :  { %9375 = vmatprep.subr.bf16.mxu1 %v13638_v14  ;;  %v5116_v14 = vld [vmem:[#allocation11 + $0x1058] sm:$0xff] }
 0x8da   :  { %9377 = vmatpush1.bf16.msra.mxu1 %v13639_v9  ;;  %v9434_v9 = vpack.c.bf16 %v5116_v14, %v5112_v32  ;;  %v5140_v32 = vld [vmem:[#allocation11 + $0x1118] sm:$0xff] }
 0x8db   :  { %5043 = vmatprep.subr.mxu1 %v13640_v52  ;;  %v5120_v52 = vld [vmem:[#allocation11 + $0x1078] sm:$0xff] }
 0x8dc   :  { %v9438_v59 = vpack.c.bf16 %v5124_v34, %v5120_v52  ;;  %v5143_v34 = vld [vmem:[#allocation11 + $0x1130] sm:$0xff] }
 0x8de   :  { %5044 = vmatpush1.msra.mxu1 %v13641_v42  ;;  %v5132_v42 = vld [vmem:[#allocation11 + $0x10d8] sm:$0xff] }
 0x8df   :  { %7357 = vmatmul.mubr.msk.f32.vlgmr.msra.gmra.mrb[30].mxu1 %vm2923_vm10, %v12808_v43  ;;  %9427 = vmatprep.subr.bf16.mxu1 %v9426_v60  ;;  %v9442_v43 = vpack.c.bf16 %v5132_v42, %v5128_v58  ;;  %v5127_v60 = vld [vmem:[#allocation11 + $0x10b0] sm:$0xff] }
 0x8e0   :  { %9429 = vmatpush1.bf16.msra.mxu1 %v9428_v3  ;;  %v5131_v3 = vld [vmem:[#allocation11 + $0x10d0] sm:$0xff] }
 0x8e1   :  { %9431 = vmatprep.subr.bf16.mxu1 %v9430_v47  ;;  %v5136_v47 = vld [vmem:[#allocation11 + $0x10f8] sm:$0xff]  ;;  %v9444_v14 = vpack.c.bf16 %v5131_v3, %v5127_v60  ;;  %v5155_v42 = vld [vmem:[#allocation11 + $0x1190] sm:$0xff]  ;;  %v2355_v60 = vpop.permute.xlu1 %2354 }
 0x8e2   :  { %v9446_v25 = vpack.c.bf16 %v5140_v32, %v5136_v47  ;;  %v2356_v3 = vsel %vm437_vm6, %v12877_v26, %v2355_v60  ;;  %v5158_v47 = vld [vmem:[#allocation11 + $0x11a8] sm:$0xff]  ;;  %v5165_v60 = vld [vmem:[#allocation11 + $0x11e0] sm:$0xff] }
 0x8e3   :  { %v5162_v32 = vld [vmem:[#allocation11 + $0x11c8] sm:$0xff] }
 0x8e4   :  { %9433 = vmatpush1.bf16.msra.mxu1 %v9432_v5  ;;  %v9448_v5 = vpack.c.bf16 %v5139_v1, %v5135_v18 }
 0x8e5   :  { %9435 = vmatprep.subr.bf16.mxu1 %v9434_v9  ;;  %v5148_v9 = vld [vmem:[#allocation11 + $0x1158] sm:$0xff] }
 0x8e6   :  { %v9450_v52 = vpack.c.bf16 %v5148_v9, %v5144_v13  ;;  %v9410_v9 = vpack.c.bf16 %v5162_v32, %v5158_v47  ;;  %v5169_v47 = vld [vmem:[#allocation11 + $0x1200] sm:$0xff]  ;;  %v5168_v32 = vld [vmem:[#allocation11 + $0x11f8] sm:$0xff] }
 0x8e8   :  { %9437 = vmatpush1.bf16.msra.mxu1 %v9436_v20  ;;  %v5147_v20 = vld [vmem:[#allocation11 + $0x1150] sm:$0xff]  ;;  %9411 = vmatprep.subr.bf16.mxu0 %v9410_v9  ;;  %v5174_v9 = vld [vmem:[#allocation11 + $0x1228] sm:$0xff] }
 0x8e9   :  { %9439 = vmatprep.subr.bf16.mxu1 %v9438_v59  ;;  %v5152_v59 = vld [vmem:[#allocation11 + $0x1178] sm:$0xff]  ;;  %v9452_v63 = vpack.c.bf16 %v5147_v20, %v5143_v34 }
 0x8ea   :  { %v9454_v58 = vpack.c.bf16 %v5156_v19, %v5152_v59  ;;  %v5164_v34 = vld [vmem:[#allocation11 + $0x11d8] sm:$0xff] }
 0x8ec   :  { %9441 = vmatpush1.bf16.msra.mxu1 %v9440_v41  ;;  %v5151_v41 = vld [vmem:[#allocation11 + $0x1170] sm:$0xff] }
 0x8ed   :  { %9443 = vmatprep.subr.bf16.mxu1 %v9442_v43  ;;  %v9456_v43 = vpack.c.bf16 %v5155_v42, %v5151_v41  ;;  %v5166_v42 = vld [vmem:[#allocation11 + $0x11e8] sm:$0xff] }
 0x8f0   :  { %9445 = vmatpush1.bf16.msra.mxu1 %v9444_v14  ;;  %v5157_v14 = vld [vmem:[#allocation11 + $0x11a0] sm:$0xff] }
 0x8f1   :  { %9447 = vmatprep.subr.bf16.mxu1 %v9446_v25  ;;  %v13642_v25 = vld [vmem:[#allocation29_spill] sm:$0xff] }
 0x8f2   :  { %v13643_v18 = vmax.f32 %v13642_v25, 0.0  ;;  %v5172_v25 = vld [vmem:[#allocation11 + $0x1218] sm:$0xff] }
 0x8f4   :  { %9449 = vmatpush1.bf16.msra.mxu1 %v9448_v5  ;;  %v2358_v1 = vmax.f32 %v13643_v18, %v2356_v3  ;;  %v5161_v5 = vld [vmem:[#allocation11 + $0x11c0] sm:$0xff]  ;;  %v5167_v18 = vld [vmem:[#allocation11 + $0x11f0] sm:$0xff] }
 0x8f5   :  { %9451 = vmatprep.subr.bf16.mxu1 %v9450_v52  ;;  %v5160_v52 = vld [vmem:[#allocation11 + $0x11b8] sm:$0xff]  ;;  %v9412_v59 = vpack.c.bf16 %v5161_v5, %v5157_v14  ;;  %v9462_v14 = vpack.c.bf16 %v5172_v25, %v5168_v32  ;;  %v5178_v5 = vld [vmem:[#allocation11 + $0x1248] sm:$0xff] }
 0x8f6   :  { %v9458_v19 = vpack.c.bf16 %v5164_v34, %v5160_v52  ;;  %v5173_v52 = vld [vmem:[#allocation11 + $0x1220] sm:$0xff]  ;;  %v9418_v34 = vpack.c.bf16 %v5178_v5, %v5174_v9  ;;  %v5182_v25 = vld [vmem:[#allocation11 + $0x1268] sm:$0xff] }
 0x8f7   :  { %9413 = vmatpush1.bf16.msra.mxu0 %v9412_v59  ;;  %v5176_v59 = vld [vmem:[#allocation11 + $0x1238] sm:$0xff]  ;;  %v5181_v9 = vld [vmem:[#allocation11 + $0x1260] sm:$0xff] }
 0x8f8   :  { %9453 = vmatpush1.bf16.msra.mxu1 %v9452_v63  ;;  %v5159_v63 = vld [vmem:[#allocation11 + $0x11b0] sm:$0xff]  ;;  %v5185_v5 = vld [vmem:[#allocation11 + $0x1280] sm:$0xff] }
 0x8f9   :  { %9455 = vmatprep.subr.bf16.mxu1 %v9454_v58  ;;  %v5163_v58 = vld [vmem:[#allocation11 + $0x11d0] sm:$0xff] }
 0x8fa   :  { %v9460_v26 = vpack.c.bf16 %v5163_v58, %v5159_v63  ;;  %v13644_v63 = vld [vmem:[#allocation53_spill] sm:$0xff] }
 0x8fb   :  { %v2557_v58 = vadd.f32 %v13644_v63, %v13543_v2 }
 0x8fc   :  { %9457 = vmatpush1.bf16.msra.mxu1 %v9456_v43  ;;  %v5170_v43 = vld [vmem:[#allocation11 + $0x1208] sm:$0xff] }
 0x8fd   :  { %9459 = vmatprep.subr.bf16.mxu1 %v9458_v19  ;;  %v9414_v3 = vpack.c.bf16 %v5170_v43, %v5166_v42  ;;  %v5180_v19 = vld [vmem:[#allocation11 + $0x1258] sm:$0xff] }
 0x8fe   :  { %v9466_v43 = vpack.c.bf16 %v5180_v19, %v5176_v59  ;;  %v5183_v59 = vld [vmem:[#allocation11 + $0x1270] sm:$0xff] }
 0x8ff   :  { %9415 = vmatprep.subr.bf16.mxu0 %v9414_v3  ;;  %v5179_v3 = vld [vmem:[#allocation11 + $0x1250] sm:$0xff] }
 0x900   :  { %9461 = vmatpush1.bf16.msra.mxu1 %v9460_v26  ;;  %v5187_v19 = vld [vmem:[#allocation11 + $0x1290] sm:$0xff] }
 0x901   :  { %9463 = vmatprep.subr.bf16.mxu1 %v9462_v14  ;;  %v2562_v14 = vmax.f32 %v2557_v58, 0.0 }
 0x922   :  { %v2375_v13 = vpop.permute.xlu1 %2374 }
 0x923   :  { %v2376_v20 = vsel %vm458_vm7, %v12881_v12, %v2375_v13  ;;  %v9416_v12 = vpack.c.bf16 %v5169_v47, %v5165_v60  ;;  %v5171_v13 = vld [vmem:[#allocation11 + $0x1210] sm:$0xff] }
 0x924   :  { %v2378_v41 = vmax.f32 %v2358_v1, %v2376_v20  ;;  %v9464_v1 = vpack.c.bf16 %v5171_v13, %v5167_v18  ;;  %v5177_v20 = vld [vmem:[#allocation11 + $0x1240] sm:$0xff]  ;;  %v5175_v60 = vld [vmem:[#allocation11 + $0x1230] sm:$0xff] }
 0x925   :  { %9417 = vmatpush1.bf16.msra.mxu0 %v9416_v12  ;;  %v9420_v42 = vpack.c.bf16 %v5177_v20, %v5173_v52  ;;  %v9468_v32 = vpack.c.bf16 %v5179_v3, %v5175_v60  ;;  %v5186_v12 = vld [vmem:[#allocation11 + $0x1288] sm:$0xff]  ;;  %v13646_v18 = vld [vmem:[#allocation66_spill] sm:$0xff]  ;;  %v5184_v52 = vld [vmem:[#allocation11 + $0x1278] sm:$0xff] }
 0x926   :  { %2380 = vst.msk [vmem:[#allocation2 + $0x12] sm:$0x3] %vm462_vm8, %v2378_v41  ;;  %9465 = vmatpush1.bf16.msra.mxu1 %v9464_v1  ;;  %v13645_v41 = vld [vmem:[#allocation67_spill] sm:$0xff]  ;;  %9419 = vmatprep.subr.bf16.mxu0 %v9418_v34  ;;  %v9422_v1 = vpack.c.bf16 %v5186_v12, %v5182_v25  ;;  %v9424_v34 = vpack.c.bf16 %v5185_v5, %v5181_v9  ;;  %v5191_v3 = vld [vmem:[#allocation11 + $0x12b0] sm:$0xff] }
 0x927   :  { %v12948_v26 = vadd.f32 %v13645_v41, %v13545_v15  ;;  %9467 = vmatprep.subr.bf16.mxu1 %v9466_v43  ;;  %v12954_v15 = vadd.f32 %v13646_v18, %v13548_v6  ;;  %v5188_v20 = vld [vmem:[#allocation11 + $0x1298] sm:$0xff]  ;;  %v9472_v6 = vpack.c.bf16 %v5187_v19, %v5183_v59  ;;  %v5190_v41 = vld [vmem:[#allocation11 + $0x12a8] sm:$0xff]  ;;  %v5189_v43 = vld [vmem:[#allocation11 + $0x12a0] sm:$0xff] }
 0x928   :  { %v9470_v63 = vpack.c.bf16 %v5188_v20, %v5184_v52  ;;  %v5192_v60 = vld [vmem:[#allocation11 + $0x12b8] sm:$0xff] }
 0x929   :  { %9421 = vmatpush1.bf16.msra.mxu0 %v9420_v42  ;;  %v13427_v13 = vmax.f32 %v12948_v26, 0.0  ;;  %v13426_v58 = vmax.f32 %v12954_v15, 0.0  ;;  %v13647_v42 = vmax.f32 %v12886_v21, 0.0  ;;  %v13648_v21 = vld [vmem:[#allocation68_spill] sm:$0xff] }
 0x92a   :  { %9469 = vmatpush1.bf16.msra.mxu1 %v9468_v32  ;;  %9423 = vmatprep.subr.bf16.mxu0 %v9422_v1  ;;  %v12975_v25 = vadd.f32 %v13648_v21, %v13605_v55  ;;  %v13654_v21 = vld [vmem:[#allocation54_spill] sm:$0xff] }
 0x92b   :  { %9471 = vmatprep.subr.bf16.mxu1 %v9470_v63 }
 0x92c   :  { %v13428_v18 = vmax.f32 %v12975_v25, 0.0 }
 0x92d   :  { %v5748_v47 = vld [vmem:[#allocation2 + $0x12] sm:$0x3]  ;;  %9425 = vmatpush1.bf16.msra.mxu0 %v9424_v34  ;;  %v13650_v34 = vmax.f32 %v12836_v8, 0.0 }
 0x92e   :  { %5753 = vrot.lane.b32.xlu1 %v5748_v47, %s10637_s24  ;;  %6155 = vrot.lane.b32.xlu0 %v5748_v47, %s10639_s10  ;;  %v12969_v47 = vpop.permute.xlu0 %2565  ;;  %v13651_v8 = vld [vmem:[#allocation72_spill] sm:$0xff] }
 0x92f   :  { %9473 = vmatpush1.bf16.msra.mxu1 %v9472_v6  ;;  %5244 = vmatprep.subr.mxu0 %v5190_v41 }
 0x930   :  { %5315 = vmatprep.subr.mxu1 %v5192_v60  ;;  %v10402_v60 = vld [vmem:[#allocation2 + $0xc] sm:$0x3] }
 0x931   :  { %5245 = vmatpush1.msra.mxu0 %v5189_v43  ;;  %v13653_v43 = vld [vmem:[#allocation49_spill] sm:$0xff] }
 0x932   :  { %2576 = vrot.lane.b32.xlu1 %v2562_v14, %s10632_s6  ;;  %2787 = vrot.lane.b32.xlu0 %v13427_v13, %s10632_s6  ;;  %v12971_v32 = vpop.permute.xlu0 %2585 }
 0x933   :  { %5316 = vmatpush1.msra.mxu1 %v5191_v3  ;;  %9475 = vmatprep.subr.bf16.mxu0 %v12064_v51  ;;  %v5350_v3 = vsel %vm2909_vm9, %v10402_v60, %v13651_v8 }
 0x936   :  { %2567 = vrot.lane.b32.xlu1 %v13647_v42, %s10632_s6  ;;  %2778 = vrot.lane.b32.xlu0 %v13426_v58, %s10632_s6  ;;  %v13652_v42 = vld [vmem:[#allocation48_spill] sm:$0xff]  ;;  %v13668_v58 = vld [vmem:[#allocation73_spill] sm:$0xff] }
 0x937   :  { %v13669_v13 = vmax.f32 %v13668_v58, 0.0 }
 0x9a0   :  { %v12977_v12 = vpop.permute.xlu1 %5753  ;;  %v12979_v14 = vpop.permute.xlu0 %6155 }
 0x9a1   :  { %13649 = vst [vmem:[#allocation25_spill] sm:$0xff] %v12979_v14 }
 0x9a4   :  { %v2577_v1 = vpop.permute.xlu1 %2576  ;;  %v12982_v9 = vpop.permute.xlu0 %2787 }
 0x9a5   :  { %v2578_v5 = vsel %vm437_vm6, %v12896_v50, %v2577_v1  ;;  %v2794_v52 = vmax.f32 %v13428_v18, %v12982_v9  ;;  %v5351_v50 = vsel %vm256_vm5, %v13651_v8, %v12889_v38  ;;  %v13655_v1 = vmov 0.0   ;;  %v13046_v8 = vld [vmem:[#allocation8 + $0x2c8] sm:$0xff] }
 0x9a6   :  { %v2582_v55 = vmax.f32 %v13650_v34, %v2578_v5  ;;  %v13656_v5 = vld [vmem:[#allocation55_spill] sm:$0xff]  ;;  %v13658_v34 = vld [vmem:[#allocation57_spill] sm:$0xff]  ;;  %13666 = vst [vmem:[#allocation36_spill] sm:$0xff] %v13046_v8 }
 0x9a7   :  { %2798 = vrot.lane.b32.xlu0 %v2794_v52, %s10628_s15  ;;  %v13657_v52 = vld [vmem:[#allocation56_spill] sm:$0xff] }
 0x9a8   :  { %2587 = vrot.lane.b32.xlu1 %v2582_v55, %s10628_s15  ;;  %v13659_v55 = vld [vmem:[#allocation58_spill] sm:$0xff]  ;;  %v2568_v60 = vpop.permute.xlu1 %2567 }
 0x9b2   :  { %v5085_v20 = vpop.f32.mrb[30].mxu1 }
 0x9b3   :  { %v10299_v59 = vadd.f32 %v5085_v20, %v12449_v46  ;;  %v5087_v19 = vpop.f32.mrb[31].mxu1  ;;  %v13660_v20 = vld [vmem:[#allocation59_spill] sm:$0xff] }
 0x9b4   :  { %v10300_v63 = vadd.f32 %v5087_v19, %v13555_v23  ;;  %v13662_v19 = vld [vmem:[#allocation62_spill] sm:$0xff] }
 0x9b5   :  { %v5090_v41 = vmax.f32 %v10299_v59, 0.0  ;;  %v13661_v59 = vld [vmem:[#allocation60_spill] sm:$0xff] }
 0x9b6   :  { %v5091_v6 = vmax.f32 %v10300_v63, 0.0  ;;  %v13663_v63 = vld [vmem:[#allocation63_spill] sm:$0xff] }
 0x9b8   :  { %7358 = vmatprep.mubr.msk.f32.mxu0 %vm3427_vm11, %v5091_v6  ;;  %7359 = vmatprep.mubr.msk.f32.mxu1 %vm3427_vm11, %v5091_v6  ;;  %v13664_v6 = vld [vmem:[#allocation64_spill] sm:$0xff] }
 0x9b9   :  { %5261 = vmatmul.mubr.f32.vlgmr.msra.gmra.mrb[28].mxu0 %v5090_v41  ;;  %5332 = vmatmul.mubr.f32.vlgmr.msra.gmra.mrb[26].mxu1 %v5090_v41  ;;  %v13665_v41 = vld [vmem:[#allocation65_spill] sm:$0xff] }
 0x9ba   :  { %9477 = vmatpush1.bf16.msra.mxu0 %v12103_v53  ;;  %5418 = vmatprep.mubr.f32.mxu0 %v5351_v50  ;;  %v13049_v50 = vld [vmem:[#allocation8 + $0x2c0] sm:$0xff] }
 0x9bb   :  { %9479 = vmatprep.subr.bf16.mxu0 %v12111_v4  ;;  %13667 = vst [vmem:[#allocation33_spill] sm:$0xff] %v13049_v50 }
 0x9be   :  { %9481 = vmatpush1.bf16.msra.mxu0 %v12116_v27 }
 0x9bf   :  { %9483 = vmatprep.subr.bf16.mxu0 %v12125_v62 }
 0x9c2   :  { %9485 = vmatpush1.bf16.msra.mxu0 %v12132_v29 }
 0x9c3   :  { %9487 = vmatprep.subr.bf16.mxu0 %v12137_v39 }
 0x9c6   :  { %9489 = vmatpush1.bf16.msra.mxu0 %v12144_v61 }
 0x9c7   :  { %9491 = vmatprep.subr.bf16.mxu0 %v12148_v11 }
 0x9ca   :  { %9493 = vmatpush1.bf16.msra.mxu0 %v12160_v17 }
 0x9cb   :  { %9495 = vmatprep.subr.bf16.mxu0 %v12164_v22 }
 0x9ce   :  { %9497 = vmatpush1.bf16.msra.mxu0 %v12168_v44 }
 0x9cf   :  { %9499 = vmatprep.subr.bf16.mxu0 %v12172_v48 }
 0x9d2   :  { %9501 = vmatpush1.bf16.msra.mxu0 %v12176_v24 }
 0x9d3   :  { %9503 = vmatprep.subr.bf16.mxu0 %v12180_v28 }
 0x9d6   :  { %9505 = vmatpush1.bf16.msra.mxu0 %v12184_v0 }
 0x9d7   :  { %9507 = vmatprep.subr.bf16.mxu0 %v12188_v37 }
 0x9da   :  { %9509 = vmatpush1.bf16.msra.mxu0 %v12193_v35 }
 0x9db   :  { %9511 = vmatprep.subr.bf16.mxu0 %v12197_v40 }
 0x9de   :  { %9513 = vmatpush1.bf16.msra.mxu0 %v12204_v7 }
 0x9df   :  { %9515 = vmatprep.subr.bf16.mxu0 %v12208_v36 }
 0x9e2   :  { %9517 = vmatpush1.bf16.msra.mxu0 %v12214_v31 }
 0x9e3   :  { %9519 = vmatprep.subr.bf16.mxu0 %v12218_v49 }
 0x9e6   :  { %9521 = vmatpush1.bf16.msra.mxu0 %v12227_v54 }
 0x9e7   :  { %9523 = vmatprep.subr.bf16.mxu0 %v12233_v30 }
 0x9ea   :  { %9525 = vmatpush1.bf16.msra.mxu0 %v12244_v10 }
 0x9eb   :  { %9527 = vmatprep.subr.bf16.mxu0 %v12248_v16 }
 0x9ee   :  { %9529 = vmatpush1.bf16.msra.mxu0 %v13622_v45 }
 0x9ef   :  { %9531 = vmatprep.subr.bf16.mxu0 %v13623_v56 }
 0x9f2   :  { %9533 = vmatpush1.bf16.msra.mxu0 %v13624_v57 }
 0x9f3   :  { %9535 = vmatprep.subr.bf16.mxu0 %v13625_v33 }
 0x9f6   :  { %9537 = vmatpush1.bf16.msra.mxu0 %v13652_v42 }
 0x9f7   :  { %9539 = vmatprep.subr.bf16.mxu0 %v13653_v43  ;;  %v5544_v43 = vld [vmem:[#allocation11 + $0x1428] sm:$0xff] }
 0x9f9   :  { %5419 = vmatmul.mubr.f32.vlgmr.msra.gmra.mrb[34].mxu0 %v5350_v3  ;;  %v2569_v3 = vsel %vm437_vm6, %v12969_v47, %v2568_v60 }
 0x9fa   :  { %9541 = vmatpush1.bf16.msra.mxu0 %v13654_v21  ;;  %5489 = vmatprep.mubr.f32.mxu0 %v13655_v1  ;;  %v2571_v18 = vmax.f32 %v13669_v13, %v2569_v3  ;;  %v5499_v13 = vld [vmem:[#allocation11 + $0x12c0] sm:$0xff]  ;;  %v5521_v1 = vld [vmem:[#allocation11 + $0x1370] sm:$0xff] }
 0x9fb   :  { %9543 = vmatprep.subr.bf16.mxu0 %v13656_v5  ;;  %v5503_v3 = vld [vmem:[#allocation11 + $0x12e0] sm:$0xff]  ;;  %v5520_v5 = vld [vmem:[#allocation11 + $0x1368] sm:$0xff] }
 0x9fc   :  { %v5515_v21 = vld [vmem:[#allocation11 + $0x1340] sm:$0xff] }
 0x9fe   :  { %9545 = vmatpush1.bf16.msra.mxu0 %v13657_v52 }
 0x9ff   :  { %9547 = vmatprep.subr.bf16.mxu0 %v13658_v34  ;;  %v5510_v34 = vld [vmem:[#allocation11 + $0x1318] sm:$0xff] }
 0xa02   :  { %9549 = vmatpush1.bf16.msra.mxu0 %v13659_v55  ;;  %v13670_v55 = vld [vmem:[#allocation69_spill] sm:$0xff] }
 0xa03   :  { %9551 = vmatprep.subr.bf16.mxu0 %v13660_v20  ;;  %v5505_v20 = vld [vmem:[#allocation11 + $0x12f0] sm:$0xff]  ;;  %v2770_v47 = vadd.f32 %v13670_v55, %v13543_v2 }
 0xa06   :  { %9553 = vmatpush1.bf16.msra.mxu0 %v13661_v59  ;;  %v5504_v59 = vld [vmem:[#allocation11 + $0x12e8] sm:$0xff] }
 0xa07   :  { %9555 = vmatprep.subr.bf16.mxu0 %v13662_v19 }
 0xa0a   :  { %9557 = vmatpush1.bf16.msra.mxu0 %v13663_v63  ;;  %v5506_v63 = vld [vmem:[#allocation11 + $0x12f8] sm:$0xff] }
 0xa0b   :  { %9559 = vmatprep.subr.bf16.mxu0 %v13664_v6 }
 0xa0e   :  { %9561 = vmatpush1.bf16.msra.mxu0 %v13665_v41 }
 0xa0f   :  { %5449 = vmatprep.subr.mxu0 %v13046_v8  ;;  %v5502_v8 = vld [vmem:[#allocation11 + $0x12d8] sm:$0xff] }
 0xa10   :  { %v9610_v19 = vpack.c.bf16 %v5506_v63, %v5502_v8  ;;  %v5513_v8 = vld [vmem:[#allocation11 + $0x1330] sm:$0xff] }
 0xa12   :  { %5450 = vmatpush1.msra.mxu0 %v13049_v50  ;;  %v5500_v50 = vld [vmem:[#allocation11 + $0x12c8] sm:$0xff]  ;;  %9611 = vmatprep.subr.bf16.mxu1 %v9610_v19 }
 0xa13   :  { %7360 = vmatmul.mubr.msk.f32.vlgmr.msra.gmra.mrb[34].mxu0 %vm2923_vm10, %v12889_v38  ;;  %v5501_v38 = vld [vmem:[#allocation11 + $0x12d0] sm:$0xff]  ;;  %v9562_v60 = vpack.c.bf16 %v5504_v59, %v5500_v50  ;;  %v5511_v59 = vld [vmem:[#allocation11 + $0x1320] sm:$0xff]  ;;  %v5518_v50 = vld [vmem:[#allocation11 + $0x1358] sm:$0xff] }
 0xa14   :  { %v9612_v58 = vpack.c.bf16 %v5505_v20, %v5501_v38  ;;  %v5507_v20 = vld [vmem:[#allocation11 + $0x1300] sm:$0xff]  ;;  %v2775_v38 = vmax.f32 %v2770_v47, 0.0  ;;  %v5524_v47 = vld [vmem:[#allocation11 + $0x1388] sm:$0xff] }
 0xa15   :  { %9563 = vmatprep.subr.bf16.mxu0 %v9562_v60  ;;  %v9568_v19 = vpack.c.bf16 %v5511_v59, %v5507_v20  ;;  %v5519_v60 = vld [vmem:[#allocation11 + $0x1360] sm:$0xff] }
 0xa16   :  { %9613 = vmatpush1.bf16.msra.mxu1 %v9612_v58  ;;  %v5526_v58 = vld [vmem:[#allocation11 + $0x1398] sm:$0xff]  ;;  %v5523_v20 = vld [vmem:[#allocation11 + $0x1380] sm:$0xff] }
 0xa17   :  { %v5527_v59 = vld [vmem:[#allocation11 + $0x13a0] sm:$0xff] }
 0xa1a   :  { %v2588_v14 = vpop.permute.xlu1 %2587 }
 0xa1b   :  { %v2589_v41 = vsel %vm458_vm7, %v12971_v32, %v2588_v14  ;;  %v9564_v32 = vpack.c.bf16 %v5503_v3, %v5499_v13  ;;  %v5514_v14 = vld [vmem:[#allocation11 + $0x1338] sm:$0xff]  ;;  %v5516_v3 = vld [vmem:[#allocation11 + $0x1348] sm:$0xff] }
 0xa1c   :  { %v2591_v6 = vmax.f32 %v2571_v18, %v2589_v41  ;;  %v5508_v18 = vld [vmem:[#allocation11 + $0x1308] sm:$0xff]  ;;  %v9614_v63 = vpack.c.bf16 %v5514_v14, %v5510_v34  ;;  %v5509_v41 = vld [vmem:[#allocation11 + $0x1310] sm:$0xff]  ;;  %v5522_v13 = vld [vmem:[#allocation11 + $0x1378] sm:$0xff]  ;;  %v9570_v34 = vpack.c.bf16 %v5520_v5, %v5516_v3 }
 0xa1d   :  { %v9616_v55 = vpack.c.bf16 %v5513_v8, %v5509_v41  ;;  %9565 = vmatpush1.bf16.msra.mxu0 %v9564_v32  ;;  %v5517_v14 = vld [vmem:[#allocation11 + $0x1350] sm:$0xff]  ;;  %v5528_v32 = vld [vmem:[#allocation11 + $0x13a8] sm:$0xff] }
 0xa1e   :  { %2593 = vst.msk [vmem:[#allocation2 + $0x14] sm:$0x3] %vm462_vm8, %v2591_v6  ;;  %v5512_v6 = vld [vmem:[#allocation11 + $0x1328] sm:$0xff]  ;;  %9615 = vmatprep.subr.bf16.mxu1 %v9614_v63  ;;  %v9572_v63 = vpack.c.bf16 %v5519_v60, %v5515_v21  ;;  %v5525_v8 = vld [vmem:[#allocation11 + $0x1390] sm:$0xff]  ;;  %v9574_v5 = vpack.c.bf16 %v5528_v32, %v5524_v47  ;;  %v9576_v21 = vpack.c.bf16 %v5527_v59, %v5523_v20  ;;  %v5531_v60 = vld [vmem:[#allocation11 + $0x13c0] sm:$0xff] }
 0xa1f   :  { %v9566_v2 = vpack.c.bf16 %v5512_v6, %v5508_v18  ;;  %v5530_v18 = vld [vmem:[#allocation11 + $0x13b8] sm:$0xff]  ;;  %9617 = vmatpush1.bf16.msra.mxu1 %v9616_v55  ;;  %v9620_v6 = vpack.c.bf16 %v5521_v1, %v5517_v14  ;;  %v5532_v55 = vld [vmem:[#allocation11 + $0x13c8] sm:$0xff]  ;;  %v5537_v14 = vld [vmem:[#allocation11 + $0x13f0] sm:$0xff] }
 0xa20   :  { %v9622_v41 = vpack.c.bf16 %v5530_v18, %v5526_v58  ;;  %v5536_v1 = vld [vmem:[#allocation11 + $0x13e8] sm:$0xff]  ;;  %v5535_v58 = vld [vmem:[#allocation11 + $0x13e0] sm:$0xff]  ;;  %v5542_v18 = vld [vmem:[#allocation11 + $0x1418] sm:$0xff] }
 0xa21   :  { %9567 = vmatprep.subr.bf16.mxu0 %v9566_v2  ;;  %v5529_v2 = vld [vmem:[#allocation11 + $0x13b0] sm:$0xff]  ;;  %v5546_v47 = vld [vmem:[#allocation11 + $0x1438] sm:$0xff]  ;;  %v5540_v32 = vld [vmem:[#allocation11 + $0x1408] sm:$0xff] }
 0xa22   :  { %9569 = vmatpush1.bf16.msra.mxu0 %v9568_v19  ;;  %v9624_v3 = vpack.c.bf16 %v5529_v2, %v5525_v8  ;;  %v9630_v8 = vpack.c.bf16 %v5546_v47, %v5542_v18  ;;  %v5539_v2 = vld [vmem:[#allocation11 + $0x1400] sm:$0xff]  ;;  %v9582_v20 = vpack.c.bf16 %v5544_v43, %v5540_v32  ;;  %v5556_v43 = vld [vmem:[#allocation11 + $0x1488] sm:$0xff] }
 0xa23   :  { %9571 = vmatprep.subr.bf16.mxu0 %v9570_v34  ;;  %v9578_v34 = vpack.c.bf16 %v5536_v1, %v5532_v55  ;;  %v5543_v59 = vld [vmem:[#allocation11 + $0x1420] sm:$0xff]  ;;  %v5560_v18 = vld [vmem:[#allocation11 + $0x14a8] sm:$0xff] }
 0xa24   :  { %v9584_v1 = vpack.c.bf16 %v5543_v59, %v5539_v2  ;;  %v5559_v2 = vld [vmem:[#allocation11 + $0x14a0] sm:$0xff]  ;;  %v5566_v59 = vld [vmem:[#allocation11 + $0x14d8] sm:$0xff] }
 0xa25   :  { %v6154_v52 = vld [vmem:[#allocation2 + $0x14] sm:$0x3] }
 0xa26   :  { %6159 = vrot.lane.b32.xlu1 %v6154_v52, %s10637_s24  ;;  %6561 = vrot.lane.b32.xlu0 %v6154_v52, %s10639_s10  ;;  %v9618_v52 = vpack.c.bf16 %v5522_v13, %v5518_v50  ;;  %v5534_v50 = vld [vmem:[#allocation11 + $0x13d8] sm:$0xff] }
 0xa27   :  { %v5538_v13 = vld [vmem:[#allocation11 + $0x13f8] sm:$0xff]  ;;  %9573 = vmatpush1.bf16.msra.mxu0 %v9572_v63  ;;  %v5541_v63 = vld [vmem:[#allocation11 + $0x1410] sm:$0xff] }
 0xa28   :  { %9619 = vmatprep.subr.bf16.mxu1 %v9618_v52  ;;  %v9626_v19 = vpack.c.bf16 %v5538_v13, %v5534_v50  ;;  %v5533_v52 = vld [vmem:[#allocation11 + $0x13d0] sm:$0xff]  ;;  %9575 = vmatprep.subr.bf16.mxu0 %v9574_v5  ;;  %v5550_v50 = vld [vmem:[#allocation11 + $0x1458] sm:$0xff]  ;;  %v5548_v13 = vld [vmem:[#allocation11 + $0x1448] sm:$0xff] }
 0xa29   :  { %9621 = vmatpush1.bf16.msra.mxu1 %v9620_v6  ;;  %v9580_v6 = vpack.c.bf16 %v5535_v58, %v5531_v60  ;;  %v5554_v5 = vld [vmem:[#allocation11 + $0x1478] sm:$0xff]  ;;  %v5551_v60 = vld [vmem:[#allocation11 + $0x1460] sm:$0xff] }
 0xa2a   :  { %2789 = vrot.lane.b32.xlu1 %v2775_v38, %s10632_s6  ;;  %v13671_v38 = vmax.f32 %v12975_v25, 0.0  ;;  %9623 = vmatprep.subr.bf16.mxu1 %v9622_v41  ;;  %v9628_v25 = vpack.c.bf16 %v5537_v14, %v5533_v52  ;;  %v5545_v41 = vld [vmem:[#allocation11 + $0x1430] sm:$0xff]  ;;  %v5547_v52 = vld [vmem:[#allocation11 + $0x1440] sm:$0xff]  ;;  %v5558_v58 = vld [vmem:[#allocation11 + $0x1498] sm:$0xff] }
 0xa2b   :  { %9577 = vmatpush1.bf16.msra.mxu0 %v9576_v21  ;;  %v9632_v55 = vpack.c.bf16 %v5545_v41, %v5541_v63  ;;  %v5549_v21 = vld [vmem:[#allocation11 + $0x1450] sm:$0xff]  ;;  %v9588_v32 = vpack.c.bf16 %v5551_v60, %v5547_v52  ;;  %v5555_v63 = vld [vmem:[#allocation11 + $0x1480] sm:$0xff]  ;;  %v9590_v41 = vpack.c.bf16 %v5560_v18, %v5556_v43  ;;  %v5574_v60 = vld [vmem:[#allocation11 + $0x1518] sm:$0xff] }
 0xa2c   :  { %9579 = vmatprep.subr.bf16.mxu0 %v9578_v34  ;;  %v5562_v34 = vld [vmem:[#allocation11 + $0x14b8] sm:$0xff]  ;;  %v5567_v52 = vld [vmem:[#allocation11 + $0x14e0] sm:$0xff] }
 0xa2d   :  { %9625 = vmatpush1.bf16.msra.mxu1 %v9624_v3  ;;  %v9634_v3 = vpack.c.bf16 %v5554_v5, %v5550_v50  ;;  %v5564_v50 = vld [vmem:[#allocation11 + $0x14c8] sm:$0xff] }
 0xa2e   :  { %2780 = vrot.lane.b32.xlu1 %v13671_v38, %s10632_s6  ;;  %9627 = vmatprep.subr.bf16.mxu1 %v9626_v19  ;;  %v5552_v38 = vld [vmem:[#allocation11 + $0x1468] sm:$0xff]  ;;  %v5553_v19 = vld [vmem:[#allocation11 + $0x1470] sm:$0xff] }
 0xa2f   :  { %9581 = vmatpush1.bf16.msra.mxu0 %v9580_v6  ;;  %v9586_v14 = vpack.c.bf16 %v5552_v38, %v5548_v13  ;;  %v9636_v47 = vpack.c.bf16 %v5553_v19, %v5549_v21  ;;  %v5557_v6 = vld [vmem:[#allocation11 + $0x1490] sm:$0xff]  ;;  %v5568_v5 = vld [vmem:[#allocation11 + $0x14e8] sm:$0xff]  ;;  %v9592_v38 = vpack.c.bf16 %v5559_v2, %v5555_v63  ;;  %v5563_v21 = vld [vmem:[#allocation11 + $0x14c0] sm:$0xff] }
 0xa30   :  { %9583 = vmatprep.subr.bf16.mxu0 %v9582_v20  ;;  %v5570_v20 = vld [vmem:[#allocation11 + $0x14f8] sm:$0xff]  ;;  %v9594_v19 = vpack.c.bf16 %v5568_v5, %v5564_v50  ;;  %v9596_v18 = vpack.c.bf16 %v5567_v52, %v5563_v21  ;;  %v5575_v63 = vld [vmem:[#allocation11 + $0x1520] sm:$0xff] }
 0xa31   :  { %9629 = vmatpush1.bf16.msra.mxu1 %v9628_v25  ;;  %v9638_v25 = vpack.c.bf16 %v5562_v34, %v5558_v58  ;;  %v5572_v58 = vld [vmem:[#allocation11 + $0x1508] sm:$0xff]  ;;  %v5582_v2 = vld [vmem:[#allocation11 + $0x1558] sm:$0xff]  ;;  %v5583_v21 = vld [vmem:[#allocation11 + $0x1560] sm:$0xff] }
 0xa32   :  { %9631 = vmatprep.subr.bf16.mxu1 %v9630_v8  ;;  %v5561_v8 = vld [vmem:[#allocation11 + $0x14b0] sm:$0xff]  ;;  %v5576_v34 = vld [vmem:[#allocation11 + $0x1528] sm:$0xff] }
 0xa33   :  { %9585 = vmatpush1.bf16.msra.mxu0 %v9584_v1  ;;  %v9640_v13 = vpack.c.bf16 %v5561_v8, %v5557_v6  ;;  %v5565_v1 = vld [vmem:[#allocation11 + $0x14d0] sm:$0xff]  ;;  %v5571_v6 = vld [vmem:[#allocation11 + $0x1500] sm:$0xff]  ;;  %v9598_v8 = vpack.c.bf16 %v5576_v34, %v5572_v58  ;;  %v5588_v34 = vld [vmem:[#allocation11 + $0x1588] sm:$0xff] }
 0xa34   :  { %9587 = vmatprep.subr.bf16.mxu0 %v9586_v14  ;;  %v5578_v14 = vld [vmem:[#allocation11 + $0x1538] sm:$0xff]  ;;  %v9600_v5 = vpack.c.bf16 %v5575_v63, %v5571_v6  ;;  %v5591_v6 = vld [vmem:[#allocation11 + $0x15a0] sm:$0xff] }
 0xa35   :  { %9633 = vmatpush1.bf16.msra.mxu1 %v9632_v55  ;;  %v9642_v55 = vpack.c.bf16 %v5570_v20, %v5566_v59  ;;  %v5580_v59 = vld [vmem:[#allocation11 + $0x1548] sm:$0xff] }
 0xa36   :  { %9635 = vmatprep.subr.bf16.mxu1 %v9634_v3  ;;  %v5569_v3 = vld [vmem:[#allocation11 + $0x14f0] sm:$0xff]  ;;  %v5584_v20 = vld [vmem:[#allocation11 + $0x1568] sm:$0xff] }
 0xa37   :  { %9589 = vmatpush1.bf16.msra.mxu0 %v9588_v32  ;;  %v9644_v43 = vpack.c.bf16 %v5569_v3, %v5565_v1  ;;  %v5573_v32 = vld [vmem:[#allocation11 + $0x1510] sm:$0xff]  ;;  %v9602_v1 = vpack.c.bf16 %v5584_v20, %v5580_v59  ;;  %v5579_v3 = vld [vmem:[#allocation11 + $0x1540] sm:$0xff] }
 0xa38   :  { %9591 = vmatprep.subr.bf16.mxu0 %v9590_v41  ;;  %v5586_v41 = vld [vmem:[#allocation11 + $0x1578] sm:$0xff]  ;;  %v9604_v52 = vpack.c.bf16 %v5583_v21, %v5579_v3  ;;  %v5597_v59 = vld [vmem:[#allocation11 + $0x15d0] sm:$0xff]  ;;  %v5595_v20 = vld [vmem:[#allocation11 + $0x15c0] sm:$0xff] }
 0xa39   :  { %9637 = vmatpush1.bf16.msra.mxu1 %v9636_v47  ;;  %v9646_v47 = vpack.c.bf16 %v5578_v14, %v5574_v60  ;;  %v5590_v60 = vld [vmem:[#allocation11 + $0x1598] sm:$0xff] }
 0xa3a   :  { %9639 = vmatprep.subr.bf16.mxu1 %v9638_v25  ;;  %v5577_v25 = vld [vmem:[#allocation11 + $0x1530] sm:$0xff]  ;;  %v5594_v14 = vld [vmem:[#allocation11 + $0x15b8] sm:$0xff] }
 0xa3b   :  { %9593 = vmatpush1.bf16.msra.mxu0 %v9592_v38  ;;  %v9648_v50 = vpack.c.bf16 %v5577_v25, %v5573_v32  ;;  %v5581_v38 = vld [vmem:[#allocation11 + $0x1550] sm:$0xff]  ;;  %v9654_v58 = vpack.c.bf16 %v5594_v14, %v5590_v60  ;;  %v5587_v25 = vld [vmem:[#allocation11 + $0x1580] sm:$0xff] }
 0xa3c   :  { %9595 = vmatprep.subr.bf16.mxu0 %v9594_v19  ;;  %v5593_v32 = vld [vmem:[#allocation11 + $0x15b0] sm:$0xff]  ;;  %v9608_v63 = vpack.c.bf16 %v5591_v6, %v5587_v25  ;;  %v5909_v25 = vld [vmem:[#allocation11 + $0x1600] sm:$0xff] }
 0xa3d   :  { %9641 = vmatpush1.bf16.msra.mxu1 %v9640_v13  ;;  %v9650_v13 = vpack.c.bf16 %v5586_v41, %v5582_v2  ;;  %v5598_v2 = vld [vmem:[#allocation11 + $0x15d8] sm:$0xff]  ;;  %v5596_v41 = vld [vmem:[#allocation11 + $0x15c8] sm:$0xff] }
 0xa3e   :  { %9643 = vmatprep.subr.bf16.mxu1 %v9642_v55  ;;  %v5585_v55 = vld [vmem:[#allocation11 + $0x1570] sm:$0xff] }
 0xa3f   :  { %9597 = vmatpush1.bf16.msra.mxu0 %v9596_v18  ;;  %v9652_v19 = vpack.c.bf16 %v5585_v55, %v5581_v38  ;;  %v5589_v18 = vld [vmem:[#allocation11 + $0x1590] sm:$0xff]  ;;  %v13672_v38 = vmax.f32 %v12948_v26, 0.0 }
 0xa40   :  { %9599 = vmatprep.subr.bf16.mxu0 %v9598_v8  ;;  %v9656_v8 = vpack.c.bf16 %v5593_v32, %v5589_v18  ;;  %v5910_v18 = vld [vmem:[#allocation11 + $0x1608] sm:$0xff] }
 0xa41   :  { %9645 = vmatpush1.bf16.msra.mxu1 %v9644_v43  ;;  %v5592_v43 = vld [vmem:[#allocation11 + $0x15a8] sm:$0xff] }
 0xa42   :  { %9647 = vmatprep.subr.bf16.mxu1 %v9646_v47  ;;  %v9606_v47 = vpack.c.bf16 %v5592_v43, %v5588_v34  ;;  %v5906_v43 = vld [vmem:[#allocation11 + $0x15e8] sm:$0xff] }
 0xa43   :  { %9601 = vmatpush1.bf16.msra.mxu0 %v9600_v5  ;;  %v9746_v32 = vpack.c.bf16 %v5910_v18, %v5906_v43  ;;  %v5929_v43 = vld [vmem:[#allocation11 + $0x16a0] sm:$0xff] }
 0xa44   :  { %9603 = vmatprep.subr.bf16.mxu0 %v9602_v1  ;;  %v5933_v18 = vld [vmem:[#allocation11 + $0x16c0] sm:$0xff] }
 0xa45   :  { %9649 = vmatpush1.bf16.msra.mxu1 %v9648_v50 }
 0xa46   :  { %9651 = vmatprep.subr.bf16.mxu1 %v9650_v13 }
 0xa47   :  { %9605 = vmatpush1.bf16.msra.mxu0 %v9604_v52 }
 0xa48   :  { %9607 = vmatprep.subr.bf16.mxu0 %v9606_v47  ;;  %v5905_v47 = vld [vmem:[#allocation11 + $0x15e0] sm:$0xff] }
 0xa49   :  { %9653 = vmatpush1.bf16.msra.mxu1 %v9652_v19 }
 0xa4a   :  { %9655 = vmatprep.subr.bf16.mxu1 %v9654_v58  ;;  %v2779_v58 = vpop.permute.xlu0 %2778 }
 0xa4b   :  { %9609 = vmatpush1.bf16.msra.mxu0 %v9608_v63 }
 0xa4c   :  { %5650 = vmatprep.subr.mxu0 %v5596_v41  ;;  %v9748_v41 = vpack.c.bf16 %v5909_v25, %v5905_v47  ;;  %v5938_v47 = vld [vmem:[#allocation11 + $0x16e8] sm:$0xff]  ;;  %v9760_v25 = vpack.c.bf16 %v5933_v18, %v5929_v43 }
 0xa4d   :  { %9657 = vmatpush1.bf16.msra.mxu1 %v9656_v8  ;;  %v13674_v8 = vmax.f32 %v12954_v15, 0.0  ;;  %v5926_v15 = vld [vmem:[#allocation11 + $0x1688] sm:$0xff] }
 0xa4e   :  { %5721 = vmatprep.subr.mxu1 %v5598_v2  ;;  %v2799_v6 = vpop.permute.xlu0 %2798  ;;  %v5970_v43 = vld [vmem:[#allocation11 + $0x17e8] sm:$0xff] }
 0xa4f   :  { %5651 = vmatpush1.msra.mxu0 %v5595_v20  ;;  %v5974_v18 = vld [vmem:[#allocation11 + $0x1808] sm:$0xff] }
 0xa50   :  { %9747 = vmatprep.subr.bf16.mxu0 %v9746_v32  ;;  %v5942_v32 = vld [vmem:[#allocation11 + $0x1708] sm:$0xff] }
 0xa51   :  { %5722 = vmatpush1.msra.mxu1 %v5597_v59  ;;  %v5914_v59 = vld [vmem:[#allocation11 + $0x1628] sm:$0xff] }
 0xa52   :  { %9659 = vmatprep.subr.bf16.mxu1 %v12064_v51 }
 0xa98   :  { %v13070_v50 = vpop.permute.xlu1 %6159 }
 0xa9c   :  { %v2790_v5 = vpop.permute.xlu1 %2789 }
 0xa9d   :  { %v2791_v13 = vsel %vm437_vm6, %v12982_v9, %v2790_v5  ;;  %v13673_v9 = vld [vmem:[#allocation71_spill] sm:$0xff]  ;;  %v5918_v5 = vld [vmem:[#allocation11 + $0x1648] sm:$0xff] }
 0xa9e   :  { %v2795_v55 = vmax.f32 %v13672_v38, %v2791_v13  ;;  %v5757_v26 = vsel %vm256_vm5, %v13673_v9, %v12977_v12  ;;  %v5913_v13 = vld [vmem:[#allocation11 + $0x1620] sm:$0xff] }
 0xa9f   :  { %v5917_v38 = vld [vmem:[#allocation11 + $0x1640] sm:$0xff] }
 0xaa0   :  { %2800 = vrot.lane.b32.xlu1 %v2795_v55, %s10628_s15  ;;  %v2781_v14 = vpop.permute.xlu1 %2780  ;;  %s7234_s15 = sshll.u32 %s10642_s0, 4  ;;  %s7235_s15 = int_to_ptr.vmem [resolvable:$true] %s7234_s15 }
 0xaa1   :  { %v2782_v34 = vsel %vm437_vm6, %v2779_v58, %v2781_v14  ;;  %v5930_v14 = vld [vmem:[#allocation11 + $0x16a8] sm:$0xff]  ;;  %s10586_s6 = scalar_lea.vmem %s7235_s15, 32  ;;  %p10591_p9 = scmp.lt.s32.totalorder %s7235_s15, %s7235_s15 }
 0xaa2   :  { %v2784_v63 = vmax.f32 %v13674_v8, %v2782_v34  ;;  %v5934_v58 = vld [vmem:[#allocation11 + $0x16c8] sm:$0xff]  ;;  %v9762_v8 = vpack.c.bf16 %v5942_v32, %v5938_v47  ;;  %v10405_v32 = vld [vmem:[#allocation2 + $0xe] sm:$0x3]  ;;  %p10587_p8 = scmp.ne.s32.totalorder %s7235_s15, %s10586_s6  ;;  %p10592_p10 = scmp.lt.s32.totalorder %s10586_s6, %s10586_s6 }
 0xaa3   :  { %v9758_v34 = vpack.c.bf16 %v5934_v58, %v5930_v14  ;;  %v5961_v58 = vld [vmem:[#allocation11 + $0x17a0] sm:$0xff]  ;;  %v13675_v47 = vld [vmem:[#allocation49_spill] sm:$0xff] }
 0xaa4   :  { %p10593_p11 = por %p10592_p10, %p10591_p9 }
 0xaa6   :  { %p10594_p12 = pnand %p10593_p11, %p10587_p8 }
 0xae6   :  { %v5491_v1 = vpop.f32.mrb[34].mxu0 }
 0xae7   :  { %v10301_v3 = vadd.f32 %v5491_v1, %v12449_v46  ;;  %v5493_v21 = vpop.f32.mrb[35].mxu0  ;;  %v9750_v1 = vpack.c.bf16 %v5918_v5, %v5914_v59  ;;  %v5950_v59 = vld [vmem:[#allocation11 + $0x1748] sm:$0xff] }
 0xae8   :  { %v10302_v19 = vadd.f32 %v5493_v21, %v13555_v23  ;;  %v5922_v21 = vld [vmem:[#allocation11 + $0x1668] sm:$0xff] }
 0xae9   :  { %v5496_v60 = vmax.f32 %v10301_v3, 0.0  ;;  %v9752_v3 = vpack.c.bf16 %v5917_v38, %v5913_v13  ;;  %v5945_v13 = vld [vmem:[#allocation11 + $0x1720] sm:$0xff] }
 0xaea   :  { %v5497_v52 = vmax.f32 %v10302_v19, 0.0  ;;  %v9754_v19 = vpack.c.bf16 %v5926_v15, %v5922_v21  ;;  %v5949_v38 = vld [vmem:[#allocation11 + $0x1740] sm:$0xff] }
 0xaeb   :  { %v5953_v15 = vld [vmem:[#allocation11 + $0x1760] sm:$0xff] }
 0xaec   :  { %7361 = vmatprep.mubr.msk.f32.mxu0 %vm3427_vm11, %v5497_v52  ;;  %7362 = vmatprep.mubr.msk.f32.mxu1 %vm3427_vm11, %v5497_v52  ;;  %v5921_v52 = vld [vmem:[#allocation11 + $0x1660] sm:$0xff] }
 0xaed   :  { %5667 = vmatmul.mubr.f32.vlgmr.msra.gmra.mrb[28].mxu0 %v5496_v60  ;;  %5738 = vmatmul.mubr.f32.vlgmr.msra.gmra.mrb[26].mxu1 %v5496_v60  ;;  %v5925_v60 = vld [vmem:[#allocation11 + $0x1680] sm:$0xff] }
 0xaee   :  { %9661 = vmatpush1.bf16.msra.mxu1 %v12103_v53  ;;  %5824 = vmatprep.mubr.f32.mxu1 %v5757_v26  ;;  %v9756_v26 = vpack.c.bf16 %v5925_v60, %v5921_v52  ;;  %v5962_v52 = vld [vmem:[#allocation11 + $0x17a8] sm:$0xff] }
 0xaef   :  { %9663 = vmatprep.subr.bf16.mxu1 %v12111_v4  ;;  %9749 = vmatpush1.bf16.msra.mxu0 %v9748_v41  ;;  %v5946_v41 = vld [vmem:[#allocation11 + $0x1728] sm:$0xff] }
 0xaf0   :  { %9751 = vmatprep.subr.bf16.mxu0 %v9750_v1  ;;  %v9766_v5 = vpack.c.bf16 %v5950_v59, %v5946_v41  ;;  %v5958_v1 = vld [vmem:[#allocation11 + $0x1788] sm:$0xff]  ;;  %v13676_v41 = vld [vmem:[#allocation54_spill] sm:$0xff]  ;;  %v13677_v59 = vmov 0.0  }
 0xaf1   :  { %v5966_v60 = vld [vmem:[#allocation11 + $0x17c8] sm:$0xff] }
 0xaf2   :  { %9665 = vmatpush1.bf16.msra.mxu1 %v12116_v27  ;;  %v9774_v14 = vpack.c.bf16 %v5966_v60, %v5962_v52 }
 0xaf3   :  { %9667 = vmatprep.subr.bf16.mxu1 %v12125_v62  ;;  %9753 = vmatpush1.bf16.msra.mxu0 %v9752_v3  ;;  %v9768_v3 = vpack.c.bf16 %v5949_v38, %v5945_v13  ;;  %v13678_v13 = vld [vmem:[#allocation55_spill] sm:$0xff] }
 0xaf4   :  { %9755 = vmatprep.subr.bf16.mxu0 %v9754_v19  ;;  %v5957_v19 = vld [vmem:[#allocation11 + $0x1780] sm:$0xff] }
 0xaf6   :  { %9669 = vmatpush1.bf16.msra.mxu1 %v12132_v29 }
 0xaf7   :  { %9671 = vmatprep.subr.bf16.mxu1 %v12137_v39  ;;  %9757 = vmatpush1.bf16.msra.mxu0 %v9756_v26  ;;  %v9772_v26 = vpack.c.bf16 %v5957_v19, %v5953_v15  ;;  %v5990_v15 = vld [vmem:[#allocation11 + $0x1888] sm:$0xff] }
 0xaf8   :  { %9759 = vmatprep.subr.bf16.mxu0 %v9758_v34  ;;  %v5965_v34 = vld [vmem:[#allocation11 + $0x17c0] sm:$0xff]  ;;  %v13680_v19 = vld [vmem:[#allocation57_spill] sm:$0xff] }
 0xafa   :  { %9673 = vmatpush1.bf16.msra.mxu1 %v12144_v61 }
 0xafb   :  { %9675 = vmatprep.subr.bf16.mxu1 %v12148_v11  ;;  %9761 = vmatpush1.bf16.msra.mxu0 %v9760_v25  ;;  %v5756_v25 = vsel %vm2909_vm9, %v10405_v32, %v13673_v9  ;;  %v5977_v9 = vld [vmem:[#allocation11 + $0x1820] sm:$0xff]  ;;  %v13684_v32 = vld [vmem:[#allocation62_spill] sm:$0xff] }
 0xafc   :  { %9763 = vmatprep.subr.bf16.mxu0 %v9762_v8  ;;  %v9778_v8 = vpack.c.bf16 %v5974_v18, %v5970_v43  ;;  %v13683_v18 = vld [vmem:[#allocation60_spill] sm:$0xff] }
 0xafe   :  { %9677 = vmatpush1.bf16.msra.mxu1 %v12160_v17 }
 0xaff   :  { %9679 = vmatprep.subr.bf16.mxu1 %v12164_v22 }
 0xb02   :  { %9681 = vmatpush1.bf16.msra.mxu1 %v12168_v44 }
 0xb03   :  { %9683 = vmatprep.subr.bf16.mxu1 %v12172_v48 }
 0xb06   :  { %9685 = vmatpush1.bf16.msra.mxu1 %v12176_v24 }
 0xb07   :  { %9687 = vmatprep.subr.bf16.mxu1 %v12180_v28 }
 0xb0a   :  { %9689 = vmatpush1.bf16.msra.mxu1 %v12184_v0 }
 0xb0b   :  { %9691 = vmatprep.subr.bf16.mxu1 %v12188_v37 }
 0xb0e   :  { %9693 = vmatpush1.bf16.msra.mxu1 %v12193_v35 }
 0xb0f   :  { %9695 = vmatprep.subr.bf16.mxu1 %v12197_v40 }
 0xb12   :  { %9697 = vmatpush1.bf16.msra.mxu1 %v12204_v7  ;;  %v2801_v2 = vpop.permute.xlu1 %2800 }
 0xb13   :  { %9699 = vmatprep.subr.bf16.mxu1 %v12208_v36  ;;  %v2802_v20 = vsel %vm458_vm7, %v2799_v6, %v2801_v2  ;;  %v5941_v2 = vld [vmem:[#allocation11 + $0x1700] sm:$0xff] }
 0xb14   :  { %v2804_v55 = vmax.f32 %v2784_v63, %v2802_v20  ;;  %v5937_v63 = vld [vmem:[#allocation11 + $0x16e0] sm:$0xff] }
 0xb15   :  { %v9764_v20 = vpack.c.bf16 %v5941_v2, %v5937_v63  ;;  %v5969_v63 = vld [vmem:[#allocation11 + $0x17e0] sm:$0xff] }
 0xb16   :  { %9701 = vmatpush1.bf16.msra.mxu1 %v12214_v31  ;;  %2806 = vst.msk [vmem:[#allocation2 + $0x16] sm:$0x3] %vm462_vm8, %v2804_v55  ;;  %v5954_v55 = vld [vmem:[#allocation11 + $0x1768] sm:$0xff]  ;;  %v5973_v2 = vld [vmem:[#allocation11 + $0x1800] sm:$0xff] }
 0xb17   :  { %9703 = vmatprep.subr.bf16.mxu1 %v12218_v49  ;;  %9765 = vmatpush1.bf16.msra.mxu0 %v9764_v20  ;;  %v9770_v21 = vpack.c.bf16 %v5958_v1, %v5954_v55  ;;  %v5978_v20 = vld [vmem:[#allocation11 + $0x1828] sm:$0xff]  ;;  %v9780_v38 = vpack.c.bf16 %v5973_v2, %v5969_v63  ;;  %v5981_v1 = vld [vmem:[#allocation11 + $0x1840] sm:$0xff]  ;;  %v5912_v63 = vld [vmem:[#allocation11 + $0x1618] sm:$0xff] }
 0xb18   :  { %9767 = vmatprep.subr.bf16.mxu0 %v9766_v5  ;;  %v5982_v5 = vld [vmem:[#allocation11 + $0x1848] sm:$0xff]  ;;  %v9784_v52 = vpack.c.bf16 %v5981_v1, %v5977_v9  ;;  %v5907_v2 = vld [vmem:[#allocation11 + $0x15f0] sm:$0xff]  ;;  %v13688_v9 = vld [vmem:[#allocation36_spill] sm:$0xff] }
 0xb19   :  { %v9782_v55 = vpack.c.bf16 %v5982_v5, %v5978_v20  ;;  %v5911_v20 = vld [vmem:[#allocation11 + $0x1610] sm:$0xff]  ;;  %v13687_v5 = vld [vmem:[#allocation65_spill] sm:$0xff] }
 0xb1a   :  { %9705 = vmatpush1.bf16.msra.mxu1 %v12227_v54 }
 0xb1b   :  { %9707 = vmatprep.subr.bf16.mxu1 %v12233_v30  ;;  %9769 = vmatpush1.bf16.msra.mxu0 %v9768_v3  ;;  %v13679_v3 = vld [vmem:[#allocation56_spill] sm:$0xff] }
 0xb1c   :  { %9771 = vmatprep.subr.bf16.mxu0 %v9770_v21  ;;  %v5986_v21 = vld [vmem:[#allocation11 + $0x1868] sm:$0xff] }
 0xb1d   :  { %v6560_v6 = vld [vmem:[#allocation2 + $0x16] sm:$0x3]  ;;  %v9786_v60 = vpack.c.bf16 %v5990_v15, %v5986_v21  ;;  %v9796_v21 = vpack.c.bf16 %v5911_v20, %v5907_v2  ;;  %v5931_v20 = vld [vmem:[#allocation11 + $0x16b0] sm:$0xff] }
 0xb1e   :  { %9709 = vmatpush1.bf16.msra.mxu1 %v12244_v10  ;;  %6565 = vrot.lane.b32.xlu1 %v6560_v6, %s10637_s24  ;;  %v9776_v6 = vpack.c.bf16 %v5965_v34, %v5961_v58  ;;  %v13681_v58 = vld [vmem:[#allocation58_spill] sm:$0xff]  ;;  %v13682_v34 = vld [vmem:[#allocation59_spill] sm:$0xff] }
 0xb1f   :  { %9711 = vmatprep.subr.bf16.mxu1 %v12248_v16  ;;  %9773 = vmatpush1.bf16.msra.mxu0 %v9772_v26  ;;  %v5985_v26 = vld [vmem:[#allocation11 + $0x1860] sm:$0xff] }
 0xb20   :  { %9775 = vmatprep.subr.bf16.mxu0 %v9774_v14  ;;  %v5989_v14 = vld [vmem:[#allocation11 + $0x1880] sm:$0xff] }
 0xb21   :  { %v9788_v43 = vpack.c.bf16 %v5989_v14, %v5985_v26  ;;  %v13689_v26 = vld [vmem:[#allocation33_spill] sm:$0xff]  ;;  %v5924_v14 = vld [vmem:[#allocation11 + $0x1678] sm:$0xff] }
 0xb22   :  { %9713 = vmatpush1.bf16.msra.mxu1 %v13622_v45 }
 0xb23   :  { %9715 = vmatprep.subr.bf16.mxu1 %v13623_v56  ;;  %9777 = vmatpush1.bf16.msra.mxu0 %v9776_v6  ;;  %v13686_v6 = vld [vmem:[#allocation64_spill] sm:$0xff] }
 0xb24   :  { %9779 = vmatprep.subr.bf16.mxu0 %v9778_v8  ;;  %v5908_v8 = vld [vmem:[#allocation11 + $0x15f8] sm:$0xff] }
 0xb25   :  { %v9794_v1 = vpack.c.bf16 %v5912_v63, %v5908_v8  ;;  %v5936_v8 = vld [vmem:[#allocation11 + $0x16d8] sm:$0xff] }
 0xb26   :  { %9717 = vmatpush1.bf16.msra.mxu1 %v13624_v57 }
 0xb27   :  { %9719 = vmatprep.subr.bf16.mxu1 %v13625_v33  ;;  %9781 = vmatpush1.bf16.msra.mxu0 %v9780_v38  ;;  %v5916_v38 = vld [vmem:[#allocation11 + $0x1638] sm:$0xff] }
 0xb28   :  { %9783 = vmatprep.subr.bf16.mxu0 %v9782_v55  ;;  %v5920_v55 = vld [vmem:[#allocation11 + $0x1658] sm:$0xff] }
 0xb29   :  { %v9798_v15 = vpack.c.bf16 %v5920_v55, %v5916_v38  ;;  %v5935_v38 = vld [vmem:[#allocation11 + $0x16d0] sm:$0xff]  ;;  %v5940_v55 = vld [vmem:[#allocation11 + $0x16f8] sm:$0xff] }
 0xb2a   :  { %9721 = vmatpush1.bf16.msra.mxu1 %v13652_v42 }
 0xb2b   :  { %9723 = vmatprep.subr.bf16.mxu1 %v13675_v47  ;;  %9785 = vmatpush1.bf16.msra.mxu0 %v9784_v52  ;;  %v5915_v52 = vld [vmem:[#allocation11 + $0x1630] sm:$0xff] }
 0xb2c   :  { %9787 = vmatprep.subr.bf16.mxu0 %v9786_v60  ;;  %v5919_v60 = vld [vmem:[#allocation11 + $0x1650] sm:$0xff] }
 0xb2d   :  { %5825 = vmatmul.mubr.f32.vlgmr.msra.gmra.mrb[32].mxu1 %v5756_v25  ;;  %v13685_v25 = vld [vmem:[#allocation63_spill] sm:$0xff] }
 0xb2e   :  { %9725 = vmatpush1.bf16.msra.mxu1 %v13676_v41  ;;  %5895 = vmatprep.mubr.f32.mxu1 %v13677_v59 }
 0xb2f   :  { %9727 = vmatprep.subr.bf16.mxu1 %v13678_v13  ;;  %9789 = vmatpush1.bf16.msra.mxu0 %v9788_v43  ;;  %v5928_v43 = vld [vmem:[#allocation11 + $0x1698] sm:$0xff] }
 0xb32   :  { %9729 = vmatpush1.bf16.msra.mxu1 %v13679_v3 }
 0xb33   :  { %9731 = vmatprep.subr.bf16.mxu1 %v13680_v19 }
 0xb36   :  { %9733 = vmatpush1.bf16.msra.mxu1 %v13681_v58 }
 0xb37   :  { %9735 = vmatprep.subr.bf16.mxu1 %v13682_v34 }
 0xb3a   :  { %9737 = vmatpush1.bf16.msra.mxu1 %v13683_v18  ;;  %v9808_v18 = vpack.c.bf16 %v5935_v38, %v5931_v20  ;;  %v5968_v20 = vld [vmem:[#allocation11 + $0x17d8] sm:$0xff] }
 0xb3b   :  { %9739 = vmatprep.subr.bf16.mxu1 %v13684_v32  ;;  %v5927_v32 = vld [vmem:[#allocation11 + $0x1690] sm:$0xff] }
 0xb3e   :  { %9741 = vmatpush1.bf16.msra.mxu1 %v13685_v25  ;;  %v5923_v25 = vld [vmem:[#allocation11 + $0x1670] sm:$0xff] }
 0xb3f   :  { %9743 = vmatprep.subr.bf16.mxu1 %v13686_v6  ;;  %v9800_v6 = vpack.c.bf16 %v5919_v60, %v5915_v52  ;;  %v9804_v63 = vpack.c.bf16 %v5927_v32, %v5923_v25  ;;  %v5952_v52 = vld [vmem:[#allocation11 + $0x1758] sm:$0xff]  ;;  %v5951_v32 = vld [vmem:[#allocation11 + $0x1750] sm:$0xff] }
 0xb40   :  { %v5956_v25 = vld [vmem:[#allocation11 + $0x1778] sm:$0xff] }
 0xb42   :  { %9745 = vmatpush1.bf16.msra.mxu1 %v13687_v5  ;;  %v9802_v5 = vpack.c.bf16 %v5928_v43, %v5924_v14 }
 0xb43   :  { %5855 = vmatprep.subr.mxu1 %v13688_v9  ;;  %v5932_v9 = vld [vmem:[#allocation11 + $0x16b8] sm:$0xff] }
 0xb44   :  { %v9806_v2 = vpack.c.bf16 %v5936_v8, %v5932_v9  ;;  %v5955_v8 = vld [vmem:[#allocation11 + $0x1770] sm:$0xff] }
 0xb46   :  { %5856 = vmatpush1.msra.mxu1 %v13689_v26  ;;  %v5944_v26 = vld [vmem:[#allocation11 + $0x1718] sm:$0xff] }
 0xb47   :  { %7363 = vmatmul.mubr.msk.f32.vlgmr.msra.gmra.mrb[32].mxu1 %vm2923_vm10, %v12977_v12  ;;  %9795 = vmatprep.subr.bf16.mxu1 %v9794_v1  ;;  %v9810_v12 = vpack.c.bf16 %v5944_v26, %v5940_v55  ;;  %v5939_v1 = vld [vmem:[#allocation11 + $0x16f0] sm:$0xff] }
 0xb48   :  { %9797 = vmatpush1.bf16.msra.mxu1 %v9796_v21  ;;  %v5943_v21 = vld [vmem:[#allocation11 + $0x1710] sm:$0xff] }
 0xb49   :  { %9799 = vmatprep.subr.bf16.mxu1 %v9798_v15  ;;  %v5948_v15 = vld [vmem:[#allocation11 + $0x1738] sm:$0xff]  ;;  %v9812_v60 = vpack.c.bf16 %v5943_v21, %v5939_v1  ;;  %v5967_v26 = vld [vmem:[#allocation11 + $0x17d0] sm:$0xff] }
 0xb4a   :  { %v9814_v14 = vpack.c.bf16 %v5952_v52, %v5948_v15  ;;  %v5976_v1 = vld [vmem:[#allocation11 + $0x1818] sm:$0xff]  ;;  %v5971_v52 = vld [vmem:[#allocation11 + $0x17f0] sm:$0xff] }
 0xb4c   :  { %9801 = vmatpush1.bf16.msra.mxu1 %v9800_v6  ;;  %v5947_v6 = vld [vmem:[#allocation11 + $0x1730] sm:$0xff] }
 0xb4d   :  { %9803 = vmatprep.subr.bf16.mxu1 %v9802_v5  ;;  %v5960_v5 = vld [vmem:[#allocation11 + $0x1798] sm:$0xff]  ;;  %v9816_v43 = vpack.c.bf16 %v5951_v32, %v5947_v6 }
 0xb4e   :  { %v9818_v9 = vpack.c.bf16 %v5960_v5, %v5956_v25  ;;  %v5984_v6 = vld [vmem:[#allocation11 + $0x1858] sm:$0xff]  ;;  %v5979_v5 = vld [vmem:[#allocation11 + $0x1830] sm:$0xff] }
 0xb50   :  { %9805 = vmatpush1.bf16.msra.mxu1 %v9804_v63  ;;  %v5959_v63 = vld [vmem:[#allocation11 + $0x1790] sm:$0xff] }
 0xb51   :  { %9807 = vmatprep.subr.bf16.mxu1 %v9806_v2  ;;  %v5964_v2 = vld [vmem:[#allocation11 + $0x17b8] sm:$0xff]  ;;  %v9820_v38 = vpack.c.bf16 %v5959_v63, %v5955_v8 }
 0xb52   :  { %v9822_v55 = vpack.c.bf16 %v5968_v20, %v5964_v2  ;;  %v5992_v8 = vld [vmem:[#allocation11 + $0x1898] sm:$0xff]  ;;  %v5987_v20 = vld [vmem:[#allocation11 + $0x1870] sm:$0xff] }
 0xb54   :  { %9809 = vmatpush1.bf16.msra.mxu1 %v9808_v18  ;;  %v5963_v18 = vld [vmem:[#allocation11 + $0x17b0] sm:$0xff] }
 0xb55   :  { %9811 = vmatprep.subr.bf16.mxu1 %v9810_v12  ;;  %v5972_v12 = vld [vmem:[#allocation11 + $0x17f8] sm:$0xff]  ;;  %v9824_v21 = vpack.c.bf16 %v5967_v26, %v5963_v18  ;;  %v5994_v18 = vld [vmem:[#allocation11 + $0x18a8] sm:$0xff] }
 0xb56   :  { %v9826_v15 = vpack.c.bf16 %v5976_v1, %v5972_v12  ;;  %v5998_v26 = vld [vmem:[#allocation11 + $0x18c8] sm:$0xff]  ;;  %v5993_v1 = vld [vmem:[#allocation11 + $0x18a0] sm:$0xff] }
 0xb57   :  { %v9790_v12 = vpack.c.bf16 %v5998_v26, %v5994_v18 }
 0xb58   :  { %9813 = vmatpush1.bf16.msra.mxu1 %v9812_v60  ;;  %v5975_v60 = vld [vmem:[#allocation11 + $0x1810] sm:$0xff] }
 0xb59   :  { %9815 = vmatprep.subr.bf16.mxu1 %v9814_v14  ;;  %v5980_v14 = vld [vmem:[#allocation11 + $0x1838] sm:$0xff]  ;;  %v9828_v32 = vpack.c.bf16 %v5975_v60, %v5971_v52  ;;  %9791 = vmatprep.subr.bf16.mxu0 %v9790_v12  ;;  %v6313_v12 = vld [vmem:[#allocation11 + $0x1910] sm:$0xff] }
 0xb5a   :  { %v9830_v25 = vpack.c.bf16 %v5984_v6, %v5980_v14  ;;  %v6000_v60 = vld [vmem:[#allocation11 + $0x18d8] sm:$0xff]  ;;  %v5995_v14 = vld [vmem:[#allocation11 + $0x18b0] sm:$0xff] }
 0xb5b   :  { %v5999_v6 = vld [vmem:[#allocation11 + $0x18d0] sm:$0xff] }
 0xb5c   :  { %9817 = vmatpush1.bf16.msra.mxu1 %v9816_v43  ;;  %v5983_v43 = vld [vmem:[#allocation11 + $0x1850] sm:$0xff] }
 0xb5d   :  { %9819 = vmatprep.subr.bf16.mxu1 %v9818_v9  ;;  %v5988_v9 = vld [vmem:[#allocation11 + $0x1878] sm:$0xff]  ;;  %v9832_v63 = vpack.c.bf16 %v5983_v43, %v5979_v5  ;;  %v6002_v5 = vld [vmem:[#allocation11 + $0x18e8] sm:$0xff]  ;;  %v6001_v43 = vld [vmem:[#allocation11 + $0x18e0] sm:$0xff] }
 0xb5e   :  { %v9834_v2 = vpack.c.bf16 %v5992_v8, %v5988_v9  ;;  %v6004_v9 = vld [vmem:[#allocation11 + $0x18f8] sm:$0xff]  ;;  %v6003_v8 = vld [vmem:[#allocation11 + $0x18f0] sm:$0xff] }
 0xb60   :  { %9821 = vmatpush1.bf16.msra.mxu1 %v9820_v38  ;;  %v5991_v38 = vld [vmem:[#allocation11 + $0x1890] sm:$0xff] }
 0xb61   :  { %9823 = vmatprep.subr.bf16.mxu1 %v9822_v55  ;;  %v9836_v55 = vpack.c.bf16 %v5991_v38, %v5987_v20 }
 0xb64   :  { %9825 = vmatpush1.bf16.msra.mxu1 %v9824_v21  ;;  %v5997_v21 = vld [vmem:[#allocation11 + $0x18c0] sm:$0xff] }
 0xb65   :  { %9827 = vmatprep.subr.bf16.mxu1 %v9826_v15  ;;  %v5996_v15 = vld [vmem:[#allocation11 + $0x18b8] sm:$0xff]  ;;  %v9792_v52 = vpack.c.bf16 %v5997_v21, %v5993_v1  ;;  %v6317_v1 = vld [vmem:[#allocation11 + $0x1930] sm:$0xff] }
 0xb66   :  { %v6322_v21 = vld [vmem:[#allocation11 + $0x1958] sm:$0xff] }
 0xb67   :  { %9793 = vmatpush1.bf16.msra.mxu0 %v9792_v52 }
 0xb68   :  { %9829 = vmatpush1.bf16.msra.mxu1 %v9828_v32  ;;  %v9838_v32 = vpack.c.bf16 %v6000_v60, %v5996_v15  ;;  %6056 = vmatprep.subr.mxu0 %v6002_v5  ;;  %v6326_v15 = vld [vmem:[#allocation11 + $0x1978] sm:$0xff]  ;;  %v13690_v5 = vld [vmem:[#allocation25_spill] sm:$0xff] }
 0xb69   :  { %9831 = vmatprep.subr.bf16.mxu1 %v9830_v25  ;;  %v9840_v25 = vpack.c.bf16 %v5999_v6, %v5995_v14  ;;  %v9980_v14 = vpack.c.bf16 %v6317_v1, %v6313_v12  ;;  %v9982_v6 = vpack.c.bf16 %v6326_v15, %v6322_v21  ;;  %v6337_v1 = vld [vmem:[#allocation11 + $0x19d0] sm:$0xff]  ;;  %v6346_v15 = vld [vmem:[#allocation11 + $0x1a18] sm:$0xff] }
 0xb6a   :  { %v6341_v21 = vld [vmem:[#allocation11 + $0x19f0] sm:$0xff] }
 0xb6b   :  { %6057 = vmatpush1.msra.mxu0 %v6001_v43  ;;  %v6163_v43 = vsel %vm256_vm5, %v13690_v5, %v13070_v50 }
 0xb6c   :  { %9833 = vmatpush1.bf16.msra.mxu1 %v9832_v63  ;;  %9843 = vmatprep.subr.bf16.mxu0 %v12064_v51  ;;  %v6314_v63 = vld [vmem:[#allocation11 + $0x1918] sm:$0xff] }
 0xb6d   :  { %9835 = vmatprep.subr.bf16.mxu1 %v9834_v2  ;;  %v6318_v2 = vld [vmem:[#allocation11 + $0x1938] sm:$0xff] }
 0xb6e   :  { %v9978_v20 = vpack.c.bf16 %v6318_v2, %v6314_v63 }
 0xb70   :  { %9837 = vmatpush1.bf16.msra.mxu1 %v9836_v55 }
 0xb71   :  { %9839 = vmatprep.subr.bf16.mxu1 %v9838_v32  ;;  %v6321_v32 = vld [vmem:[#allocation11 + $0x1950] sm:$0xff] }
 0xb74   :  { %9841 = vmatpush1.bf16.msra.mxu1 %v9840_v25  ;;  %v6325_v25 = vld [vmem:[#allocation11 + $0x1970] sm:$0xff] }
 0xb75   :  { %6127 = vmatprep.subr.mxu1 %v6004_v9  ;;  %v6330_v9 = vld [vmem:[#allocation11 + $0x1998] sm:$0xff]  ;;  %v9984_v63 = vpack.c.bf16 %v6325_v25, %v6321_v32  ;;  %v6349_v32 = vld [vmem:[#allocation11 + $0x1a30] sm:$0xff] }
 0xb76   :  { %v6354_v25 = vld [vmem:[#allocation11 + $0x1a58] sm:$0xff] }
 0xb78   :  { %6128 = vmatpush1.msra.mxu1 %v6003_v8  ;;  %v6334_v8 = vld [vmem:[#allocation11 + $0x19b8] sm:$0xff] }
 0xb79   :  { %9979 = vmatprep.subr.bf16.mxu1 %v9978_v20  ;;  %v9986_v2 = vpack.c.bf16 %v6334_v8, %v6330_v9  ;;  %v6329_v20 = vld [vmem:[#allocation11 + $0x1990] sm:$0xff] }
 0xc1a   :  { %v5897_v38 = vpop.f32.mrb[32].mxu1 }
 0xc1b   :  { %v10303_v55 = vadd.f32 %v5897_v38, %v12449_v46  ;;  %v5899_v18 = vpop.f32.mrb[33].mxu1  ;;  %v6333_v38 = vld [vmem:[#allocation11 + $0x19b0] sm:$0xff] }
 0xc1c   :  { %v10304_v26 = vadd.f32 %v5899_v18, %v13555_v23  ;;  %v6342_v18 = vld [vmem:[#allocation11 + $0x19f8] sm:$0xff] }
 0xc1d   :  { %v5902_v60 = vmax.f32 %v10303_v55, 0.0  ;;  %v6338_v55 = vld [vmem:[#allocation11 + $0x19d8] sm:$0xff] }
 0xc1e   :  { %v5903_v52 = vmax.f32 %v10304_v26, 0.0  ;;  %v9988_v26 = vpack.c.bf16 %v6333_v38, %v6329_v20  ;;  %v9990_v12 = vpack.c.bf16 %v6342_v18, %v6338_v55  ;;  %v6362_v20 = vld [vmem:[#allocation11 + $0x1a98] sm:$0xff] }
 0xc1f   :  { %v6366_v38 = vld [vmem:[#allocation11 + $0x1ab8] sm:$0xff] }
 0xc20   :  { %7364 = vmatprep.mubr.msk.f32.mxu0 %vm3427_vm11, %v5903_v52  ;;  %7365 = vmatprep.mubr.msk.f32.mxu1 %vm3427_vm11, %v5903_v52  ;;  %v6350_v52 = vld [vmem:[#allocation11 + $0x1a38] sm:$0xff]  ;;  %v10002_v18 = vpack.c.bf16 %v6366_v38, %v6362_v20 }
 0xc21   :  { %6073 = vmatmul.mubr.f32.vlgmr.msra.gmra.mrb[28].mxu0 %v5902_v60  ;;  %6144 = vmatmul.mubr.f32.vlgmr.msra.gmra.mrb[26].mxu1 %v5902_v60  ;;  %v9992_v60 = vpack.c.bf16 %v6341_v21, %v6337_v1  ;;  %v6370_v1 = vld [vmem:[#allocation11 + $0x1ad8] sm:$0xff] }
 0xc22   :  { %9845 = vmatpush1.bf16.msra.mxu0 %v12103_v53  ;;  %6230 = vmatprep.mubr.f32.mxu0 %v6163_v43  ;;  %v6358_v43 = vld [vmem:[#allocation11 + $0x1a78] sm:$0xff] }
 0xc23   :  { %9847 = vmatprep.subr.bf16.mxu0 %v12111_v4  ;;  %9981 = vmatpush1.bf16.msra.mxu1 %v9980_v14  ;;  %v9994_v14 = vpack.c.bf16 %v6350_v52, %v6346_v15  ;;  %v9998_v8 = vpack.c.bf16 %v6358_v43, %v6354_v25  ;;  %v6374_v21 = vld [vmem:[#allocation11 + $0x1af8] sm:$0xff] }
 0xc24   :  { %9983 = vmatprep.subr.bf16.mxu1 %v9982_v6  ;;  %v6345_v6 = vld [vmem:[#allocation11 + $0x1a10] sm:$0xff]  ;;  %v10006_v52 = vpack.c.bf16 %v6374_v21, %v6370_v1 }
 0xc25   :  { %v9996_v9 = vpack.c.bf16 %v6349_v32, %v6345_v6  ;;  %v6378_v6 = vld [vmem:[#allocation11 + $0x1b18] sm:$0xff] }
 0xc26   :  { %9849 = vmatpush1.bf16.msra.mxu0 %v12116_v27  ;;  %v6382_v32 = vld [vmem:[#allocation11 + $0x1b38] sm:$0xff] }
 0xc27   :  { %9851 = vmatprep.subr.bf16.mxu0 %v12125_v62  ;;  %9985 = vmatpush1.bf16.msra.mxu1 %v9984_v63  ;;  %v6353_v63 = vld [vmem:[#allocation11 + $0x1a50] sm:$0xff]  ;;  %v10010_v43 = vpack.c.bf16 %v6382_v32, %v6378_v6  ;;  %v13691_v32 = vld [vmem:[#allocation60_spill] sm:$0xff] }
 0xc28   :  { %9987 = vmatprep.subr.bf16.mxu1 %v9986_v2  ;;  %v6357_v2 = vld [vmem:[#allocation11 + $0x1a70] sm:$0xff] }
 0xc29   :  { %v10000_v55 = vpack.c.bf16 %v6357_v2, %v6353_v63  ;;  %v6386_v63 = vld [vmem:[#allocation11 + $0x1b58] sm:$0xff] }
 0xc2a   :  { %9853 = vmatpush1.bf16.msra.mxu0 %v12132_v29  ;;  %v6390_v2 = vld [vmem:[#allocation11 + $0x1b78] sm:$0xff] }
 0xc2b   :  { %9855 = vmatprep.subr.bf16.mxu0 %v12137_v39  ;;  %9989 = vmatpush1.bf16.msra.mxu1 %v9988_v26  ;;  %v6361_v26 = vld [vmem:[#allocation11 + $0x1a90] sm:$0xff]  ;;  %v10014_v38 = vpack.c.bf16 %v6390_v2, %v6386_v63  ;;  %v6311_v63 = vld [vmem:[#allocation11 + $0x1900] sm:$0xff] }
 0xc2c   :  { %9991 = vmatprep.subr.bf16.mxu1 %v9990_v12  ;;  %v6365_v12 = vld [vmem:[#allocation11 + $0x1ab0] sm:$0xff]  ;;  %v6315_v2 = vld [vmem:[#allocation11 + $0x1920] sm:$0xff] }
 0xc2d   :  { %v10004_v15 = vpack.c.bf16 %v6365_v12, %v6361_v26  ;;  %v6394_v26 = vld [vmem:[#allocation11 + $0x1b98] sm:$0xff] }
 0xc2e   :  { %9857 = vmatpush1.bf16.msra.mxu0 %v12144_v61  ;;  %v6398_v12 = vld [vmem:[#allocation11 + $0x1bb8] sm:$0xff] }
 0xc2f   :  { %9859 = vmatprep.subr.bf16.mxu0 %v12148_v11  ;;  %9993 = vmatpush1.bf16.msra.mxu1 %v9992_v60  ;;  %v6369_v60 = vld [vmem:[#allocation11 + $0x1ad0] sm:$0xff]  ;;  %v10018_v21 = vpack.c.bf16 %v6398_v12, %v6394_v26  ;;  %v9932_v12 = vpack.c.bf16 %v6315_v2, %v6311_v63  ;;  %v6340_v63 = vld [vmem:[#allocation11 + $0x19e8] sm:$0xff] }
 0xc30   :  { %9995 = vmatprep.subr.bf16.mxu1 %v9994_v14  ;;  %v6373_v14 = vld [vmem:[#allocation11 + $0x1af0] sm:$0xff] }
 0xc31   :  { %v10008_v25 = vpack.c.bf16 %v6373_v14, %v6369_v60  ;;  %v10406_v14 = vld [vmem:[#allocation2 + $0x10] sm:$0x3] }
 0xc32   :  { %9861 = vmatpush1.bf16.msra.mxu0 %v12160_v17  ;;  %v6162_v6 = vsel %vm2909_vm9, %v10406_v14, %v13690_v5  ;;  %v13693_v5 = vld [vmem:[#allocation63_spill] sm:$0xff]  ;;  %v6332_v14 = vld [vmem:[#allocation11 + $0x19a8] sm:$0xff] }
 0xc33   :  { %9863 = vmatprep.subr.bf16.mxu0 %v12164_v22  ;;  %9997 = vmatpush1.bf16.msra.mxu1 %v9996_v9  ;;  %v6377_v9 = vld [vmem:[#allocation11 + $0x1b10] sm:$0xff] }
 0xc34   :  { %9999 = vmatprep.subr.bf16.mxu1 %v9998_v8  ;;  %v6381_v8 = vld [vmem:[#allocation11 + $0x1b30] sm:$0xff] }
 0xc35   :  { %v10012_v20 = vpack.c.bf16 %v6381_v8, %v6377_v9  ;;  %v6312_v9 = vld [vmem:[#allocation11 + $0x1908] sm:$0xff] }
 0xc36   :  { %9865 = vmatpush1.bf16.msra.mxu0 %v12168_v44  ;;  %v6316_v8 = vld [vmem:[#allocation11 + $0x1928] sm:$0xff] }
 0xc37   :  { %9867 = vmatprep.subr.bf16.mxu0 %v12172_v48  ;;  %10001 = vmatpush1.bf16.msra.mxu1 %v10000_v55  ;;  %v6385_v55 = vld [vmem:[#allocation11 + $0x1b50] sm:$0xff]  ;;  %v9930_v26 = vpack.c.bf16 %v6316_v8, %v6312_v9  ;;  %v6331_v9 = vld [vmem:[#allocation11 + $0x19a0] sm:$0xff]  ;;  %v6336_v8 = vld [vmem:[#allocation11 + $0x19c8] sm:$0xff] }
 0xc38   :  { %10003 = vmatprep.subr.bf16.mxu1 %v10002_v18  ;;  %v6389_v18 = vld [vmem:[#allocation11 + $0x1b70] sm:$0xff] }
 0xc39   :  { %v10016_v1 = vpack.c.bf16 %v6389_v18, %v6385_v55  ;;  %v6324_v55 = vld [vmem:[#allocation11 + $0x1968] sm:$0xff]  ;;  %v13194_v18 = vld [vmem:[#allocation8 + $0x2c8] sm:$0xff] }
 0xc3a   :  { %9869 = vmatpush1.bf16.msra.mxu0 %v12176_v24  ;;  %13696 = vst [vmem:[#allocation74_spill] sm:$0xff] %v13194_v18 }
 0xc3b   :  { %9871 = vmatprep.subr.bf16.mxu0 %v12180_v28  ;;  %10005 = vmatpush1.bf16.msra.mxu1 %v10004_v15  ;;  %v6393_v15 = vld [vmem:[#allocation11 + $0x1b90] sm:$0xff] }
 0xc3c   :  { %10007 = vmatprep.subr.bf16.mxu1 %v10006_v52  ;;  %v6397_v52 = vld [vmem:[#allocation11 + $0x1bb0] sm:$0xff] }
 0xc3d   :  { %v10020_v60 = vpack.c.bf16 %v6397_v52, %v6393_v15  ;;  %v6323_v15 = vld [vmem:[#allocation11 + $0x1960] sm:$0xff]  ;;  %v13197_v52 = vld [vmem:[#allocation8 + $0x2c0] sm:$0xff] }
 0xc3e   :  { %9873 = vmatpush1.bf16.msra.mxu0 %v12184_v0  ;;  %13697 = vst [vmem:[#allocation61_spill] sm:$0xff] %v13197_v52 }
 0xc3f   :  { %9875 = vmatprep.subr.bf16.mxu0 %v12188_v37  ;;  %10009 = vmatpush1.bf16.msra.mxu1 %v10008_v25  ;;  %v13692_v25 = vld [vmem:[#allocation62_spill] sm:$0xff] }
 0xc40   :  { %10011 = vmatprep.subr.bf16.mxu1 %v10010_v43  ;;  %v13694_v43 = vld [vmem:[#allocation64_spill] sm:$0xff] }
 0xc42   :  { %9877 = vmatpush1.bf16.msra.mxu0 %v12193_v35 }
 0xc43   :  { %9879 = vmatprep.subr.bf16.mxu0 %v12197_v40  ;;  %10013 = vmatpush1.bf16.msra.mxu1 %v10012_v20  ;;  %v13695_v20 = vld [vmem:[#allocation65_spill] sm:$0xff] }
 0xc44   :  { %10015 = vmatprep.subr.bf16.mxu1 %v10014_v38  ;;  %v6320_v38 = vld [vmem:[#allocation11 + $0x1948] sm:$0xff] }
 0xc46   :  { %9881 = vmatpush1.bf16.msra.mxu0 %v12204_v7 }
 0xc47   :  { %9883 = vmatprep.subr.bf16.mxu0 %v12208_v36  ;;  %10017 = vmatpush1.bf16.msra.mxu1 %v10016_v1  ;;  %v9934_v1 = vpack.c.bf16 %v6324_v55, %v6320_v38  ;;  %v9942_v38 = vpack.c.bf16 %v6340_v63, %v6336_v8  ;;  %v6335_v55 = vld [vmem:[#allocation11 + $0x19c0] sm:$0xff] }
 0xc48   :  { %10019 = vmatprep.subr.bf16.mxu1 %v10018_v21  ;;  %v6319_v21 = vld [vmem:[#allocation11 + $0x1940] sm:$0xff] }
 0xc49   :  { %v6359_v63 = vld [vmem:[#allocation11 + $0x1a80] sm:$0xff] }
 0xc4a   :  { %9885 = vmatpush1.bf16.msra.mxu0 %v12214_v31 }
 0xc4b   :  { %9887 = vmatprep.subr.bf16.mxu0 %v12218_v49  ;;  %10021 = vmatpush1.bf16.msra.mxu1 %v10020_v60  ;;  %v6328_v60 = vld [vmem:[#allocation11 + $0x1988] sm:$0xff] }
 0xc4e   :  { %9889 = vmatpush1.bf16.msra.mxu0 %v12227_v54 }
 0xc4f   :  { %9891 = vmatprep.subr.bf16.mxu0 %v12233_v30 }
 0xc52   :  { %9893 = vmatpush1.bf16.msra.mxu0 %v12244_v10 }
 0xc53   :  { %9895 = vmatprep.subr.bf16.mxu0 %v12248_v16 }
 0xc56   :  { %9897 = vmatpush1.bf16.msra.mxu0 %v13622_v45 }
 0xc57   :  { %9899 = vmatprep.subr.bf16.mxu0 %v13623_v56 }
 0xc5a   :  { %9901 = vmatpush1.bf16.msra.mxu0 %v13624_v57 }
 0xc5b   :  { %9903 = vmatprep.subr.bf16.mxu0 %v13625_v33 }
 0xc5e   :  { %9905 = vmatpush1.bf16.msra.mxu0 %v13652_v42 }
 0xc5f   :  { %9907 = vmatprep.subr.bf16.mxu0 %v13675_v47 }
 0xc61   :  { %6231 = vmatmul.mubr.f32.vlgmr.msra.gmra.mrb[36].mxu0 %v6162_v6  ;;  %v9936_v6 = vpack.c.bf16 %v6323_v15, %v6319_v21  ;;  %v6356_v21 = vld [vmem:[#allocation11 + $0x1a68] sm:$0xff] }
 0xc62   :  { %9909 = vmatpush1.bf16.msra.mxu0 %v13676_v41  ;;  %6301 = vmatprep.mubr.f32.mxu0 %v13677_v59 }
 0xc63   :  { %9911 = vmatprep.subr.bf16.mxu0 %v13678_v13 }
 0xc66   :  { %9913 = vmatpush1.bf16.msra.mxu0 %v13679_v3 }
 0xc67   :  { %9915 = vmatprep.subr.bf16.mxu0 %v13680_v19 }
 0xc6a   :  { %9917 = vmatpush1.bf16.msra.mxu0 %v13681_v58 }
 0xc6b   :  { %9919 = vmatprep.subr.bf16.mxu0 %v13682_v34 }
 0xc6e   :  { %9921 = vmatpush1.bf16.msra.mxu0 %v13691_v32 }
 0xc6f   :  { %9923 = vmatprep.subr.bf16.mxu0 %v13692_v25 }
 0xc72   :  { %9925 = vmatpush1.bf16.msra.mxu0 %v13693_v5  ;;  %v6348_v5 = vld [vmem:[#allocation11 + $0x1a28] sm:$0xff] }
 0xc73   :  { %9927 = vmatprep.subr.bf16.mxu0 %v13694_v43  ;;  %v6344_v43 = vld [vmem:[#allocation11 + $0x1a08] sm:$0xff] }
 0xc76   :  { %9929 = vmatpush1.bf16.msra.mxu0 %v13695_v20  ;;  %v9938_v20 = vpack.c.bf16 %v6332_v14, %v6328_v60  ;;  %v6351_v14 = vld [vmem:[#allocation11 + $0x1a40] sm:$0xff] }
 0xc77   :  { %6261 = vmatprep.subr.mxu0 %v13194_v18  ;;  %v6327_v18 = vld [vmem:[#allocation11 + $0x1980] sm:$0xff] }
 0xc78   :  { %v9940_v2 = vpack.c.bf16 %v6331_v9, %v6327_v18  ;;  %v6355_v18 = vld [vmem:[#allocation11 + $0x1a60] sm:$0xff] }
 0xc79   :  { %v9952_v9 = vpack.c.bf16 %v6355_v18, %v6351_v14  ;;  %v6388_v14 = vld [vmem:[#allocation11 + $0x1b68] sm:$0xff] }
 0xc7a   :  { %6262 = vmatpush1.msra.mxu0 %v13197_v52  ;;  %v6339_v52 = vld [vmem:[#allocation11 + $0x19e0] sm:$0xff] }
 0xc7b   :  { %7366 = vmatmul.mubr.msk.f32.vlgmr.msra.gmra.mrb[36].mxu0 %vm2923_vm10, %v13070_v50  ;;  %9931 = vmatprep.subr.bf16.mxu0 %v9930_v26  ;;  %v9944_v25 = vpack.c.bf16 %v6339_v52, %v6335_v55  ;;  %v9946_v50 = vpack.c.bf16 %v6348_v5, %v6344_v43  ;;  %v6343_v26 = vld [vmem:[#allocation11 + $0x1a00] sm:$0xff]  ;;  %v6372_v5 = vld [vmem:[#allocation11 + $0x1ae8] sm:$0xff] }
 0xc7c   :  { %9933 = vmatpush1.bf16.msra.mxu0 %v9932_v12  ;;  %v6347_v12 = vld [vmem:[#allocation11 + $0x1a20] sm:$0xff] }
 0xc7d   :  { %9935 = vmatprep.subr.bf16.mxu0 %v9934_v1  ;;  %v6352_v1 = vld [vmem:[#allocation11 + $0x1a48] sm:$0xff]  ;;  %v9948_v15 = vpack.c.bf16 %v6347_v12, %v6343_v26  ;;  %v6363_v52 = vld [vmem:[#allocation11 + $0x1aa0] sm:$0xff] }
 0xc7e   :  { %v9950_v60 = vpack.c.bf16 %v6356_v21, %v6352_v1  ;;  %v9956_v43 = vpack.c.bf16 %v6363_v52, %v6359_v63  ;;  %v6371_v55 = vld [vmem:[#allocation11 + $0x1ae0] sm:$0xff]  ;;  %v6380_v26 = vld [vmem:[#allocation11 + $0x1b28] sm:$0xff] }
 0xc7f   :  { %v6375_v21 = vld [vmem:[#allocation11 + $0x1b00] sm:$0xff]  ;;  %v6396_v63 = vld [vmem:[#allocation11 + $0x1ba8] sm:$0xff] }
 0xc80   :  { %9937 = vmatpush1.bf16.msra.mxu0 %v9936_v6  ;;  %v6364_v6 = vld [vmem:[#allocation11 + $0x1aa8] sm:$0xff] }
 0xc81   :  { %9939 = vmatprep.subr.bf16.mxu0 %v9938_v20  ;;  %v6360_v20 = vld [vmem:[#allocation11 + $0x1a88] sm:$0xff] }
 0xc82   :  { %v9954_v8 = vpack.c.bf16 %v6364_v6, %v6360_v20  ;;  %v6383_v6 = vld [vmem:[#allocation11 + $0x1b40] sm:$0xff] }
 0xc84   :  { %9941 = vmatpush1.bf16.msra.mxu0 %v9940_v2  ;;  %v6368_v2 = vld [vmem:[#allocation11 + $0x1ac8] sm:$0xff] }
 0xc85   :  { %9943 = vmatprep.subr.bf16.mxu0 %v9942_v38  ;;  %v9958_v38 = vpack.c.bf16 %v6372_v5, %v6368_v2  ;;  %v6391_v5 = vld [vmem:[#allocation11 + $0x1b80] sm:$0xff] }
 0xc88   :  { %9945 = vmatpush1.bf16.msra.mxu0 %v9944_v25  ;;  %v6367_v25 = vld [vmem:[#allocation11 + $0x1ac0] sm:$0xff] }
 0xc89   :  { %9947 = vmatprep.subr.bf16.mxu0 %v9946_v50  ;;  %v6376_v50 = vld [vmem:[#allocation11 + $0x1b08] sm:$0xff]  ;;  %v9960_v12 = vpack.c.bf16 %v6371_v55, %v6367_v25  ;;  %v6402_v25 = vld [vmem:[#allocation11 + $0x1bd8] sm:$0xff] }
 0xc8a   :  { %v9962_v1 = vpack.c.bf16 %v6380_v26, %v6376_v50  ;;  %v6406_v55 = vld [vmem:[#allocation11 + $0x1bf8] sm:$0xff]  ;;  %v6400_v26 = vld [vmem:[#allocation11 + $0x1bc8] sm:$0xff] }
 0xc8b   :  { %v10022_v50 = vpack.c.bf16 %v6406_v55, %v6402_v25 }
 0xc8c   :  { %9949 = vmatpush1.bf16.msra.mxu0 %v9948_v15  ;;  %v6379_v15 = vld [vmem:[#allocation11 + $0x1b20] sm:$0xff] }
 0xc8d   :  { %9951 = vmatprep.subr.bf16.mxu0 %v9950_v60  ;;  %v6384_v60 = vld [vmem:[#allocation11 + $0x1b48] sm:$0xff]  ;;  %v9964_v18 = vpack.c.bf16 %v6379_v15, %v6375_v21  ;;  %v6405_v15 = vld [vmem:[#allocation11 + $0x1bf0] sm:$0xff]  ;;  %10023 = vmatprep.subr.bf16.mxu1 %v10022_v50  ;;  %v6717_v50 = vld [vmem:[#allocation11 + $0x1c20] sm:$0xff] }
 0xc8e   :  { %v9966_v20 = vpack.c.bf16 %v6388_v14, %v6384_v60  ;;  %v6399_v60 = vld [vmem:[#allocation11 + $0x1bc0] sm:$0xff] }
 0xc8f   :  { %v6403_v14 = vld [vmem:[#allocation11 + $0x1be0] sm:$0xff] }
 0xc90   :  { %9953 = vmatpush1.bf16.msra.mxu0 %v9952_v9  ;;  %v6387_v9 = vld [vmem:[#allocation11 + $0x1b60] sm:$0xff] }
 0xc91   :  { %9955 = vmatprep.subr.bf16.mxu0 %v9954_v8  ;;  %v6392_v8 = vld [vmem:[#allocation11 + $0x1b88] sm:$0xff]  ;;  %v9968_v52 = vpack.c.bf16 %v6387_v9, %v6383_v6  ;;  %v6410_v6 = vld [vmem:[#allocation11 + $0x1c18] sm:$0xff] }
 0xc92   :  { %v9970_v2 = vpack.c.bf16 %v6396_v63, %v6392_v8  ;;  %v6408_v9 = vld [vmem:[#allocation11 + $0x1c08] sm:$0xff]  ;;  %v6409_v8 = vld [vmem:[#allocation11 + $0x1c10] sm:$0xff]  ;;  %v6407_v63 = vld [vmem:[#allocation11 + $0x1c00] sm:$0xff] }
 0xc94   :  { %9957 = vmatpush1.bf16.msra.mxu0 %v9956_v43  ;;  %v6395_v43 = vld [vmem:[#allocation11 + $0x1ba0] sm:$0xff] }
 0xc95   :  { %9959 = vmatprep.subr.bf16.mxu0 %v9958_v38  ;;  %v9972_v38 = vpack.c.bf16 %v6395_v43, %v6391_v5 }
 0xc98   :  { %9961 = vmatpush1.bf16.msra.mxu0 %v9960_v12  ;;  %v6404_v12 = vld [vmem:[#allocation11 + $0x1be8] sm:$0xff] }
 0xc99   :  { %9963 = vmatprep.subr.bf16.mxu0 %v9962_v1  ;;  %v6401_v1 = vld [vmem:[#allocation11 + $0x1bd0] sm:$0xff]  ;;  %v9974_v21 = vpack.c.bf16 %v6404_v12, %v6400_v26  ;;  %v6721_v26 = vld [vmem:[#allocation11 + $0x1c40] sm:$0xff]  ;;  %v6726_v12 = vld [vmem:[#allocation11 + $0x1c68] sm:$0xff] }
 0xc9c   :  { %9965 = vmatpush1.bf16.msra.mxu0 %v9964_v18  ;;  %v10024_v18 = vpack.c.bf16 %v6405_v15, %v6401_v1  ;;  %v6730_v1 = vld [vmem:[#allocation11 + $0x1c88] sm:$0xff] }
 0xc9d   :  { %9967 = vmatprep.subr.bf16.mxu0 %v9966_v20  ;;  %v9976_v20 = vpack.c.bf16 %v6403_v14, %v6399_v60  ;;  %v10116_v14 = vpack.c.bf16 %v6721_v26, %v6717_v50  ;;  %v6745_v26 = vld [vmem:[#allocation11 + $0x1d00] sm:$0xff] }
 0xc9e   :  { %10025 = vmatpush1.bf16.msra.mxu1 %v10024_v18  ;;  %v10118_v18 = vpack.c.bf16 %v6730_v1, %v6726_v12  ;;  %v6750_v12 = vld [vmem:[#allocation11 + $0x1d28] sm:$0xff] }
 0xc9f   :  { %6533 = vmatprep.subr.mxu1 %v6410_v6  ;;  %v6729_v6 = vld [vmem:[#allocation11 + $0x1c80] sm:$0xff] }
 0xca0   :  { %9969 = vmatpush1.bf16.msra.mxu0 %v9968_v52  ;;  %v6718_v52 = vld [vmem:[#allocation11 + $0x1c28] sm:$0xff] }
 0xca1   :  { %9971 = vmatprep.subr.bf16.mxu0 %v9970_v2  ;;  %v6722_v2 = vld [vmem:[#allocation11 + $0x1c48] sm:$0xff] }
 0xca2   :  { %6534 = vmatpush1.msra.mxu1 %v6409_v8  ;;  %v10114_v5 = vpack.c.bf16 %v6722_v2, %v6718_v52  ;;  %v6734_v8 = vld [vmem:[#allocation11 + $0x1ca8] sm:$0xff] }
 0xca3   :  { %10027 = vmatprep.subr.bf16.mxu1 %v12064_v51  ;;  %v13207_v51 = vpop.permute.xlu0 %6561 }
 0xca4   :  { %9973 = vmatpush1.bf16.msra.mxu0 %v9972_v38 }
 0xca5   :  { %9975 = vmatprep.subr.bf16.mxu0 %v9974_v21  ;;  %v13205_v21 = vpop.permute.xlu1 %6565 }
 0xca8   :  { %9977 = vmatpush1.bf16.msra.mxu0 %v9976_v20  ;;  %v6725_v20 = vld [vmem:[#allocation11 + $0x1c60] sm:$0xff] }
 0xca9   :  { %6462 = vmatprep.subr.mxu0 %v6408_v9  ;;  %v6569_v9 = vsel %vm256_vm5, %v13207_v51, %v13205_v21  ;;  %v10120_v52 = vpack.c.bf16 %v6729_v6, %v6725_v20  ;;  %v6757_v6 = vld [vmem:[#allocation11 + $0x1d60] sm:$0xff] }
 0xcac   :  { %6463 = vmatpush1.msra.mxu0 %v6407_v63  ;;  %v6738_v63 = vld [vmem:[#allocation11 + $0x1cc8] sm:$0xff] }
 0xcad   :  { %10115 = vmatprep.subr.bf16.mxu0 %v10114_v5  ;;  %v10122_v2 = vpack.c.bf16 %v6738_v63, %v6734_v8  ;;  %v6733_v5 = vld [vmem:[#allocation11 + $0x1ca0] sm:$0xff] }
 0xd4e   :  { %v6303_v43 = vpop.f32.mrb[36].mxu0 }
 0xd4f   :  { %v10305_v38 = vadd.f32 %v6303_v43, %v12449_v46  ;;  %v6305_v25 = vpop.f32.mrb[37].mxu0  ;;  %v6737_v43 = vld [vmem:[#allocation11 + $0x1cc0] sm:$0xff] }
 0xd50   :  { %v10306_v55 = vadd.f32 %v6305_v25, %v13555_v23  ;;  %v6746_v25 = vld [vmem:[#allocation11 + $0x1d08] sm:$0xff] }
 0xd51   :  { %v6308_v60 = vmax.f32 %v10305_v38, 0.0  ;;  %v6742_v38 = vld [vmem:[#allocation11 + $0x1ce8] sm:$0xff] }
 0xd52   :  { %v6309_v15 = vmax.f32 %v10306_v55, 0.0  ;;  %v10124_v55 = vpack.c.bf16 %v6737_v43, %v6733_v5  ;;  %v10126_v50 = vpack.c.bf16 %v6746_v25, %v6742_v38  ;;  %v6773_v38 = vld [vmem:[#allocation11 + $0x1de0] sm:$0xff]  ;;  %v6782_v25 = vld [vmem:[#allocation11 + $0x1e28] sm:$0xff] }
 0xd54   :  { %7367 = vmatprep.mubr.msk.f32.mxu0 %vm3427_vm11, %v6309_v15  ;;  %7368 = vmatprep.mubr.msk.f32.mxu1 %vm3427_vm11, %v6309_v15 }
 0xd55   :  { %6479 = vmatmul.mubr.f32.vlgmr.msra.gmra.mrb[28].mxu0 %v6308_v60  ;;  %6550 = vmatmul.mubr.f32.vlgmr.msra.gmra.mrb[26].mxu1 %v6308_v60  ;;  %v6749_v60 = vld [vmem:[#allocation11 + $0x1d20] sm:$0xff] }
 0xd56   :  { %10029 = vmatpush1.bf16.msra.mxu1 %v12103_v53  ;;  %6636 = vmatprep.mubr.f32.mxu1 %v6569_v9  ;;  %v6741_v53 = vld [vmem:[#allocation11 + $0x1ce0] sm:$0xff]  ;;  %v6766_v9 = vld [vmem:[#allocation11 + $0x1da8] sm:$0xff] }
 0xd57   :  { %10031 = vmatprep.subr.bf16.mxu1 %v12111_v4  ;;  %10117 = vmatpush1.bf16.msra.mxu0 %v10116_v14  ;;  %v6754_v4 = vld [vmem:[#allocation11 + $0x1d48] sm:$0xff]  ;;  %v10128_v1 = vpack.c.bf16 %v6745_v26, %v6741_v53  ;;  %v6781_v53 = vld [vmem:[#allocation11 + $0x1e20] sm:$0xff] }
 0xd58   :  { %10119 = vmatprep.subr.bf16.mxu0 %v10118_v18  ;;  %v10130_v15 = vpack.c.bf16 %v6754_v4, %v6750_v12  ;;  %v6758_v14 = vld [vmem:[#allocation11 + $0x1d68] sm:$0xff] }
 0xd59   :  { %v6790_v26 = vld [vmem:[#allocation11 + $0x1e68] sm:$0xff] }
 0xd5a   :  { %10033 = vmatpush1.bf16.msra.mxu1 %v12116_v27  ;;  %v6753_v27 = vld [vmem:[#allocation11 + $0x1d40] sm:$0xff] }
 0xd5b   :  { %10035 = vmatprep.subr.bf16.mxu1 %v12125_v62  ;;  %10121 = vmatpush1.bf16.msra.mxu0 %v10120_v52  ;;  %v6762_v62 = vld [vmem:[#allocation11 + $0x1d88] sm:$0xff]  ;;  %v10132_v18 = vpack.c.bf16 %v6753_v27, %v6749_v60  ;;  %v6765_v52 = vld [vmem:[#allocation11 + $0x1da0] sm:$0xff] }
 0xd5c   :  { %10123 = vmatprep.subr.bf16.mxu0 %v10122_v2  ;;  %v10134_v20 = vpack.c.bf16 %v6762_v62, %v6758_v14  ;;  %v6774_v2 = vld [vmem:[#allocation11 + $0x1de8] sm:$0xff]  ;;  %v6797_v14 = vld [vmem:[#allocation11 + $0x1ea0] sm:$0xff]  ;;  %v6739_v62 = vld [vmem:[#allocation11 + $0x1cd0] sm:$0xff] }
 0xd5e   :  { %10037 = vmatpush1.bf16.msra.mxu1 %v12132_v29  ;;  %v6761_v29 = vld [vmem:[#allocation11 + $0x1d80] sm:$0xff] }
 0xd5f   :  { %10039 = vmatprep.subr.bf16.mxu1 %v12137_v39  ;;  %10125 = vmatpush1.bf16.msra.mxu0 %v10124_v55  ;;  %v6770_v39 = vld [vmem:[#allocation11 + $0x1dc8] sm:$0xff]  ;;  %v10136_v8 = vpack.c.bf16 %v6761_v29, %v6757_v6 }
 0xd60   :  { %10127 = vmatprep.subr.bf16.mxu0 %v10126_v50  ;;  %v10138_v63 = vpack.c.bf16 %v6770_v39, %v6766_v9  ;;  %v6743_v9 = vld [vmem:[#allocation11 + $0x1cf0] sm:$0xff] }
 0xd61   :  { %v6747_v39 = vld [vmem:[#allocation11 + $0x1d10] sm:$0xff] }
 0xd62   :  { %10041 = vmatpush1.bf16.msra.mxu1 %v12144_v61  ;;  %v6769_v61 = vld [vmem:[#allocation11 + $0x1dc0] sm:$0xff] }
 0xd63   :  { %10043 = vmatprep.subr.bf16.mxu1 %v12148_v11  ;;  %10129 = vmatpush1.bf16.msra.mxu0 %v10128_v1  ;;  %v6778_v11 = vld [vmem:[#allocation11 + $0x1e08] sm:$0xff]  ;;  %v10140_v5 = vpack.c.bf16 %v6769_v61, %v6765_v52  ;;  %v6789_v1 = vld [vmem:[#allocation11 + $0x1e60] sm:$0xff]  ;;  %v10176_v52 = vpack.c.bf16 %v6747_v39, %v6743_v9  ;;  %v6751_v61 = vld [vmem:[#allocation11 + $0x1d30] sm:$0xff]  ;;  %v10641_v9 = vmov 0.0|0.0  }
 0xd64   :  { %10131 = vmatprep.subr.bf16.mxu0 %v10130_v15  ;;  %v10142_v43 = vpack.c.bf16 %v6778_v11, %v6774_v2  ;;  %v6798_v15 = vld [vmem:[#allocation11 + $0x1ea8] sm:$0xff]  ;;  %v6755_v2 = vld [vmem:[#allocation11 + $0x1d50] sm:$0xff]  ;;  %v6760_v11 = vld [vmem:[#allocation11 + $0x1d78] sm:$0xff] }
 0xd65   :  { %v7012_v39 = vld [vmem:[#allocation14 + $0x80] sm:$0xff] }
 0xd66   :  { %10045 = vmatpush1.bf16.msra.mxu1 %v12160_v17  ;;  %v6777_v17 = vld [vmem:[#allocation11 + $0x1e00] sm:$0xff] }
 0xd67   :  { %10047 = vmatprep.subr.bf16.mxu1 %v12164_v22  ;;  %10133 = vmatpush1.bf16.msra.mxu0 %v10132_v18  ;;  %v6786_v22 = vld [vmem:[#allocation11 + $0x1e48] sm:$0xff]  ;;  %v10144_v55 = vpack.c.bf16 %v6777_v17, %v6773_v38  ;;  %v6744_v18 = vld [vmem:[#allocation11 + $0x1cf8] sm:$0xff]  ;;  %v6759_v17 = vld [vmem:[#allocation11 + $0x1d70] sm:$0xff] }
 0xd68   :  { %10135 = vmatprep.subr.bf16.mxu0 %v10134_v20  ;;  %v10146_v50 = vpack.c.bf16 %v6786_v22, %v6782_v25  ;;  %v6748_v20 = vld [vmem:[#allocation11 + $0x1d18] sm:$0xff]  ;;  %v6763_v25 = vld [vmem:[#allocation11 + $0x1d90] sm:$0xff] }
 0xd69   :  { %v10174_v29 = vpack.c.bf16 %v6748_v20, %v6744_v18  ;;  %v6768_v22 = vld [vmem:[#allocation11 + $0x1db8] sm:$0xff]  ;;  %v6814_v18 = vld [vmem:[#allocation11 + $0x1f28] sm:$0xff] }
 0xd6a   :  { %10049 = vmatpush1.bf16.msra.mxu1 %v12168_v44  ;;  %v6785_v44 = vld [vmem:[#allocation11 + $0x1e40] sm:$0xff]  ;;  %v6816_v20 = vld [vmem:[#allocation11 + $0x1f38] sm:$0xff] }
 0xd6b   :  { %10051 = vmatprep.subr.bf16.mxu1 %v12172_v48  ;;  %10137 = vmatpush1.bf16.msra.mxu0 %v10136_v8  ;;  %v6794_v48 = vld [vmem:[#allocation11 + $0x1e88] sm:$0xff]  ;;  %v10148_v12 = vpack.c.bf16 %v6785_v44, %v6781_v53  ;;  %v6752_v8 = vld [vmem:[#allocation11 + $0x1d38] sm:$0xff]  ;;  %v6767_v44 = vld [vmem:[#allocation11 + $0x1db0] sm:$0xff] }
 0xd6c   :  { %10139 = vmatprep.subr.bf16.mxu0 %v10138_v63  ;;  %v10150_v4 = vpack.c.bf16 %v6794_v48, %v6790_v26  ;;  %v6756_v63 = vld [vmem:[#allocation11 + $0x1d58] sm:$0xff]  ;;  %v6771_v26 = vld [vmem:[#allocation11 + $0x1dd0] sm:$0xff] }
 0xd6d   :  { %v6776_v48 = vld [vmem:[#allocation11 + $0x1df8] sm:$0xff] }
 0xd6e   :  { %10053 = vmatpush1.bf16.msra.mxu1 %v12176_v24  ;;  %v6793_v24 = vld [vmem:[#allocation11 + $0x1e80] sm:$0xff] }
 0xd6f   :  { %10055 = vmatprep.subr.bf16.mxu1 %v12180_v28  ;;  %10141 = vmatpush1.bf16.msra.mxu0 %v10140_v5  ;;  %v6802_v28 = vld [vmem:[#allocation11 + $0x1ec8] sm:$0xff]  ;;  %v10152_v60 = vpack.c.bf16 %v6793_v24, %v6789_v1  ;;  %v6764_v5 = vld [vmem:[#allocation11 + $0x1d98] sm:$0xff]  ;;  %v6775_v24 = vld [vmem:[#allocation11 + $0x1df0] sm:$0xff] }
 0xd70   :  { %10143 = vmatprep.subr.bf16.mxu0 %v10142_v43  ;;  %v10154_v27 = vpack.c.bf16 %v6802_v28, %v6798_v15  ;;  %v10180_v43 = vpack.c.bf16 %v6755_v2, %v6751_v61  ;;  %v10182_v38 = vpack.c.bf16 %v6764_v5, %v6760_v11  ;;  %v6779_v15 = vld [vmem:[#allocation11 + $0x1e10] sm:$0xff]  ;;  %v6784_v28 = vld [vmem:[#allocation11 + $0x1e38] sm:$0xff]  ;;  %v6996_v5 = vld [vmem:[#allocation14] sm:$0xff] }
 0xd71   :  { %v7029_v11 = vld [vmem:[#allocation14 + $0x108] sm:$0xff] }
 0xd72   :  { %10057 = vmatpush1.bf16.msra.mxu1 %v12184_v0  ;;  %v6801_v0 = vld [vmem:[#allocation11 + $0x1ec0] sm:$0xff] }
 0xd73   :  { %10059 = vmatprep.subr.bf16.mxu1 %v12188_v37  ;;  %10145 = vmatpush1.bf16.msra.mxu0 %v10144_v55  ;;  %v10156_v37 = vpack.c.bf16 %v6801_v0, %v6797_v14  ;;  %v6772_v55 = vld [vmem:[#allocation11 + $0x1dd8] sm:$0xff]  ;;  %v6783_v0 = vld [vmem:[#allocation11 + $0x1e30] sm:$0xff] }
 0xd74   :  { %10147 = vmatprep.subr.bf16.mxu0 %v10146_v50  ;;  %v10184_v50 = vpack.c.bf16 %v6763_v25, %v6759_v17  ;;  %v10186_v53 = vpack.c.bf16 %v6772_v55, %v6768_v22  ;;  %v7014_v17 = vld [vmem:[#allocation14 + $0x90] sm:$0xff]  ;;  %v7015_v25 = vld [vmem:[#allocation14 + $0x98] sm:$0xff] }
 0xd76   :  { %10061 = vmatpush1.bf16.msra.mxu1 %v12193_v35  ;;  %v10409_v35 = vld [vmem:[#allocation2 + $0x12] sm:$0x3] }
 0xd77   :  { %10063 = vmatprep.subr.bf16.mxu1 %v12197_v40  ;;  %10149 = vmatpush1.bf16.msra.mxu0 %v10148_v12  ;;  %v6568_v40 = vsel %vm2909_vm9, %v10409_v35, %v13207_v51  ;;  %v6735_v51 = vld [vmem:[#allocation11 + $0x1cb0] sm:$0xff]  ;;  %v6780_v12 = vld [vmem:[#allocation11 + $0x1e18] sm:$0xff] }
 0xd78   :  { %10151 = vmatprep.subr.bf16.mxu0 %v10150_v4  ;;  %v10172_v6 = vpack.c.bf16 %v6739_v62, %v6735_v51  ;;  %v10188_v4 = vpack.c.bf16 %v6771_v26, %v6767_v44  ;;  %v10190_v1 = vpack.c.bf16 %v6780_v12, %v6776_v48  ;;  %v6792_v35 = vld [vmem:[#allocation11 + $0x1e78] sm:$0xff]  ;;  %v6811_v51 = vld [vmem:[#allocation11 + $0x1f10] sm:$0xff]  ;;  %v10214_v48 = vpack.c.bf16 %v7015_v25, %v7014_v17 }
 0xd79   :  { %v7031_v26 = vld [vmem:[#allocation14 + $0x118] sm:$0xff]  ;;  %v6998_v12 = vld [vmem:[#allocation14 + $0x10] sm:$0xff] }
 0xd7a   :  { %10065 = vmatpush1.bf16.msra.mxu1 %v12204_v7  ;;  %v13698_v7 = vld [vmem:[#allocation62_spill] sm:$0xff]  ;;  %v7047_v17 = vld [vmem:[#allocation14 + $0x198] sm:$0xff] }
 0xd7b   :  { %10067 = vmatprep.subr.bf16.mxu1 %v12208_v36  ;;  %10153 = vmatpush1.bf16.msra.mxu0 %v10152_v60  ;;  %v13699_v36 = vld [vmem:[#allocation63_spill] sm:$0xff] }
 0xd7c   :  { %10155 = vmatprep.subr.bf16.mxu0 %v10154_v27  ;;  %v6788_v60 = vld [vmem:[#allocation11 + $0x1e58] sm:$0xff]  ;;  %v10192_v27 = vpack.c.bf16 %v6779_v15, %v6775_v24  ;;  %v7032_v24 = vld [vmem:[#allocation14 + $0x120] sm:$0xff] }
 0xd7d   :  { %v10194_v14 = vpack.c.bf16 %v6788_v60, %v6784_v28  ;;  %v7033_v28 = vld [vmem:[#allocation14 + $0x128] sm:$0xff] }
 0xd7e   :  { %10069 = vmatpush1.bf16.msra.mxu1 %v12214_v31  ;;  %v13700_v31 = vld [vmem:[#allocation64_spill] sm:$0xff] }
 0xd7f   :  { %10071 = vmatprep.subr.bf16.mxu1 %v12218_v49  ;;  %10157 = vmatpush1.bf16.msra.mxu0 %v10156_v37  ;;  %v6720_v49 = vld [vmem:[#allocation11 + $0x1c38] sm:$0xff]  ;;  %v6787_v37 = vld [vmem:[#allocation11 + $0x1e50] sm:$0xff] }
 0xd82   :  { %10073 = vmatpush1.bf16.msra.mxu1 %v12227_v54  ;;  %v6724_v54 = vld [vmem:[#allocation11 + $0x1c58] sm:$0xff] }
 0xd83   :  { %10075 = vmatprep.subr.bf16.mxu1 %v12233_v30  ;;  %v6719_v30 = vld [vmem:[#allocation11 + $0x1c30] sm:$0xff] }
 0xd86   :  { %10077 = vmatpush1.bf16.msra.mxu1 %v12244_v10  ;;  %v6723_v10 = vld [vmem:[#allocation11 + $0x1c50] sm:$0xff] }
 0xd87   :  { %10079 = vmatprep.subr.bf16.mxu1 %v12248_v16  ;;  %v13701_v16 = vld [vmem:[#allocation65_spill] sm:$0xff] }
 0xd8a   :  { %10081 = vmatpush1.bf16.msra.mxu1 %v13622_v45  ;;  %v6732_v45 = vld [vmem:[#allocation11 + $0x1c98] sm:$0xff] }
 0xd8b   :  { %10083 = vmatprep.subr.bf16.mxu1 %v13623_v56  ;;  %v13702_v56 = vld [vmem:[#allocation74_spill] sm:$0xff] }
 0xd8e   :  { %10085 = vmatpush1.bf16.msra.mxu1 %v13624_v57  ;;  %v10162_v57 = vpack.c.bf16 %v6724_v54, %v6720_v49  ;;  %v6795_v49 = vld [vmem:[#allocation11 + $0x1e90] sm:$0xff]  ;;  %v6800_v54 = vld [vmem:[#allocation11 + $0x1eb8] sm:$0xff] }
 0xd8f   :  { %10087 = vmatprep.subr.bf16.mxu1 %v13625_v33  ;;  %v6728_v33 = vld [vmem:[#allocation11 + $0x1c78] sm:$0xff] }
 0xd92   :  { %10089 = vmatpush1.bf16.msra.mxu1 %v13652_v42  ;;  %v10164_v42 = vpack.c.bf16 %v6723_v10, %v6719_v30  ;;  %v6804_v30 = vld [vmem:[#allocation11 + $0x1ed8] sm:$0xff] }
 0xd93   :  { %10091 = vmatprep.subr.bf16.mxu1 %v13675_v47  ;;  %v10166_v47 = vpack.c.bf16 %v6732_v45, %v6728_v33  ;;  %v6799_v33 = vld [vmem:[#allocation11 + $0x1eb0] sm:$0xff] }
 0xd94   :  { %v6803_v45 = vld [vmem:[#allocation11 + $0x1ed0] sm:$0xff] }
 0xd95   :  { %6637 = vmatmul.mubr.f32.vlgmr.msra.gmra.mrb[34].mxu1 %v6568_v40  ;;  %v6796_v40 = vld [vmem:[#allocation11 + $0x1e98] sm:$0xff] }
 0xd96   :  { %10093 = vmatpush1.bf16.msra.mxu1 %v13676_v41  ;;  %6707 = vmatprep.mubr.f32.mxu1 %v13677_v59  ;;  %v6727_v41 = vld [vmem:[#allocation11 + $0x1c70] sm:$0xff] }
 0xd97   :  { %10095 = vmatprep.subr.bf16.mxu1 %v13678_v13  ;;  %v6731_v13 = vld [vmem:[#allocation11 + $0x1c90] sm:$0xff] }
 0xd9a   :  { %10097 = vmatpush1.bf16.msra.mxu1 %v13679_v3  ;;  %v13703_v3 = vld [vmem:[#allocation61_spill] sm:$0xff] }
 0xd9b   :  { %10099 = vmatprep.subr.bf16.mxu1 %v13680_v19  ;;  %v6736_v19 = vld [vmem:[#allocation11 + $0x1cb8] sm:$0xff] }
 0xd9e   :  { %10101 = vmatpush1.bf16.msra.mxu1 %v13681_v58  ;;  %v6740_v58 = vld [vmem:[#allocation11 + $0x1cd8] sm:$0xff] }
 0xd9f   :  { %10103 = vmatprep.subr.bf16.mxu1 %v13682_v34  ;;  %v10168_v34 = vpack.c.bf16 %v6731_v13, %v6727_v41  ;;  %v6812_v13 = vld [vmem:[#allocation11 + $0x1f18] sm:$0xff] }
 0xda2   :  { %10105 = vmatpush1.bf16.msra.mxu1 %v13691_v32  ;;  %v10170_v32 = vpack.c.bf16 %v6740_v58, %v6736_v19  ;;  %v6809_v19 = vld [vmem:[#allocation11 + $0x1f00] sm:$0xff] }
 0xda3   :  { %10107 = vmatprep.subr.bf16.mxu1 %v13698_v7  ;;  %v10196_v7 = vpack.c.bf16 %v6787_v37, %v6783_v0  ;;  %v7018_v0 = vld [vmem:[#allocation14 + $0xb0] sm:$0xff]  ;;  %v7019_v37 = vld [vmem:[#allocation14 + $0xb8] sm:$0xff] }
 0xda6   :  { %10109 = vmatpush1.bf16.msra.mxu1 %v13699_v36  ;;  %v10198_v36 = vpack.c.bf16 %v6796_v40, %v6792_v35  ;;  %v10249_v35 = vpack.c.bf16 %v7033_v28, %v7032_v24  ;;  %v7034_v40 = vld [vmem:[#allocation14 + $0x130] sm:$0xff]  ;;  %v7008_v24 = vld [vmem:[#allocation14 + $0x60] sm:$0xff] }
 0xda7   :  { %10111 = vmatprep.subr.bf16.mxu1 %v13700_v31  ;;  %v6791_v31 = vld [vmem:[#allocation11 + $0x1e70] sm:$0xff] }
 0xda8   :  { %v10200_v10 = vpack.c.bf16 %v6795_v49, %v6791_v31  ;;  %v10222_v31 = vpack.c.bf16 %v7019_v37, %v7018_v0  ;;  %v7002_v49 = vld [vmem:[#allocation14 + $0x30] sm:$0xff]  ;;  %v7027_v37 = vld [vmem:[#allocation14 + $0xf8] sm:$0xff] }
 0xda9   :  { %v7026_v0 = vld [vmem:[#allocation14 + $0xf0] sm:$0xff] }
 0xdaa   :  { %10113 = vmatpush1.bf16.msra.mxu1 %v13701_v16  ;;  %v10202_v16 = vpack.c.bf16 %v6804_v30, %v6800_v54  ;;  %v7003_v54 = vld [vmem:[#allocation14 + $0x38] sm:$0xff]  ;;  %v7020_v30 = vld [vmem:[#allocation14 + $0xc0] sm:$0xff] }
 0xdab   :  { %6667 = vmatprep.subr.mxu1 %v13702_v56  ;;  %v10204_v56 = vpack.c.bf16 %v6803_v45, %v6799_v33  ;;  %v7036_v33 = vld [vmem:[#allocation14 + $0x140] sm:$0xff]  ;;  %v10224_v45 = vpack.c.bf16 %v7003_v54, %v7002_v49 }
 0xdac   :  { %v13704_v49 = vld [vmem:[#allocation32_spill] sm:$0xff] }
 0xdae   :  { %6668 = vmatpush1.msra.mxu1 %v13703_v3  ;;  %v6805_v3 = vld [vmem:[#allocation11 + $0x1ee0] sm:$0xff] }
 0xdaf   :  { %7369 = vmatmul.mubr.msk.f32.vlgmr.msra.gmra.mrb[34].mxu1 %vm2923_vm10, %v13205_v21  ;;  %10163 = vmatprep.subr.bf16.mxu1 %v10162_v57  ;;  %v10178_v21 = vpack.c.bf16 %v6756_v63, %v6752_v8  ;;  %v6806_v57 = vld [vmem:[#allocation11 + $0x1ee8] sm:$0xff] }
 0xdb0   :  { %10165 = vmatpush1.bf16.msra.mxu1 %v10164_v42  ;;  %v6810_v42 = vld [vmem:[#allocation11 + $0x1f08] sm:$0xff] }
 0xdb1   :  { %10167 = vmatprep.subr.bf16.mxu1 %v10166_v47  ;;  %v6808_v47 = vld [vmem:[#allocation11 + $0x1ef8] sm:$0xff]  ;;  %v10158_v41 = vpack.c.bf16 %v6810_v42, %v6806_v57  ;;  %v7013_v8 = vld [vmem:[#allocation14 + $0x88] sm:$0xff]  ;;  %v7004_v42 = vld [vmem:[#allocation14 + $0x40] sm:$0xff] }
 0xdb2   :  { %v10206_v58 = vpack.c.bf16 %v6812_v13, %v6808_v47  ;;  %v10210_v63 = vpack.c.bf16 %v7013_v8, %v7012_v39  ;;  %v7005_v47 = vld [vmem:[#allocation14 + $0x48] sm:$0xff]  ;;  %v7023_v13 = vld [vmem:[#allocation14 + $0xd8] sm:$0xff]  ;;  %v7040_v39 = vld [vmem:[#allocation14 + $0x160] sm:$0xff] }
 0xdb3   :  { %10159 = vmatprep.subr.bf16.mxu0 %v10158_v41  ;;  %v7022_v41 = vld [vmem:[#allocation14 + $0xd0] sm:$0xff]  ;;  %v7041_v8 = vld [vmem:[#allocation14 + $0x168] sm:$0xff] }
 0xdb4   :  { %10169 = vmatpush1.bf16.msra.mxu1 %v10168_v34  ;;  %v10160_v34 = vpack.c.bf16 %v6809_v19, %v6805_v3  ;;  %v7038_v19 = vld [vmem:[#allocation14 + $0x150] sm:$0xff] }
 0xdb5   :  { %10171 = vmatprep.subr.bf16.mxu1 %v10170_v32  ;;  %v6807_v32 = vld [vmem:[#allocation11 + $0x1ef0] sm:$0xff] }
 0xdb6   :  { %v10208_v62 = vpack.c.bf16 %v6811_v51, %v6807_v32  ;;  %10161 = vmatpush1.bf16.msra.mxu0 %v10160_v34  ;;  %v7039_v34 = vld [vmem:[#allocation14 + $0x158] sm:$0xff]  ;;  %v10230_v32 = vpack.c.bf16 %v7023_v13, %v7022_v41  ;;  %v7006_v51 = vld [vmem:[#allocation14 + $0x50] sm:$0xff] }
 0xdb7   :  { %6868 = vmatprep.subr.mxu0 %v6814_v18  ;;  %v7024_v18 = vld [vmem:[#allocation14 + $0xe0] sm:$0xff] }
 0xdb8   :  { %10173 = vmatpush1.bf16.msra.mxu1 %v10172_v6  ;;  %v6813_v6 = vld [vmem:[#allocation11 + $0x1f20] sm:$0xff] }
 0xdb9   :  { %10175 = vmatprep.subr.bf16.mxu1 %v10174_v29  ;;  %v6815_v29 = vld [vmem:[#allocation11 + $0x1f30] sm:$0xff] }
 0xdba   :  { %6869 = vmatpush1.msra.mxu0 %v6813_v6  ;;  %v10258_v6 = vpack.c.bf16 %v7039_v34, %v7038_v19 }
 0xdbb   :  { %10211 = vmatprep.subr.bf16.mxu0 %v10210_v63 }
 0xdbc   :  { %10177 = vmatpush1.bf16.msra.mxu1 %v10176_v52 }
 0xdbd   :  { %10179 = vmatprep.subr.bf16.mxu1 %v10178_v21  ;;  %v7028_v21 = vld [vmem:[#allocation14 + $0x100] sm:$0xff] }
 0xdbe   :  { %v10243_v55 = vpack.c.bf16 %v7029_v11, %v7028_v21  ;;  %v7042_v21 = vld [vmem:[#allocation14 + $0x170] sm:$0xff]  ;;  %v7044_v11 = vld [vmem:[#allocation14 + $0x180] sm:$0xff] }
 0xdc0   :  { %10181 = vmatpush1.bf16.msra.mxu1 %v10180_v43  ;;  %v6997_v43 = vld [vmem:[#allocation14 + $0x8] sm:$0xff] }
 0xdc1   :  { %10183 = vmatprep.subr.bf16.mxu1 %v10182_v38 }
 0xdc4   :  { %10185 = vmatpush1.bf16.msra.mxu1 %v10184_v50  ;;  %v7030_v50 = vld [vmem:[#allocation14 + $0x110] sm:$0xff] }
 0xdc5   :  { %10187 = vmatprep.subr.bf16.mxu1 %v10186_v53  ;;  %v10212_v53 = vpack.c.bf16 %v6997_v43, %v6996_v5  ;;  %v7045_v5 = vld [vmem:[#allocation14 + $0x188] sm:$0xff] }
 0xdc6   :  { %v10267_v43 = vpack.c.bf16 %v7045_v5, %v7044_v11 }
 0xdc8   :  { %10189 = vmatpush1.bf16.msra.mxu1 %v10188_v4  ;;  %v6999_v4 = vld [vmem:[#allocation14 + $0x18] sm:$0xff] }
 0xdc9   :  { %10191 = vmatprep.subr.bf16.mxu1 %v10190_v1  ;;  %v7017_v1 = vld [vmem:[#allocation14 + $0xa8] sm:$0xff]  ;;  %v10216_v15 = vpack.c.bf16 %v6999_v4, %v6998_v12 }
 0xdca   :  { %v7053_v12 = vld [vmem:[#allocation14 + $0x1c8] sm:$0xff] }
 0xdcc   :  { %10193 = vmatpush1.bf16.msra.mxu1 %v10192_v27  ;;  %v7000_v27 = vld [vmem:[#allocation14 + $0x20] sm:$0xff] }
 0xdcd   :  { %10195 = vmatprep.subr.bf16.mxu1 %v10194_v14  ;;  %v7001_v14 = vld [vmem:[#allocation14 + $0x28] sm:$0xff] }
 0xdd0   :  { %10197 = vmatpush1.bf16.msra.mxu1 %v10196_v7  ;;  %v10220_v7 = vpack.c.bf16 %v7001_v14, %v7000_v27  ;;  %v7057_v27 = vld [vmem:[#allocation14 + $0x1e8] sm:$0xff] }
 0xdd1   :  { %10199 = vmatprep.subr.bf16.mxu1 %v10198_v36  ;;  %v7035_v36 = vld [vmem:[#allocation14 + $0x138] sm:$0xff] }
 0xdd4   :  { %10201 = vmatpush1.bf16.msra.mxu1 %v10200_v10  ;;  %v7021_v10 = vld [vmem:[#allocation14 + $0xc8] sm:$0xff] }
 0xdd5   :  { %10203 = vmatprep.subr.bf16.mxu1 %v10202_v16  ;;  %v10252_v16 = vpack.c.bf16 %v7035_v36, %v7034_v40  ;;  %v10226_v57 = vpack.c.bf16 %v7021_v10, %v7020_v30  ;;  %v7010_v40 = vld [vmem:[#allocation14 + $0x70] sm:$0xff] }
 0xdd6   :  { %v13705_v30 = vld [vmem:[#allocation26_spill] sm:$0xff] }
 0xdd7   :  { %v13706_v10 = vsub.s32 2, %v13705_v30 }
 0xdd8   :  { %10205 = vmatpush1.bf16.msra.mxu1 %v10204_v56  ;;  %v7037_v56 = vld [vmem:[#allocation14 + $0x148] sm:$0xff] }
 0xdd9   :  { %10207 = vmatprep.subr.bf16.mxu1 %v10206_v58  ;;  %v10255_v3 = vpack.c.bf16 %v7037_v56, %v7036_v33  ;;  %v10228_v58 = vpack.c.bf16 %v7005_v47, %v7004_v42  ;;  %v13707_v33 = vld [vmem:[#allocation34_spill] sm:$0xff]  ;;  %v13708_v56 = vsub.s32 3, %v13705_v30 }
 0xddc   :  { %10209 = vmatpush1.bf16.msra.mxu1 %v10208_v62  ;;  %v7007_v62 = vld [vmem:[#allocation14 + $0x58] sm:$0xff] }
 0xddd   :  { %6939 = vmatprep.subr.mxu1 %v6816_v20  ;;  %v7025_v20 = vld [vmem:[#allocation14 + $0xe8] sm:$0xff] }
 0xdde   :  { %v10234_v63 = vpack.c.bf16 %v7025_v20, %v7024_v18 }
 0xde0   :  { %6940 = vmatpush1.msra.mxu1 %v6815_v29  ;;  %v10232_v29 = vpack.c.bf16 %v7007_v62, %v7006_v51 }
 0xde1   :  { %10242 = vmatprep.subr.bf16.mxu1 %v10641_v9 }
 0xe82   :  { %v6709_v52 = vpop.f32.mrb[34].mxu1 }
 0xe83   :  { %v10307_v61 = vadd.f32 %v6709_v52, %v12449_v46  ;;  %v6711_v2 = vpop.f32.mrb[35].mxu1  ;;  %v7016_v46 = vld [vmem:[#allocation14 + $0xa0] sm:$0xff]  ;;  %v10261_v52 = vpack.c.bf16 %v7041_v8, %v7040_v39 }
 0xe84   :  { %v10308_v38 = vadd.f32 %v6711_v2, %v13555_v23  ;;  %v10246_v23 = vpack.c.bf16 %v7031_v26, %v7030_v50  ;;  %v10218_v60 = vpack.c.bf16 %v7017_v1, %v7016_v46  ;;  %v7054_v46 = vld [vmem:[#allocation14 + $0x1d0] sm:$0xff]  ;;  %v7055_v1 = vld [vmem:[#allocation14 + $0x1d8] sm:$0xff] }
 0xe85   :  { %v6714_v44 = vmax.f32 %v10307_v61, 0.0  ;;  %v7043_v61 = vld [vmem:[#allocation14 + $0x178] sm:$0xff] }
 0xe86   :  { %v6715_v22 = vmax.f32 %v10308_v38, 0.0  ;;  %v10264_v2 = vpack.c.bf16 %v7043_v61, %v7042_v21  ;;  %v7046_v38 = vld [vmem:[#allocation14 + $0x190] sm:$0xff] }
 0xe87   :  { %v10270_v25 = vpack.c.bf16 %v7047_v17, %v7046_v38 }
 0xe88   :  { %7370 = vmatprep.mubr.msk.f32.mxu0 %vm3427_vm11, %v6715_v22  ;;  %7371 = vmatprep.mubr.msk.f32.mxu1 %vm3427_vm11, %v6715_v22  ;;  %v7048_v22 = vld [vmem:[#allocation14 + $0x1a0] sm:$0xff] }
 0xe89   :  { %6885 = vmatmul.mubr.f32.vlgmr.msra.gmra.mrb[28].mxu0 %v6714_v44  ;;  %6956 = vmatmul.mubr.f32.vlgmr.msra.gmra.mrb[26].mxu1 %v6714_v44  ;;  %v7051_v44 = vld [vmem:[#allocation14 + $0x1b8] sm:$0xff] }
 0xe8a   :  { %10244 = vmatpush1.bf16.msra.mxu1 %v10243_v55  ;;  %10213 = vmatpush3.bf16.msra.mxu0 %v10212_v53  ;;  %v7049_v55 = vld [vmem:[#allocation14 + $0x1a8] sm:$0xff]  ;;  %v7050_v53 = vld [vmem:[#allocation14 + $0x1b0] sm:$0xff] }
 0xe8b   :  { %10245 = vmatprep.subr.bf16.mxu1 %v10641_v9  ;;  %10215 = vmatprep.subr.bf16.mxu0 %v10214_v48  ;;  %v10273_v50 = vpack.c.bf16 %v7049_v55, %v7048_v22  ;;  %v10276_v26 = vpack.c.bf16 %v7051_v44, %v7050_v53  ;;  %v7052_v48 = vld [vmem:[#allocation14 + $0x1c0] sm:$0xff] }
 0xe8c   :  { %v10279_v4 = vpack.c.bf16 %v7053_v12, %v7052_v48 }
 0xe8e   :  { %10247 = vmatpush1.bf16.msra.mxu1 %v10246_v23  ;;  %10217 = vmatpush3.bf16.msra.mxu0 %v10216_v15  ;;  %v10282_v23 = vpack.c.bf16 %v7055_v1, %v7054_v46  ;;  %v7009_v15 = vld [vmem:[#allocation14 + $0x68] sm:$0xff] }
 0xe8f   :  { %10248 = vmatprep.subr.bf16.mxu1 %v10641_v9  ;;  %10219 = vmatprep.subr.bf16.mxu0 %v10218_v60  ;;  %v10236_v28 = vpack.c.bf16 %v7009_v15, %v7008_v24  ;;  %v7056_v60 = vld [vmem:[#allocation14 + $0x1e0] sm:$0xff] }
 0xe90   :  { %v10285_v14 = vpack.c.bf16 %v7057_v27, %v7056_v60 }
 0xe92   :  { %10250 = vmatpush1.bf16.msra.mxu1 %v10249_v35  ;;  %10221 = vmatpush3.bf16.msra.mxu0 %v10220_v7  ;;  %v10238_v35 = vpack.c.bf16 %v7027_v37, %v7026_v0  ;;  %v7011_v7 = vld [vmem:[#allocation14 + $0x78] sm:$0xff] }
 0xe93   :  { %10251 = vmatprep.subr.bf16.mxu1 %v10641_v9  ;;  %10223 = vmatprep.subr.bf16.mxu0 %v10222_v31  ;;  %v10240_v36 = vpack.c.bf16 %v7011_v7, %v7010_v40  ;;  %v7058_v31 = vld [vmem:[#allocation14 + $0x1f0] sm:$0xf] }
 0xe96   :  { %10253 = vmatpush1.bf16.msra.mxu1 %v10252_v16  ;;  %10225 = vmatpush3.bf16.msra.mxu0 %v10224_v45 }
 0xe97   :  { %10254 = vmatprep.subr.bf16.mxu1 %v10641_v9  ;;  %10227 = vmatprep.subr.bf16.mxu0 %v10226_v57 }
 0xe9a   :  { %10256 = vmatpush1.bf16.msra.mxu1 %v10255_v3  ;;  %10229 = vmatpush3.bf16.msra.mxu0 %v10228_v58 }
 0xe9b   :  { %10257 = vmatprep.subr.bf16.mxu1 %v10641_v9  ;;  %10231 = vmatprep.subr.bf16.mxu0 %v10230_v32 }
 0xe9e   :  { %10259 = vmatpush1.bf16.msra.mxu1 %v10258_v6  ;;  %10233 = vmatpush3.bf16.msra.mxu0 %v10232_v29  ;;  %v7372_v6 = vld [vmem:[#allocation15] ss:$0 sm:$0xff] }
 0xe9f   :  { %10260 = vmatprep.subr.bf16.mxu1 %v10641_v9  ;;  %10235 = vmatprep.subr.bf16.mxu0 %v10234_v63 }
 0xea2   :  { %10262 = vmatpush1.bf16.msra.mxu1 %v10261_v52  ;;  %10237 = vmatpush3.bf16.msra.mxu0 %v10236_v28 }
 0xea3   :  { %10263 = vmatprep.subr.bf16.mxu1 %v10641_v9  ;;  %10239 = vmatprep.subr.bf16.mxu0 %v10238_v35 }
 0xea6   :  { %10265 = vmatpush1.bf16.msra.mxu1 %v10264_v2  ;;  %10241 = vmatpush3.bf16.msra.mxu0 %v10240_v36 }
 0xea7   :  { %10266 = vmatprep.subr.bf16.mxu1 %v10641_v9 }
 0xeaa   :  { %10268 = vmatpush1.bf16.msra.mxu1 %v10267_v43 }
 0xeab   :  { %10269 = vmatprep.subr.bf16.mxu1 %v10641_v9 }
 0xeae   :  { %10271 = vmatpush1.bf16.msra.mxu1 %v10270_v25 }
 0xeaf   :  { %10272 = vmatprep.subr.bf16.mxu1 %v10641_v9 }
 0xeb2   :  { %10274 = vmatpush1.bf16.msra.mxu1 %v10273_v50 }
 0xeb3   :  { %10275 = vmatprep.subr.bf16.mxu1 %v10641_v9 }
 0xeb6   :  { %10277 = vmatpush1.bf16.msra.mxu1 %v10276_v26 }
 0xeb7   :  { %10278 = vmatprep.subr.bf16.mxu1 %v10641_v9 }
 0xeba   :  { %10280 = vmatpush1.bf16.msra.mxu1 %v10279_v4 }
 0xebb   :  { %10281 = vmatprep.subr.bf16.mxu1 %v10641_v9 }
 0xebe   :  { %10283 = vmatpush1.bf16.msra.mxu1 %v10282_v23 }
 0xebf   :  { %10284 = vmatprep.subr.bf16.mxu1 %v10641_v9  ;;  %v6966_v9 = vld [vmem:[#allocation12] sm:$0xf] }
 0xec0   :  { %v6971_v54 = vrot.slane %v6966_v9, %v13704_v49  ;;  %v6979_v16 = vrot.slane %v6966_v9, %v13706_v10  ;;  %v6975_v45 = vrot.slane %v6966_v9, %v13707_v33  ;;  %v6983_v57 = vrot.slane %v6966_v9, %v13708_v56 }
 0xec2   :  { %10286 = vmatpush1.bf16.msra.mxu1 %v10285_v14 }
 0xec3   :  { %7204 = vmatprep.subr.mxu1 %v13677_v59 }
 0xec6   :  { %7373 = vmatpush1.msk.msra.mxu1 %vm7070_vm12, %v7058_v31 }
 0xf5c   :  { %v6886_v42 = vpop.f32.mrb[28].mxu0  ;;  %v6957_v47 = vpop.f32.mrb[26].mxu1 }
 0xf5d   :  { %v6988_v41 = vadd.f32 %v6971_v54, %v6886_v42  ;;  %v6990_v13 = vadd.f32 %v6979_v16, %v6957_v47  ;;  %v6888_v59 = vpop.f32.mrb[29].mxu0  ;;  %v6959_v3 = vpop.f32.mrb[27].mxu1 }
 0xf5e   :  { %v6989_v19 = vadd.f32 %v6975_v45, %v6888_v59  ;;  %v6991_v58 = vadd.f32 %v6983_v57, %v6959_v3 }
 0xf5f   :  { %v6992_v51 = vmax.f32 %v6988_v41, 0.0  ;;  %v6994_v62 = vmax.f32 %v6990_v13, 0.0 }
 0xf60   :  { %v6993_v34 = vmax.f32 %v6989_v19, 0.0  ;;  %v6995_v32 = vmax.f32 %v6991_v58, 0.0 }
 0xf62   :  { %7138 = vmatprep.mubr.f32.mxu0 %v6993_v34  ;;  %7374 = vmatprep.mubr.msk.f32.mxu1 %vm7066_vm13, %v6995_v32 }
 0xf63   :  { %7139 = vmatmul.mubr.f32.vlgmr.msra.gmra.mrb[38].mxu0 %v6992_v51  ;;  %7209 = vmatmul.mubr.f32.vlgmr.msra.gmra.mrb[36].mxu1 %v6994_v62 }
0x1036   :  { %v7407_v18 = vpop.f32.mrb[38].mxu0  ;;  %v7210_v20 = vpop.f32.mrb[36].mxu1 }
0x1037   :  { %v7408_v29 = vpop.f32.mrb[39].mxu0  ;;  %v7212_v39 = vpop.f32.mrb[37].mxu1 }
0x1038   :  { %v7409_v8 = vadd.f32 %v7408_v29, %v7407_v18 }
0x103a   :  { %v7141_v63 = vadd.f32 %v7409_v8, %v7372_v6 }
0x103c   :  { %v7211_v52 = vadd.f32 %v7210_v20, %v7141_v63 }
0x103e   :  { %v7215_v21 = vsel %vm7214_vm14, %v7211_v52, -inf }
0x103f   :  { %7216 = vmax.xlane.f32.xlu0 %v7215_v21 }
0x10cc   :  { %v7217_v61 = vpop.xlane.xlu0 %7216 }
0x10cd   :  { %v7218_v2 = vsub.f32 %v7211_v52, %v7217_v61 }
0x10cf   :  { %v7219_v11 = vmul.f32 1.442695, %v7218_v2 }
0x10d1   :  { %10386 = vpow2.f32 %v7219_v11 }
0x10db   :  { %v10387_v5 = vpop.eup %10386 }
0x10dc   :  { %v7221_v43 = vsel %vm7214_vm14, %v10387_v5, 0.0 }
0x10dd   :  { %7222 = vadd.xlane.f32.xlu1 %v7221_v43 }
0x116a   :  { %v7223_v38 = vpop.xlane.xlu1 %7222 }
0x116b   :  { %10388 = vlog2.f32 %v7223_v38 }
0x1175   :  { %v10389_v17 = vpop.eup %10388 }
0x1176   :  { %v7225_v25 = vmul.f32 0.6931472, %v10389_v17 }
0x1178   :  { %v7226_v22 = vsub.f32 %v7218_v2, %v7225_v25 }
0x117a   :  { %7227 = vst.msk [vmem:[#allocation17] sm:$0x3] %vm7214_vm14, %v7226_v22 }
0x117b   :  { %10597 = shalt.err (!%p10594_p12)
}
0x117c   :  { %s10598_s25 = scalar_lea.hbm %s13314_s9, 32 }
0x117d   :  { %p10599_p13 = scmp.ne.s32.totalorder %s13314_s9, %s10598_s25  ;;  %p10602_p0 = scmp.lt.u32.totalorder %s10598_s25, %s13314_s9 }
0x117f   :  { %p10604_p1 = pnand %p10602_p0, %p10599_p13 }
0x1181   :  { %10607 = shalt.err (!%p10604_p1)
}
0x1182   :  { %7237 = dma.vmem_to_hbm [thread:$0]  %s7235_s15, 32, %s13314_s9, [#allocation5]  }
0x1183   :  { %10618 = dma.done.wait [#allocation5], 32  }
0x1184   :  { %10619 = vsyncadd [#allocation5], 4294967264 }
0x1185   :  { %7241 = vsyncpa [#allocation4], 1 }
0x1186   :  { %7242 = vsyncpa [#allocation7], 1 }
0x1187   :  { %7243 = vsyncpa [#allocation10], 1 }
0x1188   :  { %7244 = vsyncpa [#allocation13], 1 }
0x1189   :  { %7245 = vsyncpa [#allocation16], 1 }
0x118a   :  { %7246 = vsyncpa [#allocation5], 1 }

</bundles_post_ra>
